<compile_context>
chip_gen: v6e
topology: v6e:2x2x1
jax: 0.10.0
libtpu: 0.0.40
codegen_flags: <defaults>
</compile_context>

<pallas_src>
from functools import partial

import jax
import jax.numpy as jnp
from jax.experimental import pallas as pl
from jax.experimental.pallas import tpu as pltpu


def _round_up(x, m):
    return (x + m - 1) // m * m


def _cross_attn_block_kernel(x1_ref, x2_ref, wq_ref, wkv_ref, wo_ref,
                             g1_ref, b1_ref, g2_ref, b2_ref, temp_ref,
                             o_ref, kn_s, v_s, *, num_heads: int):
    H = num_heads
    tq, C = x1_ref.shape                      # x1 q-tile [tq, C]  (leading batch dim squeezed)
    Lk = x2_ref.shape[0]                      # full kv length
    d = C // H

    def layer_norm(x, g, b):                  # torch nn.LayerNorm, eps=1e-5, affine
        mu = jnp.mean(x, axis=-1, keepdims=True)
        xc = x - mu
        var = jnp.mean(xc * xc, axis=-1, keepdims=True)
        return xc * jax.lax.rsqrt(var + 1e-5) * g + b

    def l2_normalize(x):                      # F.normalize(p=2, eps=1e-12): x / max(||x||, 1e-12)
        ss = jnp.sum(x * x, axis=-1, keepdims=True)
        return x * jax.lax.rsqrt(jnp.maximum(ss, 1e-24))

    # ---- K / V: computed once per batch element (first q tile), cached head-major in VMEM.
    @pl.when(pl.program_id(1) == 0)
    def _compute_kv():
        x2 = x2_ref[...].astype(jnp.float32)                                    # bf16 -> f32
        xn2 = layer_norm(x2, g2_ref[...], b2_ref[...]).astype(jnp.bfloat16)
        kv = jnp.dot(xn2, wkv_ref[...], preferred_element_type=jnp.float32)     # [Lk, 2C]
        k = kv[:, :C].reshape(Lk, H, d)                                          # [Lk, H, d]
        # Fold per-head temperature into kn once per batch (instead of scaling qn per tile).
        kn = l2_normalize(k) * temp_ref[...].reshape(1, H, 1)
        kn_s[...] = jnp.transpose(kn, (1, 2, 0)).astype(jnp.bfloat16)            # [H, d, Lk]
        v_s[...] = jnp.transpose(kv[:, C:].reshape(Lk, H, d), (1, 0, 2)).astype(jnp.bfloat16)

    # ---- Q path for this tile.
    x1 = x1_ref[...].astype(jnp.float32)                                         # [tq, C]
    xn1 = layer_norm(x1, g1_ref[...], b1_ref[...]).astype(jnp.bfloat16)
    q = jnp.dot(xn1, wq_ref[...], preferred_element_type=jnp.float32)            # [tq, C]
    qh = jnp.transpose(q.reshape(tq, H, d), (1, 0, 2))                           # [H, tq, d]
    qn = l2_normalize(qh).astype(jnp.bfloat16)

    # ---- Batched-head attention (MXU), stable softmax over the full key length.
    # kn_s is [H, d, Lk] (contraction dim already leading on the RHS -> no per-tile relayout).
    # TODO(synk): online (flash) softmax over kv chunks once Lk exceeds a few hundred.
    s = jnp.einsum('hqd,hdk->hqk', qn, kn_s[...],
                   preferred_element_type=jnp.float32)                           # [H, tq, Lk]
    s = s - jnp.max(s, axis=-1, keepdims=True)
    p = jnp.exp(s)
    p = p * pl.reciprocal(jnp.sum(p, axis=-1, keepdims=True), approx=True)
    o = jnp.einsum('hqk,hkd->hqd', p.astype(jnp.bfloat16), v_s[...],
                   preferred_element_type=jnp.float32)                           # [H, tq, d]

    # ---- Output projection without the head-merge relayout: Wo is pre-reshaped to [H, d, C],
    # so this is H accumulating MXU matmuls with lane-dense N=C, then a cheap leading-dim sum.
    o = jnp.einsum('hqd,hdc->hqc', o.astype(jnp.bfloat16), wo_ref[...],
                   preferred_element_type=jnp.float32)                           # [H, tq, C]
    o_ref[...] = (x1 + jnp.sum(o, axis=0)).astype(o_ref.dtype)                   # pre-norm residual


def spatial_cross_attention_block(x1, x2, params, *, num_heads, q_tile=None):
    B, Lq, C = x1.shape
    Lk = x2.shape[1]
    H = num_heads
    assert C % H == 0
    d = C // H

    # q tiling: default 256 (fills the v6e/v7x 256-wide MXU); pad Lq to a tile multiple and
    # slice the padded rows off the output (padded LN rows are finite and discarded).
    if q_tile is None:
        q_tile = 256
    q_tile = min(q_tile, _round_up(Lq, 8))
    Lq_pad = _round_up(Lq, q_tile)
    nq = Lq_pad // q_tile
    if Lq_pad != Lq:
        x1 = jnp.pad(x1, ((0, 0), (0, Lq_pad - Lq), (0, 0)))

    # bf16 weights/activations where they feed the MXU: half the VMEM/HBM traffic.
    wq = params["wq"].astype(jnp.bfloat16)
    wkv = params["wkv"].astype(jnp.bfloat16)              # fused [C, 2C]
    wo = params["wo"].reshape(H, d, C).astype(jnp.bfloat16)   # head-major [H, d, C]
    temp = params["temp"].reshape(H, 1, 1).astype(jnp.float32)
    x2_bf = x2.astype(jnp.bfloat16)                        # only read on the first q tile per batch

    def const_spec(shape):
        # Block index never changes -> single-buffer to halve resident VMEM for constants.
        nd = len(shape)
        return pl.BlockSpec(shape, lambda b, qi, _nd=nd: (0,) * _nd,
                            pipeline_mode=pl.Buffered(1))

    # VMEM budget: ~0.75x of the chip's per-core capacity (96 MiB v5e/v6e, 48 MiB v7x).
    try:
        vmem_cap = int(pltpu.get_tpu_info().vmem_capacity_bytes)
    except Exception:
        vmem_cap = 64 * 1024 * 1024
    vmem_limit = (3 * vmem_cap) // 4

    kernel = partial(_cross_attn_block_kernel, num_heads=H)
    out = pl.pallas_call(
        kernel,
        out_shape=jax.ShapeDtypeStruct((B, Lq_pad, C), x1.dtype),
        grid=(B, nq),
        in_specs=[
            pl.BlockSpec((pl.Squeezed(), q_tile, C), lambda b, qi: (b, qi, 0)),  # x1 q-tile
            pl.BlockSpec((pl.Squeezed(), Lk, C), lambda b, qi: (b, 0, 0)),       # x2 (full kv, bf16)
            const_spec((C, C)),          # Wq
            const_spec((C, 2 * C)),      # Wkv (fused k|v)
            const_spec((H, d, C)),       # Wo, head-major
            const_spec((1, C)),          # ln1 gamma
            const_spec((1, C)),          # ln1 beta
            const_spec((1, C)),          # ln2 gamma
            const_spec((1, C)),          # ln2 beta
            const_spec((H, 1, 1)),       # per-head temperature
        ],
        out_specs=pl.BlockSpec((pl.Squeezed(), q_tile, C), lambda b, qi: (b, qi, 0)),
        scratch_shapes=[
            pltpu.VMEM((H, d, Lk), jnp.bfloat16),   # normalized K (temp folded), [H, d, Lk]
            pltpu.VMEM((H, Lk, d), jnp.bfloat16),   # V, head-major
        ],
        compiler_params=pltpu.CompilerParams(
            # q-tile axis must stay "arbitrary": the pl.when(qi==0) KV cache is carried across it.
            dimension_semantics=("parallel", "arbitrary"),
            vmem_limit_bytes=vmem_limit,
        ),
    )(x1, x2_bf, wq, wkv, wo,
      params["g1"], params["b1"], params["g2"], params["b2"], temp)

    if Lq_pad != Lq:
        out = out[:, :Lq]
    return out


def reference_block(x1, x2, params, *, num_heads):
    """Pure-JAX (f32) replica of the PyTorch forward (3-D path) for validation."""
    def ln(x, g, b):
        mu = x.mean(-1, keepdims=True)
        var = ((x - mu) ** 2).mean(-1, keepdims=True)
        return (x - mu) / jnp.sqrt(var + 1e-5) * g + b

    B, L1, C = x1.shape
    L2 = x2.shape[1]
    d = C // num_heads
    xn1 = ln(x1, params["g1"][0], params["b1"][0])
    xn2 = ln(x2, params["g2"][0], params["b2"][0])
    q = xn1 @ params["wq"]
    kv = xn2 @ params["wkv"]
    k, v = kv[..., :C], kv[..., C:]

    def split_heads(t, L):  # b l (head c) -> b head l c
        return t.reshape(B, L, num_heads, d).transpose(0, 2, 1, 3)

    q, k, v = split_heads(q, L1), split_heads(k, L2), split_heads(v, L2)
    qn = q / jnp.maximum(jnp.sqrt((q * q).sum(-1, keepdims=True)), 1e-12)
    kn = k / jnp.maximum(jnp.sqrt((k * k).sum(-1, keepdims=True)), 1e-12)
    attn = jnp.einsum("bhld,bhmd->bhlm", qn, kn) * params["temp"][None]
    attn = jax.nn.softmax(attn, axis=-1)
    o = jnp.einsum("bhlm,bhmd->bhld", attn, v)
    o = o.transpose(0, 2, 1, 3).reshape(B, L1, C)
    return x1 + o @ params["wo"]


def init_params(key, input_dim, num_heads):
    ks = jax.random.split(key, 7)
    s = 1.0 / jnp.sqrt(jnp.float32(input_dim))
    return {
        # Linear weights stored [in, out] (y = x @ W); kv fused like nn.Linear(C, 2C).
        "wq": s * jax.random.normal(ks[0], (input_dim, input_dim), jnp.float32),
        "wkv": s * jax.random.normal(ks[1], (input_dim, 2 * input_dim), jnp.float32),
        "wo": s * jax.random.normal(ks[2], (input_dim, input_dim), jnp.float32),
        "g1": 1.0 + 0.1 * jax.random.normal(ks[3], (1, input_dim), jnp.float32),
        "b1": 0.05 * jax.random.normal(ks[4], (1, input_dim), jnp.float32),
        "g2": 1.0 + 0.1 * jax.random.normal(ks[5], (1, input_dim), jnp.float32),
        "b2": 0.05 * jax.random.normal(ks[6], (1, input_dim), jnp.float32),
        # nn.Parameter(torch.ones(num_heads, 1, 1)); perturbed to exercise per-head scaling
        "temp": (1.0 + 0.1 * jnp.arange(num_heads, dtype=jnp.float32)).reshape(num_heads, 1, 1),
    }


def _check(out, ref, tag):
    err = float(jnp.max(jnp.abs(out - ref)))
    scale = float(jnp.max(jnp.abs(ref)))
    # bf16 MXU operands (incl. bf16 x2) + approx reciprocal -> looser than a pure-f32 path.
    assert err / scale < 3e-2, f"{tag}: mismatch vs reference: abs={err}, rel={err / scale}"


if __name__ == "__main__":
    B, H_sp, W_sp = 2, 8, 8            # spatial 8x8 -> L = 64 tokens (B>=2 keeps both v7x cores busy)
    C, num_heads = 128, 4              # lane-dense channel dim (multiple of 128), head dim 32
    L = H_sp * W_sp

    key = jax.random.PRNGKey(0)
    k1, k2, k3, k4, kp = jax.random.split(key, 5)
    x1 = jax.random.normal(k1, (B, L, C), jnp.float32)
    x2 = jax.random.normal(k2, (B, L, C), jnp.float32)
    params = init_params(kp, C, num_heads)

    # Test 1: q_tile=32 -> 2 q tiles per batch element: exercises the cached-KV (pl.when) path.
    out = spatial_cross_attention_block(x1, x2, params, num_heads=num_heads, q_tile=32)
    out = jax.block_until_ready(out)
    assert out.shape == (B, L, C) and out.dtype == jnp.float32
    _check(out, reference_block(x1, x2, params, num_heads=num_heads), "tiled")

    # Test 2: non-multiple-of-8 query/kv length -> exercises the padded-tail path (default q_tile).
    L2 = 60
    x1b = jax.random.normal(k3, (B, L2, C), jnp.float32)
    x2b = jax.random.normal(k4, (B, L2, C), jnp.float32)
    out2 = spatial_cross_attention_block(x1b, x2b, params, num_heads=num_heads)
    out2 = jax.block_until_ready(out2)
    assert out2.shape == (B, L2, C)
    _check(out2, reference_block(x1b, x2b, params, num_heads=num_heads), "padded")

    print("KERNEL_OK")
</pallas_src>

<mosaic_0001>
module attributes {stable_mosaic.version = 11 : i64} {
  func.func @_cross_attn_block_kernel(%arg0: i32, %arg1: i32, %arg2: memref<1x32x128xf32, #tpu.memory_space<vmem>>, %arg3: memref<1x64x128xbf16, #tpu.memory_space<vmem>>, %arg4: memref<128x128xbf16, #tpu.memory_space<vmem>>, %arg5: memref<128x256xbf16, #tpu.memory_space<vmem>>, %arg6: memref<4x32x128xbf16, #tpu.memory_space<vmem>>, %arg7: memref<1x128xf32, #tpu.memory_space<vmem>>, %arg8: memref<1x128xf32, #tpu.memory_space<vmem>>, %arg9: memref<1x128xf32, #tpu.memory_space<vmem>>, %arg10: memref<1x128xf32, #tpu.memory_space<vmem>>, %arg11: memref<4x1x1xf32, #tpu.memory_space<vmem>>, %arg12: memref<1x32x128xf32, #tpu.memory_space<vmem>>, %arg13: memref<4x32x64xbf16, #tpu.memory_space<vmem>>, %arg14: memref<4x64x32xbf16, #tpu.memory_space<vmem>>) attributes {dimension_semantics = [#tpu.dimension_semantics<parallel>, #tpu.dimension_semantics<arbitrary>], iteration_bounds = array<i64: 2, 2>, scalar_prefetch = 0 : i64, scratch_operands = 2 : i64, tpu.core_type = #tpu.core_type<tc>, window_params = [{transform_indices = @transform_0, window_bounds = array<i64: 1, 32, 128>}, {transform_indices = @transform_1, window_bounds = array<i64: 1, 64, 128>}, {pipeline_mode = #tpu.pipeline_mode<synchronous>, transform_indices = @transform_2, window_bounds = array<i64: 128, 128>}, {pipeline_mode = #tpu.pipeline_mode<synchronous>, transform_indices = @transform_3, window_bounds = array<i64: 128, 256>}, {pipeline_mode = #tpu.pipeline_mode<synchronous>, transform_indices = @transform_4, window_bounds = array<i64: 4, 32, 128>}, {pipeline_mode = #tpu.pipeline_mode<synchronous>, transform_indices = @transform_5, window_bounds = array<i64: 1, 128>}, {pipeline_mode = #tpu.pipeline_mode<synchronous>, transform_indices = @transform_6, window_bounds = array<i64: 1, 128>}, {pipeline_mode = #tpu.pipeline_mode<synchronous>, transform_indices = @transform_7, window_bounds = array<i64: 1, 128>}, {pipeline_mode = #tpu.pipeline_mode<synchronous>, transform_indices = @transform_8, window_bounds = array<i64: 1, 128>}, {pipeline_mode = #tpu.pipeline_mode<synchronous>, transform_indices = @transform_9, window_bounds = array<i64: 4, 1, 1>}, {transform_indices = @transform_10, window_bounds = array<i64: 1, 32, 128>}]} {
    %c0_i32 = arith.constant 0 : i32
    %0 = arith.cmpi eq, %arg1, %c0_i32 : i32
    %1 = arith.extui %0 : i1 to i32
    %c0_i32_0 = arith.constant 0 : i32
    %2 = arith.cmpi ne, %1, %c0_i32_0 : i32
    scf.if %2 {
      %c0_34 = arith.constant 0 : index
      %c0_35 = arith.constant 0 : index
      %c0_36 = arith.constant 0 : index
      %64 = vector.load %arg3[%c0_34, %c0_35, %c0_36] : memref<1x64x128xbf16, #tpu.memory_space<vmem>>, vector<1x64x128xbf16>
      %65 = vector.shape_cast %64 : vector<1x64x128xbf16> to vector<64x128xbf16>
      %66 = arith.extf %65 : vector<64x128xbf16> to vector<64x128xf32>
      %c0_37 = arith.constant 0 : index
      %c0_38 = arith.constant 0 : index
      %67 = vector.load %arg9[%c0_37, %c0_38] : memref<1x128xf32, #tpu.memory_space<vmem>>, vector<1x128xf32>
      %c0_39 = arith.constant 0 : index
      %c0_40 = arith.constant 0 : index
      %68 = vector.load %arg10[%c0_39, %c0_40] : memref<1x128xf32, #tpu.memory_space<vmem>>, vector<1x128xf32>
      %cst_41 = arith.constant dense<0.000000e+00> : vector<64xf32>
      %69 = vector.multi_reduction <add>, %66, %cst_41 [1] : vector<64x128xf32> to vector<64xf32>
      %70 = vector.shape_cast %69 : vector<64xf32> to vector<64x1xf32>
      %cst_42 = arith.constant 1.280000e+02 : f32
      %71 = vector.broadcast %cst_42 : f32 to vector<64x1xf32>
      %72 = arith.divf %70, %71 : vector<64x1xf32>
      %73 = vector.broadcast %72 : vector<64x1xf32> to vector<64x128xf32>
      %74 = arith.subf %66, %73 : vector<64x128xf32>
      %75 = arith.mulf %74, %74 : vector<64x128xf32>
      %cst_43 = arith.constant dense<0.000000e+00> : vector<64xf32>
      %76 = vector.multi_reduction <add>, %75, %cst_43 [1] : vector<64x128xf32> to vector<64xf32>
      %77 = vector.shape_cast %76 : vector<64xf32> to vector<64x1xf32>
      %cst_44 = arith.constant 1.280000e+02 : f32
      %78 = vector.broadcast %cst_44 : f32 to vector<64x1xf32>
      %79 = arith.divf %77, %78 : vector<64x1xf32>
      %cst_45 = arith.constant 9.99999974E-6 : f32
      %80 = vector.broadcast %cst_45 : f32 to vector<64x1xf32>
      %81 = arith.addf %79, %80 : vector<64x1xf32>
      %82 = math.rsqrt %81 : vector<64x1xf32>
      %83 = vector.broadcast %82 : vector<64x1xf32> to vector<64x128xf32>
      %84 = arith.mulf %74, %83 : vector<64x128xf32>
      %85 = vector.broadcast %67 : vector<1x128xf32> to vector<64x128xf32>
      %86 = arith.mulf %84, %85 : vector<64x128xf32>
      %87 = vector.broadcast %68 : vector<1x128xf32> to vector<64x128xf32>
      %88 = arith.addf %86, %87 : vector<64x128xf32>
      %89 = arith.truncf %88 : vector<64x128xf32> to vector<64x128xbf16>
      %c0_46 = arith.constant 0 : index
      %c0_47 = arith.constant 0 : index
      %90 = vector.load %arg5[%c0_46, %c0_47] : memref<128x256xbf16, #tpu.memory_space<vmem>>, vector<128x256xbf16>
      %cst_48 = arith.constant dense<0.000000e+00> : vector<64x256xf32>
      %91 = tpu.matmul %89, %90, %cst_48 {dimension_numbers = #tpu.dot_dimension_numbers<[1], [0], [0], [1], [0, 0, 1, 1], [], []>} : vector<64x128xbf16>, vector<128x256xbf16>, vector<64x256xf32> -> vector<64x256xf32>
      %92 = vector.extract_strided_slice %91 {offsets = [0, 0], sizes = [64, 128], strides = [1, 1]} : vector<64x256xf32> to vector<64x128xf32>
      %93 = vector.shape_cast %92 : vector<64x128xf32> to vector<64x4x32xf32>
      %94 = arith.mulf %93, %93 : vector<64x4x32xf32>
      %cst_49 = arith.constant dense<0.000000e+00> : vector<64x4xf32>
      %95 = vector.multi_reduction <add>, %94, %cst_49 [2] : vector<64x4x32xf32> to vector<64x4xf32>
      %96 = vector.shape_cast %95 : vector<64x4xf32> to vector<64x4x1xf32>
      %cst_50 = arith.constant 1.000000e-24 : f32
      %97 = vector.broadcast %cst_50 : f32 to vector<64x4x1xf32>
      %98 = arith.maximumf %96, %97 : vector<64x4x1xf32>
      %99 = math.rsqrt %98 : vector<64x4x1xf32>
      %100 = vector.broadcast %99 : vector<64x4x1xf32> to vector<64x4x32xf32>
      %101 = arith.mulf %93, %100 : vector<64x4x32xf32>
      %c0_51 = arith.constant 0 : index
      %c0_52 = arith.constant 0 : index
      %c0_53 = arith.constant 0 : index
      %102 = vector.load %arg11[%c0_51, %c0_52, %c0_53] : memref<4x1x1xf32, #tpu.memory_space<vmem>>, vector<4x1x1xf32>
      %103 = vector.shape_cast %102 : vector<4x1x1xf32> to vector<1x4x1xf32>
      %104 = vector.broadcast %103 : vector<1x4x1xf32> to vector<64x4x32xf32>
      %105 = arith.mulf %101, %104 : vector<64x4x32xf32>
      %106 = tpu.transpose %105, [1, 2, 0] : vector<64x4x32xf32> -> vector<4x32x64xf32>
      %107 = arith.truncf %106 : vector<4x32x64xf32> to vector<4x32x64xbf16>
      %c0_54 = arith.constant 0 : index
      %c0_55 = arith.constant 0 : index
      %c0_56 = arith.constant 0 : index
      %108 = vector.load %arg13[%c0_54, %c0_55, %c0_56] : memref<4x32x64xbf16, #tpu.memory_space<vmem>>, vector<4x32x64xbf16>
      tpu.vector_store %arg13[%c0_54, %c0_55, %c0_56], %107 {strides = array<i32>} : memref<4x32x64xbf16, #tpu.memory_space<vmem>>, vector<4x32x64xbf16>,
      %109 = vector.extract_strided_slice %91 {offsets = [0, 128], sizes = [64, 128], strides = [1, 1]} : vector<64x256xf32> to vector<64x128xf32>
      %110 = vector.shape_cast %109 : vector<64x128xf32> to vector<64x4x32xf32>
      %111 = tpu.transpose %110, [1, 0, 2] : vector<64x4x32xf32> -> vector<4x64x32xf32>
      %112 = arith.truncf %111 : vector<4x64x32xf32> to vector<4x64x32xbf16>
      %c0_57 = arith.constant 0 : index
      %c0_58 = arith.constant 0 : index
      %c0_59 = arith.constant 0 : index
      %113 = vector.load %arg14[%c0_57, %c0_58, %c0_59] : memref<4x64x32xbf16, #tpu.memory_space<vmem>>, vector<4x64x32xbf16>
      tpu.vector_store %arg14[%c0_57, %c0_58, %c0_59], %112 {strides = array<i32>} : memref<4x64x32xbf16, #tpu.memory_space<vmem>>, vector<4x64x32xbf16>,
    } else {
    }
    %c0 = arith.constant 0 : index
    %c0_1 = arith.constant 0 : index
    %c0_2 = arith.constant 0 : index
    %3 = vector.load %arg2[%c0, %c0_1, %c0_2] : memref<1x32x128xf32, #tpu.memory_space<vmem>>, vector<1x32x128xf32>
    %4 = vector.shape_cast %3 : vector<1x32x128xf32> to vector<32x128xf32>
    %c0_3 = arith.constant 0 : index
    %c0_4 = arith.constant 0 : index
    %5 = vector.load %arg7[%c0_3, %c0_4] : memref<1x128xf32, #tpu.memory_space<vmem>>, vector<1x128xf32>
    %c0_5 = arith.constant 0 : index
    %c0_6 = arith.constant 0 : index
    %6 = vector.load %arg8[%c0_5, %c0_6] : memref<1x128xf32, #tpu.memory_space<vmem>>, vector<1x128xf32>
    %cst = arith.constant dense<0.000000e+00> : vector<32xf32>
    %7 = vector.multi_reduction <add>, %4, %cst [1] : vector<32x128xf32> to vector<32xf32>
    %8 = vector.shape_cast %7 : vector<32xf32> to vector<32x1xf32>
    %cst_7 = arith.constant 1.280000e+02 : f32
    %9 = vector.broadcast %cst_7 : f32 to vector<32x1xf32>
    %10 = arith.divf %8, %9 : vector<32x1xf32>
    %11 = vector.broadcast %10 : vector<32x1xf32> to vector<32x128xf32>
    %12 = arith.subf %4, %11 : vector<32x128xf32>
    %13 = arith.mulf %12, %12 : vector<32x128xf32>
    %cst_8 = arith.constant dense<0.000000e+00> : vector<32xf32>
    %14 = vector.multi_reduction <add>, %13, %cst_8 [1] : vector<32x128xf32> to vector<32xf32>
    %15 = vector.shape_cast %14 : vector<32xf32> to vector<32x1xf32>
    %cst_9 = arith.constant 1.280000e+02 : f32
    %16 = vector.broadcast %cst_9 : f32 to vector<32x1xf32>
    %17 = arith.divf %15, %16 : vector<32x1xf32>
    %cst_10 = arith.constant 9.99999974E-6 : f32
    %18 = vector.broadcast %cst_10 : f32 to vector<32x1xf32>
    %19 = arith.addf %17, %18 : vector<32x1xf32>
    %20 = math.rsqrt %19 : vector<32x1xf32>
    %21 = vector.broadcast %20 : vector<32x1xf32> to vector<32x128xf32>
    %22 = arith.mulf %12, %21 : vector<32x128xf32>
    %23 = vector.broadcast %5 : vector<1x128xf32> to vector<32x128xf32>
    %24 = arith.mulf %22, %23 : vector<32x128xf32>
    %25 = vector.broadcast %6 : vector<1x128xf32> to vector<32x128xf32>
    %26 = arith.addf %24, %25 : vector<32x128xf32>
    %27 = arith.truncf %26 : vector<32x128xf32> to vector<32x128xbf16>
    %c0_11 = arith.constant 0 : index
    %c0_12 = arith.constant 0 : index
    %28 = vector.load %arg4[%c0_11, %c0_12] : memref<128x128xbf16, #tpu.memory_space<vmem>>, vector<128x128xbf16>
    %cst_13 = arith.constant dense<0.000000e+00> : vector<32x128xf32>
    %29 = tpu.matmul %27, %28, %cst_13 {dimension_numbers = #tpu.dot_dimension_numbers<[1], [0], [0], [1], [0, 0, 1, 1], [], []>} : vector<32x128xbf16>, vector<128x128xbf16>, vector<32x128xf32> -> vector<32x128xf32>
    %30 = vector.shape_cast %29 : vector<32x128xf32> to vector<32x4x32xf32>
    %31 = tpu.transpose %30, [1, 0, 2] : vector<32x4x32xf32> -> vector<4x32x32xf32>
    %32 = arith.mulf %31, %31 : vector<4x32x32xf32>
    %cst_14 = arith.constant dense<0.000000e+00> : vector<4x32xf32>
    %33 = vector.multi_reduction <add>, %32, %cst_14 [2] : vector<4x32x32xf32> to vector<4x32xf32>
    %34 = vector.shape_cast %33 : vector<4x32xf32> to vector<4x32x1xf32>
    %cst_15 = arith.constant 1.000000e-24 : f32
    %35 = vector.broadcast %cst_15 : f32 to vector<4x32x1xf32>
    %36 = arith.maximumf %34, %35 : vector<4x32x1xf32>
    %37 = math.rsqrt %36 : vector<4x32x1xf32>
    %38 = vector.broadcast %37 : vector<4x32x1xf32> to vector<4x32x32xf32>
    %39 = arith.mulf %31, %38 : vector<4x32x32xf32>
    %40 = arith.truncf %39 : vector<4x32x32xf32> to vector<4x32x32xbf16>
    %c0_16 = arith.constant 0 : index
    %c0_17 = arith.constant 0 : index
    %c0_18 = arith.constant 0 : index
    %41 = vector.load %arg13[%c0_16, %c0_17, %c0_18] : memref<4x32x64xbf16, #tpu.memory_space<vmem>>, vector<4x32x64xbf16>
    "tpu.trace_start"() <{level = 10 : i32, message = "hqd,hdk->hqk"}> : () -> ()
    %cst_19 = arith.constant dense<0.000000e+00> : vector<4x32x64xf32>
    %42 = tpu.matmul %40, %41, %cst_19 {dimension_numbers = #tpu.dot_dimension_numbers<[2], [1], [1], [2], [0, 0, 0, 1, 1, 2], [0], [0]>} : vector<4x32x32xbf16>, vector<4x32x64xbf16>, vector<4x32x64xf32> -> vector<4x32x64xf32>
    "tpu.trace_stop"() : () -> ()
    %cst_20 = arith.constant dense<0xFF800000> : vector<4x32xf32>
    %43 = vector.multi_reduction <maximumf>, %42, %cst_20 [2] : vector<4x32x64xf32> to vector<4x32xf32>
    %44 = vector.shape_cast %43 : vector<4x32xf32> to vector<4x32x1xf32>
    %45 = vector.broadcast %44 : vector<4x32x1xf32> to vector<4x32x64xf32>
    %46 = arith.subf %42, %45 : vector<4x32x64xf32>
    %47 = math.exp %46 : vector<4x32x64xf32>
    %cst_21 = arith.constant dense<0.000000e+00> : vector<4x32xf32>
    %48 = vector.multi_reduction <add>, %47, %cst_21 [2] : vector<4x32x64xf32> to vector<4x32xf32>
    %49 = vector.shape_cast %48 : vector<4x32xf32> to vector<4x32x1xf32>
    %50 = tpu.reciprocal %49 {approx = true} : vector<4x32x1xf32> -> vector<4x32x1xf32>
    %51 = vector.broadcast %50 : vector<4x32x1xf32> to vector<4x32x64xf32>
    %52 = arith.mulf %47, %51 : vector<4x32x64xf32>
    %53 = arith.truncf %52 : vector<4x32x64xf32> to vector<4x32x64xbf16>
    %c0_22 = arith.constant 0 : index
    %c0_23 = arith.constant 0 : index
    %c0_24 = arith.constant 0 : index
    %54 = vector.load %arg14[%c0_22, %c0_23, %c0_24] : memref<4x64x32xbf16, #tpu.memory_space<vmem>>, vector<4x64x32xbf16>
    "tpu.trace_start"() <{level = 10 : i32, message = "hqk,hkd->hqd"}> : () -> ()
    %cst_25 = arith.constant dense<0.000000e+00> : vector<4x32x32xf32>
    %55 = tpu.matmul %53, %54, %cst_25 {dimension_numbers = #tpu.dot_dimension_numbers<[2], [1], [1], [2], [0, 0, 0, 1, 1, 2], [0], [0]>} : vector<4x32x64xbf16>, vector<4x64x32xbf16>, vector<4x32x32xf32> -> vector<4x32x32xf32>
    "tpu.trace_stop"() : () -> ()
    %56 = arith.truncf %55 : vector<4x32x32xf32> to vector<4x32x32xbf16>
    %c0_26 = arith.constant 0 : index
    %c0_27 = arith.constant 0 : index
    %c0_28 = arith.constant 0 : index
    %57 = vector.load %arg6[%c0_26, %c0_27, %c0_28] : memref<4x32x128xbf16, #tpu.memory_space<vmem>>, vector<4x32x128xbf16>
    "tpu.trace_start"() <{level = 10 : i32, message = "hqd,hdc->hqc"}> : () -> ()
    %cst_29 = arith.constant dense<0.000000e+00> : vector<4x32x128xf32>
    %58 = tpu.matmul %56, %57, %cst_29 {dimension_numbers = #tpu.dot_dimension_numbers<[2], [1], [1], [2], [0, 0, 0, 1, 1, 2], [0], [0]>} : vector<4x32x32xbf16>, vector<4x32x128xbf16>, vector<4x32x128xf32> -> vector<4x32x128xf32>
    "tpu.trace_stop"() : () -> ()
    %cst_30 = arith.constant dense<0.000000e+00> : vector<32x128xf32>
    %59 = vector.multi_reduction <add>, %58, %cst_30 [0] : vector<4x32x128xf32> to vector<32x128xf32>
    %60 = arith.addf %4, %59 : vector<32x128xf32>
    %c0_31 = arith.constant 0 : index
    %c0_32 = arith.constant 0 : index
    %c0_33 = arith.constant 0 : index
    %61 = vector.load %arg12[%c0_31, %c0_32, %c0_33] : memref<1x32x128xf32, #tpu.memory_space<vmem>>, vector<1x32x128xf32>
    %62 = vector.shape_cast %61 : vector<1x32x128xf32> to vector<32x128xf32>
    %63 = vector.shape_cast %60 : vector<32x128xf32> to vector<1x32x128xf32>
    tpu.vector_store %arg12[%c0_31, %c0_32, %c0_33], %63 {strides = array<i32>} : memref<1x32x128xf32, #tpu.memory_space<vmem>>, vector<1x32x128xf32>,
    return
  }
  func.func @transform_0(%arg0: i32, %arg1: i32) -> (i32, i32, i32) {
    %c0_i32 = arith.constant 0 : i32
    %c0_i32_0 = arith.constant 0 : i32
    return %arg0, %arg1, %c0_i32 : i32, i32, i32
  }
  func.func @transform_1(%arg0: i32, %arg1: i32) -> (i32, i32, i32) {
    %c0_i32 = arith.constant 0 : i32
    %c0_i32_0 = arith.constant 0 : i32
    %c0_i32_1 = arith.constant 0 : i32
    return %arg0, %c0_i32, %c0_i32_0 : i32, i32, i32
  }
  func.func @transform_2(%arg0: i32, %arg1: i32) -> (i32, i32) {
    %c0_i32 = arith.constant 0 : i32
    %c0_i32_0 = arith.constant 0 : i32
    %c0_i32_1 = arith.constant 0 : i32
    return %c0_i32, %c0_i32_0 : i32, i32
  }
  func.func @transform_3(%arg0: i32, %arg1: i32) -> (i32, i32) {
    %c0_i32 = arith.constant 0 : i32
    %c0_i32_0 = arith.constant 0 : i32
    %c0_i32_1 = arith.constant 0 : i32
    return %c0_i32, %c0_i32_0 : i32, i32
  }
  func.func @transform_4(%arg0: i32, %arg1: i32) -> (i32, i32, i32) {
    %c0_i32 = arith.constant 0 : i32
    %c0_i32_0 = arith.constant 0 : i32
    %c0_i32_1 = arith.constant 0 : i32
    %c0_i32_2 = arith.constant 0 : i32
    return %c0_i32, %c0_i32_0, %c0_i32_1 : i32, i32, i32
  }
  func.func @transform_5(%arg0: i32, %arg1: i32) -> (i32, i32) {
    %c0_i32 = arith.constant 0 : i32
    %c0_i32_0 = arith.constant 0 : i32
    %c0_i32_1 = arith.constant 0 : i32
    return %c0_i32, %c0_i32_0 : i32, i32
  }
  func.func @transform_6(%arg0: i32, %arg1: i32) -> (i32, i32) {
    %c0_i32 = arith.constant 0 : i32
    %c0_i32_0 = arith.constant 0 : i32
    %c0_i32_1 = arith.constant 0 : i32
    return %c0_i32, %c0_i32_0 : i32, i32
  }
  func.func @transform_7(%arg0: i32, %arg1: i32) -> (i32, i32) {
    %c0_i32 = arith.constant 0 : i32
    %c0_i32_0 = arith.constant 0 : i32
    %c0_i32_1 = arith.constant 0 : i32
    return %c0_i32, %c0_i32_0 : i32, i32
  }
  func.func @transform_8(%arg0: i32, %arg1: i32) -> (i32, i32) {
    %c0_i32 = arith.constant 0 : i32
    %c0_i32_0 = arith.constant 0 : i32
    %c0_i32_1 = arith.constant 0 : i32
    return %c0_i32, %c0_i32_0 : i32, i32
  }
  func.func @transform_9(%arg0: i32, %arg1: i32) -> (i32, i32, i32) {
    %c0_i32 = arith.constant 0 : i32
    %c0_i32_0 = arith.constant 0 : i32
    %c0_i32_1 = arith.constant 0 : i32
    %c0_i32_2 = arith.constant 0 : i32
    return %c0_i32, %c0_i32_0, %c0_i32_1 : i32, i32, i32
  }
  func.func @transform_10(%arg0: i32, %arg1: i32) -> (i32, i32, i32) {
    %c0_i32 = arith.constant 0 : i32
    %c0_i32_0 = arith.constant 0 : i32
    return %arg0, %arg1, %c0_i32 : i32, i32, i32
  }
}

</mosaic_0001>

<bundles_post_ra>
// kernel: tpu_custom_call.1
= control target key start
LH: loop header
LB: loop body
LE: loop exit
PB: predicated region body
PF: predicated region fallthrough
CT: control target
= control target key end

     0   :  { %s19529_s0 = inlined_call_operand.hbm [shape: f32[2,64,128], index: 0, kind: input, shape index: {}]   ;;  %s19530_s1 = inlined_call_operand.hbm [shape: bf16[2,64,128], index: 1, kind: input, shape index: {}]   ;;  %s19531_s2 = inlined_call_operand.hbm [shape: bf16[128,128], index: 2, kind: input, shape index: {}]   ;;  %s19532_s3 = inlined_call_operand.hbm [shape: bf16[128,256], index: 3, kind: input, shape index: {}]   ;;  %s19533_s4 = inlined_call_operand.hbm [shape: bf16[4,32,128], index: 4, kind: input, shape index: {}]   ;;  %s19534_s5 = inlined_call_operand.vmem [shape: f32[1,128], index: 5, kind: input, shape index: {}]   ;;  %s19535_s6 = inlined_call_operand.vmem [shape: f32[1,128], index: 6, kind: input, shape index: {}]   ;;  %s19536_s7 = inlined_call_operand.vmem [shape: f32[1,128], index: 7, kind: input, shape index: {}]   ;;  %s19537_s8 = inlined_call_operand.vmem [shape: f32[1,128], index: 8, kind: input, shape index: {}]   ;;  %s19538_s9 = inlined_call_operand.vmem [shape: f32[4,1,1], index: 9, kind: input, shape index: {}]   ;;  %s19539_s10 = inlined_call_operand.hbm [shape: f32[2,64,128], index: 10, kind: output, shape index: {}]  }
   0x1   :  { %19956 = sst [smem:[#allocation236_spill]] %s19531_s2 }
   0x2   :  { %19957 = sst [smem:[#allocation237_spill]] %s19532_s3 }
   0x3   :  { %19958 = sst [smem:[#allocation238_spill]] %s19533_s4 }
   0x4   :  { %19959 = sst [smem:[#allocation239_spill]] %s19534_s5 }
   0x5   :  { %19960 = sst [smem:[#allocation240_spill]] %s19535_s6 }
   0x6   :  { %19961 = sst [smem:[#allocation241_spill]] %s19536_s7 }
   0x7   :  { %19962 = sst [smem:[#allocation242_spill]] %s19537_s8 }
   0x8   :  { %19963 = sst [smem:[#allocation243_spill]] %s19538_s9 }
   0x9   :  { %19964 = sst [smem:[#allocation244_spill]] %s19539_s10 }
   0xa   :  { %15 = vsyncpa [#allocation5], 0 }
   0xb   :  { %17 = vsyncpa [#allocation5 + $0x1], 0 }
   0xc   :  { %18 = vsyncpa [#allocation8], 0 }
   0xd   :  { %20 = vsyncpa [#allocation8 + $0x1], 0 }
   0xe   :  { %21 = vsyncpa [#allocation11], 0 }
   0xf   :  { %22 = vsyncpa [#allocation6], 0 }
  0x10   :  { %24 = vsyncpa [#allocation6 + $0x1], 0  ;;  %s14571_s13 = smov 0   ;;  %s14573_s14 = smov 0  }
  0x11   :  { %s14575_s15 = smov 0   ;;  %s14577_s16 = smov 0  }
  0x12   :  { %s14579_s17 = smov 0   ;;  %s14581_s18 = smov 0  }
  0x13   :  { %s14583_s19 = smov 0   ;;  %s14585_s20 = smov 0  }
  0x14   :  { %s14587_s21 = smov 0   ;;  %s14589_s22 = smov 0  }
  0x15   :  { %s14591_s23 = smov 0  }
  0x16 LB: > { %19965 = sst [smem:[#allocation19_spill]] %s14461_s16  ;;  %s14625_s24 = sadd.s32 4294967295, %s14489_s23   ;;  %s14489_s23 = sphi %s14591_s23, %s30_s23   ;;  %s14485_s22 = sphi %s14589_s22, %s20780_s22   ;;  %s14481_s21 = sphi %s14587_s21, %s20771_s21   ;;  %s14477_s20 = sphi %s14585_s20, %s20779_s20   ;;  %s14473_s19 = sphi %s14583_s19, %s20770_s19   ;;  %s14469_s18 = sphi %s14581_s18, %s20778_s18   ;;  %s14465_s17 = sphi %s14579_s17, %s20777_s17   ;;  %s14461_s16 = sphi %s14577_s16, %s20776_s16   ;;  %s14457_s15 = sphi %s14575_s15, %s20775_s15   ;;  %s14453_s14 = sphi %s14573_s14, %s20774_s14   ;;  %s14449_s13 = sphi %s14571_s13, %s20773_s13  }
  0x17   : > { %19966 = sst [smem:[#allocation20_spill]] %s14473_s19  ;;  %s13283_s25 = sadd.s32 4294967294, %s14489_s23  }
  0x18   : > { %19967 = sst [smem:[#allocation21_spill]] %s14477_s20  ;;  %p64_p0 = scmp.ne.s32.totalorder %s14465_s17, %s14461_s16 }
  0x19   : > { %19968 = sst [smem:[#allocation22_spill]] %s14481_s21  ;;  %p19557_p1 = scmp.eq.s32.totalorder %s14625_s24, 0 }
  0x1a   : > { %p90_p2 = scmp.ne.s32.totalorder %s14453_s14, %s14449_s13  ;;  %p290_p5 = scmp.eq.s32.totalorder %s13283_s25, 3 }
  0x1b   : > { %p14635_p4 = por %p19557_p1, %p64_p0  ;;  %p13284_p7 = scmp.ge.s32.totalorder %s14489_s23, 1 }
  0x1c   : > { %p14641_p6 = por %p90_p2, %p19557_p1  ;;  %p14646_p8 = por %p290_p5, %p64_p0 }
  0x1d   : > { %p297_p9 = scmp.lt.s32.totalorder %s14489_s23, 5  ;;  %s14491_s30 = smov [#allocation9]  }
  0x1e   : > { %s19970_s27 = scalar_select %p14641_p6, 1, 0 }
  0x1f   : > { %s19972_s28 = scalar_select %p14646_p8, 1, 0 }
  0x20   : > { %19971 = sst [smem:[#allocation23_spill]] %s19970_s27  ;;  %p14651_p10 = pnand %p13284_p7, %p297_p9 }
  0x21   : > { %19973 = sst [smem:[#allocation24_spill]] %s19972_s28  ;;  %s309_s11 = sshll.u32 %s14491_s30, 4  ;;  %s310_s11 = int_to_ptr.vmem [resolvable:$true] %s309_s11 }
  0x22   : > { %p13766_p11 = pneg %p14651_p10  ;;  %s14492_s13 = smov [#allocation10]  }
  0x23   : > { %s322_s25 = sshll.u32 %s14492_s13, 4  ;;  %s14234_s28 = scalar_lea.vmem %s310_s11, 1024  ;;  %s323_s25 = int_to_ptr.vmem [resolvable:$true] %s322_s25 }
  0x24   : > { %p14659_p12 = pnand %p13766_p11, %p19557_p1  ;;  %p14235_p0 = scmp.ne.s32.totalorder %s310_s11, %s14234_s28 }
  0x25   : > { %p14242_p7 = scmp.lt.s32.totalorder %s310_s11, %s310_s11  ;;  %p14243_p9 = scmp.lt.s32.totalorder %s14234_s28, %s14234_s28 }
  0x26   : > { %p14225_p13 = pneg %p14659_p12 }
  0x27   : > { %p14244_p3 = por %p14243_p9, %p14242_p7 }
  0x28   : > { %p14237_p2 = pnand %p14235_p0, %p14225_p13 }
  0x2a   : > { %p14238_p5 = pneg %p14237_p2 }
  0x2c   : > { %p14245_p11 = pnand %p14244_p3, %p14238_p5 }
  0x2e   : > { %14248 = shalt.err (!%p14245_p11)
}
  0x2f   : > { %s19543_s30 = smov 64   ;;  %s19545_s16 = smov 4  }
  0x30   : > { %s19976_s2 = sld [smem:[#allocation236_spill]]  ;;  %s14260_s20 = scalar_lea.vmem %s323_s25, 2048 }
  0x31   : > { %p14261_p0 = scmp.ne.s32.totalorder %s323_s25, %s14260_s20  ;;  %p14268_p3 = scmp.lt.s32.totalorder %s323_s25, %s323_s25 }
  0x32   : > { %p14269_p5 = scmp.lt.s32.totalorder %s14260_s20, %s14260_s20 }
  0x33   : > { %p14263_p2 = pnand %p14261_p0, %p14225_p13 }
  0x34   : > { %p14270_p9 = por %p14269_p5, %p14268_p3 }
  0x35   : > { %p14264_p7 = pneg %p14263_p2 }
  0x36   : > { %13769 = dma.hbm_to_vmem [thread:$0]  (!%p14659_p12), %s19976_s2, 1024, %s310_s11, [#allocation8], %s19543_s30, %s19543_s30, %s19545_s16  }
  0x37   : > { %p14271_p11 = pnand %p14270_p9, %p14264_p7 }
  0x39   : > { %14274 = shalt.err (!%p14271_p11)
}
  0x3a   : > { %s19547_s28 = smov 128   ;;  %s19548_s6 = smov 8  }
  0x3b   : > { %s19977_s3 = sld [smem:[#allocation237_spill]]  ;;  %s14497_s13 = smov [#allocation12]  }
  0x3c   : > { %s335_s30 = sshll.u32 %s14497_s13, 4  ;;  %s336_s30 = int_to_ptr.vmem [resolvable:$true] %s335_s30 }
  0x3d   : > { %s14286_s16 = scalar_lea.vmem %s336_s30, 1024  ;;  %p14294_p3 = scmp.lt.s32.totalorder %s336_s30, %s336_s30 }
  0x3e   : > { %p14287_p0 = scmp.ne.s32.totalorder %s336_s30, %s14286_s16  ;;  %p14295_p5 = scmp.lt.s32.totalorder %s14286_s16, %s14286_s16 }
  0x40   : > { %p14289_p2 = pnand %p14287_p0, %p14225_p13  ;;  %p14296_p9 = por %p14295_p5, %p14294_p3 }
  0x41   : > { %13772 = dma.hbm_to_vmem [thread:$0]  (!%p14659_p12), %s19977_s3, 2048, %s323_s25, [#allocation11], %s19547_s28, %s19547_s28, %s19548_s6  }
  0x42   : > { %p14290_p7 = pneg %p14289_p2 }
  0x44   : > { %p14297_p11 = pnand %p14296_p9, %p14290_p7 }
  0x46   : > { %14300 = shalt.err (!%p14297_p11)
}
  0x47   : > { %s19978_s20 = smov 4   ;;  %s19979_s2 = smov 64  }
  0x48   : > { %s19980_s4 = sld [smem:[#allocation238_spill]]  ;;  %s39_s16 = sadd.s32 1, %s14481_s21 }
  0x49   : > { %p40_p13 = scmp.ge.s32.totalorder %s39_s16, 2  ;;  %s42_s12 = sadd.s32 1, %s14485_s22 }
  0x4a   : > { %s51_s11 = sadd.s32 1, %s14469_s18  ;;  %p58_p0 = scmp.ne.s32.totalorder %s14469_s18, %s14465_s17 }
  0x4b   : > { %s20782_s16 = smov (%p40_p13, %s39_s16), 0  ;;  %s20784_s12 = smov (!%p40_p13, %s42_s12), %s14485_s22 }
  0x4c   : > { %19981 = sst [smem:[#allocation25_spill]] %s20782_s16  ;;  %s47_s13 = ssub.s32 %s14481_s21, %s20782_s16 }
  0x4d   : > { %p19558_p2 = scmp.eq.s32.totalorder %s14489_s23, 0  ;;  %p44_p7 = scmp.ge.s32.totalorder %s20784_s12, 2 }
  0x4e   : > { %13775 = dma.hbm_to_vmem [thread:$0]  (!%p14659_p12), %s19980_s4, 1024, %s336_s30, [#allocation11], %s19979_s2, %s19979_s2, %s19978_s20  }
  0x4f   : > { %p19982_p3 = scmp.eq.s32.totalorder %s14625_s24, 3  ;;  %p14717_p12 = por %p19558_p2, %p58_p0 }
  0x50   : > { %p13790_p9 = scmp.lt.s32.totalorder %s14489_s23, 4  ;;  %s20786_s12 = smov (%p44_p7, %s20784_s12), 0 }
  0x51   : > { %p14711_p5 = por %p19982_p3, %p58_p0  ;;  %19986 = sst [smem:[#allocation27_spill]] %s20786_s12 }
  0x52   : > { %s364_s10 = sand.u32 1, %s14469_s18   ;;  %s13290_s28 = sshll.u32 %s14481_s21, 2 }
  0x53   : > { %s19983_s25 = scalar_select %p14711_p5, 1, 0 }
  0x54   : > { %s14728_s6 = ssub.s32 %s14485_s22, %s20786_s12  ;;  %s13289_s4 = sshll.u32 %s364_s10, 5 }
  0x55   : > { %19984 = sst [smem:[#allocation26_spill]] %s19983_s25  ;;  %s48_s3 = sor.u32 %s47_s13, %s14728_s6 }
  0x56   : > { %p49_p13 = scmp.eq.s32.totalorder %s48_s3, 0  ;;  %s13291_s16 = sshll.u32 %s14485_s22, 3 }
  0x57   : > { %s374_s5 = sadd.s32 %s13291_s16, %s13290_s28  ;;  %s368_s8 = scalar_lea.vmem [#allocation4], %s13289_s4 }
  0x58   : > { %s14734_s25 = scalar_select %p49_p13, %s14469_s18, %s51_s11  }
  0x59   : > { %s377_s7 = sshll.u32 %s368_s8, 4  ;;  %s13292_s9 = sshll.u32 %s374_s5, 7  ;;  %s378_s7 = int_to_ptr.vmem [resolvable:$true] %s377_s7 }
  0x5a   : > { %s376_s21 = scalar_lea.hbm %s19529_s0, %s13292_s9  ;;  %p14743_p0 = pnand %p13790_p9, %p14717_p12 }
  0x5b   : > { %s387_s3 = sand.u32 1, %s14489_s23   ;;  %s365_s13 = scalar_lea.sflag [#allocation5], %s364_s10 }
  0x5c   : > { %p14303_p7 = pneg %p14743_p0  ;;  %s14314_s28 = scalar_lea.vmem %s378_s7, 512 }
  0x5d   : > { %p14315_p3 = scmp.ne.s32.totalorder %s378_s7, %s14314_s28  ;;  %s14498_s4 = smov [#allocation4]  }
  0x5e   : > { %s14319_s5 = sshll.u32 %s14498_s4, 4  ;;  %s14320_s5 = int_to_ptr.vmem [resolvable:$false] %s14319_s5 }
  0x5f   : > { %p14317_p13 = pnand %p14315_p3, %p14303_p7  ;;  %s14321_s8 = scalar_lea.vmem %s14320_s5, 1024 }
  0x60   : > { %p14322_p2 = scmp.lt.s32.totalorder %s378_s7, %s14320_s5  ;;  %p14323_p11 = scmp.lt.s32.totalorder %s14321_s8, %s14314_s28 }
  0x61   : > { %p14318_p1 = pneg %p14317_p13 }
  0x62   : > { %p14324_p8 = por %p14323_p11, %p14322_p2 }
  0x64   : > { %p14325_p12 = pnand %p14324_p8, %p14318_p1 }
  0x66   : > { %14328 = shalt.err (!%p14325_p12)
}
  0x67   : > { %s19988_s9 = smov 8   ;;  %s19989_s19 = smov 128  }
  0x68   : > { %13779 = dma.hbm_to_vmem [thread:$0]  (!%p14743_p0), %s376_s21, 512, %s378_s7, %s365_s13, %s19989_s19, %s19989_s19, %s19988_s9  }
  0x69   : > { %s77_s27 = sadd.s32 1, %s14457_s15  ;;  %p84_p7 = scmp.ne.s32.totalorder %s14457_s15, %s14453_s14 }
  0x6a   : > { %p19990_p2 = scmp.eq.s32.totalorder %s14728_s6, 0  ;;  %p19991_p1 = scmp.eq.s32.totalorder %s14489_s23, 0 }
  0x6b   : > { %s389_s12 = sand.u32 1, %s14457_s15   ;;  %s13466_s11 = sshll.u32 %s14485_s22, 9 }
  0x6c   : > { %s14761_s16 = scalar_select %p19990_p2, %s14457_s15, %s77_s27  }
  0x6d   : > { %p86_p8 = por %p84_p7, %p19991_p1  ;;  %s13293_s30 = sshll.u32 %s389_s12, 5 }
  0x6e   : > { %s397_s4 = scalar_lea.hbm %s19530_s1, %s13466_s11  ;;  %s391_s7 = scalar_lea.vmem [#allocation7], %s13293_s30 }
  0x6f   : > { %p14772_p11 = pnand %p13790_p9, %p86_p8  ;;  %s398_s21 = sshll.u32 %s391_s7, 4  ;;  %s399_s21 = int_to_ptr.vmem [resolvable:$true] %s398_s21 }
  0x70   : > { %s388_s6 = scalar_lea.sflag [#allocation8], %s387_s3  ;;  %s14342_s13 = scalar_lea.vmem %s399_s21, 512 }
  0x71   : > { %p14331_p0 = pneg %p14772_p11  ;;  %p14343_p3 = scmp.ne.s32.totalorder %s399_s21, %s14342_s13 }
  0x72   : > { %s14499_s8 = smov [#allocation7]  }
  0x73   : > { %p14345_p13 = pnand %p14343_p3, %p14331_p0  ;;  %s14347_s9 = sshll.u32 %s14499_s8, 4  ;;  %s14348_s9 = int_to_ptr.vmem [resolvable:$false] %s14347_s9 }
  0x74   : > { %s14349_s19 = scalar_lea.vmem %s14348_s9, 1024  ;;  %p14350_p7 = scmp.lt.s32.totalorder %s399_s21, %s14348_s9 }
  0x75   : > { %p14346_p12 = pneg %p14345_p13  ;;  %p14351_p9 = scmp.lt.s32.totalorder %s14349_s19, %s14342_s13 }
  0x77   : > { %p14352_p2 = por %p14351_p9, %p14350_p7 }
  0x79   : > { %p14353_p1 = pnand %p14352_p2, %p14346_p12 }
  0x7b   : > { %14356 = shalt.err (!%p14353_p1)
}
  0x7c   : > { %13782 = dma.hbm_to_vmem [thread:$0]  (!%p14772_p11), %s397_s4, 512, %s399_s21, %s388_s6, %s19979_s2, %s19979_s2, %s19978_s20  }
  0x7d   : > { %410 = sbr.rel (%p14651_p10) target bundleno = 4163 (0x1043), region = 60  ;;  %s14786_s3 = sand.u32 (!%p14651_p10), 1, %s14465_s17  }
  0x7e   : > { %s13297_s27 = sshll.u32 (!%p14651_p10), %s14786_s3, 5  ;;  %s413_s12 = scalar_lea.sflag (!%p14651_p10), [#allocation5], %s14786_s3 }
  0x7f   : > { %s14790_s11 = scalar_lea.vmem (!%p14651_p10), [#allocation4], %s13297_s27 }
  0x82   : > { %14428 = dma.done.wait (%p14635_p4), %s413_s12, 512  }
  0x83   : > { %14430 = vsyncadd (%p14635_p4), %s413_s12, 4294966784  ;;  %s421_s29 = sand.u32 1, %s14625_s24   ;;  %s423_s20 = sand.u32 1, %s14453_s14  }
  0x84   : > { %s13298_s30 = sshll.u32 %s423_s20, 5  ;;  %s422_s10 = scalar_lea.sflag [#allocation8], %s421_s29 }
  0x85   : > { %s425_s28 = scalar_lea.vmem [#allocation7], %s13298_s30 }
  0x86   : > { %14432 = dma.done.wait (%p14641_p6), %s422_s10, 512  }
  0x87   : > { %14434 = vsyncadd (%p14641_p6), %s422_s10, 4294966784  ;;  %p19994_p10 = scmp.eq.s32.totalorder %s14625_s24, 0 }
  0x89   : > { %14436 = dma.done.wait (%p19994_p10), [#allocation8], 1024   ;;  %p19995_p8 = pmov %p19994_p10 }
  0x8b   : > { %14438 = vsyncadd (%p19995_p8), [#allocation8], 4294966272  ;;  %p19996_p4 = pmov %p19995_p8 }
  0x8d   : > { %14440 = dma.done.wait (%p19996_p4), [#allocation11], 3072   ;;  %p19997_p11 = pmov %p19996_p4 }
  0x8e   : > { %s14810_s26 = scalar_lea.vmem [#allocation13], %s13297_s27  ;;  %s19998_s4 = sld [smem:[#allocation20_spill]] }
  0x8f   : > { %14442 = vsyncadd (%p19997_p11), [#allocation11], 4294964224 }
  0x94   : > { %p13303_p0 = scmp.ne.s32.totalorder %s19998_s4, 0 }
  0x96   : > { %485 = sbr.rel (%p13303_p0) target bundleno = 2369 (0x941), region = 84 }
  0x9b   : > { %v13516_v0 = vld [vmem:[%s425_s28] sm:$0xff]   ;;  %v13531_v1 = vld [vmem:[%s425_s28 + $0x8] sm:$0xff]   ;;  %v14500_v4 = vmov 0   ;;  %v13532_v5 = vld [vmem:[%s425_s28 + $0x10] sm:$0xff]   ;;  %s19999_s7 = sld [smem:[#allocation243_spill]]  ;;  %s14501_s10 = smov 96  }
  0x9c   : > { %v13517_v2 = vunpack.c.l.bf16 %v13516_v0  ;;  %v13521_v3 = vunpack.c.l.bf16 %v13531_v1  ;;  %13906 = vset.pattern.permute.xlu1 %v14500_v4  ;;  %13905 = vset.pattern.permute.xlu0 %v14500_v4  ;;  %v13518_v6 = vunpack.c.h.bf16 %v13516_v0  ;;  %v13522_v7 = vunpack.c.h.bf16 %v13531_v1  ;;  %v13533_v10 = vld [vmem:[%s425_s28 + $0x18] sm:$0xff]   ;;  %v13910_v50 = vld [vmem:[#allocation10 + $0x64] ss:$8 sps:$4 sm:$0xff]   ;;  %v13912_v51 = vld [vmem:[#allocation10 + $0x60] ss:$8 sps:$4 sm:$0xff]   ;;  %s20000_s2 = sld [smem:[#allocation241_spill]] }
  0x9d   : > { %753 = vmatprep.mubr.bf16.mxu0 %v14500_v4  ;;  %773 = vmatprep.mubr.bf16.mxu1 %v14500_v4  ;;  %v13525_v8 = vunpack.c.l.bf16 %v13532_v5  ;;  %v13526_v9 = vunpack.c.h.bf16 %v13532_v5  ;;  %v13529_v11 = vunpack.c.l.bf16 %v13533_v10  ;;  %v13530_v12 = vunpack.c.h.bf16 %v13533_v10  ;;  %v13907_v17 = vld [vmem:[#allocation10 + $0x74] ss:$8 sps:$4 sm:$0xff]   ;;  %v13909_v18 = vld [vmem:[#allocation10 + $0x70] ss:$8 sps:$4 sm:$0xff]   ;;  %v13916_v55 = vld [vmem:[#allocation10 + $0x44] ss:$8 sps:$4 sm:$0xff]  }
  0x9e   : > { %504 = vadd.xlane.f32.xlu0 %v13517_v2  ;;  %508 = vadd.xlane.f32.xlu1 %v13521_v3  ;;  %v13913_v53 = vld [vmem:[#allocation10 + $0x54] ss:$8 sps:$4 sm:$0xff]   ;;  %v13915_v54 = vld [vmem:[#allocation10 + $0x50] ss:$8 sps:$4 sm:$0xff]   ;;  %v13918_v56 = vld [vmem:[#allocation10 + $0x40] ss:$8 sps:$4 sm:$0xff]  }
  0x9f   : > { %721 = vmatprep.subr.bf16.mxu0 %v13907_v17  ;;  %13732 = vmatprep.subr.bf16.mxu1 %v13907_v17  ;;  %v13919_v57 = vld [vmem:[#allocation10 + $0x34] ss:$8 sps:$4 sm:$0xff]   ;;  %v13921_v58 = vld [vmem:[#allocation10 + $0x30] ss:$8 sps:$4 sm:$0xff]   ;;  %v13922_v59 = vld [vmem:[#allocation10 + $0x24] ss:$8 sps:$4 sm:$0xff]  }
  0xa0   : > { %722 = vmatpush1.bf16.msra.mxu0 %v13909_v18  ;;  %13740 = vmatpush1.bf16.msra.mxu1 %v13909_v18  ;;  %v13924_v60 = vld [vmem:[#allocation10 + $0x20] ss:$8 sps:$4 sm:$0xff]   ;;  %v13925_v61 = vld [vmem:[#allocation10 + $0x14] ss:$8 sps:$4 sm:$0xff]   ;;  %v13927_v62 = vld [vmem:[#allocation10 + $0x10] ss:$8 sps:$4 sm:$0xff]  }
  0xa1   : > { %v1868_v13 = vld [vmem:[%s19999_s7 + $0x1] sm:$0x1]  ;;  %v1869_v14 = vld [vmem:[%s19999_s7 + $0x2] sm:$0x1]  ;;  %v1867_v15 = vld [vmem:[%s19999_s7] sm:$0x1]  ;;  %723 = vmatprep.subr.bf16.mxu0 %v13910_v50  ;;  %13733 = vmatprep.subr.bf16.mxu1 %v13910_v50 }
  0xa2   : > { %506 = vadd.xlane.f32.xlu0 %v13518_v6  ;;  %510 = vadd.xlane.f32.xlu1 %v13522_v7  ;;  %v1870_v16 = vld [vmem:[%s19999_s7 + $0x3] sm:$0x1]  ;;  %v13928_v63 = vld [vmem:[#allocation10 + $0x4] ss:$8 sps:$4 sm:$0xff]   ;;  %s20001_s30 = sld [smem:[#allocation242_spill]]  ;;  %s14502_s28 = smov 64  }
  0xa3   : > { %v13930_v0 = vld [vmem:[#allocation10] ss:$8 sps:$4 sm:$0xff]   ;;  %s14503_s4 = smov 32   ;;  %vm1482_vm0 = vcmask 257024   ;;  %vm9760_vm1 = vcmask 519168  }
  0xa4   : > { %724 = vmatpush1.bf16.msra.mxu0 %v13912_v51  ;;  %13741 = vmatpush1.bf16.msra.mxu1 %v13912_v51 }
  0xa5   : > { %725 = vmatprep.subr.bf16.mxu0 %v13913_v53  ;;  %13734 = vmatprep.subr.bf16.mxu1 %v13913_v53 }
  0xa6   : > { %512 = vadd.xlane.f32.xlu0 %v13525_v8  ;;  %514 = vadd.xlane.f32.xlu1 %v13526_v9 }
  0xa8   : > { %726 = vmatpush1.bf16.msra.mxu0 %v13915_v54  ;;  %13742 = vmatpush1.bf16.msra.mxu1 %v13915_v54 }
  0xa9   : > { %727 = vmatprep.subr.bf16.mxu0 %v13916_v55  ;;  %13735 = vmatprep.subr.bf16.mxu1 %v13916_v55 }
  0xaa   : > { %516 = vadd.xlane.f32.xlu0 %v13529_v11  ;;  %518 = vadd.xlane.f32.xlu1 %v13530_v12 }
  0xac   : > { %728 = vmatpush1.bf16.msra.mxu0 %v13918_v56  ;;  %13743 = vmatpush1.bf16.msra.mxu1 %v13918_v56 }
  0xad   : > { %729 = vmatprep.subr.bf16.mxu0 %v13919_v57  ;;  %13736 = vmatprep.subr.bf16.mxu1 %v13919_v57 }
  0xb0   : > { %730 = vmatpush1.bf16.msra.mxu0 %v13921_v58  ;;  %13744 = vmatpush1.bf16.msra.mxu1 %v13921_v58 }
  0xb1   : > { %731 = vmatprep.subr.bf16.mxu0 %v13922_v59  ;;  %13737 = vmatprep.subr.bf16.mxu1 %v13922_v59 }
  0xb4   : > { %732 = vmatpush1.bf16.msra.mxu0 %v13924_v60  ;;  %13745 = vmatpush1.bf16.msra.mxu1 %v13924_v60 }
  0xb5   : > { %733 = vmatprep.subr.bf16.mxu0 %v13925_v61  ;;  %13738 = vmatprep.subr.bf16.mxu1 %v13925_v61 }
  0xb8   : > { %734 = vmatpush1.bf16.msra.mxu0 %v13927_v62  ;;  %13746 = vmatpush1.bf16.msra.mxu1 %v13927_v62 }
  0xb9   : > { %735 = vmatprep.subr.bf16.mxu0 %v13928_v63  ;;  %13739 = vmatprep.subr.bf16.mxu1 %v13928_v63 }
  0xbb   : > { %1882 = vperm.xlu1 %13906, %v1868_v13  }
  0xbc   : > { %736 = vmatpush1.bf16.msra.mxu0 %v13930_v0  ;;  %13747 = vmatpush1.bf16.msra.mxu1 %v13930_v0 }
  0xbf   : > { %1891 = vperm.xlu1 %13906, %v1869_v14  }
  0xc0   : > { %1873 = vperm.xlu0 %13905, %v1867_v15  }
  0xc3   : > { %1900 = vperm.xlu1 %13906, %v1870_v16  }
 0x127   : > { %v505_v19 = vpop.xlane.xlu0 %504  ;;  %v509_v20 = vpop.xlane.xlu1 %508 }
 0x128   : > { %v521_v21 = vmul.f32 0.0078125, %v505_v19  ;;  %v523_v22 = vmul.f32 0.0078125, %v509_v20 }
 0x12a   : > { %v14829_v23 = vsub.f32 %v13517_v2, %v521_v21  ;;  %v14831_v24 = vsub.f32 %v13521_v3, %v523_v22 }
 0x12b   : > { %v507_v25 = vpop.xlane.xlu0 %506  ;;  %v511_v26 = vpop.xlane.xlu1 %510 }
 0x12c   : > { %v522_v27 = vmul.f32 0.0078125, %v507_v25  ;;  %v537_v28 = vmul.f32 %v14829_v23, %v14829_v23  ;;  %v524_v29 = vmul.f32 0.0078125, %v511_v26  ;;  %v539_v30 = vmul.f32 %v14831_v24, %v14831_v24 }
 0x12e   : > { %545 = vadd.xlane.f32.xlu0 %v537_v28  ;;  %v14837_v31 = vsub.f32 %v13518_v6, %v522_v27  ;;  %v14839_v32 = vsub.f32 %v13522_v7, %v524_v29 }
 0x12f   : > { %v513_v33 = vpop.xlane.xlu0 %512  ;;  %v515_v34 = vpop.xlane.xlu1 %514 }
 0x130   : > { %v525_v35 = vmul.f32 0.0078125, %v513_v33  ;;  %v538_v36 = vmul.f32 %v14837_v31, %v14837_v31  ;;  %v526_v37 = vmul.f32 0.0078125, %v515_v34  ;;  %v540_v38 = vmul.f32 %v14839_v32, %v14839_v32 }
 0x132   : > { %549 = vadd.xlane.f32.xlu0 %v539_v30  ;;  %547 = vadd.xlane.f32.xlu1 %v538_v36  ;;  %v14845_v39 = vsub.f32 %v13525_v8, %v525_v35  ;;  %v14847_v40 = vsub.f32 %v13526_v9, %v526_v37  ;;  %v13304_v36 = vld [vmem:[%s20000_s2] ss:$0 sm:$0xff] }
 0x133   : > { %v517_v41 = vpop.xlane.xlu0 %516  ;;  %v519_v42 = vpop.xlane.xlu1 %518 }
 0x134   : > { %v527_v43 = vmul.f32 0.0078125, %v517_v41  ;;  %v541_v44 = vmul.f32 %v14845_v39, %v14845_v39  ;;  %v528_v45 = vmul.f32 0.0078125, %v519_v42  ;;  %v542_v46 = vmul.f32 %v14847_v40, %v14847_v40 }
 0x136   : > { %551 = vadd.xlane.f32.xlu1 %v540_v38  ;;  %553 = vadd.xlane.f32.xlu0 %v541_v44  ;;  %v14853_v47 = vsub.f32 %v13529_v11, %v527_v43  ;;  %v14855_v48 = vsub.f32 %v13530_v12, %v528_v45  ;;  %v13305_v43 = vld [vmem:[%s20001_s30] ss:$0 sm:$0xff] }
 0x137   : > { %v14861_v1 = vpop.permute.xlu1 %1882 }
 0x138   : > { %v543_v49 = vmul.f32 %v14853_v47, %v14853_v47  ;;  %v544_v52 = vmul.f32 %v14855_v48, %v14855_v48 }
 0x13a   : > { %555 = vadd.xlane.f32.xlu1 %v542_v46  ;;  %557 = vadd.xlane.f32.xlu0 %v543_v49 }
 0x13b   : > { %v14863_v2 = vpop.permute.xlu1 %1891  ;;  %v14865_v3 = vpop.permute.xlu0 %1873 }
 0x13e   : > { %559 = vadd.xlane.f32.xlu1 %v544_v52 }
 0x13f   : > { %v14867_v5 = vpop.permute.xlu1 %1900 }
 0x1b7   : > { %v546_v6 = vpop.xlane.xlu0 %545 }
 0x1b8   : > { %v561_v7 = vmul.f32 0.0078125, %v546_v6 }
 0x1ba   : > { %v569_v8 = vadd.f32 1e-05, %v561_v7 }
 0x1bb   : > { %v548_v9 = vpop.xlane.xlu1 %547  ;;  %v550_v10 = vpop.xlane.xlu0 %549 }
 0x1bc   : > { %13931 = vrsqrt.f32 %v569_v8  ;;  %v562_v11 = vmul.f32 0.0078125, %v548_v9  ;;  %v563_v12 = vmul.f32 0.0078125, %v550_v10 }
 0x1be   : > { %v570_v13 = vadd.f32 1e-05, %v562_v11  ;;  %v571_v14 = vadd.f32 1e-05, %v563_v12 }
 0x1bf   : > { %v552_v15 = vpop.xlane.xlu1 %551  ;;  %v554_v16 = vpop.xlane.xlu0 %553 }
 0x1c0   : > { %13933 = vrsqrt.f32 %v570_v13  ;;  %v564_v17 = vmul.f32 0.0078125, %v552_v15  ;;  %v565_v18 = vmul.f32 0.0078125, %v554_v16 }
 0x1c1   : > { %13935 = vrsqrt.f32 %v571_v14 }
 0x1c2   : > { %v572_v19 = vadd.f32 1e-05, %v564_v17  ;;  %v573_v20 = vadd.f32 1e-05, %v565_v18 }
 0x1c3   : > { %v556_v21 = vpop.xlane.xlu1 %555  ;;  %v558_v22 = vpop.xlane.xlu0 %557 }
 0x1c4   : > { %13937 = vrsqrt.f32 %v572_v19  ;;  %v566_v25 = vmul.f32 0.0078125, %v556_v21  ;;  %v567_v26 = vmul.f32 0.0078125, %v558_v22 }
 0x1c5   : > { %13939 = vrsqrt.f32 %v573_v20 }
 0x1c6   : > { %v574_v27 = vadd.f32 1e-05, %v566_v25  ;;  %v575_v28 = vadd.f32 1e-05, %v567_v26  ;;  %v14504_v26 = vmov 1983009808  }
 0x1c7   : > { %v560_v29 = vpop.xlane.xlu1 %559 }
 0x1c8   : > { %13941 = vrsqrt.f32 %v574_v27  ;;  %v568_v30 = vmul.f32 0.0078125, %v560_v29  ;;  %v877_v27 = vunpack.c.l.s4 %v14504_v26  ;;  %v879_v29 = vlaneseq }
 0x1c9   : > { %v13932_v33 = vpop.eup %13931  ;;  %13943 = vrsqrt.f32 %v575_v28 }
 0x1ca   : > { %v576_v34 = vadd.f32 1e-05, %v568_v30  ;;  %v585_v35 = vmul.f32 %v13932_v33, %v14829_v23  ;;  %v878_v30 = vunpack.c.0.s8 %v877_v27  ;;  %v14505_v33 = vmov 1934713408  }
 0x1cc   : > { %13945 = vrsqrt.f32 %v576_v34  ;;  %v599_v42 = vmul.f32 %v13304_v36, %v585_v35  ;;  %v909_v34 = vunpack.c.l.s4 %v14505_v33 }
 0x1cd   : > { %v13934_v37 = vpop.eup %13933 }
 0x1ce   : > { %v13936_v38 = vpop.eup %13935  ;;  %v586_v41 = vmul.f32 %v13934_v37, %v14837_v31  ;;  %v613_v23 = vadd.f32 %v13305_v43, %v599_v42  ;;  %v14963_v37 = vshrl.u32 %v879_v29, 7 }
 0x1cf   : > { %v587_v46 = vmul.f32 %v13936_v38, %v14831_v24 }
 0x1d0   : > { %v600_v44 = vmul.f32 %v13304_v36, %v586_v41  ;;  %v14966_v38 = vsub.s32 %v878_v30, %v14963_v37  ;;  %v910_v41 = vunpack.c.0.s8 %v909_v34 }
 0x1d1   : > { %v13938_v45 = vpop.eup %13937  ;;  %v601_v31 = vmul.f32 %v13304_v36, %v587_v46 }
 0x1d2   : > { %v13940_v49 = vpop.eup %13939  ;;  %v614_v50 = vadd.f32 %v13305_v43, %v600_v44  ;;  %v588_v51 = vmul.f32 %v13938_v45, %v14839_v32 }
 0x1d3   : > { %v589_v52 = vmul.f32 %v13940_v49, %v14845_v39  ;;  %v615_v61 = vadd.f32 %v13305_v43, %v601_v31 }
 0x1d4   : > { %v621_v53 = vpack.c.bf16 %v614_v50, %v613_v23  ;;  %v602_v54 = vmul.f32 %v13304_v36, %v588_v51  ;;  %v14973_v23 = vsub.s32 %v910_v41, %v14963_v37 }
 0x1d5   : > { %v13942_v55 = vpop.eup %13941  ;;  %v603_v57 = vmul.f32 %v13304_v36, %v589_v52 }
 0x1d6   : > { %754 = vmatmul.mubr.bf16.vlgmr.msra.gmra.mxu0 %v621_v53  ;;  %v590_v56 = vmul.f32 %v13942_v55, %v14847_v40  ;;  %v13944_v58 = vpop.eup %13943  ;;  %v616_v59 = vadd.f32 %v13305_v43, %v602_v54 }
 0x1d7   : > { %763 = vmatprep.mubr.bf16.mxu0 %v14500_v4  ;;  %v617_v62 = vadd.f32 %v13305_v43, %v603_v57  ;;  %v591_v32 = vmul.f32 %v13944_v58, %v14853_v47 }
 0x1d8   : > { %v604_v24 = vmul.f32 %v13304_v36, %v590_v56  ;;  %v622_v0 = vpack.c.bf16 %v616_v59, %v615_v61 }
 0x1d9   : > { %v13946_v60 = vpop.eup %13945  ;;  %v605_v40 = vmul.f32 %v13304_v36, %v591_v32 }
 0x1da   : > { %v618_v63 = vadd.f32 %v13305_v43, %v604_v24  ;;  %v592_v39 = vmul.f32 %v13946_v60, %v14855_v48 }
 0x1db   : > { %v619_v9 = vadd.f32 %v13305_v43, %v605_v40 }
 0x1dc   : > { %v623_v6 = vpack.c.bf16 %v618_v63, %v617_v62  ;;  %v606_v7 = vmul.f32 %v13304_v36, %v592_v39  ;;  %v19559_v63 = vmov 0.0  }
 0x1de   : > { %764 = vmatmul.mubr.bf16.gmra.mxu0 %v622_v0  ;;  %774 = vmatmul.mubr.bf16.vlgmr.msra.gmra.mxu1 %v623_v6  ;;  %v620_v8 = vadd.f32 %v13305_v43, %v606_v7 }
 0x1df   : > { %783 = vmatprep.mubr.bf16.mxu1 %v14500_v4 }
 0x1e0   : > { %v624_v10 = vpack.c.bf16 %v620_v8, %v619_v9 }
 0x1e6   : > { %784 = vmatmul.mubr.bf16.gmra.mxu1 %v624_v10 }
 0x296   : > { %v14885_v11 = vpop.f32.mrf.mxu0 }
 0x297   : > { %802 = vrot.lane.b32.xlu0 %v14885_v11, %s14501_s10 }
 0x298   : > { %v14889_v47 = vpop.f32.mrf.mxu0 }
 0x299   : > { %20002 = vst [vmem:[#allocation28_spill] sm:$0xff] %v14889_v47 }
 0x29a   : > { %v14891_v48 = vpop.f32.mrf.mxu0 }
 0x29b   : > { %804 = vrot.lane.b32.xlu1 %v14891_v48, %s14501_s10 }
 0x29c   : > { %v14915_v14 = vpop.f32.mrf.mxu0 }
 0x29d   : > { %20004 = vst [vmem:[#allocation30_spill] sm:$0xff] %v14915_v14 }
 0x29e   : > { %v14895_v12 = vpop.f32.mrf.mxu1  ;;  %v14923_v16 = vpop.f32.mrf.mxu0 }
 0x29f   : > { %810 = vrot.lane.b32.xlu0 %v14895_v12, %s14501_s10 }
 0x2a0   : > { %v14899_v4 = vpop.f32.mrf.mxu1  ;;  %v14931_v18 = vpop.f32.mrf.mxu0 }
 0x2a1   : > { %20003 = vst [vmem:[#allocation29_spill] sm:$0xff] %v14899_v4  ;;  %20006 = vst [vmem:[#allocation32_spill] sm:$0xff] %v14931_v18 }
 0x2a2   : > { %v14901_v13 = vpop.f32.mrf.mxu1  ;;  %v14937_v19 = vpop.f32.mrf.mxu0 }
 0x2a3   : > { %826 = vrot.lane.b32.xlu0 %v14885_v11, %s14502_s28  ;;  %812 = vrot.lane.b32.xlu1 %v14901_v13, %s14501_s10 }
 0x2a4   : > { %v14917_v15 = vpop.f32.mrf.mxu1 }
 0x2a5   : > { %20005 = vst [vmem:[#allocation31_spill] sm:$0xff] %v14917_v15 }
 0x2a6   : > { %v14925_v17 = vpop.f32.mrf.mxu1 }
 0x2a7   : > { %834 = vrot.lane.b32.xlu0 %v14895_v12, %s14502_s28  ;;  %828 = vrot.lane.b32.xlu1 %v14891_v48, %s14502_s28 }
 0x2a8   : > { %v14939_v20 = vpop.f32.mrf.mxu1 }
 0x2a9   : > { %20007 = vst [vmem:[#allocation33_spill] sm:$0xff] %v14939_v20 }
 0x2aa   : > { %v14945_v21 = vpop.f32.mrf.mxu1 }
 0x2ab   : > { %850 = vrot.lane.b32.xlu0 %v14885_v11, %s14503_s4  ;;  %836 = vrot.lane.b32.xlu1 %v14901_v13, %s14502_s28 }
 0x2af   : > { %858 = vrot.lane.b32.xlu0 %v14895_v12, %s14503_s4  ;;  %852 = vrot.lane.b32.xlu1 %v14891_v48, %s14503_s4 }
 0x2b3   : > { %860 = vrot.lane.b32.xlu1 %v14901_v13, %s14503_s4  ;;  %814 = vrot.lane.b32.xlu0 %v14925_v17, %s14501_s10 }
 0x2b7   : > { %806 = vrot.lane.b32.xlu1 %v14923_v16, %s14501_s10  ;;  %830 = vrot.lane.b32.xlu0 %v14923_v16, %s14502_s28 }
 0x2bb   : > { %808 = vrot.lane.b32.xlu1 %v14937_v19, %s14501_s10  ;;  %838 = vrot.lane.b32.xlu0 %v14925_v17, %s14502_s28 }
 0x2bf   : > { %854 = vrot.lane.b32.xlu0 %v14923_v16, %s14503_s4  ;;  %816 = vrot.lane.b32.xlu1 %v14945_v21, %s14501_s10 }
 0x2c3   : > { %862 = vrot.lane.b32.xlu0 %v14925_v17, %s14503_s4  ;;  %832 = vrot.lane.b32.xlu1 %v14937_v19, %s14502_s28 }
 0x2c7   : > { %840 = vrot.lane.b32.xlu1 %v14945_v21, %s14502_s28 }
 0x2cb   : > { %856 = vrot.lane.b32.xlu1 %v14937_v19, %s14503_s4 }
 0x2cf   : > { %864 = vrot.lane.b32.xlu1 %v14945_v21, %s14503_s4 }
 0x309   : > { %v803_v22 = vpop.permute.xlu0 %802 }
 0x30d   : > { %v14961_v35 = vpop.permute.xlu1 %804 }
 0x311   : > { %v811_v25 = vpop.permute.xlu0 %810 }
 0x315   : > { %v827_v28 = vpop.permute.xlu0 %826  ;;  %v14969_v43 = vpop.permute.xlu1 %812 }
 0x316   : > { %v874_v42 = vcombine.low %v14885_v11, %v827_v28  ;;  %v875_v45 = vcombine.high %v14885_v11, %v827_v28 }
 0x318   : > { %v882_v50 = vrot.slane %v874_v42, %v14966_v38  ;;  %v889_v54 = vrot.slane %v875_v45, %v14966_v38 }
 0x319   : > { %v835_v36 = vpop.permute.xlu0 %834  ;;  %v14979_v31 = vpop.permute.xlu1 %828 }
 0x31a   : > { %v1146_v24 = vcombine.low %v14895_v12, %v835_v36  ;;  %v1147_v10 = vcombine.high %v14895_v12, %v835_v36 }
 0x31c   : > { %v1154_v0 = vrot.slane %v1146_v24, %v14966_v38  ;;  %v1161_v34 = vrot.slane %v1147_v10, %v14966_v38 }
 0x31d   : > { %v851_v44 = vpop.permute.xlu0 %850  ;;  %v14999_v6 = vpop.permute.xlu1 %836 }
 0x31e   : > { %v890_v46 = vcombine.low %v803_v22, %v851_v44  ;;  %v891_v49 = vcombine.high %v803_v22, %v851_v44 }
 0x320   : > { %v898_v51 = vrot.slane %v890_v46, %v14966_v38  ;;  %v905_v52 = vrot.slane %v891_v49, %v14966_v38 }
 0x321   : > { %v859_v53 = vpop.permute.xlu0 %858  ;;  %v853_v12 = vpop.permute.xlu1 %852 }
 0x322   : > { %v906_v55 = vcombine.low %v882_v50, %v898_v51  ;;  %v1162_v56 = vcombine.low %v811_v25, %v859_v53  ;;  %v907_v57 = vcombine.high %v882_v50, %v898_v51  ;;  %v922_v58 = vcombine.low %v889_v54, %v905_v52 }
 0x323   : > { %v923_v7 = vcombine.high %v889_v54, %v905_v52  ;;  %v1163_v40 = vcombine.high %v811_v25, %v859_v53  ;;  %v958_v44 = vcombine.low %v14961_v35, %v853_v12  ;;  %v942_v54 = vcombine.low %v14891_v48, %v14979_v31 }
 0x324   : > { %v14982_v59 = vrot.slane %v906_v55, %v14973_v23  ;;  %v1170_v60 = vrot.slane %v1162_v56, %v14966_v38  ;;  %v14989_v62 = vrot.slane %v922_v58, %v14973_v23  ;;  %v14996_v39 = vrot.slane %v907_v57, %v14973_v23 }
 0x325   : > { %v15012_v27 = vrot.slane %v923_v7, %v14973_v23  ;;  %v1177_v25 = vrot.slane %v1163_v40, %v14966_v38  ;;  %v966_v55 = vrot.slane %v958_v44, %v14966_v38  ;;  %v950_v7 = vrot.slane %v942_v54, %v14966_v38 }
 0x326   : > { %v1418_v61 = vmul.f32 %v14982_v59, %v14982_v59  ;;  %v14993_v32 = vcombine.high %v14982_v59, %v19559_v63  ;;  %v1178_v8 = vcombine.low %v1154_v0, %v1170_v60  ;;  %v1420_v22 = vmul.f32 %v14996_v39, %v14996_v39 }
 0x327   : > { %v15009_v26 = vcombine.high %v14989_v62, %v19559_v63  ;;  %v1179_v28 = vcombine.high %v1154_v0, %v1170_v60  ;;  %v1422_v41 = vmul.f32 %v14989_v62, %v14989_v62  ;;  %v15027_v42 = vcombine.high %v15012_v27, %v19559_v63 }
 0x328   : > { %v1483_v9 = vsel %vm1482_vm0, %v1418_v61, 0.0  ;;  %v1419_v11 = vmul.f32 %v14993_v32, %v14993_v32  ;;  %v15017_v30 = vrot.slane %v1178_v8, %v14973_v23  ;;  %v1489_v33 = vsel %vm1482_vm0, %v1420_v22, 0.0 }
 0x329   : > { %1484 = vadd.xlane.f32.xlu0 %v1483_v9  ;;  %v1423_v36 = vmul.f32 %v15009_v26, %v15009_v26  ;;  %v15031_v45 = vrot.slane %v1179_v28, %v14973_v23  ;;  %v1194_v46 = vcombine.low %v1161_v34, %v1177_v25  ;;  %v1495_v50 = vsel %vm1482_vm0, %v1422_v41, 0.0 }
 0x32a   : > { %v1486_v29 = vsel %vm1482_vm0, %v1419_v11, 0.0  ;;  %v1425_v51 = vmul.f32 %v15027_v42, %v15027_v42  ;;  %v1424_v52 = vmul.f32 %v15012_v27, %v15012_v27  ;;  %v15041_v53 = vcombine.high %v15017_v30, %v19559_v63 }
 0x32b   : > { %1487 = vadd.xlane.f32.xlu1 %v1486_v29  ;;  %v1498_v49 = vsel %vm1482_vm0, %v1423_v36, 0.0  ;;  %v1195_v56 = vcombine.high %v1161_v34, %v1177_v25  ;;  %v1450_v58 = vmul.f32 %v15017_v30, %v15017_v30  ;;  %v15050_v24 = vrot.slane %v1194_v46, %v14973_v23  ;;  %v15080_v34 = vpop.permute.xlu0 %814  ;;  %v861_v36 = vpop.permute.xlu1 %860 }
 0x32c   : > { %v1504_v57 = vsel %vm1482_vm0, %v1425_v51, 0.0  ;;  %v1501_v60 = vsel %vm1482_vm0, %v1424_v52, 0.0  ;;  %v1451_v61 = vmul.f32 %v15041_v53, %v15041_v53  ;;  %v15057_v0 = vcombine.high %v15031_v45, %v19559_v63 }
 0x32d   : > { %1490 = vadd.xlane.f32.xlu0 %v1489_v33  ;;  %v959_v40 = vcombine.high %v14961_v35, %v853_v12  ;;  %v974_v8 = vcombine.low %v950_v7, %v966_v55  ;;  %v15062_v9 = vrot.slane %v1195_v56, %v14973_v23  ;;  %v1579_v10 = vsel %vm1482_vm0, %v1450_v58, 0.0 }
 0x32e   : > { %v1582_v11 = vsel %vm1482_vm0, %v1451_v61, 0.0  ;;  %v1453_v22 = vmul.f32 %v15057_v0, %v15057_v0  ;;  %v1452_v25 = vmul.f32 %v15031_v45, %v15031_v45  ;;  %v15072_v28 = vcombine.high %v15050_v24, %v19559_v63 }
 0x32f   : > { %1499 = vadd.xlane.f32.xlu1 %v1498_v49  ;;  %v943_v35 = vcombine.high %v14891_v48, %v14979_v31  ;;  %v973_v29 = vrot.slane %v959_v40, %v14966_v38  ;;  %v975_v12 = vcombine.high %v950_v7, %v966_v55  ;;  %v15078_v33 = vrot.slane %v974_v8, %v14973_v23 }
 0x330   : > { %v1588_v41 = vsel %vm1482_vm0, %v1453_v22, 0.0  ;;  %v1585_v44 = vsel %vm1482_vm0, %v1452_v25, 0.0  ;;  %v1455_v46 = vmul.f32 %v15072_v28, %v15072_v28  ;;  %v15088_v48 = vcombine.high %v15062_v9, %v19559_v63 }
 0x331   : > { %1496 = vadd.xlane.f32.xlu0 %v1495_v50  ;;  %v957_v31 = vrot.slane %v943_v35, %v14966_v38  ;;  %v1454_v49 = vmul.f32 %v15050_v24, %v15050_v24  ;;  %v1230_v51 = vcombine.low %v14969_v43, %v861_v36  ;;  %v15095_v52 = vrot.slane %v975_v12, %v14973_v23 }
 0x332   : > { %v1594_v54 = vsel %vm1482_vm0, %v1455_v46, 0.0  ;;  %v1457_v55 = vmul.f32 %v15088_v48, %v15088_v48  ;;  %v15102_v56 = vcombine.high %v15078_v33, %v19559_v63  ;;  %v15111_v61 = vcombine.high %v14996_v39, %v19559_v63 }
 0x333   : > { %1505 = vadd.xlane.f32.xlu1 %v1504_v57  ;;  %v990_v50 = vcombine.low %v957_v31, %v973_v29  ;;  %v15104_v57 = vpop.permute.xlu0 %830  ;;  %v1591_v58 = vsel %vm1482_vm0, %v1454_v49, 0.0  ;;  %v1214_v7 = vcombine.low %v14901_v13, %v14999_v6  ;;  %v991_v40 = vcombine.high %v957_v31, %v973_v29 }
 0x334   : > { %v1427_v22 = vmul.f32 %v15102_v56, %v15102_v56  ;;  %v15124_v25 = vcombine.high %v15095_v52, %v19559_v63  ;;  %v1421_v29 = vmul.f32 %v15111_v61, %v15111_v61 }
 0x335   : > { %1502 = vadd.xlane.f32.xlu0 %v1501_v60  ;;  %v1456_v60 = vmul.f32 %v15062_v9, %v15062_v9  ;;  %v15116_v8 = vrot.slane %v990_v50, %v14973_v23  ;;  %v1222_v12 = vrot.slane %v1214_v7, %v14966_v38 }
 0x336   : > { %v1510_v49 = vsel %vm1482_vm0, %v1427_v22, 0.0  ;;  %v1429_v50 = vmul.f32 %v15124_v25, %v15124_v25 }
 0x337   : > { %1583 = vadd.xlane.f32.xlu1 %v1582_v11  ;;  %v1600_v11 = vsel %vm1482_vm0, %v1457_v55, 0.0  ;;  %v1597_v35 = vsel %vm1482_vm0, %v1456_v60, 0.0  ;;  %v15134_v46 = vpop.permute.xlu0 %838  ;;  %v1492_v55 = vsel %vm1482_vm0, %v1421_v29, 0.0 }
 0x338   : > { %v1516_v7 = vsel %vm1482_vm0, %v1429_v50, 0.0 }
 0x339   : > { %1580 = vadd.xlane.f32.xlu0 %v1579_v10  ;;  %v1238_v10 = vrot.slane %v1230_v51, %v14966_v38  ;;  %v15141_v51 = vcombine.high %v15116_v8, %v19559_v63 }
 0x33b   : > { %1589 = vadd.xlane.f32.xlu1 %v1588_v41  ;;  %v15131_v41 = vrot.slane %v991_v40, %v14973_v23  ;;  %v1246_v31 = vcombine.low %v1222_v12, %v1238_v10  ;;  %v1431_v40 = vmul.f32 %v15141_v51, %v15141_v51 }
 0x33d   : > { %1586 = vadd.xlane.f32.xlu0 %v1585_v44  ;;  %v1231_v44 = vcombine.high %v14969_v43, %v861_v36  ;;  %v1426_v43 = vmul.f32 %v15078_v33, %v15078_v33  ;;  %v15150_v60 = vrot.slane %v1246_v31, %v14973_v23  ;;  %v1522_v31 = vsel %vm1482_vm0, %v1431_v40, 0.0 }
 0x33f   : > { %1595 = vadd.xlane.f32.xlu1 %v1594_v54  ;;  %v1215_v54 = vcombine.high %v14901_v13, %v14999_v6  ;;  %v1245_v36 = vrot.slane %v1231_v44, %v14966_v38  ;;  %v15157_v13 = vcombine.high %v15131_v41, %v19559_v63  ;;  %v1507_v22 = vsel %vm1482_vm0, %v1426_v43, 0.0 }
 0x340   : > { %v15171_v50 = vcombine.high %v15150_v60, %v19559_v63  ;;  %v1010_v43 = vcombine.low %v14923_v16, %v15104_v57 }
 0x341   : > { %1592 = vadd.xlane.f32.xlu0 %v1591_v58  ;;  %v1247_v58 = vcombine.high %v1222_v12, %v1238_v10  ;;  %v1229_v6 = vrot.slane %v1215_v54, %v14966_v38  ;;  %v1428_v10 = vmul.f32 %v15095_v52, %v15095_v52 }
 0x343   : > { %1601 = vadd.xlane.f32.xlu1 %v1600_v11  ;;  %v855_v11 = vpop.permute.xlu0 %854  ;;  %v15164_v29 = vrot.slane %v1247_v58, %v14973_v23  ;;  %v1262_v12 = vcombine.low %v1229_v6, %v1245_v36  ;;  %v1513_v54 = vsel %vm1482_vm0, %v1428_v10, 0.0  ;;  %v1263_v58 = vcombine.high %v1229_v6, %v1245_v36 }
 0x344   : > { %v1459_v10 = vmul.f32 %v15171_v50, %v15171_v50  ;;  %v1432_v36 = vmul.f32 %v15131_v41, %v15131_v41  ;;  %v1018_v6 = vrot.slane %v1010_v43, %v14966_v38 }
 0x345   : > { %1598 = vadd.xlane.f32.xlu0 %v1597_v35  ;;  %v807_v35 = vpop.permute.xlu1 %806 }
 0x346   : > { %v1026_v44 = vcombine.low %v807_v35, %v855_v11  ;;  %v1606_v15 = vsel %vm1482_vm0, %v1459_v10, 0.0  ;;  %v1525_v43 = vsel %vm1482_vm0, %v1432_v36, 0.0 }
 0x347   : > { %1511 = vadd.xlane.f32.xlu1 %v1510_v49  ;;  %v1433_v49 = vmul.f32 %v15157_v13, %v15157_v13  ;;  %v863_v14 = vpop.permute.xlu0 %862 }
 0x349   : > { %1493 = vadd.xlane.f32.xlu0 %v1492_v55  ;;  %v1430_v55 = vmul.f32 %v15116_v8, %v15116_v8  ;;  %v15181_v40 = vpop.permute.xlu1 %808  ;;  %v1528_v63 = vsel %vm1482_vm0, %v1433_v49, 0.0 }
 0x34b   : > { %1517 = vadd.xlane.f32.xlu1 %v1516_v7  ;;  %v15179_v7 = vrot.slane %v1262_v12, %v14973_v23  ;;  %v15196_v12 = vrot.slane %v1263_v58, %v14973_v23  ;;  %v1458_v58 = vmul.f32 %v15150_v60, %v15150_v60 }
 0x34d   : > { %1508 = vadd.xlane.f32.xlu0 %v1507_v22  ;;  %20008 = vst [vmem:[#allocation34_spill] sm:$0xff] %v15179_v7  ;;  %v1034_v22 = vrot.slane %v1026_v44, %v14966_v38  ;;  %20011 = vst [vmem:[#allocation36_spill] sm:$0xff] %v15196_v12  ;;  %v1027_v44 = vcombine.high %v807_v35, %v855_v11  ;;  %v15210_v11 = vpop.permute.xlu1 %816  ;;  %v1603_v36 = vsel %vm1482_vm0, %v1458_v58, 0.0 }
 0x34f   : > { %1523 = vadd.xlane.f32.xlu1 %v1522_v31  ;;  %v20009_v31 = vmov 0.0   ;;  %v1042_v49 = vcombine.low %v1018_v6, %v1034_v22  ;;  %v1041_v35 = vrot.slane %v1027_v44, %v14966_v38  ;;  %v1043_v10 = vcombine.high %v1018_v6, %v1034_v22 }
 0x350   : > { %v15189_v20 = vcombine.high %v15164_v29, %v20009_v31  ;;  %v1460_v22 = vmul.f32 %v15164_v29, %v15164_v29  ;;  %v1298_v44 = vcombine.low %v15080_v34, %v863_v14 }
 0x351   : > { %1514 = vadd.xlane.f32.xlu0 %v1513_v54  ;;  %v1519_v54 = vsel %vm1482_vm0, %v1430_v55, 0.0  ;;  %v1011_v55 = vcombine.high %v14923_v16, %v15104_v57  ;;  %v15221_v16 = vcombine.high %v15196_v12, %v20009_v31 }
 0x352   : > { %20010 = vst [vmem:[#allocation35_spill] sm:$0xff] %v15189_v20  ;;  %v1461_v4 = vmul.f32 %v15189_v20, %v15189_v20  ;;  %v1609_v58 = vsel %vm1482_vm0, %v1460_v22, 0.0 }
 0x353   : > { %1529 = vadd.xlane.f32.xlu1 %v1528_v63  ;;  %v15203_v63 = vcombine.high %v15179_v7, %v20009_v31  ;;  %20013 = vst [vmem:[#allocation38_spill] sm:$0xff] %v15221_v16  ;;  %v1025_v57 = vrot.slane %v1011_v55, %v14966_v38  ;;  %v1465_v55 = vmul.f32 %v15221_v16, %v15221_v16 }
 0x354   : > { %v1612_v18 = vsel %vm1482_vm0, %v1461_v4, 0.0  ;;  %v15229_v4 = vrot.slane %v1043_v10, %v14973_v23  ;;  %v1282_v10 = vcombine.low %v14925_v17, %v15134_v46 }
 0x355   : > { %1520 = vadd.xlane.f32.xlu0 %v1519_v54  ;;  %20012 = vst [vmem:[#allocation37_spill] sm:$0xff] %v15203_v63  ;;  %v15214_v54 = vrot.slane %v1042_v49, %v14973_v23  ;;  %v1058_v6 = vcombine.low %v1025_v57, %v1041_v35  ;;  %v15231_v49 = vpop.permute.xlu1 %832  ;;  %v1059_v47 = vcombine.high %v1025_v57, %v1041_v35  ;;  %v1624_v16 = vsel %vm1482_vm0, %v1465_v55, 0.0 }
 0x356   : > { %v15254_v22 = vcombine.high %v15229_v4, %v20009_v31  ;;  %v1464_v35 = vmul.f32 %v15196_v12, %v15196_v12  ;;  %v1290_v57 = vrot.slane %v1282_v10, %v14966_v38  ;;  %v1299_v55 = vcombine.high %v15080_v34, %v863_v14 }
 0x357   : > { %1607 = vadd.xlane.f32.xlu1 %v1606_v15  ;;  %v1463_v15 = vmul.f32 %v15203_v63, %v15203_v63  ;;  %v15247_v63 = vrot.slane %v1058_v6, %v14973_v23  ;;  %v15263_v6 = vrot.slane %v1059_v47, %v14973_v23  ;;  %v1283_v10 = vcombine.high %v14925_v17, %v15134_v46 }
 0x358   : > { %20015 = vst [vmem:[#allocation40_spill] sm:$0xff] %v15254_v22  ;;  %v1434_v47 = vmul.f32 %v15214_v54, %v15214_v54  ;;  %v1313_v14 = vrot.slane %v1299_v55, %v14966_v38 }
 0x359   : > { %1526 = vadd.xlane.f32.xlu0 %v1525_v43  ;;  %v1618_v43 = vsel %vm1482_vm0, %v1463_v15, 0.0  ;;  %v1306_v15 = vrot.slane %v1298_v44, %v14966_v38  ;;  %v15260_v44 = vpop.permute.xlu1 %840  ;;  %20016 = vst [vmem:[#allocation41_spill] sm:$0xff] %v15263_v6  ;;  %v15284_v20 = vcombine.high %v15263_v6, %v20009_v31  ;;  %v1297_v46 = vrot.slane %v1283_v10, %v14966_v38 }
 0x35a   : > { %v1078_v10 = vcombine.low %v14937_v19, %v15231_v49 }
 0x35b   : > { %1613 = vadd.xlane.f32.xlu1 %v1612_v18  ;;  %v15238_v18 = vcombine.high %v15214_v54, %v20009_v31  ;;  %v1315_v34 = vcombine.high %v1290_v57, %v1306_v15  ;;  %20018 = vst [vmem:[#allocation43_spill] sm:$0xff] %v15284_v20 }
 0x35d   : > { %1604 = vadd.xlane.f32.xlu0 %v1603_v36  ;;  %20014 = vst [vmem:[#allocation39_spill] sm:$0xff] %v15238_v18  ;;  %v1462_v36 = vmul.f32 %v15179_v7, %v15179_v7 }
 0x35f   : > { %1619 = vadd.xlane.f32.xlu1 %v1618_v43  ;;  %v1435_v43 = vmul.f32 %v15238_v18, %v15238_v18  ;;  %v1615_v7 = vsel %vm1482_vm0, %v1462_v36, 0.0  ;;  %v15271_v36 = vcombine.high %v15247_v63, %v20009_v31 }
 0x361   : > { %1610 = vadd.xlane.f32.xlu0 %v1609_v58  ;;  %v1314_v58 = vcombine.low %v1290_v57, %v1306_v15  ;;  %v1534_v18 = vsel %vm1482_vm0, %v1435_v43, 0.0  ;;  %20017 = vst [vmem:[#allocation42_spill] sm:$0xff] %v15271_v36  ;;  %v857_v43 = vpop.permute.xlu1 %856  ;;  %v1439_v12 = vmul.f32 %v15271_v36, %v15271_v36  ;;  %v1436_v15 = vmul.f32 %v15229_v4, %v15229_v4 }
 0x362   : > { %v1094_v57 = vcombine.low %v15181_v40, %v857_v43 }
 0x363   : > { %1625 = vadd.xlane.f32.xlu1 %v1624_v16  ;;  %v1437_v16 = vmul.f32 %v15254_v22, %v15254_v22  ;;  %v15287_v17 = vrot.slane %v1314_v58, %v14973_v23  ;;  %v1546_v55 = vsel %vm1482_vm0, %v1439_v12, 0.0  ;;  %v1331_v12 = vcombine.high %v1297_v46, %v1313_v14 }
 0x365   : > { %1616 = vadd.xlane.f32.xlu0 %v1615_v7  ;;  %v1621_v7 = vsel %vm1482_vm0, %v1464_v35, 0.0  ;;  %v1540_v22 = vsel %vm1482_vm0, %v1437_v16, 0.0  ;;  %20019 = vst [vmem:[#allocation44_spill] sm:$0xff] %v15287_v17  ;;  %v1330_v35 = vcombine.low %v1297_v46, %v1313_v14  ;;  %v1441_v16 = vmul.f32 %v15284_v20, %v15284_v20 }
 0x366   : > { %v15299_v58 = vcombine.high %v15287_v17, %v20009_v31  ;;  %v1440_v14 = vmul.f32 %v15263_v6, %v15263_v6  ;;  %v1095_v46 = vcombine.high %v15181_v40, %v857_v43  ;;  %v1466_v40 = vmul.f32 %v15287_v17, %v15287_v17 }
 0x367   : > { %1535 = vadd.xlane.f32.xlu1 %v1534_v18  ;;  %v1531_v18 = vsel %vm1482_vm0, %v1434_v47, 0.0  ;;  %v1438_v47 = vmul.f32 %v15247_v63, %v15247_v63  ;;  %v1552_v20 = vsel %vm1482_vm0, %v1441_v16, 0.0 }
 0x368   : > { %20020 = vst [vmem:[#allocation45_spill] sm:$0xff] %v15299_v58  ;;  %v1467_v36 = vmul.f32 %v15299_v58, %v15299_v58 }
 0x369   : > { %1622 = vadd.xlane.f32.xlu0 %v1621_v7  ;;  %v1537_v7 = vsel %vm1482_vm0, %v1436_v15, 0.0  ;;  %v1086_v15 = vrot.slane %v1078_v10, %v14966_v38  ;;  %v1079_v10 = vcombine.high %v14937_v19, %v15231_v49 }
 0x36a   : > { %v1630_v16 = vsel %vm1482_vm0, %v1467_v36, 0.0  ;;  %v1109_v36 = vrot.slane %v1095_v46, %v14966_v38 }
 0x36b   : > { %1541 = vadd.xlane.f32.xlu1 %v1540_v22  ;;  %v15302_v22 = vrot.slane %v1315_v34, %v14973_v23  ;;  %v1093_v49 = vrot.slane %v1079_v10, %v14966_v38 }
 0x36d   : > { %1532 = vadd.xlane.f32.xlu0 %v1531_v18  ;;  %20021 = vst [vmem:[#allocation46_spill] sm:$0xff] %v15302_v22  ;;  %v1102_v18 = vrot.slane %v1094_v57, %v14966_v38  ;;  %v15315_v34 = vcombine.high %v15302_v22, %v20009_v31 }
 0x36f   : > { %1547 = vadd.xlane.f32.xlu1 %v1546_v55  ;;  %20022 = vst [vmem:[#allocation47_spill] sm:$0xff] %v15315_v34  ;;  %v15318_v55 = vrot.slane %v1330_v35, %v14973_v23  ;;  %v1110_v57 = vcombine.low %v1086_v15, %v1102_v18  ;;  %v1469_v58 = vmul.f32 %v15315_v34, %v15315_v34  ;;  %v865_v34 = vpop.permute.xlu1 %864 }
 0x370   : > { %v1111_v43 = vcombine.high %v1086_v15, %v1102_v18  ;;  %v1468_v18 = vmul.f32 %v15302_v22, %v15302_v22  ;;  %v1126_v15 = vcombine.low %v1093_v49, %v1109_v36  ;;  %v1366_v46 = vcombine.low %v15210_v11, %v865_v34 }
 0x371   : > { %1538 = vadd.xlane.f32.xlu0 %v1537_v7  ;;  %20023 = vst [vmem:[#allocation48_spill] sm:$0xff] %v15318_v55  ;;  %v1543_v7 = vsel %vm1482_vm0, %v1438_v47, 0.0  ;;  %v15330_v35 = vcombine.high %v15318_v55, %v20009_v31  ;;  %v1549_v47 = vsel %vm1482_vm0, %v1440_v14, 0.0  ;;  %v1627_v14 = vsel %vm1482_vm0, %v1466_v40, 0.0 }
 0x372   : > { %v1470_v40 = vmul.f32 %v15318_v55, %v15318_v55 }
 0x373   : > { %1553 = vadd.xlane.f32.xlu1 %v1552_v20  ;;  %20024 = vst [vmem:[#allocation49_spill] sm:$0xff] %v15330_v35  ;;  %v15333_v20 = vrot.slane %v1331_v12, %v14973_v23  ;;  %v1636_v12 = vsel %vm1482_vm0, %v1469_v58, 0.0  ;;  %v1471_v6 = vmul.f32 %v15330_v35, %v15330_v35  ;;  %v15357_v58 = vrot.slane %v1111_v43, %v14973_v23 }
 0x374   : > { %v1127_v43 = vcombine.high %v1093_v49, %v1109_v36  ;;  %v1639_v35 = vsel %vm1482_vm0, %v1470_v40, 0.0  ;;  %v1351_v40 = vcombine.high %v14945_v21, %v15260_v44 }
 0x375   : > { %1544 = vadd.xlane.f32.xlu0 %v1543_v7  ;;  %20025 = vst [vmem:[#allocation50_spill] sm:$0xff] %v15333_v20  ;;  %v15342_v7 = vrot.slane %v1110_v57, %v14973_v23  ;;  %v15349_v19 = vcombine.high %v15333_v20, %v20009_v31  ;;  %20028 = vst [vmem:[#allocation53_spill] sm:$0xff] %v15357_v58  ;;  %v1642_v57 = vsel %vm1482_vm0, %v1471_v6, 0.0 }
 0x376   : > { %v15372_v6 = vrot.slane %v1126_v15, %v14973_v23  ;;  %v1472_v36 = vmul.f32 %v15333_v20, %v15333_v20  ;;  %v15387_v15 = vrot.slane %v1127_v43, %v14973_v23 }
 0x377   : > { %1631 = vadd.xlane.f32.xlu1 %v1630_v16  ;;  %20026 = vst [vmem:[#allocation51_spill] sm:$0xff] %v15342_v7  ;;  %20027 = vst [vmem:[#allocation52_spill] sm:$0xff] %v15349_v19  ;;  %v1473_v16 = vmul.f32 %v15349_v19, %v15349_v19  ;;  %v15364_v10 = vcombine.high %v15342_v7, %v20009_v31 }
 0x378   : > { %20030 = vst [vmem:[#allocation55_spill] sm:$0xff] %v15372_v6  ;;  %20032 = vst [vmem:[#allocation57_spill] sm:$0xff] %v15387_v15 }
 0x379   : > { %1550 = vadd.xlane.f32.xlu0 %v1549_v47  ;;  %20029 = vst [vmem:[#allocation54_spill] sm:$0xff] %v15364_v10  ;;  %v1633_v47 = vsel %vm1482_vm0, %v1468_v18, 0.0  ;;  %v1648_v19 = vsel %vm1482_vm0, %v1473_v16, 0.0  ;;  %v15380_v18 = vcombine.high %v15357_v58, %v20009_v31 }
 0x37b   : > { %1637 = vadd.xlane.f32.xlu1 %v1636_v12  ;;  %v1350_v12 = vcombine.low %v14945_v21, %v15260_v44  ;;  %20031 = vst [vmem:[#allocation56_spill] sm:$0xff] %v15380_v18  ;;  %v15411_v21 = vcombine.high %v15387_v15, %v20009_v31  ;;  %v1365_v44 = vrot.slane %v1351_v40, %v14966_v38 }
 0x37d   : > { %1628 = vadd.xlane.f32.xlu0 %v1627_v14  ;;  %v1374_v14 = vrot.slane %v1366_v46, %v14966_v38  ;;  %v1358_v49 = vrot.slane %v1350_v12, %v14966_v38  ;;  %v1367_v46 = vcombine.high %v15210_v11, %v865_v34  ;;  %v1442_v12 = vmul.f32 %v15342_v7, %v15342_v7 }
 0x37e   : > { %20035 = vst [vmem:[#allocation60_spill] sm:$0xff] %v15411_v21 }
 0x37f   : > { %1643 = vadd.xlane.f32.xlu1 %v1642_v57  ;;  %v1443_v57 = vmul.f32 %v15364_v10, %v15364_v10  ;;  %v1382_v16 = vcombine.low %v1358_v49, %v1374_v14  ;;  %v1445_v10 = vmul.f32 %v15380_v18, %v15380_v18  ;;  %v1381_v11 = vrot.slane %v1367_v46, %v14966_v38 }
 0x380   : > { %v1383_v34 = vcombine.high %v1358_v49, %v1374_v14  ;;  %v1444_v14 = vmul.f32 %v15357_v58, %v15357_v58 }
 0x381   : > { %1634 = vadd.xlane.f32.xlu0 %v1633_v47  ;;  %v1558_v47 = vsel %vm1482_vm0, %v1443_v57, 0.0  ;;  %v15404_v43 = vrot.slane %v1382_v16, %v14973_v23  ;;  %v1564_v57 = vsel %vm1482_vm0, %v1445_v10, 0.0  ;;  %v1398_v49 = vcombine.low %v1365_v44, %v1381_v11 }
 0x382   : > { %v15418_v46 = vrot.slane %v1383_v34, %v14973_v23  ;;  %v1449_v16 = vmul.f32 %v15411_v21, %v15411_v21  ;;  %v1561_v40 = vsel %vm1482_vm0, %v1444_v14, 0.0 }
 0x383   : > { %1649 = vadd.xlane.f32.xlu1 %v1648_v19  ;;  %v15395_v19 = vcombine.high %v15372_v6, %v20009_v31  ;;  %20034 = vst [vmem:[#allocation59_spill] sm:$0xff] %v15404_v43  ;;  %v15431_v34 = vrot.slane %v1398_v49, %v14973_v23 }
 0x384   : > { %20036 = vst [vmem:[#allocation61_spill] sm:$0xff] %v15418_v46 }
 0x385   : > { %1640 = vadd.xlane.f32.xlu0 %v1639_v35  ;;  %20033 = vst [vmem:[#allocation58_spill] sm:$0xff] %v15395_v19  ;;  %v1645_v35 = vsel %vm1482_vm0, %v1472_v36, 0.0  ;;  %v1447_v18 = vmul.f32 %v15395_v19, %v15395_v19  ;;  %v1555_v36 = vsel %vm1482_vm0, %v1442_v12, 0.0  ;;  %v1399_v12 = vcombine.high %v1365_v44, %v1381_v11  ;;  %20038 = vst [vmem:[#allocation63_spill] sm:$0xff] %v15431_v34 }
 0x387   : > { %1559 = vadd.xlane.f32.xlu1 %v1558_v47  ;;  %v1570_v10 = vsel %vm1482_vm0, %v1447_v18, 0.0  ;;  %v15425_v47 = vcombine.high %v15404_v43, %v20009_v31  ;;  %v1576_v18 = vsel %vm1482_vm0, %v1449_v16, 0.0  ;;  %v15444_v11 = vrot.slane %v1399_v12, %v14973_v23 }
 0x388   : > { %v15451_v16 = vcombine.high %v15431_v34, %v20009_v31 }
 0x389   : > { %1646 = vadd.xlane.f32.xlu0 %v1645_v35  ;;  %20037 = vst [vmem:[#allocation62_spill] sm:$0xff] %v15425_v47  ;;  %v1446_v35 = vmul.f32 %v15372_v6, %v15372_v6  ;;  %20040 = vst [vmem:[#allocation65_spill] sm:$0xff] %v15444_v11 }
 0x38a   : > { %20041 = vst [vmem:[#allocation66_spill] sm:$0xff] %v15451_v16  ;;  %v1479_v12 = vmul.f32 %v15451_v16, %v15451_v16  ;;  %v1478_v16 = vmul.f32 %v15431_v34, %v15431_v34 }
 0x38b   : > { %1565 = vadd.xlane.f32.xlu1 %v1564_v57  ;;  %v1475_v57 = vmul.f32 %v15425_v47, %v15425_v47  ;;  %v1567_v14 = vsel %vm1482_vm0, %v1446_v35, 0.0  ;;  %v1474_v35 = vmul.f32 %v15404_v43, %v15404_v43 }
 0x38d   : > { %1556 = vadd.xlane.f32.xlu0 %v1555_v36  ;;  %v15438_v36 = vcombine.high %v15418_v46, %v20009_v31  ;;  %v1654_v44 = vsel %vm1482_vm0, %v1475_v57, 0.0  ;;  %v15461_v57 = vcombine.high %v15444_v11, %v20009_v31 }
 0x38f   : > { %1571 = vadd.xlane.f32.xlu1 %v1570_v10  ;;  %20039 = vst [vmem:[#allocation64_spill] sm:$0xff] %v15438_v36  ;;  %v1448_v10 = vmul.f32 %v15387_v15, %v15387_v15  ;;  %v1477_v49 = vmul.f32 %v15438_v36, %v15438_v36  ;;  %20042 = vst [vmem:[#allocation67_spill] sm:$0xff] %v15461_v57 }
 0x391   : > { %1562 = vadd.xlane.f32.xlu0 %v1561_v40  ;;  %v1573_v40 = vsel %vm1482_vm0, %v1448_v10, 0.0  ;;  %v1666_v10 = vsel %vm1482_vm0, %v1479_v12, 0.0 }
 0x393   : > { %1577 = vadd.xlane.f32.xlu1 %v1576_v18  ;;  %v1660_v18 = vsel %vm1482_vm0, %v1477_v49, 0.0 }
 0x395   : > { %1568 = vadd.xlane.f32.xlu0 %v1567_v14  ;;  %v1651_v14 = vsel %vm1482_vm0, %v1474_v35, 0.0  ;;  %v1663_v35 = vsel %vm1482_vm0, %v1478_v16, 0.0  ;;  %v1878_v16 = vsub.s32 0, %v14963_v37 }
 0x397   : > { %1655 = vadd.xlane.f32.xlu1 %v1654_v44  ;;  %v1476_v44 = vmul.f32 %v15418_v46, %v15418_v46  ;;  %v1906_v43 = vrot.slane %v14867_v5, %v1878_v16 }
 0x399   : > { %1574 = vadd.xlane.f32.xlu0 %v1573_v40  ;;  %v1481_v40 = vmul.f32 %v15461_v57, %v15461_v57  ;;  %v1657_v49 = vsel %vm1482_vm0, %v1476_v44, 0.0 }
 0x39b   : > { %1661 = vadd.xlane.f32.xlu1 %v1660_v18  ;;  %v1672_v31 = vsel %vm1482_vm0, %v1481_v40, 0.0  ;;  %v1480_v18 = vmul.f32 %v15444_v11, %v15444_v11  ;;  %v1888_v11 = vrot.slane %v14861_v1, %v1878_v16 }
 0x39d   : > { %1652 = vadd.xlane.f32.xlu0 %v1651_v14  ;;  %v1669_v12 = vsel %vm1482_vm0, %v1480_v18, 0.0 }
 0x39f   : > { %1667 = vadd.xlane.f32.xlu1 %v1666_v10 }
 0x3a1   : > { %1658 = vadd.xlane.f32.xlu0 %v1657_v49  ;;  %v14507_v49 = vmov 1966171168  }
 0x3a2   : > { %v1914_v40 = vunpack.c.l.s4 %v14507_v49  ;;  %v1879_v49 = vrot.slane %v14865_v3, %v1878_v16 }
 0x3a3   : > { %1673 = vadd.xlane.f32.xlu1 %v1672_v31 }
 0x3a5   : > { %1664 = vadd.xlane.f32.xlu0 %v1663_v35  ;;  %v1915_v35 = vunpack.c.0.s8 %v1914_v40 }
 0x3a9   : > { %1670 = vadd.xlane.f32.xlu0 %v1669_v12 }
 0x3b2   : > { %v1485_v14 = vpop.xlane.xlu0 %1484 }
 0x3b3   : > { %v1675_v31 = vmax.f32 %v1485_v14, 1e-24 }
 0x3b4   : > { %v1488_v10 = vpop.xlane.xlu1 %1487 }
 0x3b5   : > { %v1676_v46 = vmax.f32 %v1488_v10, 1e-24  ;;  %v1897_v10 = vrot.slane %v14863_v2, %v1878_v16 }
 0x3b6   : > { %v1491_v57 = vpop.xlane.xlu0 %1490 }
 0x3b7   : > { %13947 = vrsqrt.f32 %v1676_v46  ;;  %v1918_v46 = vsub.s32 %v1915_v35, %v14963_v37  ;;  %v1912_v40 = vcombine.low %v1897_v10, %v1906_v43  ;;  %v1677_v58 = vmax.f32 %v1491_v57, 1e-24 }
 0x3b8   : > { %v1500_v44 = vpop.xlane.xlu1 %1499  ;;  %13949 = vrsqrt.f32 %v1675_v31  ;;  %v1911_v31 = vcombine.low %v1879_v49, %v1888_v11 }
 0x3b9   : > { %v1926_v19 = vrot.slane %v1912_v40, %v1918_v46  ;;  %13951 = vrsqrt.f32 %v1677_v58  ;;  %v1680_v40 = vmax.f32 %v1500_v44, 1e-24 }
 0x3ba   : > { %v1497_v36 = vpop.xlane.xlu0 %1496  ;;  %v1919_v6 = vrot.slane %v1911_v31, %v1918_v46 }
 0x3bc   : > { %v15477_v34 = vpop.xlane.xlu1 %1505  ;;  %v1927_v3 = vcombine.low %v1919_v6, %v1926_v19  ;;  %v1679_v19 = vmax.f32 %v1497_v36, 1e-24 }
 0x3be   : > { %v15479_v47 = vpop.xlane.xlu0 %1502  ;;  %v15507_v11 = vrot.slane %v1927_v3, %v1918_v46 }
 0x3c0   : > { %v15482_v18 = vpop.xlane.xlu1 %1583 }
 0x3c1   : > { %v1708_v55 = vmax.f32 %v15482_v18, 1e-24 }
 0x3c2   : > { %v15484_v12 = vpop.xlane.xlu0 %1580 }
 0x3c4   : > { %v15490_v14 = vpop.xlane.xlu1 %1589  ;;  %v13948_v2 = vpop.eup %13947 }
 0x3c5   : > { %v13950_v5 = vpop.eup %13949  ;;  %v1804_v20 = vmul.f32 %v13948_v2, %v14993_v32  ;;  %v1710_v22 = vmax.f32 %v15490_v14, 1e-24 }
 0x3c6   : > { %v15492_v21 = vpop.xlane.xlu0 %1586  ;;  %v1803_v43 = vmul.f32 %v13950_v5, %v14982_v59  ;;  %v13952_v46 = vpop.eup %13951 }
 0x3c7   : > { %v1937_v10 = vmul.f32 %v15507_v11, %v1804_v20  ;;  %v1805_v2 = vmul.f32 %v13952_v46, %v14996_v39  ;;  %v1682_v39 = vmax.f32 %v15477_v34, 1e-24  ;;  %v1707_v34 = vmax.f32 %v15484_v12, 1e-24 }
 0x3c8   : > { %v15495_v15 = vpop.xlane.xlu1 %1595  ;;  %v1936_v6 = vmul.f32 %v15507_v11, %v1803_v43  ;;  %v1709_v18 = vmax.f32 %v15492_v21, 1e-24 }
 0x3c9   : > { %v1938_v36 = vmul.f32 %v15507_v11, %v1805_v2 }
 0x3ca   : > { %v15497_v1 = vpop.xlane.xlu0 %1592 }
 0x3cc   : > { %v15499_v7 = vpop.xlane.xlu1 %1601 }
 0x3ce   : > { %v15501_v16 = vpop.xlane.xlu0 %1598 }
 0x3d0   : > { %v15504_v37 = vpop.xlane.xlu1 %1511 }
 0x3d2   : > { %v1494_v35 = vpop.xlane.xlu0 %1493 }
 0x3d3   : > { %v1678_v57 = vmax.f32 %v1494_v35, 1e-24  ;;  %v1681_v35 = vmax.f32 %v15479_v47, 1e-24 }
 0x3d4   : > { %v15510_v49 = vpop.xlane.xlu1 %1517 }
 0x3d5   : > { %13953 = vrsqrt.f32 %v1678_v57 }
 0x3d6   : > { %2032 = vxpose.xlu0.b32.start.end [1/1] (short) (narrow) %v1937_v10, 32  ;;  %v15513_v58 = vpop.xlane.xlu0 %1508  ;;  %2000 = vxpose.xlu1.b32.start.end [1/1] (short) (narrow) %v1936_v6, 32  ;;  %13955 = vrsqrt.f32 %v1679_v19 }
 0x3d7   : > { %13957 = vrsqrt.f32 %v1680_v40 }
 0x3d8   : > { %v15515_v32 = vpop.xlane.xlu1 %1523  ;;  %13959 = vrsqrt.f32 %v1681_v35 }
 0x3d9   : > { %13961 = vrsqrt.f32 %v1682_v39 }
 0x3da   : > { %v15517_v59 = vpop.xlane.xlu0 %1514  ;;  %13963 = vrsqrt.f32 %v1707_v34 }
 0x3db   : > { %13965 = vrsqrt.f32 %v1708_v55 }
 0x3dc   : > { %v15519_v31 = vpop.xlane.xlu1 %1529  ;;  %13967 = vrsqrt.f32 %v1709_v18 }
 0x3dd   : > { %13969 = vrsqrt.f32 %v1710_v22  ;;  %v1712_v22 = vmax.f32 %v15495_v15, 1e-24 }
 0x3de   : > { %v15521_v20 = vpop.xlane.xlu0 %1520 }
 0x3e0   : > { %v15524_v5 = vpop.xlane.xlu1 %1607 }
 0x3e2   : > { %v13954_v3 = vpop.eup %13953  ;;  %v15526_v43 = vpop.xlane.xlu0 %1526 }
 0x3e3   : > { %v1806_v44 = vmul.f32 %v13954_v3, %v15111_v61  ;;  %2064 = vxpose.xlu1.b32.start.end [1/1] (short) (narrow) %v1938_v36, 32  ;;  %v13956_v19 = vpop.eup %13955 }
 0x3e4   : > { %v15531_v57 = vpop.xlane.xlu1 %1613  ;;  %v13958_v2 = vpop.eup %13957  ;;  %v1807_v61 = vmul.f32 %v13956_v19, %v14989_v62 }
 0x3e5   : > { %v1939_v10 = vmul.f32 %v15507_v11, %v1806_v44  ;;  %v1808_v3 = vmul.f32 %v13958_v2, %v15009_v26  ;;  %v13960_v39 = vpop.eup %13959 }
 0x3e6   : > { %v15534_v6 = vpop.xlane.xlu0 %1604  ;;  %v1940_v44 = vmul.f32 %v15507_v11, %v1807_v61  ;;  %v13962_v26 = vpop.eup %13961  ;;  %v1809_v2 = vmul.f32 %v13960_v39, %v15012_v27 }
 0x3e7   : > { %2096 = vxpose.xlu0.b32.start.end [1/1] (short) (narrow) %v1939_v10, 32  ;;  %v1941_v10 = vmul.f32 %v15507_v11, %v1808_v3  ;;  %v13964_v27 = vpop.eup %13963 }
 0x3e8   : > { %v15537_v40 = vpop.xlane.xlu1 %1619  ;;  %v1942_v3 = vmul.f32 %v15507_v11, %v1809_v2  ;;  %v13966_v39 = vpop.eup %13965 }
 0x3e9   : > { %v1836_v21 = vmul.f32 %v13966_v39, %v15041_v53 }
 0x3ea   : > { %v15539_v46 = vpop.xlane.xlu0 %1610 }
 0x3ec   : > { %v15545_v36 = vpop.xlane.xlu1 %1625 }
 0x3ee   : > { %v15542_v47 = vpop.xlane.xlu0 %1616 }
 0x3f0   : > { %2128 = vxpose.xlu1.b32.start.end [1/1] (short) (narrow) %v1940_v44, 32  ;;  %v15553_v62 = vpop.xlane.xlu1 %1535  ;;  %v1810_v44 = vmul.f32 %v13962_v26, %v15027_v42  ;;  %v1835_v42 = vmul.f32 %v13964_v27, %v15017_v30  ;;  %v13968_v30 = vpop.eup %13967 }
 0x3f1   : > { %v13970_v27 = vpop.eup %13969  ;;  %v1837_v53 = vmul.f32 %v13968_v30, %v15031_v45 }
 0x3f2   : > { %v15549_v35 = vpop.xlane.xlu0 %1622  ;;  %v1943_v34 = vmul.f32 %v15507_v11, %v1810_v44  ;;  %v1968_v44 = vmul.f32 %v15507_v11, %v1835_v42 }
 0x3f3   : > { %v1970_v42 = vmul.f32 %v15507_v11, %v1837_v53 }
 0x3f4   : > { %2160 = vxpose.xlu0.b32.start.end [1/1] (short) (narrow) %v1941_v10, 32  ;;  %v15560_v12 = vpop.xlane.xlu1 %1541 }
 0x3f6   : > { %v15555_v19 = vpop.xlane.xlu0 %1532 }
 0x3f8   : > { %v15569_v55 = vpop.xlane.xlu1 %1547 }
 0x3fa   : > { %v15558_v61 = vpop.xlane.xlu0 %1538 }
 0x3fc   : > { %v15574_v2 = vpop.xlane.xlu1 %1553 }
 0x3fd   : > { %2192 = vxpose.xlu1.b32.start.end [1/1] (short) (narrow) %v1942_v3, 32  ;;  %v1711_v3 = vmax.f32 %v15497_v1, 1e-24  ;;  %v1838_v1 = vmul.f32 %v13970_v27, %v15057_v0 }
 0x3fe   : > { %v15566_v10 = vpop.xlane.xlu0 %1544 }
 0x3ff   : > { %13971 = vrsqrt.f32 %v1711_v3  ;;  %v1971_v3 = vmul.f32 %v15507_v11, %v1838_v1  ;;  %v1683_v1 = vmax.f32 %v15513_v58, 1e-24 }
 0x400   : > { %v15582_v18 = vpop.xlane.xlu1 %1631  ;;  %13973 = vrsqrt.f32 %v1712_v22 }
 0x401   : > { %2224 = vxpose.xlu0.b32.start.end [1/1] (short) (narrow) %v1943_v34, 32  ;;  %v1969_v34 = vmul.f32 %v15507_v11, %v1836_v21  ;;  %v1713_v21 = vmax.f32 %v15501_v16, 1e-24 }
 0x402   : > { %v15572_v26 = vpop.xlane.xlu0 %1550 }
 0x403   : > { %13975 = vrsqrt.f32 %v1713_v21 }
 0x404   : > { %v15588_v39 = vpop.xlane.xlu1 %1637 }
 0x406   : > { %v15579_v14 = vpop.xlane.xlu0 %1628 }
 0x408   : > { %v15595_v15 = vpop.xlane.xlu1 %1643 }
 0x40a   : > { %3024 = vxpose.xlu1.b32.start.end [1/1] (short) (narrow) %v1968_v44, 32  ;;  %v15585_v17 = vpop.xlane.xlu0 %1634 }
 0x40c   : > { %v13972_v22 = vpop.eup %13971  ;;  %v15601_v0 = vpop.xlane.xlu1 %1649 }
 0x40d   : > { %v13974_v30 = vpop.eup %13973  ;;  %20045 = vst [vmem:[#allocation70_spill] sm:$0xff] %v15601_v0  ;;  %v1839_v16 = vmul.f32 %v13972_v22, %v15050_v24 }
 0x40e   : > { %3056 = vxpose.xlu0.b32.start.end [1/1] (short) (narrow) %v1969_v34, 32  ;;  %v15593_v44 = vpop.xlane.xlu0 %1640  ;;  %v1714_v34 = vmax.f32 %v15499_v7, 1e-24  ;;  %v1840_v27 = vmul.f32 %v13974_v30, %v15072_v28 }
 0x40f   : > { %20043 = vst [vmem:[#allocation68_spill] sm:$0xff] %v15593_v44  ;;  %v1972_v53 = vmul.f32 %v15507_v11, %v1839_v16 }
 0x410   : > { %13977 = vrsqrt.f32 %v1714_v34  ;;  %v15609_v7 = vpop.xlane.xlu1 %1559  ;;  %v1973_v21 = vmul.f32 %v15507_v11, %v1840_v27  ;;  %v13976_v34 = vpop.eup %13975 }
 0x411   : > { %20047 = vst [vmem:[#allocation72_spill] sm:$0xff] %v15609_v7  ;;  %13979 = vrsqrt.f32 %v1683_v1  ;;  %v1841_v22 = vmul.f32 %v13976_v34, %v15062_v9  ;;  %v1686_v1 = vmax.f32 %v15510_v49, 1e-24  ;;  %v1687_v49 = vmax.f32 %v15521_v20, 1e-24 }
 0x412   : > { %v15599_v45 = vpop.xlane.xlu0 %1646 }
 0x413   : > { %20044 = vst [vmem:[#allocation69_spill] sm:$0xff] %v15599_v45  ;;  %v1974_v16 = vmul.f32 %v15507_v11, %v1841_v22 }
 0x414   : > { %v15615_v24 = vpop.xlane.xlu1 %1565 }
 0x415   : > { %20049 = vst [vmem:[#allocation74_spill] sm:$0xff] %v15615_v24 }
 0x417   : > { %3088 = vxpose.xlu1.b32.start.end [1/1] (short) (narrow) %v1970_v42, 32  ;;  %v15606_v42 = vpop.xlane.xlu0 %1556 }
 0x418   : > { %20046 = vst [vmem:[#allocation71_spill] sm:$0xff] %v15606_v42  ;;  %v15622_v27 = vpop.xlane.xlu1 %1571  ;;  %v20066_v42 = vld [vmem:[#allocation38_spill] sm:$0xff] }
 0x419   : > { %20051 = vst [vmem:[#allocation76_spill] sm:$0xff] %v15622_v27 }
 0x41b   : > { %3120 = vxpose.xlu0.b32.start.end [1/1] (short) (narrow) %v1971_v3, 32  ;;  %v1684_v3 = vmax.f32 %v15504_v37, 1e-24  ;;  %v15613_v45 = vpop.xlane.xlu0 %1562  ;;  %v1685_v37 = vmax.f32 %v15517_v59, 1e-24 }
 0x41c   : > { %20048 = vst [vmem:[#allocation73_spill] sm:$0xff] %v15613_v45  ;;  %v15629_v9 = vpop.xlane.xlu1 %1577  ;;  %v20065_v45 = vld [vmem:[#allocation36_spill] sm:$0xff] }
 0x41d   : > { %v13978_v28 = vpop.eup %13977  ;;  %13981 = vrsqrt.f32 %v1684_v3  ;;  %20053 = vst [vmem:[#allocation78_spill] sm:$0xff] %v15629_v9  ;;  %v20063_v9 = vld [vmem:[#allocation37_spill] sm:$0xff] }
 0x41e   : > { %v1842_v58 = vmul.f32 %v13978_v28, %v15088_v48  ;;  %13983 = vrsqrt.f32 %v1685_v37  ;;  %v1688_v37 = vmax.f32 %v15515_v32, 1e-24  ;;  %v1689_v32 = vmax.f32 %v15526_v43, 1e-24 }
 0x41f   : > { %v15619_v30 = vpop.xlane.xlu0 %1568  ;;  %13985 = vrsqrt.f32 %v1686_v1  ;;  %v1715_v43 = vmax.f32 %v15534_v6, 1e-24  ;;  %v1720_v6 = vmax.f32 %v15537_v40, 1e-24 }
 0x420   : > { %20050 = vst [vmem:[#allocation75_spill] sm:$0xff] %v15619_v30  ;;  %v15635_v22 = vpop.xlane.xlu1 %1655  ;;  %13987 = vrsqrt.f32 %v1687_v49 }
 0x421   : > { %20055 = vst [vmem:[#allocation80_spill] sm:$0xff] %v15635_v22  ;;  %13989 = vrsqrt.f32 %v1688_v37 }
 0x422   : > { %13991 = vrsqrt.f32 %v1689_v32 }
 0x423   : > { %v15627_v3 = vpop.xlane.xlu0 %1574 }
 0x424   : > { %3152 = vxpose.xlu1.b32.start.end [1/1] (short) (narrow) %v1972_v53, 32  ;;  %v1975_v53 = vmul.f32 %v15507_v11, %v1842_v58  ;;  %20052 = vst [vmem:[#allocation77_spill] sm:$0xff] %v15627_v3 }
 0x427   : > { %v15632_v28 = vpop.xlane.xlu0 %1652 }
 0x428   : > { %3184 = vxpose.xlu0.b32.start.end [1/1] (short) (narrow) %v1973_v21, 32  ;;  %v13980_v21 = vpop.eup %13979  ;;  %20054 = vst [vmem:[#allocation79_spill] sm:$0xff] %v15632_v28  ;;  %v1692_v28 = vmax.f32 %v15553_v62, 1e-24 }
 0x429   : > { %v1811_v34 = vmul.f32 %v13980_v21, %v15078_v33  ;;  %v15643_v33 = vpop.xlane.xlu1 %1661 }
 0x42a   : > { %v13982_v48 = vpop.eup %13981  ;;  %20057 = vst [vmem:[#allocation82_spill] sm:$0xff] %v15643_v33 }
 0x42b   : > { %v1812_v59 = vmul.f32 %v13982_v48, %v15102_v56  ;;  %v1944_v58 = vmul.f32 %v15507_v11, %v1811_v34  ;;  %v13984_v1 = vpop.eup %13983 }
 0x42c   : > { %v13986_v21 = vpop.eup %13985  ;;  %v1813_v56 = vmul.f32 %v13984_v1, %v15095_v52 }
 0x42d   : > { %v15648_v34 = vpop.xlane.xlu1 %1667  ;;  %v1814_v20 = vmul.f32 %v13986_v21, %v15124_v25  ;;  %v13988_v52 = vpop.eup %13987 }
 0x42e   : > { %20059 = vst [vmem:[#allocation84_spill] sm:$0xff] %v15648_v34  ;;  %v1815_v21 = vmul.f32 %v13988_v52, %v15116_v8  ;;  %v1718_v8 = vmax.f32 %v15531_v57, 1e-24 }
 0x431   : > { %3216 = vxpose.xlu1.b32.start.end [1/1] (short) (narrow) %v1974_v16, 32  ;;  %v1945_v16 = vmul.f32 %v15507_v11, %v1812_v59  ;;  %v1946_v59 = vmul.f32 %v15507_v11, %v1813_v56  ;;  %v15657_v37 = vpop.xlane.xlu1 %1673 }
 0x432   : > { %20061 = vst [vmem:[#allocation86_spill] sm:$0xff] %v15657_v37 }
 0x435   : > { %3248 = vxpose.xlu0.b32.start.end [1/1] (short) (narrow) %v1975_v53, 32  ;;  %v15641_v53 = vpop.xlane.xlu0 %1658 }
 0x436   : > { %20056 = vst [vmem:[#allocation81_spill] sm:$0xff] %v15641_v53 }
 0x439   : > { %v15646_v48 = vpop.xlane.xlu0 %1664 }
 0x43a   : > { %20058 = vst [vmem:[#allocation83_spill] sm:$0xff] %v15646_v48  ;;  %v13990_v48 = vpop.eup %13989 }
 0x43b   : > { %v13992_v37 = vpop.eup %13991 }
 0x43c   : > { %v1817_v52 = vmul.f32 %v13992_v37, %v15131_v41  ;;  %v1721_v41 = vmax.f32 %v15549_v35, 1e-24 }
 0x43d   : > { %v15654_v49 = vpop.xlane.xlu0 %1670 }
 0x43e   : > { %2256 = vxpose.xlu1.b32.start.end [1/1] (short) (narrow) %v1944_v58, 32  ;;  %v1947_v58 = vmul.f32 %v15507_v11, %v1814_v20  ;;  %20060 = vst [vmem:[#allocation85_spill] sm:$0xff] %v15654_v49  ;;  %v1816_v20 = vmul.f32 %v13990_v48, %v15141_v51  ;;  %v1948_v49 = vmul.f32 %v15507_v11, %v1815_v21  ;;  %v1717_v48 = vmax.f32 %v15539_v46, 1e-24 }
 0x43f   : > { %v1950_v40 = vmul.f32 %v15507_v11, %v1817_v52 }
 0x440   : > { %v1949_v32 = vmul.f32 %v15507_v11, %v1816_v20 }
 0x442   : > { %2288 = vxpose.xlu0.b32.start.end [1/1] (short) (narrow) %v1945_v16, 32  ;;  %v1690_v16 = vmax.f32 %v15519_v31, 1e-24 }
 0x444   : > { %13993 = vrsqrt.f32 %v1690_v16 }
 0x445   : > { %13995 = vrsqrt.f32 %v1715_v43  ;;  %v1719_v43 = vmax.f32 %v15542_v47, 1e-24 }
 0x44b   : > { %2320 = vxpose.xlu1.b32.start.end [1/1] (short) (narrow) %v1946_v59, 32 }
 0x44f   : > { %2352 = vxpose.xlu0.b32.start.end [1/1] (short) (narrow) %v1947_v58, 32  ;;  %v1716_v58 = vmax.f32 %v15524_v5, 1e-24  ;;  %v1722_v5 = vmax.f32 %v15545_v36, 1e-24 }
 0x451   : > { %13997 = vrsqrt.f32 %v1716_v58  ;;  %v13994_v21 = vpop.eup %13993 }
 0x452   : > { %v2048_v1 = vpop.trf.xlu0  ;;  %v2016_v25 = vpop.trf.xlu1  ;;  %13999 = vrsqrt.f32 %v1718_v8 }
 0x453   : > { %14001 = vrsqrt.f32 %v1720_v6 }
 0x454   : > { %14003 = vrsqrt.f32 %v1717_v48 }
 0x455   : > { %14005 = vrsqrt.f32 %v1722_v5 }
 0x456   : > { %v2049_v56 = vpop.trf.xlu0  ;;  %v2017_v59 = vpop.trf.xlu1  ;;  %14007 = vrsqrt.f32 %v1719_v43 }
 0x457   : > { %14009 = vrsqrt.f32 %v1721_v41 }
 0x458   : > { %2384 = vxpose.xlu1.b32.start.end [1/1] (short) (narrow) %v1948_v49, 32  ;;  %14011 = vrsqrt.f32 %v1692_v28 }
 0x45a   : > { %v15663_v31 = vpop.trf.xlu0  ;;  %v15667_v16 = vpop.trf.xlu1 }
 0x45c   : > { %2416 = vxpose.xlu0.b32.start.end [1/1] (short) (narrow) %v1949_v32, 32  ;;  %v1818_v32 = vmul.f32 %v13994_v21, %v15157_v13  ;;  %v13996_v13 = vpop.eup %13995 }
 0x45e   : > { %v15671_v51 = vpop.trf.xlu0  ;;  %v15674_v49 = vpop.trf.xlu1  ;;  %v1951_v6 = vmul.f32 %v15507_v11, %v1818_v32 }
 0x462   : > { %v2080_v57 = vpop.trf.xlu1 }
 0x463   : > { %v2112_v20 = vpop.trf.xlu0  ;;  %v4048_v58 = vcombine.low %v2016_v25, %v2080_v57  ;;  %v4049_v46 = vcombine.high %v2016_v25, %v2080_v57  ;;  %v1843_v57 = vmul.f32 %v13996_v13, %v15150_v60 }
 0x464   : > { %v4064_v34 = vcombine.low %v2048_v1, %v2112_v20  ;;  %v4065_v53 = vcombine.high %v2048_v1, %v2112_v20 }
 0x465   : > { %v15683_v37 = vrot.slane %v4048_v58, %v14966_v38  ;;  %v15686_v36 = vrot.slane %v4049_v46, %v14966_v38  ;;  %2448 = vxpose.xlu1.b32.start.end [1/1] (short) (narrow) %v1950_v40, 32 }
 0x466   : > { %v15689_v47 = vrot.slane %v4064_v34, %v14966_v38  ;;  %v15692_v8 = vrot.slane %v4065_v53, %v14966_v38  ;;  %v2081_v25 = vpop.trf.xlu1 }
 0x467   : > { %v2113_v1 = vpop.trf.xlu0  ;;  %v5136_v52 = vcombine.low %v2017_v59, %v2081_v25  ;;  %v5137_v21 = vcombine.high %v2017_v59, %v2081_v25  ;;  %v13998_v25 = vpop.eup %13997 }
 0x468   : > { %v5152_v5 = vcombine.low %v2049_v56, %v2113_v1  ;;  %v5153_v43 = vcombine.high %v2049_v56, %v2113_v1 }
 0x469   : > { %2480 = vxpose.xlu0.b32.start.end [1/1] (short) (narrow) %v1951_v6, 32  ;;  %v15705_v20 = vrot.slane %v5136_v52, %v14966_v38  ;;  %v15708_v40 = vrot.slane %v5137_v21, %v14966_v38  ;;  %v1976_v52 = vmul.f32 %v15507_v11, %v1843_v57  ;;  %v1844_v21 = vmul.f32 %v13998_v25, %v15171_v50 }
 0x46a   : > { %v15711_v32 = vrot.slane %v5152_v5, %v14966_v38  ;;  %v15714_v58 = vrot.slane %v5153_v43, %v14966_v38  ;;  %v2082_v46 = vpop.trf.xlu1  ;;  %v14000_v5 = vpop.eup %13999 }
 0x46b   : > { %v2114_v59 = vpop.trf.xlu0  ;;  %v6224_v56 = vcombine.low %v15667_v16, %v2082_v46  ;;  %v6225_v41 = vcombine.high %v15667_v16, %v2082_v46  ;;  %v1977_v33 = vmul.f32 %v15507_v11, %v1844_v21 }
 0x46c   : > { %v6240_v60 = vcombine.low %v15663_v31, %v2114_v59  ;;  %v6241_v13 = vcombine.high %v15663_v31, %v2114_v59  ;;  %v14002_v59 = vpop.eup %14001 }
 0x46d   : > { %v15729_v43 = vrot.slane %v6224_v56, %v14966_v38  ;;  %v15732_v16 = vrot.slane %v6225_v41, %v14966_v38  ;;  %v14004_v53 = vpop.eup %14003 }
 0x46e   : > { %v15735_v31 = vrot.slane %v6240_v60, %v14966_v38  ;;  %v15738_v46 = vrot.slane %v6241_v13, %v14966_v38  ;;  %v2083_v6 = vpop.trf.xlu1  ;;  %v14006_v25 = vpop.eup %14005  ;;  %v1845_v21 = vmul.f32 %v14004_v53, %v15164_v29 }
 0x46f   : > { %v2115_v1 = vpop.trf.xlu0  ;;  %v7312_v34 = vcombine.low %v15674_v49, %v2083_v6  ;;  %v7313_v48 = vcombine.high %v15674_v49, %v2083_v6  ;;  %v14008_v6 = vpop.eup %14007  ;;  %v1850_v29 = vmul.f32 %v14006_v25, %v20066_v42 }
 0x470   : > { %v7328_v57 = vcombine.low %v15671_v51, %v2115_v1  ;;  %v7329_v50 = vcombine.high %v15671_v51, %v2115_v1  ;;  %v1978_v62 = vmul.f32 %v15507_v11, %v1845_v21 }
 0x471   : > { %v15755_v56 = vrot.slane %v7312_v34, %v14966_v38  ;;  %v15758_v41 = vrot.slane %v7313_v48, %v14966_v38  ;;  %v15808_v28 = vmul.f32 %v15507_v11, %v1850_v29 }
 0x472   : > { %v15761_v60 = vrot.slane %v7328_v57, %v14966_v38  ;;  %v15764_v13 = vrot.slane %v7329_v50, %v14966_v38  ;;  %v2144_v35 = vpop.trf.xlu1  ;;  %3280 = vxpose.xlu1.b32.start.end [1/1] (short) (narrow) %v1976_v52, 32  ;;  %v14010_v57 = vpop.eup %14009 }
 0x473   : > { %v2176_v49 = vpop.trf.xlu0  ;;  %v1849_v24 = vmul.f32 %v14010_v57, %v20065_v45  ;;  %v20071_v57 = vcombine.high %v15686_v36, %v15692_v8 }
 0x474   : > { %v7376_v51 = vcombine.low %v15755_v56, %v15761_v60  ;;  %v7377_v34 = vcombine.high %v15755_v56, %v15761_v60  ;;  %v7392_v48 = vcombine.low %v15758_v41, %v15764_v13  ;;  %v7393_v1 = vcombine.high %v15758_v41, %v15764_v13  ;;  %v20062_v60 = vld [vmem:[#allocation35_spill] sm:$0xff]  ;;  %v20064_v13 = vld [vmem:[#allocation34_spill] sm:$0xff] }
 0x475   : > { %v1691_v56 = vmax.f32 %v15555_v19, 1e-24  ;;  %v1846_v30 = vmul.f32 %v14000_v5, %v20062_v60  ;;  %v1848_v41 = vmul.f32 %v14002_v59, %v20063_v9  ;;  %v1847_v27 = vmul.f32 %v14008_v6, %v20064_v13 }
 0x476   : > { %3312 = vxpose.xlu0.b32.start.end [1/1] (short) (narrow) %v1977_v33, 32  ;;  %v15775_v50 = vpop.trf.xlu1  ;;  %v1693_v33 = vmax.f32 %v15558_v61, 1e-24  ;;  %v15805_v42 = vmul.f32 %v15507_v11, %v1849_v24  ;;  %v20067_v59 = vcombine.low %v15683_v37, %v15689_v47  ;;  %v20069_v24 = vcombine.low %v15686_v36, %v15692_v8 }
 0x477   : > { %v15777_v52 = vpop.trf.xlu0  ;;  %14013 = vrsqrt.f32 %v1691_v56  ;;  %v1979_v61 = vmul.f32 %v15507_v11, %v1846_v30  ;;  %v15801_v5 = vmul.f32 %v15507_v11, %v1848_v41  ;;  %v1980_v45 = vmul.f32 %v15507_v11, %v1847_v27 }
 0x478   : > { %14015 = vrsqrt.f32 %v1693_v33  ;;  %v15814_v25 = vrot.slane %v20067_v59, %v14973_v23  ;;  %v20068_v30 = vcombine.high %v15683_v37, %v15689_v47  ;;  %v15826_v27 = vrot.slane %v20069_v24, %v14973_v23 }
 0x479   : > { %v15832_v21 = vrot.slane %v20071_v57, %v14973_v23  ;;  %v20073_v56 = vcombine.low %v15705_v20, %v15711_v32  ;;  %v20075_v37 = vcombine.high %v15705_v20, %v15711_v32  ;;  %v20077_v41 = vcombine.low %v15708_v40, %v15714_v58 }
 0x47a   : > { %v15781_v3 = vpop.trf.xlu1  ;;  %v15820_v6 = vrot.slane %v20068_v30, %v14973_v23  ;;  %20070 = vst [vmem:[#allocation35_spill] sm:$0xff] %v15826_v27  ;;  %v20079_v36 = vcombine.high %v15708_v40, %v15714_v58  ;;  %v20081_v30 = vcombine.low %v15729_v43, %v15735_v31  ;;  %v20083_v57 = vcombine.high %v15729_v43, %v15735_v31 }
 0x47b   : > { %v15783_v22 = vpop.trf.xlu0  ;;  %20072 = vst [vmem:[#allocation37_spill] sm:$0xff] %v15832_v21  ;;  %v15838_v60 = vrot.slane %v20073_v56, %v14973_v23  ;;  %v15844_v47 = vrot.slane %v20075_v37, %v14973_v23  ;;  %v15850_v33 = vrot.slane %v20077_v41, %v14973_v23  ;;  %v20085_v58 = vcombine.low %v15732_v16, %v15738_v46 }
 0x47c   : > { %v15856_v8 = vrot.slane %v20079_v36, %v14973_v23  ;;  %v15862_v24 = vrot.slane %v20081_v30, %v14973_v23  ;;  %v15868_v40 = vrot.slane %v20083_v57, %v14973_v23  ;;  %v15887_v41 = vrot.slane %v7376_v51, %v14973_v23 }
 0x47d   : > { %20074 = vst [vmem:[#allocation34_spill] sm:$0xff] %v15838_v60  ;;  %20076 = vst [vmem:[#allocation36_spill] sm:$0xff] %v15844_v47  ;;  %v15890_v36 = vrot.slane %v7377_v34, %v14973_v23 }
 0x47e   : > { %v15794_v7 = vpop.trf.xlu1  ;;  %20078 = vst [vmem:[#allocation38_spill] sm:$0xff] %v15850_v33  ;;  %20080 = vst [vmem:[#allocation87_spill] sm:$0xff] %v15856_v8 }
 0x47f   : > { %v15796_v19 = vpop.trf.xlu0  ;;  %3344 = vxpose.xlu1.b32.start.end [1/1] (short) (narrow) %v1978_v62, 32  ;;  %20082 = vst [vmem:[#allocation88_spill] sm:$0xff] %v15862_v24  ;;  %20084 = vst [vmem:[#allocation89_spill] sm:$0xff] %v15868_v40  ;;  %v20116_v40 = vld [vmem:[#allocation45_spill] sm:$0xff] }
 0x480   : > { %20089 = vst [vmem:[#allocation92_spill] sm:$0xff] %v15887_v41  ;;  %20090 = vst [vmem:[#allocation93_spill] sm:$0xff] %v15890_v36 }
 0x482   : > { %v2208_v13 = vpop.trf.xlu1 }
 0x483   : > { %3376 = vxpose.xlu0.b32.start.end [1/1] (short) (narrow) %v1979_v61, 32  ;;  %v2240_v29 = vpop.trf.xlu0  ;;  %v4080_v62 = vcombine.low %v2144_v35, %v2208_v13  ;;  %v4081_v59 = vcombine.high %v2144_v35, %v2208_v13  ;;  %v15874_v61 = vrot.slane %v20085_v58, %v14973_v23  ;;  %v20087_v35 = vcombine.high %v15732_v16, %v15738_v46 }
 0x484   : > { %v4096_v20 = vcombine.low %v2176_v49, %v2240_v29  ;;  %v4097_v32 = vcombine.high %v2176_v49, %v2240_v29  ;;  %v15893_v13 = vrot.slane %v7392_v48, %v14973_v23  ;;  %v15896_v16 = vrot.slane %v7393_v1, %v14973_v23 }
 0x485   : > { %20086 = vst [vmem:[#allocation90_spill] sm:$0xff] %v15874_v61  ;;  %v15880_v49 = vrot.slane %v20087_v35, %v14973_v23  ;;  %v4088_v56 = vrot.slane %v4080_v62, %v14966_v38  ;;  %v4095_v37 = vrot.slane %v4081_v59, %v14966_v38 }
 0x486   : > { %v4104_v43 = vrot.slane %v4096_v20, %v14966_v38  ;;  %v4111_v31 = vrot.slane %v4097_v32, %v14966_v38  ;;  %20091 = vst [vmem:[#allocation94_spill] sm:$0xff] %v15893_v13  ;;  %20092 = vst [vmem:[#allocation95_spill] sm:$0xff] %v15896_v16  ;;  %v2209_v46 = vpop.trf.xlu1 }
 0x487   : > { %20088 = vst [vmem:[#allocation91_spill] sm:$0xff] %v15880_v49  ;;  %v2241_v29 = vpop.trf.xlu0  ;;  %v5168_v32 = vcombine.low %v15775_v50, %v2209_v46  ;;  %v5169_v51 = vcombine.high %v15775_v50, %v2209_v46  ;;  %v15918_v46 = vpop.eup %14011 }
 0x488   : > { %v4144_v62 = vcombine.low %v4088_v56, %v4104_v43  ;;  %v4145_v59 = vcombine.high %v4088_v56, %v4104_v43  ;;  %v4160_v30 = vcombine.low %v4095_v37, %v4111_v31  ;;  %v4161_v20 = vcombine.high %v4095_v37, %v4111_v31 }
 0x489   : > { %v5184_v57 = vcombine.low %v15777_v52, %v2241_v29  ;;  %v5185_v34 = vcombine.high %v15777_v52, %v2241_v29  ;;  %v5176_v56 = vrot.slane %v5168_v32, %v14966_v38  ;;  %v5183_v50 = vrot.slane %v5169_v51, %v14966_v38 }
 0x48a   : > { %v15903_v48 = vrot.slane %v4144_v62, %v14973_v23  ;;  %v15906_v1 = vrot.slane %v4145_v59, %v14973_v23  ;;  %v15909_v58 = vrot.slane %v4160_v30, %v14973_v23  ;;  %v15912_v35 = vrot.slane %v4161_v20, %v14973_v23  ;;  %v2210_v43 = vpop.trf.xlu1  ;;  %v15924_v20 = vpop.eup %14013 }
 0x48b   : > { %v5192_v37 = vrot.slane %v5184_v57, %v14966_v38  ;;  %v5199_v52 = vrot.slane %v5185_v34, %v14966_v38  ;;  %v2242_v31 = vpop.trf.xlu0  ;;  %v6256_v29 = vcombine.low %v15781_v3, %v2210_v43  ;;  %v6257_v62 = vcombine.high %v15781_v3, %v2210_v43  ;;  %v15926_v34 = vpop.eup %14015 }
 0x48c   : > { %20093 = vst [vmem:[#allocation96_spill] sm:$0xff] %v15906_v1  ;;  %20094 = vst [vmem:[#allocation97_spill] sm:$0xff] %v15909_v58  ;;  %v6272_v59 = vcombine.low %v15783_v22, %v2242_v31  ;;  %v6273_v30 = vcombine.high %v15783_v22, %v2242_v31  ;;  %3408 = vxpose.xlu1.b32.start.end [1/1] (short) (narrow) %v1980_v45, 32 }
 0x48d   : > { %20095 = vst [vmem:[#allocation98_spill] sm:$0xff] %v15912_v35  ;;  %v5232_v32 = vcombine.low %v5176_v56, %v5192_v37  ;;  %v5233_v51 = vcombine.high %v5176_v56, %v5192_v37  ;;  %v5248_v9 = vcombine.low %v5183_v50, %v5199_v52  ;;  %v5249_v57 = vcombine.high %v5183_v50, %v5199_v52 }
 0x48e   : > { %v6264_v53 = vrot.slane %v6256_v29, %v14966_v38  ;;  %v6271_v44 = vrot.slane %v6257_v62, %v14966_v38  ;;  %v6280_v0 = vrot.slane %v6272_v59, %v14966_v38  ;;  %v6287_v3 = vrot.slane %v6273_v30, %v14966_v38  ;;  %v2211_v50 = vpop.trf.xlu1 }
 0x48f   : > { %v15933_v43 = vrot.slane %v5232_v32, %v14973_v23  ;;  %v15936_v22 = vrot.slane %v5233_v51, %v14973_v23  ;;  %v15939_v56 = vrot.slane %v5248_v9, %v14973_v23  ;;  %v15942_v45 = vrot.slane %v5249_v57, %v14973_v23  ;;  %v2243_v37 = vpop.trf.xlu0 }
 0x490   : > { %v6320_v52 = vcombine.low %v6264_v53, %v6280_v0  ;;  %v6321_v31 = vcombine.high %v6264_v53, %v6280_v0  ;;  %v6336_v29 = vcombine.low %v6271_v44, %v6287_v3  ;;  %v6337_v62 = vcombine.high %v6271_v44, %v6287_v3  ;;  %3440 = vxpose.xlu0.b32.start.end [1/1] (short) (narrow) %v15801_v5, 32 }
 0x491   : > { %20096 = vst [vmem:[#allocation99_spill] sm:$0xff] %v15933_v43  ;;  %20097 = vst [vmem:[#allocation100_spill] sm:$0xff] %v15936_v22  ;;  %v7344_v59 = vcombine.low %v15794_v7, %v2211_v50  ;;  %v7345_v30 = vcombine.high %v15794_v7, %v2211_v50  ;;  %v7360_v32 = vcombine.low %v15796_v19, %v2243_v37  ;;  %v20108_v51 = vmax.f32 %v15560_v12, 1e-24  ;;  %v20172_v22 = vld [vmem:[#allocation54_spill] sm:$0xff] }
 0x492   : > { %20098 = vst [vmem:[#allocation101_spill] sm:$0xff] %v15939_v56  ;;  %20099 = vst [vmem:[#allocation102_spill] sm:$0xff] %v15942_v45  ;;  %v7361_v9 = vcombine.high %v15796_v19, %v2243_v37  ;;  %v15961_v3 = vpop.trf.xlu1  ;;  %v16006_v0 = vrot.slane %v6320_v52, %v14973_v23  ;;  %v16012_v1 = vrot.slane %v6336_v29, %v14973_v23 }
 0x493   : > { %v7352_v53 = vrot.slane %v7344_v59, %v14966_v38  ;;  %v7359_v7 = vrot.slane %v7345_v30, %v14966_v38  ;;  %v7368_v5 = vrot.slane %v7360_v32, %v14966_v38  ;;  %v15963_v50 = vpop.trf.xlu0  ;;  %v16015_v37 = vrot.slane %v6337_v62, %v14973_v23 }
 0x494   : > { %v7375_v19 = vrot.slane %v7361_v9, %v14966_v38  ;;  %20104 = vst [vmem:[#allocation107_spill] sm:$0xff] %v16006_v0  ;;  %20106 = vst [vmem:[#allocation109_spill] sm:$0xff] %v16012_v1  ;;  %14017 = vrsqrt.f32 %v20108_v51  ;;  %v1695_v62 = vmax.f32 %v15566_v10, 1e-24  ;;  %v1819_v52 = vmul.f32 %v15924_v20, %v15214_v54  ;;  %v20113_v1 = vld [vmem:[#allocation41_spill] sm:$0xff] }
 0x495   : > { %v7408_v30 = vcombine.low %v7352_v53, %v7368_v5  ;;  %v7409_v32 = vcombine.high %v7352_v53, %v7368_v5  ;;  %20107 = vst [vmem:[#allocation110_spill] sm:$0xff] %v16015_v37  ;;  %v1723_v54 = vmax.f32 %v15579_v14, 1e-24  ;;  %v20112_v37 = vld [vmem:[#allocation42_spill] sm:$0xff] }
 0x496   : > { %v7424_v57 = vcombine.low %v7359_v7, %v7375_v19  ;;  %v7425_v9 = vcombine.high %v7359_v7, %v7375_v19  ;;  %v15993_v5 = vpop.trf.xlu1  ;;  %v1952_v20 = vmul.f32 %v15507_v11, %v1819_v52 }
 0x497   : > { %v15982_v44 = vrot.slane %v7408_v30, %v14973_v23  ;;  %v15985_v59 = vrot.slane %v7409_v32, %v14973_v23  ;;  %v15995_v19 = vpop.trf.xlu0  ;;  %v20109_v32 = vmax.f32 %v15569_v55, 1e-24 }
 0x498   : > { %v15988_v53 = vrot.slane %v7424_v57, %v14973_v23  ;;  %v15991_v7 = vrot.slane %v7425_v9, %v14973_v23  ;;  %v16009_v9 = vrot.slane %v6321_v31, %v14973_v23  ;;  %v1724_v57 = vmax.f32 %v15582_v18, 1e-24  ;;  %v20110_v31 = vld [vmem:[#allocation39_spill] sm:$0xff] }
 0x499   : > { %20100 = vst [vmem:[#allocation103_spill] sm:$0xff] %v15982_v44  ;;  %20101 = vst [vmem:[#allocation104_spill] sm:$0xff] %v15985_v59  ;;  %3472 = vxpose.xlu1.b32.start.end [1/1] (short) (narrow) %v15805_v42, 32  ;;  %v1698_v42 = vmax.f32 %v15574_v2, 1e-24  ;;  %14019 = vrsqrt.f32 %v20109_v32  ;;  %v1820_v10 = vmul.f32 %v15918_v46, %v20110_v31 }
 0x49a   : > { %20102 = vst [vmem:[#allocation105_spill] sm:$0xff] %v15988_v53  ;;  %20103 = vst [vmem:[#allocation106_spill] sm:$0xff] %v15991_v7  ;;  %v16026_v30 = vpop.trf.xlu1  ;;  %v1697_v2 = vmax.f32 %v15572_v26, 1e-24 }
 0x49b   : > { %20105 = vst [vmem:[#allocation108_spill] sm:$0xff] %v16009_v9  ;;  %v16028_v29 = vpop.trf.xlu0  ;;  %14021 = vrsqrt.f32 %v1698_v42  ;;  %v1953_v14 = vmul.f32 %v15507_v11, %v1820_v10  ;;  %v20115_v9 = vld [vmem:[#allocation44_spill] sm:$0xff] }
 0x49c   : > { %14023 = vrsqrt.f32 %v1695_v62 }
 0x49d   : > { %3504 = vxpose.xlu0.b32.start.end [1/1] (short) (narrow) %v15808_v28, 32  ;;  %14025 = vrsqrt.f32 %v1724_v57 }
 0x49e   : > { %v16059_v28 = vpop.trf.xlu1  ;;  %14027 = vrsqrt.f32 %v1697_v2 }
 0x49f   : > { %v16061_v59 = vpop.trf.xlu0  ;;  %14029 = vrsqrt.f32 %v1723_v54 }
 0x4a2   : > { %v3104_v12 = vpop.trf.xlu1 }
 0x4a3   : > { %v3136_v51 = vpop.trf.xlu0  ;;  %v4592_v7 = vcombine.low %v15961_v3, %v3104_v12  ;;  %v4593_v16 = vcombine.high %v15961_v3, %v3104_v12 }
 0x4a4   : > { %v4608_v55 = vcombine.low %v15963_v50, %v3136_v51  ;;  %v4609_v18 = vcombine.high %v15963_v50, %v3136_v51  ;;  %v1821_v51 = vmul.f32 %v15926_v34, %v15229_v4 }
 0x4a5   : > { %v16078_v26 = vrot.slane %v4592_v7, %v14966_v38  ;;  %v16081_v32 = vrot.slane %v4593_v16, %v14966_v38 }
 0x4a6   : > { %v16084_v46 = vrot.slane %v4608_v55, %v14966_v38  ;;  %v16087_v3 = vrot.slane %v4609_v18, %v14966_v38  ;;  %v3105_v31 = vpop.trf.xlu1  ;;  %2512 = vxpose.xlu1.b32.start.end [1/1] (short) (narrow) %v1952_v20, 32 }
 0x4a7   : > { %v3137_v50 = vpop.trf.xlu0  ;;  %v5680_v62 = vcombine.low %v15993_v5, %v3105_v31  ;;  %v5681_v42 = vcombine.high %v15993_v5, %v3105_v31 }
 0x4a8   : > { %v5696_v2 = vcombine.low %v15995_v19, %v3137_v50  ;;  %v5697_v12 = vcombine.high %v15995_v19, %v3137_v50  ;;  %v14018_v19 = vpop.eup %14017 }
 0x4a9   : > { %v16105_v10 = vrot.slane %v5680_v62, %v14966_v38  ;;  %v16108_v55 = vrot.slane %v5681_v42, %v14966_v38  ;;  %v20111_v42 = vld [vmem:[#allocation40_spill] sm:$0xff] }
 0x4aa   : > { %2544 = vxpose.xlu0.b32.start.end [1/1] (short) (narrow) %v1953_v14, 32  ;;  %v16111_v18 = vrot.slane %v5696_v2, %v14966_v38  ;;  %v16114_v5 = vrot.slane %v5697_v12, %v14966_v38  ;;  %v3106_v20 = vpop.trf.xlu1  ;;  %v14020_v12 = vpop.eup %14019  ;;  %v1822_v16 = vmul.f32 %v14018_v19, %v20111_v42  ;;  %v1954_v2 = vmul.f32 %v15507_v11, %v1821_v51 }
 0x4ab   : > { %v3138_v31 = vpop.trf.xlu0  ;;  %v6768_v54 = vcombine.low %v16026_v30, %v3106_v20  ;;  %v6769_v50 = vcombine.high %v16026_v30, %v3106_v20  ;;  %v1824_v49 = vmul.f32 %v14020_v12, %v20112_v37 }
 0x4ac   : > { %v6784_v4 = vcombine.low %v16028_v29, %v3138_v31  ;;  %v6785_v34 = vcombine.high %v16028_v29, %v3138_v31  ;;  %v14022_v31 = vpop.eup %14021 }
 0x4ad   : > { %v16129_v52 = vrot.slane %v6768_v54, %v14966_v38  ;;  %v16132_v30 = vrot.slane %v6769_v50, %v14966_v38  ;;  %v14024_v7 = vpop.eup %14023 }
 0x4ae   : > { %v16135_v29 = vrot.slane %v6784_v4, %v14966_v38  ;;  %v16138_v20 = vrot.slane %v6785_v34, %v14966_v38  ;;  %v3107_v62 = vpop.trf.xlu1  ;;  %v14026_v42 = vpop.eup %14025 }
 0x4af   : > { %v3139_v14 = vpop.trf.xlu0  ;;  %v7856_v34 = vcombine.low %v16059_v28, %v3107_v62  ;;  %v7857_v57 = vcombine.high %v16059_v28, %v3107_v62  ;;  %v14028_v62 = vpop.eup %14027  ;;  %v1852_v0 = vmul.f32 %v14026_v42, %v20116_v40 }
 0x4b0   : > { %v7872_v53 = vcombine.low %v16061_v59, %v3139_v14  ;;  %v7873_v19 = vcombine.high %v16061_v59, %v3139_v14  ;;  %v1955_v59 = vmul.f32 %v15507_v11, %v1822_v16 }
 0x4b1   : > { %v16155_v13 = vrot.slane %v7856_v34, %v14966_v38  ;;  %v16158_v54 = vrot.slane %v7857_v57, %v14966_v38 }
 0x4b2   : > { %v7880_v50 = vrot.slane %v7872_v53, %v14966_v38  ;;  %v16162_v4 = vrot.slane %v7873_v19, %v14966_v38  ;;  %v3168_v36 = vpop.trf.xlu1  ;;  %v14030_v53 = vpop.eup %14029 }
 0x4b3   : > { %v3200_v28 = vpop.trf.xlu0  ;;  %2576 = vxpose.xlu1.b32.start.end [1/1] (short) (narrow) %v1954_v2, 32  ;;  %v1726_v2 = vmax.f32 %v15588_v39, 1e-24 }
 0x4b4   : > { %v7920_v14 = vcombine.low %v16155_v13, %v7880_v50  ;;  %v7921_v51 = vcombine.high %v16155_v13, %v7880_v50  ;;  %v7936_v34 = vcombine.low %v16158_v54, %v16162_v4  ;;  %v7937_v57 = vcombine.high %v16158_v54, %v16162_v4  ;;  %v20114_v4 = vld [vmem:[#allocation43_spill] sm:$0xff] }
 0x4b5   : > { %v1823_v13 = vmul.f32 %v14024_v7, %v15247_v63  ;;  %v1725_v50 = vmax.f32 %v15585_v17, 1e-24  ;;  %v1825_v54 = vmul.f32 %v14028_v62, %v20113_v1  ;;  %v1826_v61 = vmul.f32 %v14022_v31, %v20114_v4 }
 0x4b6   : > { %v16171_v44 = vpop.trf.xlu1  ;;  %14031 = vrsqrt.f32 %v1726_v2  ;;  %v1957_v17 = vmul.f32 %v15507_v11, %v1824_v49  ;;  %v20117_v7 = vcombine.low %v16078_v26, %v16084_v46  ;;  %v20118_v49 = vcombine.high %v16078_v26, %v16084_v46 }
 0x4b7   : > { %2608 = vxpose.xlu0.b32.start.end [1/1] (short) (narrow) %v1955_v59, 32  ;;  %v16173_v19 = vpop.trf.xlu0  ;;  %v1851_v59 = vmul.f32 %v14030_v53, %v20115_v9  ;;  %v1956_v45 = vmul.f32 %v15507_v11, %v1823_v13  ;;  %14033 = vrsqrt.f32 %v1725_v50  ;;  %v16195_v1 = vmul.f32 %v15507_v11, %v1825_v54 }
 0x4b8   : > { %v16198_v37 = vmul.f32 %v15507_v11, %v1826_v61  ;;  %v16204_v9 = vmul.f32 %v15507_v11, %v1852_v0  ;;  %v16210_v12 = vrot.slane %v20117_v7, %v14973_v23  ;;  %v20119_v61 = vcombine.low %v16081_v32, %v16087_v3 }
 0x4b9   : > { %v16201_v40 = vmul.f32 %v15507_v11, %v1851_v59  ;;  %v20121_v0 = vcombine.high %v16081_v32, %v16087_v3  ;;  %v20123_v62 = vcombine.low %v16105_v10, %v16111_v18  ;;  %v20125_v26 = vcombine.high %v16105_v10, %v16111_v18 }
 0x4ba   : > { %v16176_v41 = vpop.trf.xlu1  ;;  %v16222_v31 = vrot.slane %v20119_v61, %v14973_v23  ;;  %v20127_v2 = vcombine.low %v16108_v55, %v16114_v5  ;;  %v20129_v32 = vcombine.high %v16108_v55, %v16114_v5  ;;  %v20131_v18 = vcombine.low %v16129_v52, %v16135_v29 }
 0x4bb   : > { %v16178_v16 = vpop.trf.xlu0  ;;  %v16228_v42 = vrot.slane %v20121_v0, %v14973_v23  ;;  %v16234_v53 = vrot.slane %v20123_v62, %v14973_v23  ;;  %v16240_v46 = vrot.slane %v20125_v26, %v14973_v23  ;;  %v20133_v61 = vcombine.high %v16129_v52, %v16135_v29 }
 0x4bc   : > { %20120 = vst [vmem:[#allocation39_spill] sm:$0xff] %v16222_v31  ;;  %v16246_v13 = vrot.slane %v20127_v2, %v14973_v23  ;;  %v16252_v3 = vrot.slane %v20129_v32, %v14973_v23  ;;  %v20135_v5 = vcombine.low %v16132_v30, %v16138_v20  ;;  %v16283_v26 = vrot.slane %v7920_v14, %v14973_v23 }
 0x4bd   : > { %20122 = vst [vmem:[#allocation40_spill] sm:$0xff] %v16228_v42  ;;  %20124 = vst [vmem:[#allocation42_spill] sm:$0xff] %v16234_v53  ;;  %v16264_v55 = vrot.slane %v20133_v61, %v14973_v23  ;;  %v16286_v2 = vrot.slane %v7921_v51, %v14973_v23  ;;  %v16289_v32 = vrot.slane %v7936_v34, %v14973_v23 }
 0x4be   : > { %v16187_v39 = vpop.trf.xlu1  ;;  %20126 = vst [vmem:[#allocation41_spill] sm:$0xff] %v16240_v46  ;;  %20128 = vst [vmem:[#allocation43_spill] sm:$0xff] %v16246_v13 }
 0x4bf   : > { %v16189_v24 = vpop.trf.xlu0  ;;  %20130 = vst [vmem:[#allocation44_spill] sm:$0xff] %v16252_v3  ;;  %20134 = vst [vmem:[#allocation111_spill] sm:$0xff] %v16264_v55 }
 0x4c0   : > { %2640 = vxpose.xlu1.b32.start.end [1/1] (short) (narrow) %v1956_v45, 32  ;;  %v16216_v45 = vrot.slane %v20118_v49, %v14973_v23  ;;  %v16258_v49 = vrot.slane %v20131_v18, %v14973_v23  ;;  %20139 = vst [vmem:[#allocation114_spill] sm:$0xff] %v16283_v26  ;;  %20140 = vst [vmem:[#allocation115_spill] sm:$0xff] %v16286_v2 }
 0x4c1   : > { %20141 = vst [vmem:[#allocation116_spill] sm:$0xff] %v16289_v32 }
 0x4c2   : > { %v3232_v50 = vpop.trf.xlu1  ;;  %20132 = vst [vmem:[#allocation45_spill] sm:$0xff] %v16258_v49 }
 0x4c3   : > { %v3264_v54 = vpop.trf.xlu0  ;;  %v4624_v4 = vcombine.low %v3168_v36, %v3232_v50  ;;  %v4625_v59 = vcombine.high %v3168_v36, %v3232_v50  ;;  %v16270_v36 = vrot.slane %v20135_v5, %v14973_v23 }
 0x4c4   : > { %v4640_v7 = vcombine.low %v3200_v28, %v3264_v54  ;;  %v4641_v10 = vcombine.high %v3200_v28, %v3264_v54  ;;  %2672 = vxpose.xlu0.b32.start.end [1/1] (short) (narrow) %v1957_v17, 32  ;;  %v20137_v28 = vcombine.high %v16132_v30, %v16138_v20  ;;  %v16292_v30 = vrot.slane %v7937_v57, %v14973_v23 }
 0x4c5   : > { %20136 = vst [vmem:[#allocation112_spill] sm:$0xff] %v16270_v36  ;;  %v4632_v0 = vrot.slane %v4624_v4, %v14966_v38  ;;  %v4639_v62 = vrot.slane %v4625_v59, %v14966_v38 }
 0x4c6   : > { %v16276_v17 = vrot.slane %v20137_v28, %v14973_v23  ;;  %v4648_v52 = vrot.slane %v4640_v7, %v14966_v38  ;;  %v4655_v29 = vrot.slane %v4641_v10, %v14966_v38  ;;  %20142 = vst [vmem:[#allocation117_spill] sm:$0xff] %v16292_v30  ;;  %v3233_v20 = vpop.trf.xlu1 }
 0x4c7   : > { %v3265_v50 = vpop.trf.xlu0  ;;  %v5712_v10 = vcombine.low %v16171_v44, %v3233_v20  ;;  %v5713_v14 = vcombine.high %v16171_v44, %v3233_v20 }
 0x4c8   : > { %20138 = vst [vmem:[#allocation113_spill] sm:$0xff] %v16276_v17  ;;  %v4688_v54 = vcombine.low %v4632_v0, %v4648_v52  ;;  %v4689_v4 = vcombine.high %v4632_v0, %v4648_v52  ;;  %v4704_v59 = vcombine.low %v4639_v62, %v4655_v29  ;;  %v4705_v7 = vcombine.high %v4639_v62, %v4655_v29  ;;  %v16314_v29 = vpop.eup %14031 }
 0x4c9   : > { %v5728_v18 = vcombine.low %v16173_v19, %v3265_v50  ;;  %v5729_v51 = vcombine.high %v16173_v19, %v3265_v50  ;;  %v5720_v28 = vrot.slane %v5712_v10, %v14966_v38  ;;  %v5727_v44 = vrot.slane %v5713_v14, %v14966_v38 }
 0x4ca   : > { %v16299_v34 = vrot.slane %v4688_v54, %v14973_v23  ;;  %v16302_v57 = vrot.slane %v4689_v4, %v14973_v23  ;;  %v16305_v61 = vrot.slane %v4704_v59, %v14973_v23  ;;  %v16308_v5 = vrot.slane %v4705_v7, %v14973_v23  ;;  %v3234_v62 = vpop.trf.xlu1  ;;  %v16320_v59 = vpop.eup %14033 }
 0x4cb   : > { %v5736_v0 = vrot.slane %v5728_v18, %v14966_v38  ;;  %v5743_v19 = vrot.slane %v5729_v51, %v14966_v38  ;;  %v3266_v52 = vpop.trf.xlu0  ;;  %v6800_v20 = vcombine.low %v16176_v41, %v3234_v62  ;;  %v6801_v50 = vcombine.high %v16176_v41, %v3234_v62 }
 0x4cc   : > { %20143 = vst [vmem:[#allocation118_spill] sm:$0xff] %v16305_v61  ;;  %20144 = vst [vmem:[#allocation119_spill] sm:$0xff] %v16308_v5  ;;  %v6816_v54 = vcombine.low %v16178_v16, %v3266_v52  ;;  %v6817_v4 = vcombine.high %v16178_v16, %v3266_v52 }
 0x4cd   : > { %v5776_v7 = vcombine.low %v5720_v28, %v5736_v0  ;;  %v5777_v10 = vcombine.high %v5720_v28, %v5736_v0  ;;  %v5792_v14 = vcombine.low %v5727_v44, %v5743_v19  ;;  %v5793_v18 = vcombine.high %v5727_v44, %v5743_v19  ;;  %2704 = vxpose.xlu1.b32.start.end [1/1] (short) (narrow) %v16195_v1, 32 }
 0x4ce   : > { %v6808_v51 = vrot.slane %v6800_v20, %v14966_v38  ;;  %v6815_v63 = vrot.slane %v6801_v50, %v14966_v38  ;;  %v6824_v8 = vrot.slane %v6816_v54, %v14966_v38  ;;  %v6831_v56 = vrot.slane %v6817_v4, %v14966_v38  ;;  %v3235_v0 = vpop.trf.xlu1 }
 0x4cf   : > { %v16328_v41 = vrot.slane %v5776_v7, %v14973_v23  ;;  %v16331_v16 = vrot.slane %v5777_v10, %v14973_v23  ;;  %v16334_v28 = vrot.slane %v5792_v14, %v14973_v23  ;;  %v16337_v44 = vrot.slane %v5793_v18, %v14973_v23  ;;  %v3267_v19 = vpop.trf.xlu0  ;;  %v20158_v14 = vld [vmem:[#allocation68_spill] sm:$0xff] }
 0x4d0   : > { %v6864_v62 = vcombine.low %v6808_v51, %v6824_v8  ;;  %v6865_v52 = vcombine.high %v6808_v51, %v6824_v8  ;;  %v6880_v20 = vcombine.low %v6815_v63, %v6831_v56  ;;  %v6881_v50 = vcombine.high %v6815_v63, %v6831_v56 }
 0x4d1   : > { %20145 = vst [vmem:[#allocation120_spill] sm:$0xff] %v16328_v41  ;;  %20146 = vst [vmem:[#allocation121_spill] sm:$0xff] %v16331_v16  ;;  %v7888_v1 = vcombine.low %v16187_v39, %v3235_v0  ;;  %v7889_v54 = vcombine.high %v16187_v39, %v3235_v0  ;;  %v7904_v4 = vcombine.low %v16189_v24, %v3267_v19  ;;  %2736 = vxpose.xlu0.b32.start.end [1/1] (short) (narrow) %v16198_v37, 32 }
 0x4d2   : > { %20147 = vst [vmem:[#allocation122_spill] sm:$0xff] %v16334_v28  ;;  %20148 = vst [vmem:[#allocation123_spill] sm:$0xff] %v16337_v44  ;;  %v7905_v7 = vcombine.high %v16189_v24, %v3267_v19  ;;  %v16356_v18 = vpop.trf.xlu1  ;;  %v16401_v19 = vrot.slane %v6864_v62, %v14973_v23  ;;  %v16407_v10 = vrot.slane %v6880_v20, %v14973_v23  ;;  %v1727_v2 = vmax.f32 %v20158_v14, 1e-24  ;;  %v20166_v44 = vld [vmem:[#allocation49_spill] sm:$0xff] }
 0x4d3   : > { %v7896_v39 = vrot.slane %v7888_v1, %v14966_v38  ;;  %v7903_v63 = vrot.slane %v7889_v54, %v14966_v38  ;;  %v7912_v24 = vrot.slane %v7904_v4, %v14966_v38  ;;  %v16358_v51 = vpop.trf.xlu0  ;;  %v16410_v0 = vrot.slane %v6881_v50, %v14973_v23 }
 0x4d4   : > { %v7919_v37 = vrot.slane %v7905_v7, %v14966_v38  ;;  %20153 = vst [vmem:[#allocation128_spill] sm:$0xff] %v16401_v19  ;;  %20155 = vst [vmem:[#allocation130_spill] sm:$0xff] %v16407_v10 }
 0x4d5   : > { %v7952_v54 = vcombine.low %v7896_v39, %v7912_v24  ;;  %v7953_v4 = vcombine.high %v7896_v39, %v7912_v24  ;;  %20156 = vst [vmem:[#allocation131_spill] sm:$0xff] %v16410_v0 }
 0x4d6   : > { %v7968_v8 = vcombine.low %v7903_v63, %v7919_v37  ;;  %v7969_v7 = vcombine.high %v7903_v63, %v7919_v37  ;;  %v16388_v24 = vpop.trf.xlu1 }
 0x4d7   : > { %v16377_v56 = vrot.slane %v7952_v54, %v14973_v23  ;;  %v16380_v1 = vrot.slane %v7953_v4, %v14973_v23  ;;  %v16390_v37 = vpop.trf.xlu0  ;;  %v20159_v54 = vmax.f32 %v15595_v15, 1e-24  ;;  %v20160_v4 = vld [vmem:[#allocation72_spill] sm:$0xff] }
 0x4d8   : > { %v16383_v39 = vrot.slane %v7968_v8, %v14973_v23  ;;  %v16386_v63 = vrot.slane %v7969_v7, %v14973_v23  ;;  %v16404_v7 = vrot.slane %v6865_v52, %v14973_v23  ;;  %v20161_v8 = vld [vmem:[#allocation69_spill] sm:$0xff] }
 0x4d9   : > { %20149 = vst [vmem:[#allocation124_spill] sm:$0xff] %v16377_v56  ;;  %20150 = vst [vmem:[#allocation125_spill] sm:$0xff] %v16380_v1  ;;  %v20157_v1 = vld [vmem:[#allocation70_spill] sm:$0xff]  ;;  %14035 = vrsqrt.f32 %v20159_v54  ;;  %v1729_v32 = vmax.f32 %v20161_v8, 1e-24  ;;  %v20163_v54 = vld [vmem:[#allocation71_spill] sm:$0xff] }
 0x4da   : > { %20151 = vst [vmem:[#allocation126_spill] sm:$0xff] %v16383_v39  ;;  %20152 = vst [vmem:[#allocation127_spill] sm:$0xff] %v16386_v63  ;;  %v16420_v52 = vpop.trf.xlu1  ;;  %3536 = vxpose.xlu1.b32.start.end [1/1] (short) (narrow) %v16201_v40, 32  ;;  %v1730_v40 = vmax.f32 %v20157_v1, 1e-24  ;;  %v20162_v1 = vld [vmem:[#allocation46_spill] sm:$0xff] }
 0x4db   : > { %20154 = vst [vmem:[#allocation129_spill] sm:$0xff] %v16404_v7  ;;  %v16423_v20 = vpop.trf.xlu0  ;;  %v1700_v39 = vmax.f32 %v20160_v4, 1e-24  ;;  %v1699_v4 = vmax.f32 %v20163_v54, 1e-24 }
 0x4dc   : > { %14037 = vrsqrt.f32 %v1730_v40  ;;  %v20164_v40 = vld [vmem:[#allocation47_spill] sm:$0xff] }
 0x4dd   : > { %14039 = vrsqrt.f32 %v1727_v2  ;;  %v1854_v2 = vmul.f32 %v16314_v29, %v20164_v40 }
 0x4de   : > { %3568 = vxpose.xlu0.b32.start.end [1/1] (short) (narrow) %v16204_v9, 32  ;;  %v16452_v56 = vpop.trf.xlu1  ;;  %v1853_v9 = vmul.f32 %v16320_v59, %v20162_v1  ;;  %14041 = vrsqrt.f32 %v1700_v39 }
 0x4df   : > { %v16454_v50 = vpop.trf.xlu0  ;;  %14043 = vrsqrt.f32 %v1729_v32 }
 0x4e0   : > { %14045 = vrsqrt.f32 %v1699_v4 }
 0x4e2   : > { %v2336_v62 = vpop.trf.xlu1 }
 0x4e3   : > { %v2368_v63 = vpop.trf.xlu0  ;;  %v4184_v14 = vcombine.low %v16356_v18, %v2336_v62  ;;  %v4185_v30 = vcombine.high %v16356_v18, %v2336_v62 }
 0x4e4   : > { %v4200_v26 = vcombine.low %v16358_v51, %v2368_v63  ;;  %v4201_v15 = vcombine.high %v16358_v51, %v2368_v63  ;;  %v1986_v63 = vmul.f32 %v15507_v11, %v1853_v9 }
 0x4e5   : > { %v16470_v8 = vrot.slane %v4184_v14, %v14966_v38  ;;  %v16473_v0 = vrot.slane %v4185_v30, %v14966_v38 }
 0x4e6   : > { %v16476_v59 = vrot.slane %v4200_v26, %v14966_v38  ;;  %v16479_v18 = vrot.slane %v4201_v15, %v14966_v38  ;;  %v2337_v51 = vpop.trf.xlu1  ;;  %v1987_v15 = vmul.f32 %v15507_v11, %v1854_v2 }
 0x4e7   : > { %v2369_v39 = vpop.trf.xlu0  ;;  %v5272_v1 = vcombine.low %v16388_v24, %v2337_v51  ;;  %v5273_v32 = vcombine.high %v16388_v24, %v2337_v51 }
 0x4e8   : > { %v5288_v14 = vcombine.low %v16390_v37, %v2369_v39  ;;  %v5289_v9 = vcombine.high %v16390_v37, %v2369_v39 }
 0x4e9   : > { %v16496_v54 = vrot.slane %v5272_v1, %v14966_v38  ;;  %v16499_v40 = vrot.slane %v5273_v32, %v14966_v38 }
 0x4ea   : > { %v16502_v30 = vrot.slane %v5288_v14, %v14966_v38  ;;  %v16505_v26 = vrot.slane %v5289_v9, %v14966_v38  ;;  %v2338_v24 = vpop.trf.xlu1  ;;  %3600 = vxpose.xlu1.b32.start.end [1/1] (short) (narrow) %v1986_v63, 32  ;;  %v14036_v9 = vpop.eup %14035 }
 0x4eb   : > { %v2370_v51 = vpop.trf.xlu0  ;;  %v6360_v37 = vcombine.low %v16420_v52, %v2338_v24  ;;  %v6361_v4 = vcombine.high %v16420_v52, %v2338_v24  ;;  %3632 = vxpose.xlu0.b32.start.end [1/1] (short) (narrow) %v1987_v15, 32 }
 0x4ec   : > { %v6376_v2 = vcombine.low %v16423_v20, %v2370_v51  ;;  %v6377_v39 = vcombine.high %v16423_v20, %v2370_v51  ;;  %v5336_v1 = vcombine.low %v16496_v54, %v16502_v30  ;;  %v5337_v32 = vcombine.high %v16496_v54, %v16502_v30  ;;  %v14038_v30 = vpop.eup %14037 }
 0x4ed   : > { %v5352_v14 = vcombine.low %v16499_v40, %v16505_v26  ;;  %v5353_v63 = vcombine.high %v16499_v40, %v16505_v26  ;;  %v16520_v52 = vrot.slane %v6360_v37, %v14966_v38  ;;  %v16523_v24 = vrot.slane %v6361_v4, %v14966_v38  ;;  %v14040_v62 = vpop.eup %14039 }
 0x4ee   : > { %v16526_v20 = vrot.slane %v6376_v2, %v14966_v38  ;;  %v16529_v15 = vrot.slane %v6377_v39, %v14966_v38  ;;  %v2339_v54 = vpop.trf.xlu1  ;;  %v14042_v10 = vpop.eup %14041 }
 0x4ef   : > { %v2371_v51 = vpop.trf.xlu0  ;;  %v7448_v2 = vcombine.low %v16452_v56, %v2339_v54  ;;  %v7449_v39 = vcombine.high %v16452_v56, %v2339_v54  ;;  %v1856_v56 = vmul.f32 %v14036_v9, %v20166_v44 }
 0x4f0   : > { %v6424_v26 = vcombine.low %v16520_v52, %v16526_v20  ;;  %v6425_v40 = vcombine.high %v16520_v52, %v16526_v20  ;;  %v6440_v37 = vcombine.low %v16523_v24, %v16529_v15  ;;  %v6441_v4 = vcombine.high %v16523_v24, %v16529_v15  ;;  %v14044_v24 = vpop.eup %14043  ;;  %v20165_v15 = vld [vmem:[#allocation48_spill] sm:$0xff] }
 0x4f1   : > { %v7464_v29 = vcombine.low %v16454_v50, %v2371_v51  ;;  %v7465_v17 = vcombine.high %v16454_v50, %v2371_v51  ;;  %v7456_v36 = vrot.slane %v7448_v2, %v14966_v38  ;;  %v7463_v7 = vrot.slane %v7449_v39, %v14966_v38  ;;  %v14046_v51 = vpop.eup %14045  ;;  %v20167_v39 = vld [vmem:[#allocation74_spill] sm:$0xff] }
 0x4f2   : > { %v2400_v55 = vpop.trf.xlu1  ;;  %v1855_v49 = vmul.f32 %v14040_v62, %v20165_v15  ;;  %v1702_v33 = vmax.f32 %v20167_v39, 1e-24  ;;  %v20171_v15 = vld [vmem:[#allocation51_spill] sm:$0xff] }
 0x4f3   : > { %v7472_v52 = vrot.slane %v7464_v29, %v14966_v38  ;;  %v7479_v20 = vrot.slane %v7465_v17, %v14966_v38  ;;  %v2432_v19 = vpop.trf.xlu0  ;;  %v1989_v17 = vmul.f32 %v15507_v11, %v1856_v56  ;;  %v1827_v46 = vmul.f32 %v14046_v51, %v20171_v15 }
 0x4f4   : > { %v1988_v29 = vmul.f32 %v15507_v11, %v1855_v49  ;;  %v1828_v49 = vmul.f32 %v14042_v10, %v20172_v22  ;;  %14047 = vrsqrt.f32 %v1702_v33  ;;  %v20173_v22 = vcombine.low %v16470_v8, %v16476_v59 }
 0x4f5   : > { %v7512_v54 = vcombine.low %v7456_v36, %v7472_v52  ;;  %v7513_v3 = vcombine.high %v7456_v36, %v7472_v52  ;;  %v7528_v28 = vcombine.low %v7463_v7, %v7479_v20  ;;  %v7529_v50 = vcombine.high %v7463_v7, %v7479_v20  ;;  %v20168_v36 = vld [vmem:[#allocation73_spill] sm:$0xff]  ;;  %v20169_v7 = vld [vmem:[#allocation50_spill] sm:$0xff]  ;;  %v20170_v52 = vld [vmem:[#allocation52_spill] sm:$0xff] }
 0x4f6   : > { %v16549_v13 = vpop.trf.xlu1  ;;  %v1701_v44 = vmax.f32 %v20168_v36, 1e-24  ;;  %v1857_v9 = vmul.f32 %v14044_v24, %v20169_v7  ;;  %v1858_v20 = vmul.f32 %v14038_v30, %v20170_v52  ;;  %v16572_v36 = vmul.f32 %v15507_v11, %v1827_v46 }
 0x4f7   : > { %v16551_v2 = vpop.trf.xlu0  ;;  %v16575_v24 = vmul.f32 %v15507_v11, %v1828_v49  ;;  %v16581_v33 = vrot.slane %v20173_v22, %v14973_v23  ;;  %v20174_v10 = vcombine.high %v16470_v8, %v16476_v59  ;;  %v20175_v46 = vcombine.low %v16473_v0, %v16479_v18 }
 0x4f8   : > { %14049 = vrsqrt.f32 %v1701_v44  ;;  %v20177_v44 = vcombine.high %v16473_v0, %v16479_v18  ;;  %v16605_v52 = vrot.slane %v5337_v32, %v14973_v23  ;;  %v16608_v8 = vrot.slane %v5352_v14, %v14973_v23 }
 0x4f9   : > { %v16587_v30 = vrot.slane %v20174_v10, %v14973_v23  ;;  %v16593_v51 = vrot.slane %v20175_v46, %v14973_v23  ;;  %v16611_v59 = vrot.slane %v5353_v63, %v14973_v23  ;;  %v16614_v18 = vrot.slane %v6424_v26, %v14973_v23 }
 0x4fa   : > { %v16556_v16 = vpop.trf.xlu1  ;;  %3664 = vxpose.xlu1.b32.start.end [1/1] (short) (narrow) %v1988_v29, 32  ;;  %v1990_v29 = vmul.f32 %v15507_v11, %v1857_v9  ;;  %v16599_v7 = vrot.slane %v20177_v44, %v14973_v23  ;;  %v16602_v9 = vrot.slane %v5336_v1, %v14973_v23  ;;  %20180 = vst [vmem:[#allocation69_spill] sm:$0xff] %v16605_v52  ;;  %20181 = vst [vmem:[#allocation46_spill] sm:$0xff] %v16608_v8 }
 0x4fb   : > { %v16558_v62 = vpop.trf.xlu0  ;;  %3696 = vxpose.xlu0.b32.start.end [1/1] (short) (narrow) %v1989_v17, 32  ;;  %v1991_v17 = vmul.f32 %v15507_v11, %v1858_v20  ;;  %20176 = vst [vmem:[#allocation70_spill] sm:$0xff] %v16593_v51  ;;  %20182 = vst [vmem:[#allocation71_spill] sm:$0xff] %v16611_v59  ;;  %v16617_v1 = vrot.slane %v6425_v40, %v14973_v23  ;;  %v16620_v32 = vrot.slane %v6440_v37, %v14973_v23  ;;  %v20214_v59 = vld [vmem:[#allocation58_spill] sm:$0xff] }
 0x4fc   : > { %20178 = vst [vmem:[#allocation68_spill] sm:$0xff] %v16599_v7  ;;  %20179 = vst [vmem:[#allocation72_spill] sm:$0xff] %v16602_v9  ;;  %v16623_v14 = vrot.slane %v6441_v4, %v14973_v23  ;;  %v16630_v26 = vrot.slane %v7512_v54, %v14973_v23  ;;  %v16633_v40 = vrot.slane %v7513_v3, %v14973_v23 }
 0x4fd   : > { %20183 = vst [vmem:[#allocation47_spill] sm:$0xff] %v16614_v18  ;;  %20184 = vst [vmem:[#allocation48_spill] sm:$0xff] %v16617_v1  ;;  %v16636_v37 = vrot.slane %v7528_v28, %v14973_v23  ;;  %v16639_v4 = vrot.slane %v7529_v50, %v14973_v23 }
 0x4fe   : > { %v16565_v56 = vpop.trf.xlu1  ;;  %20185 = vst [vmem:[#allocation49_spill] sm:$0xff] %v16620_v32  ;;  %20186 = vst [vmem:[#allocation74_spill] sm:$0xff] %v16623_v14 }
 0x4ff   : > { %v16567_v39 = vpop.trf.xlu0  ;;  %20187 = vst [vmem:[#allocation73_spill] sm:$0xff] %v16630_v26  ;;  %20188 = vst [vmem:[#allocation50_spill] sm:$0xff] %v16633_v40  ;;  %v20210_v26 = vld [vmem:[#allocation53_spill] sm:$0xff] }
 0x500   : > { %20189 = vst [vmem:[#allocation52_spill] sm:$0xff] %v16636_v37  ;;  %20190 = vst [vmem:[#allocation51_spill] sm:$0xff] %v16639_v4 }
 0x502   : > { %v2464_v20 = vpop.trf.xlu1 }
 0x503   : > { %v2496_v15 = vpop.trf.xlu0  ;;  %v4216_v49 = vcombine.low %v2400_v55, %v2464_v20  ;;  %v4217_v22 = vcombine.high %v2400_v55, %v2464_v20 }
 0x504   : > { %v4232_v10 = vcombine.low %v2432_v19, %v2496_v15  ;;  %v4233_v0 = vcombine.high %v2432_v19, %v2496_v15 }
 0x505   : > { %v4224_v63 = vrot.slane %v4216_v49, %v14966_v38  ;;  %v4231_v46 = vrot.slane %v4217_v22, %v14966_v38 }
 0x506   : > { %v4240_v55 = vrot.slane %v4232_v10, %v14966_v38  ;;  %v4247_v19 = vrot.slane %v4233_v0, %v14966_v38  ;;  %v2465_v44 = vpop.trf.xlu1 }
 0x507   : > { %v2497_v20 = vpop.trf.xlu0  ;;  %v5304_v0 = vcombine.low %v16549_v13, %v2465_v44  ;;  %v5305_v54 = vcombine.high %v16549_v13, %v2465_v44 }
 0x508   : > { %v4280_v15 = vcombine.low %v4224_v63, %v4240_v55  ;;  %v4281_v49 = vcombine.high %v4224_v63, %v4240_v55  ;;  %v4296_v22 = vcombine.low %v4231_v46, %v4247_v19  ;;  %v4297_v10 = vcombine.high %v4231_v46, %v4247_v19 }
 0x509   : > { %v5320_v47 = vcombine.low %v16551_v2, %v2497_v20  ;;  %v5321_v3 = vcombine.high %v16551_v2, %v2497_v20  ;;  %v5312_v46 = vrot.slane %v5304_v0, %v14966_v38  ;;  %v5319_v13 = vrot.slane %v5305_v54, %v14966_v38  ;;  %v16661_v20 = vpop.eup %14047 }
 0x50a   : > { %v16646_v28 = vrot.slane %v4280_v15, %v14973_v23  ;;  %v16649_v50 = vrot.slane %v4281_v49, %v14973_v23  ;;  %v16652_v41 = vrot.slane %v4296_v22, %v14973_v23  ;;  %v16655_v63 = vrot.slane %v4297_v10, %v14973_v23  ;;  %v2466_v19 = vpop.trf.xlu1  ;;  %3728 = vxpose.xlu1.b32.start.end [1/1] (short) (narrow) %v1990_v29, 32  ;;  %v16667_v0 = vpop.eup %14049 }
 0x50b   : > { %v5328_v55 = vrot.slane %v5320_v47, %v14966_v38  ;;  %v5335_v2 = vrot.slane %v5321_v3, %v14966_v38  ;;  %v2498_v44 = vpop.trf.xlu0  ;;  %v6392_v15 = vcombine.low %v16556_v16, %v2466_v19  ;;  %v6393_v49 = vcombine.high %v16556_v16, %v2466_v19  ;;  %3760 = vxpose.xlu0.b32.start.end [1/1] (short) (narrow) %v1991_v17, 32 }
 0x50c   : > { %20191 = vst [vmem:[#allocation54_spill] sm:$0xff] %v16652_v41  ;;  %20192 = vst [vmem:[#allocation132_spill] sm:$0xff] %v16655_v63  ;;  %v6408_v22 = vcombine.low %v16558_v62, %v2498_v44  ;;  %v6409_v10 = vcombine.high %v16558_v62, %v2498_v44  ;;  %v20220_v63 = vld [vmem:[#allocation62_spill] sm:$0xff] }
 0x50d   : > { %v5368_v54 = vcombine.low %v5312_v46, %v5328_v55  ;;  %v5369_v47 = vcombine.high %v5312_v46, %v5328_v55  ;;  %v5384_v53 = vcombine.low %v5319_v13, %v5335_v2  ;;  %v5385_v3 = vcombine.high %v5319_v13, %v5335_v2 }
 0x50e   : > { %v6400_v29 = vrot.slane %v6392_v15, %v14966_v38  ;;  %v6407_v43 = vrot.slane %v6393_v49, %v14966_v38  ;;  %v6416_v60 = vrot.slane %v6408_v22, %v14966_v38  ;;  %v6423_v5 = vrot.slane %v6409_v10, %v14966_v38  ;;  %v2467_v13 = vpop.trf.xlu1 }
 0x50f   : > { %v16674_v16 = vrot.slane %v5368_v54, %v14973_v23  ;;  %v16677_v62 = vrot.slane %v5369_v47, %v14973_v23  ;;  %v16680_v17 = vrot.slane %v5384_v53, %v14973_v23  ;;  %v16683_v46 = vrot.slane %v5385_v3, %v14973_v23  ;;  %v2499_v55 = vpop.trf.xlu0 }
 0x510   : > { %v6456_v2 = vcombine.low %v6400_v29, %v6416_v60  ;;  %v6457_v19 = vcombine.high %v6400_v29, %v6416_v60  ;;  %v6472_v44 = vcombine.low %v6407_v43, %v6423_v5  ;;  %v6473_v15 = vcombine.high %v6407_v43, %v6423_v5 }
 0x511   : > { %20193 = vst [vmem:[#allocation133_spill] sm:$0xff] %v16674_v16  ;;  %20194 = vst [vmem:[#allocation134_spill] sm:$0xff] %v16677_v62  ;;  %v7480_v49 = vcombine.low %v16565_v56, %v2467_v13  ;;  %v7481_v22 = vcombine.high %v16565_v56, %v2467_v13  ;;  %v7496_v10 = vcombine.low %v16567_v39, %v2499_v55 }
 0x512   : > { %20195 = vst [vmem:[#allocation135_spill] sm:$0xff] %v16680_v17  ;;  %20196 = vst [vmem:[#allocation136_spill] sm:$0xff] %v16683_v46  ;;  %v7497_v54 = vcombine.high %v16567_v39, %v2499_v55  ;;  %v16701_v29 = vpop.trf.xlu1  ;;  %v16746_v3 = vrot.slane %v6456_v2, %v14973_v23  ;;  %v16752_v42 = vrot.slane %v6472_v44, %v14973_v23 }
 0x513   : > { %v7488_v43 = vrot.slane %v7480_v49, %v14966_v38  ;;  %v7495_v5 = vrot.slane %v7481_v22, %v14966_v38  ;;  %v7504_v56 = vrot.slane %v7496_v10, %v14966_v38  ;;  %v16703_v13 = vpop.trf.xlu0  ;;  %v16755_v55 = vrot.slane %v6473_v15, %v14973_v23  ;;  %v20206_v15 = vld [vmem:[#allocation78_spill] sm:$0xff] }
 0x514   : > { %v7511_v39 = vrot.slane %v7497_v54, %v14966_v38  ;;  %20201 = vst [vmem:[#allocation141_spill] sm:$0xff] %v16746_v3  ;;  %20203 = vst [vmem:[#allocation143_spill] sm:$0xff] %v16752_v42  ;;  %v1706_v2 = vmax.f32 %v20206_v15, 1e-24  ;;  %v1829_v15 = vmul.f32 %v16667_v0, %v20210_v26 }
 0x515   : > { %v7544_v22 = vcombine.low %v7488_v43, %v7504_v56  ;;  %v7545_v10 = vcombine.high %v7488_v43, %v7504_v56  ;;  %20204 = vst [vmem:[#allocation144_spill] sm:$0xff] %v16755_v55 }
 0x516   : > { %v7560_v47 = vcombine.low %v7495_v5, %v7511_v39  ;;  %v7561_v54 = vcombine.high %v7495_v5, %v7511_v39  ;;  %v16733_v56 = vpop.trf.xlu1 }
 0x517   : > { %v16722_v60 = vrot.slane %v7544_v22, %v14973_v23  ;;  %v16725_v49 = vrot.slane %v7545_v10, %v14973_v23  ;;  %v16735_v39 = vpop.trf.xlu0  ;;  %v20208_v22 = vld [vmem:[#allocation80_spill] sm:$0xff] }
 0x518   : > { %v16728_v43 = vrot.slane %v7560_v47, %v14973_v23  ;;  %v16731_v5 = vrot.slane %v7561_v54, %v14973_v23  ;;  %v16749_v54 = vrot.slane %v6457_v19, %v14973_v23  ;;  %v20205_v19 = vld [vmem:[#allocation76_spill] sm:$0xff]  ;;  %v1732_v10 = vmax.f32 %v20208_v22, 1e-24  ;;  %v20209_v47 = vld [vmem:[#allocation77_spill] sm:$0xff] }
 0x519   : > { %20197 = vst [vmem:[#allocation137_spill] sm:$0xff] %v16722_v60  ;;  %20198 = vst [vmem:[#allocation138_spill] sm:$0xff] %v16725_v49  ;;  %v1704_v53 = vmax.f32 %v20205_v19, 1e-24  ;;  %v20207_v49 = vld [vmem:[#allocation75_spill] sm:$0xff] }
 0x51a   : > { %20199 = vst [vmem:[#allocation139_spill] sm:$0xff] %v16728_v43  ;;  %20200 = vst [vmem:[#allocation140_spill] sm:$0xff] %v16731_v5  ;;  %v16766_v46 = vpop.trf.xlu1  ;;  %2768 = vxpose.xlu1.b32.start.end [1/1] (short) (narrow) %v16572_v36, 32  ;;  %v1703_v40 = vmax.f32 %v20207_v49, 1e-24 }
 0x51b   : > { %20202 = vst [vmem:[#allocation142_spill] sm:$0xff] %v16749_v54  ;;  %v16769_v44 = vpop.trf.xlu0  ;;  %2800 = vxpose.xlu0.b32.start.end [1/1] (short) (narrow) %v16575_v24, 32  ;;  %14051 = vrsqrt.f32 %v1704_v53  ;;  %v1705_v43 = vmax.f32 %v20209_v47, 1e-24  ;;  %v20211_v53 = vld [vmem:[#allocation79_spill] sm:$0xff] }
 0x51c   : > { %14053 = vrsqrt.f32 %v1706_v2  ;;  %v1731_v22 = vmax.f32 %v20211_v53, 1e-24  ;;  %v20212_v2 = vld [vmem:[#allocation56_spill] sm:$0xff] }
 0x51d   : > { %14055 = vrsqrt.f32 %v1703_v40  ;;  %v1830_v40 = vmul.f32 %v16661_v20, %v20212_v2 }
 0x51e   : > { %v16798_v24 = vpop.trf.xlu1  ;;  %14057 = vrsqrt.f32 %v1732_v10 }
 0x51f   : > { %v16800_v60 = vpop.trf.xlu0  ;;  %14059 = vrsqrt.f32 %v1705_v43 }
 0x520   : > { %14061 = vrsqrt.f32 %v1731_v22 }
 0x522   : > { %v3360_v37 = vpop.trf.xlu1 }
 0x523   : > { %v3392_v19 = vpop.trf.xlu0  ;;  %v4728_v36 = vcombine.low %v16701_v29, %v3360_v37  ;;  %v4729_v49 = vcombine.high %v16701_v29, %v3360_v37 }
 0x524   : > { %v4744_v5 = vcombine.low %v16703_v13, %v3392_v19  ;;  %v4745_v4 = vcombine.high %v16703_v13, %v3392_v19  ;;  %v1962_v13 = vmul.f32 %v15507_v11, %v1829_v15 }
 0x525   : > { %v16814_v47 = vrot.slane %v4728_v36, %v14966_v38  ;;  %v16817_v55 = vrot.slane %v4729_v49, %v14966_v38  ;;  %v1963_v49 = vmul.f32 %v15507_v11, %v1830_v40 }
 0x526   : > { %v16820_v26 = vrot.slane %v4744_v5, %v14966_v38  ;;  %v16823_v37 = vrot.slane %v4745_v4, %v14966_v38  ;;  %v3361_v0 = vpop.trf.xlu1 }
 0x527   : > { %v3393_v29 = vpop.trf.xlu0  ;;  %v5816_v4 = vcombine.low %v16733_v56, %v3361_v0  ;;  %v5817_v43 = vcombine.high %v16733_v56, %v3361_v0 }
 0x528   : > { %v5832_v36 = vcombine.low %v16735_v39, %v3393_v29  ;;  %v5833_v15 = vcombine.high %v16735_v39, %v3393_v29 }
 0x529   : > { %v16840_v53 = vrot.slane %v5816_v4, %v14966_v38  ;;  %v16843_v2 = vrot.slane %v5817_v43, %v14966_v38 }
 0x52a   : > { %v16846_v19 = vrot.slane %v5832_v36, %v14966_v38  ;;  %v16849_v5 = vrot.slane %v5833_v15, %v14966_v38  ;;  %v3362_v56 = vpop.trf.xlu1  ;;  %2832 = vxpose.xlu1.b32.start.end [1/1] (short) (narrow) %v1962_v13, 32  ;;  %v14052_v15 = vpop.eup %14051 }
 0x52b   : > { %v3394_v0 = vpop.trf.xlu0  ;;  %v6904_v39 = vcombine.low %v16766_v46, %v3362_v56  ;;  %v6905_v22 = vcombine.high %v16766_v46, %v3362_v56  ;;  %2864 = vxpose.xlu0.b32.start.end [1/1] (short) (narrow) %v1963_v49, 32 }
 0x52c   : > { %v6920_v40 = vcombine.low %v16769_v44, %v3394_v0  ;;  %v6921_v29 = vcombine.high %v16769_v44, %v3394_v0  ;;  %v5880_v4 = vcombine.low %v16840_v53, %v16846_v19  ;;  %v5881_v43 = vcombine.high %v16840_v53, %v16846_v19  ;;  %v14054_v19 = vpop.eup %14053 }
 0x52d   : > { %v5896_v36 = vcombine.low %v16843_v2, %v16849_v5  ;;  %v5897_v13 = vcombine.high %v16843_v2, %v16849_v5  ;;  %v16864_v46 = vrot.slane %v6904_v39, %v14966_v38  ;;  %v16867_v56 = vrot.slane %v6905_v22, %v14966_v38  ;;  %v14056_v10 = vpop.eup %14055 }
 0x52e   : > { %v16870_v44 = vrot.slane %v6920_v40, %v14966_v38  ;;  %v16873_v49 = vrot.slane %v6921_v29, %v14966_v38  ;;  %v3363_v53 = vpop.trf.xlu1  ;;  %v14058_v42 = vpop.eup %14057 }
 0x52f   : > { %v3395_v0 = vpop.trf.xlu0  ;;  %v7992_v40 = vcombine.low %v16798_v24, %v3363_v53  ;;  %v7993_v29 = vcombine.high %v16798_v24, %v3363_v53  ;;  %v1832_v24 = vmul.f32 %v14052_v15, %v20214_v59  ;;  %v20216_v59 = vld [vmem:[#allocation81_spill] sm:$0xff] }
 0x530   : > { %v6968_v5 = vcombine.low %v16864_v46, %v16870_v44  ;;  %v6969_v2 = vcombine.high %v16864_v46, %v16870_v44  ;;  %v6984_v39 = vcombine.low %v16867_v56, %v16873_v49  ;;  %v6985_v22 = vcombine.high %v16867_v56, %v16873_v49  ;;  %v14060_v56 = vpop.eup %14059  ;;  %v20213_v49 = vld [vmem:[#allocation55_spill] sm:$0xff] }
 0x531   : > { %v8008_v20 = vcombine.low %v16800_v60, %v3395_v0  ;;  %v8009_v14 = vcombine.high %v16800_v60, %v3395_v0  ;;  %v8000_v32 = vrot.slane %v7992_v40, %v14966_v38  ;;  %v8007_v54 = vrot.slane %v7993_v29, %v14966_v38  ;;  %v14062_v0 = vpop.eup %14061  ;;  %v20215_v29 = vld [vmem:[#allocation82_spill] sm:$0xff] }
 0x532   : > { %v3424_v1 = vpop.trf.xlu1  ;;  %v1831_v18 = vmul.f32 %v14056_v10, %v20213_v49  ;;  %v1734_v52 = vmax.f32 %v20215_v29, 1e-24  ;;  %v20219_v49 = vld [vmem:[#allocation59_spill] sm:$0xff] }
 0x533   : > { %v8016_v46 = vrot.slane %v8008_v20, %v14966_v38  ;;  %v8023_v44 = vrot.slane %v8009_v14, %v14966_v38  ;;  %v3456_v3 = vpop.trf.xlu0  ;;  %v1965_v14 = vmul.f32 %v15507_v11, %v1832_v24  ;;  %v1859_v9 = vmul.f32 %v14062_v0, %v20219_v49 }
 0x534   : > { %v1964_v20 = vmul.f32 %v15507_v11, %v1831_v18  ;;  %v1860_v18 = vmul.f32 %v14058_v42, %v20220_v63  ;;  %14063 = vrsqrt.f32 %v1734_v52  ;;  %v20221_v42 = vcombine.low %v16814_v47, %v16820_v26 }
 0x535   : > { %v8056_v53 = vcombine.low %v8000_v32, %v8016_v46  ;;  %v8057_v17 = vcombine.high %v8000_v32, %v8016_v46  ;;  %v8072_v8 = vcombine.low %v8007_v54, %v8023_v44  ;;  %v8073_v60 = vcombine.high %v8007_v54, %v8023_v44  ;;  %v20217_v54 = vld [vmem:[#allocation57_spill] sm:$0xff]  ;;  %v20218_v46 = vld [vmem:[#allocation60_spill] sm:$0xff] }
 0x536   : > { %v16893_v62 = vpop.trf.xlu1  ;;  %v1733_v32 = vmax.f32 %v20216_v59, 1e-24  ;;  %v1833_v15 = vmul.f32 %v14060_v56, %v20217_v54  ;;  %v1834_v44 = vmul.f32 %v14054_v19, %v20218_v46  ;;  %v16916_v59 = vmul.f32 %v15507_v11, %v1859_v9 }
 0x537   : > { %v16895_v40 = vpop.trf.xlu0  ;;  %v16919_v56 = vmul.f32 %v15507_v11, %v1860_v18  ;;  %v16925_v52 = vrot.slane %v20221_v42, %v14973_v23  ;;  %v20222_v63 = vcombine.high %v16814_v47, %v16820_v26  ;;  %v20223_v9 = vcombine.low %v16817_v55, %v16823_v37 }
 0x538   : > { %14065 = vrsqrt.f32 %v1733_v32  ;;  %v20225_v32 = vcombine.high %v16817_v55, %v16823_v37  ;;  %v16949_v46 = vrot.slane %v5881_v43, %v14973_v23  ;;  %v16952_v47 = vrot.slane %v5896_v36, %v14973_v23 }
 0x539   : > { %v16931_v19 = vrot.slane %v20222_v63, %v14973_v23  ;;  %v16937_v0 = vrot.slane %v20223_v9, %v14973_v23  ;;  %v16955_v26 = vrot.slane %v5897_v13, %v14973_v23  ;;  %v16958_v37 = vrot.slane %v6968_v5, %v14973_v23 }
 0x53a   : > { %v16900_v16 = vpop.trf.xlu1  ;;  %2896 = vxpose.xlu1.b32.start.end [1/1] (short) (narrow) %v1964_v20, 32  ;;  %v1966_v20 = vmul.f32 %v15507_v11, %v1833_v15  ;;  %v16943_v54 = vrot.slane %v20225_v32, %v14973_v23  ;;  %v16946_v15 = vrot.slane %v5880_v4, %v14973_v23  ;;  %20228 = vst [vmem:[#allocation80_spill] sm:$0xff] %v16949_v46  ;;  %20229 = vst [vmem:[#allocation77_spill] sm:$0xff] %v16952_v47 }
 0x53b   : > { %v16902_v10 = vpop.trf.xlu0  ;;  %2928 = vxpose.xlu0.b32.start.end [1/1] (short) (narrow) %v1965_v14, 32  ;;  %v1967_v14 = vmul.f32 %v15507_v11, %v1834_v44  ;;  %20224 = vst [vmem:[#allocation76_spill] sm:$0xff] %v16937_v0  ;;  %20230 = vst [vmem:[#allocation53_spill] sm:$0xff] %v16955_v26  ;;  %v16961_v4 = vrot.slane %v6969_v2, %v14973_v23  ;;  %v16964_v43 = vrot.slane %v6984_v39, %v14973_v23 }
 0x53c   : > { %20226 = vst [vmem:[#allocation78_spill] sm:$0xff] %v16943_v54  ;;  %20227 = vst [vmem:[#allocation75_spill] sm:$0xff] %v16946_v15  ;;  %v16967_v36 = vrot.slane %v6985_v22, %v14973_v23  ;;  %v16974_v5 = vrot.slane %v8056_v53, %v14973_v23  ;;  %v16977_v2 = vrot.slane %v8057_v17, %v14973_v23 }
 0x53d   : > { %20231 = vst [vmem:[#allocation79_spill] sm:$0xff] %v16958_v37  ;;  %20232 = vst [vmem:[#allocation56_spill] sm:$0xff] %v16961_v4  ;;  %v16980_v39 = vrot.slane %v8072_v8, %v14973_v23  ;;  %v16983_v22 = vrot.slane %v8073_v60, %v14973_v23  ;;  %v20260_v37 = vld [vmem:[#allocation66_spill] sm:$0xff] }
 0x53e   : > { %v16909_v24 = vpop.trf.xlu1  ;;  %20233 = vst [vmem:[#allocation55_spill] sm:$0xff] %v16964_v43  ;;  %20234 = vst [vmem:[#allocation58_spill] sm:$0xff] %v16967_v36 }
 0x53f   : > { %v16911_v29 = vpop.trf.xlu0  ;;  %20235 = vst [vmem:[#allocation82_spill] sm:$0xff] %v16974_v5  ;;  %20236 = vst [vmem:[#allocation81_spill] sm:$0xff] %v16977_v2 }
 0x540   : > { %20237 = vst [vmem:[#allocation57_spill] sm:$0xff] %v16980_v39  ;;  %20238 = vst [vmem:[#allocation60_spill] sm:$0xff] %v16983_v22 }
 0x542   : > { %v3488_v44 = vpop.trf.xlu1 }
 0x543   : > { %v3520_v49 = vpop.trf.xlu0  ;;  %v4760_v18 = vcombine.low %v3424_v1, %v3488_v44  ;;  %v4761_v42 = vcombine.high %v3424_v1, %v3488_v44 }
 0x544   : > { %v4776_v63 = vcombine.low %v3456_v3, %v3520_v49  ;;  %v4777_v55 = vcombine.high %v3456_v3, %v3520_v49 }
 0x545   : > { %v4768_v13 = vrot.slane %v4760_v18, %v14966_v38  ;;  %v4775_v9 = vrot.slane %v4761_v42, %v14966_v38 }
 0x546   : > { %v4784_v1 = vrot.slane %v4776_v63, %v14966_v38  ;;  %v4791_v3 = vrot.slane %v4777_v55, %v14966_v38  ;;  %v3489_v32 = vpop.trf.xlu1 }
 0x547   : > { %v3521_v44 = vpop.trf.xlu0  ;;  %v5848_v55 = vcombine.low %v16893_v62, %v3489_v32  ;;  %v5849_v53 = vcombine.high %v16893_v62, %v3489_v32 }
 0x548   : > { %v4824_v49 = vcombine.low %v4768_v13, %v4784_v1  ;;  %v4825_v18 = vcombine.high %v4768_v13, %v4784_v1  ;;  %v4840_v42 = vcombine.low %v4775_v9, %v4791_v3  ;;  %v4841_v63 = vcombine.high %v4775_v9, %v4791_v3 }
 0x549   : > { %v5864_v7 = vcombine.low %v16895_v40, %v3521_v44  ;;  %v5865_v17 = vcombine.high %v16895_v40, %v3521_v44  ;;  %v5856_v9 = vrot.slane %v5848_v55, %v14966_v38  ;;  %v5863_v62 = vrot.slane %v5849_v53, %v14966_v38  ;;  %v17005_v44 = vpop.eup %14063 }
 0x54a   : > { %v16990_v8 = vrot.slane %v4824_v49, %v14973_v23  ;;  %v16993_v60 = vrot.slane %v4825_v18, %v14973_v23  ;;  %v16996_v35 = vrot.slane %v4840_v42, %v14973_v23  ;;  %v16999_v13 = vrot.slane %v4841_v63, %v14973_v23  ;;  %v3490_v3 = vpop.trf.xlu1  ;;  %2960 = vxpose.xlu1.b32.start.end [1/1] (short) (narrow) %v1966_v20, 32  ;;  %v17011_v55 = vpop.eup %14065 }
 0x54b   : > { %v5872_v1 = vrot.slane %v5864_v7, %v14966_v38  ;;  %v5879_v40 = vrot.slane %v5865_v17, %v14966_v38  ;;  %v3522_v32 = vpop.trf.xlu0  ;;  %v6936_v49 = vcombine.low %v16900_v16, %v3490_v3  ;;  %v6937_v18 = vcombine.high %v16900_v16, %v3490_v3  ;;  %2992 = vxpose.xlu0.b32.start.end [1/1] (short) (narrow) %v1967_v14, 32 }
 0x54c   : > { %20239 = vst [vmem:[#allocation59_spill] sm:$0xff] %v16996_v35  ;;  %20240 = vst [vmem:[#allocation62_spill] sm:$0xff] %v16999_v13  ;;  %v6952_v42 = vcombine.low %v16902_v10, %v3522_v32  ;;  %v6953_v63 = vcombine.high %v16902_v10, %v3522_v32 }
 0x54d   : > { %v5912_v53 = vcombine.low %v5856_v9, %v5872_v1  ;;  %v5913_v7 = vcombine.high %v5856_v9, %v5872_v1  ;;  %v5928_v21 = vcombine.low %v5863_v62, %v5879_v40  ;;  %v5929_v17 = vcombine.high %v5863_v62, %v5879_v40 }
 0x54e   : > { %v6944_v20 = vrot.slane %v6936_v49, %v14966_v38  ;;  %v6951_v61 = vrot.slane %v6937_v18, %v14966_v38  ;;  %v6960_v31 = vrot.slane %v6952_v42, %v14966_v38  ;;  %v6967_v41 = vrot.slane %v6953_v63, %v14966_v38  ;;  %v3491_v62 = vpop.trf.xlu1 }
 0x54f   : > { %v17018_v16 = vrot.slane %v5912_v53, %v14973_v23  ;;  %v17021_v10 = vrot.slane %v5913_v7, %v14973_v23  ;;  %v17024_v14 = vrot.slane %v5928_v21, %v14973_v23  ;;  %v17027_v9 = vrot.slane %v5929_v17, %v14973_v23  ;;  %v3523_v1 = vpop.trf.xlu0  ;;  %v20253_v21 = vld [vmem:[#allocation84_spill] sm:$0xff] }
 0x550   : > { %v7000_v40 = vcombine.low %v6944_v20, %v6960_v31  ;;  %v7001_v3 = vcombine.high %v6944_v20, %v6960_v31  ;;  %v7016_v32 = vcombine.low %v6951_v61, %v6967_v41  ;;  %v7017_v49 = vcombine.high %v6951_v61, %v6967_v41 }
 0x551   : > { %20241 = vst [vmem:[#allocation145_spill] sm:$0xff] %v17018_v16  ;;  %20242 = vst [vmem:[#allocation146_spill] sm:$0xff] %v17021_v10  ;;  %v8024_v18 = vcombine.low %v16909_v24, %v3491_v62  ;;  %v8025_v42 = vcombine.high %v16909_v24, %v3491_v62  ;;  %v8040_v63 = vcombine.low %v16911_v29, %v3523_v1 }
 0x552   : > { %20243 = vst [vmem:[#allocation147_spill] sm:$0xff] %v17024_v14  ;;  %20244 = vst [vmem:[#allocation148_spill] sm:$0xff] %v17027_v9  ;;  %v8041_v53 = vcombine.high %v16911_v29, %v3523_v1  ;;  %v17045_v20 = vpop.trf.xlu1  ;;  %v17090_v17 = vrot.slane %v7000_v40, %v14973_v23  ;;  %v17096_v51 = vrot.slane %v7016_v32, %v14973_v23 }
 0x553   : > { %v8032_v61 = vrot.slane %v8024_v18, %v14966_v38  ;;  %v8039_v41 = vrot.slane %v8025_v42, %v14966_v38  ;;  %v8048_v24 = vrot.slane %v8040_v63, %v14966_v38  ;;  %v17047_v62 = vpop.trf.xlu0  ;;  %v17099_v1 = vrot.slane %v7017_v49, %v14973_v23  ;;  %v20255_v49 = vld [vmem:[#allocation86_spill] sm:$0xff] }
 0x554   : > { %v8055_v29 = vrot.slane %v8041_v53, %v14966_v38  ;;  %20249 = vst [vmem:[#allocation153_spill] sm:$0xff] %v17090_v17  ;;  %20251 = vst [vmem:[#allocation155_spill] sm:$0xff] %v17096_v51 }
 0x555   : > { %v8088_v42 = vcombine.low %v8032_v61, %v8048_v24  ;;  %v8089_v63 = vcombine.high %v8032_v61, %v8048_v24  ;;  %20252 = vst [vmem:[#allocation156_spill] sm:$0xff] %v17099_v1  ;;  %v20258_v1 = vld [vmem:[#allocation64_spill] sm:$0xff] }
 0x556   : > { %v8104_v7 = vcombine.low %v8039_v41, %v8055_v29  ;;  %v8105_v53 = vcombine.high %v8039_v41, %v8055_v29  ;;  %v17077_v24 = vpop.trf.xlu1 }
 0x557   : > { %v17066_v31 = vrot.slane %v8088_v42, %v14973_v23  ;;  %v17069_v18 = vrot.slane %v8089_v63, %v14973_v23  ;;  %v17079_v29 = vpop.trf.xlu0  ;;  %v1736_v42 = vmax.f32 %v20253_v21, 1e-24  ;;  %v1738_v63 = vmax.f32 %v20255_v49, 1e-24 }
 0x558   : > { %v17072_v61 = vrot.slane %v8104_v7, %v14973_v23  ;;  %v17075_v41 = vrot.slane %v8105_v53, %v14973_v23  ;;  %v17093_v53 = vrot.slane %v7001_v3, %v14973_v23 }
 0x559   : > { %20245 = vst [vmem:[#allocation149_spill] sm:$0xff] %v17066_v31  ;;  %20246 = vst [vmem:[#allocation150_spill] sm:$0xff] %v17069_v18  ;;  %v20254_v18 = vld [vmem:[#allocation83_spill] sm:$0xff]  ;;  %14067 = vrsqrt.f32 %v1736_v42  ;;  %v1862_v42 = vmul.f32 %v17005_v44, %v20258_v1 }
 0x55a   : > { %20247 = vst [vmem:[#allocation151_spill] sm:$0xff] %v17072_v61  ;;  %20248 = vst [vmem:[#allocation152_spill] sm:$0xff] %v17075_v41  ;;  %v17109_v3 = vpop.trf.xlu1  ;;  %3792 = vxpose.xlu1.b32.start.end [1/1] (short) (narrow) %v16916_v59, 32  ;;  %v1735_v2 = vmax.f32 %v20254_v18, 1e-24  ;;  %v20256_v61 = vld [vmem:[#allocation61_spill] sm:$0xff] }
 0x55b   : > { %20250 = vst [vmem:[#allocation154_spill] sm:$0xff] %v17093_v53  ;;  %v17112_v32 = vpop.trf.xlu0  ;;  %3824 = vxpose.xlu0.b32.start.end [1/1] (short) (narrow) %v16919_v56, 32  ;;  %v1861_v40 = vmul.f32 %v17011_v55, %v20256_v61  ;;  %v20257_v41 = vld [vmem:[#allocation85_spill] sm:$0xff] }
 0x55c   : > { %14069 = vrsqrt.f32 %v1735_v2  ;;  %v1737_v22 = vmax.f32 %v20257_v41, 1e-24 }
 0x55d   : > { %14071 = vrsqrt.f32 %v1738_v63  ;;  %v1994_v61 = vmul.f32 %v15507_v11, %v1861_v40 }
 0x55e   : > { %v17141_v56 = vpop.trf.xlu1  ;;  %14073 = vrsqrt.f32 %v1737_v22 }
 0x55f   : > { %v17143_v31 = vpop.trf.xlu0 }
 0x562   : > { %v2592_v5 = vpop.trf.xlu1 }
 0x563   : > { %v2624_v7 = vpop.trf.xlu0  ;;  %v4320_v21 = vcombine.low %v17045_v20, %v2592_v5  ;;  %v4321_v39 = vcombine.high %v17045_v20, %v2592_v5 }
 0x564   : > { %v4336_v59 = vcombine.low %v17047_v62, %v2624_v7  ;;  %v4337_v18 = vcombine.high %v17047_v62, %v2624_v7 }
 0x565   : > { %v17156_v2 = vrot.slane %v4320_v21, %v14966_v38  ;;  %v17159_v49 = vrot.slane %v4321_v39, %v14966_v38  ;;  %v1995_v21 = vmul.f32 %v15507_v11, %v1862_v42 }
 0x566   : > { %v17162_v55 = vrot.slane %v4336_v59, %v14966_v38  ;;  %v17165_v5 = vrot.slane %v4337_v18, %v14966_v38  ;;  %v2593_v20 = vpop.trf.xlu1 }
 0x567   : > { %v2625_v62 = vpop.trf.xlu0  ;;  %v5408_v7 = vcombine.low %v17077_v24, %v2593_v20  ;;  %v5409_v63 = vcombine.high %v17077_v24, %v2593_v20 }
 0x568   : > { %v5424_v59 = vcombine.low %v17079_v29, %v2625_v62  ;;  %v5425_v40 = vcombine.high %v17079_v29, %v2625_v62 }
 0x569   : > { %v17182_v18 = vrot.slane %v5408_v7, %v14966_v38  ;;  %v17185_v1 = vrot.slane %v5409_v63, %v14966_v38 }
 0x56a   : > { %v17188_v39 = vrot.slane %v5424_v59, %v14966_v38  ;;  %v17191_v41 = vrot.slane %v5425_v40, %v14966_v38  ;;  %v2594_v24 = vpop.trf.xlu1  ;;  %3856 = vxpose.xlu1.b32.start.end [1/1] (short) (narrow) %v1994_v61, 32 }
 0x56b   : > { %v2626_v20 = vpop.trf.xlu0  ;;  %v6496_v29 = vcombine.low %v17109_v3, %v2594_v24  ;;  %v6497_v22 = vcombine.high %v17109_v3, %v2594_v24  ;;  %3888 = vxpose.xlu0.b32.start.end [1/1] (short) (narrow) %v1995_v21, 32  ;;  %v14068_v24 = vpop.eup %14067 }
 0x56c   : > { %v6512_v42 = vcombine.low %v17112_v32, %v2626_v20  ;;  %v6513_v62 = vcombine.high %v17112_v32, %v2626_v20  ;;  %v5472_v7 = vcombine.low %v17182_v18, %v17188_v39  ;;  %v5473_v63 = vcombine.high %v17182_v18, %v17188_v39  ;;  %v14070_v39 = vpop.eup %14069 }
 0x56d   : > { %v5488_v59 = vcombine.low %v17185_v1, %v17191_v41  ;;  %v5489_v61 = vcombine.high %v17185_v1, %v17191_v41  ;;  %v6504_v40 = vrot.slane %v6496_v29, %v14966_v38  ;;  %v17207_v3 = vrot.slane %v6497_v22, %v14966_v38 }
 0x56e   : > { %v6520_v32 = vrot.slane %v6512_v42, %v14966_v38  ;;  %v17211_v21 = vrot.slane %v6513_v62, %v14966_v38  ;;  %v2595_v20 = vpop.trf.xlu1 }
 0x56f   : > { %v2627_v44 = vpop.trf.xlu0  ;;  %v7584_v41 = vcombine.low %v17141_v56, %v2595_v20  ;;  %v7585_v29 = vcombine.high %v17141_v56, %v2595_v20  ;;  %v1864_v56 = vmul.f32 %v14068_v24, %v20260_v37  ;;  %v20261_v37 = vld [vmem:[#allocation65_spill] sm:$0xff]  ;;  %v17279_v46 = vrot.slane %v5489_v61, %v14973_v23 }
 0x570   : > { %v6560_v18 = vcombine.low %v6504_v40, %v6520_v32  ;;  %v6561_v36 = vcombine.high %v6504_v40, %v6520_v32  ;;  %v6576_v51 = vcombine.low %v17207_v3, %v17211_v21  ;;  %v6577_v1 = vcombine.high %v17207_v3, %v17211_v21  ;;  %v14072_v3 = vpop.eup %14071  ;;  %v20259_v21 = vld [vmem:[#allocation63_spill] sm:$0xff] }
 0x571   : > { %v7600_v22 = vcombine.low %v17143_v31, %v2627_v44  ;;  %v7601_v42 = vcombine.high %v17143_v31, %v2627_v44  ;;  %v7592_v62 = vrot.slane %v7584_v41, %v14966_v38  ;;  %v17223_v43 = vrot.slane %v7585_v29, %v14966_v38  ;;  %v14074_v41 = vpop.eup %14073  ;;  %20272 = vst [vmem:[#allocation64_spill] sm:$0xff] %v17279_v46 }
 0x572   : > { %v2656_v53 = vpop.trf.xlu1  ;;  %v1863_v17 = vmul.f32 %v14070_v39, %v20259_v21  ;;  %v1865_v24 = vmul.f32 %v14074_v41, %v20261_v37  ;;  %v20262_v39 = vld [vmem:[#allocation67_spill] sm:$0xff]  ;;  %v20264_v21 = vcombine.high %v17156_v2, %v17162_v55  ;;  %v20267_v37 = vcombine.high %v17159_v49, %v17165_v5 }
 0x573   : > { %v7608_v40 = vrot.slane %v7600_v22, %v14966_v38  ;;  %v7615_v32 = vrot.slane %v7601_v42, %v14966_v38  ;;  %v2688_v4 = vpop.trf.xlu0  ;;  %v1997_v42 = vmul.f32 %v15507_v11, %v1864_v56 }
 0x574   : > { %v1996_v22 = vmul.f32 %v15507_v11, %v1863_v17  ;;  %v20263_v17 = vcombine.low %v17156_v2, %v17162_v55  ;;  %v17253_v56 = vrot.slane %v20264_v21, %v14973_v23  ;;  %v1998_v41 = vmul.f32 %v15507_v11, %v1865_v24 }
 0x575   : > { %v7648_v20 = vcombine.low %v7592_v62, %v7608_v40  ;;  %v7649_v9 = vcombine.high %v7592_v62, %v7608_v40  ;;  %v7664_v31 = vcombine.low %v17223_v43, %v7615_v32  ;;  %v7665_v44 = vcombine.high %v17223_v43, %v7615_v32 }
 0x576   : > { %v2657_v29 = vpop.trf.xlu1  ;;  %v1866_v62 = vmul.f32 %v14072_v3, %v20262_v39  ;;  %v17247_v32 = vrot.slane %v20263_v17, %v14973_v23  ;;  %v17267_v39 = vrot.slane %v20267_v37, %v14973_v23  ;;  %v17270_v2 = vrot.slane %v5472_v7, %v14973_v23 }
 0x577   : > { %v2689_v26 = vpop.trf.xlu0  ;;  %v17273_v55 = vrot.slane %v5473_v63, %v14973_v23  ;;  %v17295_v61 = vrot.slane %v7649_v9, %v14973_v23  ;;  %v17304_v13 = vrot.slane %v7664_v31, %v14973_v23  ;;  %v17307_v9 = vrot.slane %v7665_v44, %v14973_v23 }
 0x578   : > { %v1999_v3 = vmul.f32 %v15507_v11, %v1866_v62  ;;  %20268 = vst [vmem:[#allocation83_spill] sm:$0xff] %v17267_v39  ;;  %20269 = vst [vmem:[#allocation86_spill] sm:$0xff] %v17270_v2 }
 0x579   : > { %20270 = vst [vmem:[#allocation61_spill] sm:$0xff] %v17273_v55  ;;  %20276 = vst [vmem:[#allocation67_spill] sm:$0xff] %v17295_v61 }
 0x57a   : > { %v17233_v14 = vpop.trf.xlu1  ;;  %3920 = vxpose.xlu1.b32.start.end [1/1] (short) (narrow) %v1996_v22, 32  ;;  %v20265_v22 = vcombine.low %v17159_v49, %v17165_v5  ;;  %v17282_v49 = vrot.slane %v6560_v18, %v14973_v23  ;;  %v17285_v5 = vrot.slane %v6561_v36, %v14973_v23  ;;  %v17301_v36 = vrot.slane %v6577_v1, %v14973_v23 }
 0x57b   : > { %v17235_v47 = vpop.trf.xlu0  ;;  %3952 = vxpose.xlu0.b32.start.end [1/1] (short) (narrow) %v1997_v42, 32  ;;  %20279 = vst [vmem:[#allocation159_spill] sm:$0xff] %v17304_v13  ;;  %20280 = vst [vmem:[#allocation160_spill] sm:$0xff] %v17307_v9 }
 0x57c   : > { %v17261_v42 = vrot.slane %v20265_v22, %v14973_v23  ;;  %v17276_v22 = vrot.slane %v5488_v59, %v14973_v23  ;;  %20273 = vst [vmem:[#allocation63_spill] sm:$0xff] %v17282_v49  ;;  %20274 = vst [vmem:[#allocation66_spill] sm:$0xff] %v17285_v5  ;;  %v17292_v59 = vrot.slane %v7648_v20, %v14973_v23 }
 0x57d   : > { %20278 = vst [vmem:[#allocation158_spill] sm:$0xff] %v17301_v36 }
 0x57e   : > { %v17239_v40 = vpop.trf.xlu1  ;;  %20266 = vst [vmem:[#allocation84_spill] sm:$0xff] %v17261_v42  ;;  %20271 = vst [vmem:[#allocation85_spill] sm:$0xff] %v17276_v22 }
 0x57f   : > { %v17241_v43 = vpop.trf.xlu0  ;;  %20275 = vst [vmem:[#allocation65_spill] sm:$0xff] %v17292_v59 }
 0x582   : > { %v2720_v24 = vpop.trf.xlu1 }
 0x583   : > { %v2752_v11 = vpop.trf.xlu0  ;;  %v4352_v62 = vcombine.low %v2656_v53, %v2720_v24  ;;  %v4353_v17 = vcombine.high %v2656_v53, %v2720_v24  ;;  %v17298_v24 = vrot.slane %v6576_v51, %v14973_v23 }
 0x584   : > { %v4368_v21 = vcombine.low %v2688_v4, %v2752_v11  ;;  %v4369_v10 = vcombine.high %v2688_v4, %v2752_v11 }
 0x585   : > { %v4360_v7 = vrot.slane %v4352_v62, %v14966_v38  ;;  %v4367_v63 = vrot.slane %v4353_v17, %v14966_v38  ;;  %20277 = vst [vmem:[#allocation157_spill] sm:$0xff] %v17298_v24 }
 0x586   : > { %v4376_v53 = vrot.slane %v4368_v21, %v14966_v38  ;;  %v4383_v4 = vrot.slane %v4369_v10, %v14966_v38  ;;  %v2721_v37 = vpop.trf.xlu1 }
 0x587   : > { %v2753_v18 = vpop.trf.xlu0  ;;  %v5440_v16 = vcombine.low %v2657_v29, %v2721_v37  ;;  %v5441_v10 = vcombine.high %v2657_v29, %v2721_v37 }
 0x588   : > { %v4416_v11 = vcombine.low %v4360_v7, %v4376_v53  ;;  %v4417_v62 = vcombine.high %v4360_v7, %v4376_v53  ;;  %v4432_v17 = vcombine.low %v4367_v63, %v4383_v4  ;;  %v4433_v21 = vcombine.high %v4367_v63, %v4383_v4 }
 0x589   : > { %v5456_v15 = vcombine.low %v2689_v26, %v2753_v18  ;;  %v5457_v20 = vcombine.high %v2689_v26, %v2753_v18  ;;  %v5448_v7 = vrot.slane %v5440_v16, %v14966_v38  ;;  %v5455_v63 = vrot.slane %v5441_v10, %v14966_v38 }
 0x58a   : > { %v17310_v51 = vrot.slane %v4416_v11, %v14973_v23  ;;  %v17313_v1 = vrot.slane %v4417_v62, %v14973_v23  ;;  %v2722_v53 = vpop.trf.xlu1  ;;  %3984 = vxpose.xlu1.b32.start.end [1/1] (short) (narrow) %v1998_v41, 32  ;;  %v17328_v35 = vrot.slane %v4432_v17, %v14973_v23 }
 0x58b   : > { %v5464_v29 = vrot.slane %v5456_v15, %v14966_v38  ;;  %v5471_v26 = vrot.slane %v5457_v20, %v14966_v38  ;;  %v2754_v31 = vpop.trf.xlu0  ;;  %v6528_v44 = vcombine.low %v17233_v14, %v2722_v53  ;;  %v6529_v4 = vcombine.high %v17233_v14, %v2722_v53  ;;  %4016 = vxpose.xlu0.b32.start.end [1/1] (short) (narrow) %v1999_v3, 32 }
 0x58c   : > { %v6544_v37 = vcombine.low %v17235_v47, %v2754_v31  ;;  %v6545_v18 = vcombine.high %v17235_v47, %v2754_v31  ;;  %20281 = vst [vmem:[#allocation161_spill] sm:$0xff] %v17328_v35  ;;  %v17331_v14 = vrot.slane %v4433_v21, %v14973_v23 }
 0x58d   : > { %v5504_v11 = vcombine.low %v5448_v7, %v5464_v29  ;;  %v5505_v16 = vcombine.high %v5448_v7, %v5464_v29  ;;  %v5520_v62 = vcombine.low %v5455_v63, %v5471_v26  ;;  %v5521_v10 = vcombine.high %v5455_v63, %v5471_v26 }
 0x58e   : > { %v6536_v15 = vrot.slane %v6528_v44, %v14966_v38  ;;  %v6543_v20 = vrot.slane %v6529_v4, %v14966_v38  ;;  %v6552_v41 = vrot.slane %v6544_v37, %v14966_v38  ;;  %v6559_v54 = vrot.slane %v6545_v18, %v14966_v38  ;;  %20282 = vst [vmem:[#allocation162_spill] sm:$0xff] %v17331_v14  ;;  %v2723_v7 = vpop.trf.xlu1 }
 0x58f   : > { %v17334_v47 = vrot.slane %v5504_v11, %v14973_v23  ;;  %v17337_v3 = vrot.slane %v5505_v16, %v14973_v23  ;;  %v2755_v63 = vpop.trf.xlu0  ;;  %v7616_v44 = vcombine.low %v17239_v40, %v2723_v7  ;;  %v7617_v17 = vcombine.high %v17239_v40, %v2723_v7 }
 0x590   : > { %v6592_v29 = vcombine.low %v6536_v15, %v6552_v41  ;;  %v6593_v26 = vcombine.high %v6536_v15, %v6552_v41  ;;  %v6608_v53 = vcombine.low %v6543_v20, %v6559_v54  ;;  %v6609_v31 = vcombine.high %v6543_v20, %v6559_v54 }
 0x591   : > { %20283 = vst [vmem:[#allocation163_spill] sm:$0xff] %v17334_v47  ;;  %20284 = vst [vmem:[#allocation164_spill] sm:$0xff] %v17337_v3  ;;  %v7632_v4 = vcombine.low %v17241_v43, %v2755_v63  ;;  %v7633_v21 = vcombine.high %v17241_v43, %v2755_v63  ;;  %v17344_v37 = vrot.slane %v5520_v62, %v14973_v23 }
 0x592   : > { %v17347_v18 = vrot.slane %v5521_v10, %v14973_v23  ;;  %v7624_v16 = vrot.slane %v7616_v44, %v14966_v38  ;;  %v7631_v40 = vrot.slane %v7617_v17, %v14966_v38  ;;  %v17357_v20 = vpop.trf.xlu1  ;;  %v20291_v10 = vcombine.low %v15814_v25, %v15903_v48 }
 0x593   : > { %20285 = vst [vmem:[#allocation165_spill] sm:$0xff] %v17344_v37  ;;  %v7640_v15 = vrot.slane %v7632_v4, %v14966_v38  ;;  %v7647_v43 = vrot.slane %v7633_v21, %v14966_v38  ;;  %20287 = vst [vmem:[#allocation167_spill] sm:$0xff] %v17357_v20  ;;  %v17359_v62 = vpop.trf.xlu0  ;;  %v17393_v41 = vrot.slane %v6592_v29, %v14973_v23 }
 0x594   : > { %20286 = vst [vmem:[#allocation166_spill] sm:$0xff] %v17347_v18  ;;  %20288 = vst [vmem:[#allocation168_spill] sm:$0xff] %v17359_v62  ;;  %v17396_v11 = vrot.slane %v6593_v26, %v14973_v23 }
 0x595   : > { %v7680_v44 = vcombine.low %v7624_v16, %v7640_v15  ;;  %v7681_v17 = vcombine.high %v7624_v16, %v7640_v15  ;;  %v7696_v4 = vcombine.low %v7631_v40, %v7647_v43  ;;  %v7697_v21 = vcombine.high %v7631_v40, %v7647_v43  ;;  %20292 = vst [vmem:[#allocation171_spill] sm:$0xff] %v17393_v41 }
 0x596   : > { %v17377_v7 = vpop.trf.xlu1  ;;  %20293 = vst [vmem:[#allocation172_spill] sm:$0xff] %v17396_v11  ;;  %v17399_v16 = vrot.slane %v6608_v53, %v14973_v23  ;;  %v17402_v40 = vrot.slane %v6609_v31, %v14973_v23  ;;  %v20296_v15 = vcombine.high %v15814_v25, %v15903_v48  ;;  %v20303_v25 = vcombine.low %v16581_v33, %v16646_v28 }
 0x597   : > { %20289 = vst [vmem:[#allocation169_spill] sm:$0xff] %v17377_v7  ;;  %v17379_v0 = vpop.trf.xlu0  ;;  %8400 = vxpose.xlu1.b32.start [1/8] (short) (narrow) %v20291_v10, 8  ;;  %v17408_v43 = vrot.slane %v7680_v44, %v14973_v23  ;;  %v17411_v10 = vrot.slane %v7681_v17, %v14973_v23  ;;  %v17414_v29 = vrot.slane %v7696_v4, %v14973_v23 }
 0x598   : > { %20290 = vst [vmem:[#allocation170_spill] sm:$0xff] %v17379_v0  ;;  %20294 = vst [vmem:[#allocation173_spill] sm:$0xff] %v17399_v16  ;;  %8432 = vxpose.xlu0.b32.start [1/8] (short) (narrow) %v20296_v15, 8  ;;  %v17417_v26 = vrot.slane %v7697_v21, %v14973_v23  ;;  %v20304_v15 = vcombine.high %v16581_v33, %v16646_v28  ;;  %v4448_v4 = vcombine.low %v17247_v32, %v17310_v51 }
 0x599   : > { %20295 = vst [vmem:[#allocation174_spill] sm:$0xff] %v17402_v40  ;;  %20297 = vst [vmem:[#allocation175_spill] sm:$0xff] %v17408_v43  ;;  %v4449_v33 = vcombine.high %v17247_v32, %v17310_v51 }
 0x59a   : > { %20298 = vst [vmem:[#allocation176_spill] sm:$0xff] %v17411_v10  ;;  %20299 = vst [vmem:[#allocation177_spill] sm:$0xff] %v17414_v29  ;;  %v17427_v44 = vpop.trf.xlu1 }
 0x59b   : > { %20300 = vst [vmem:[#allocation178_spill] sm:$0xff] %v17417_v26  ;;  %20301 = vst [vmem:[#allocation179_spill] sm:$0xff] %v17427_v44  ;;  %v17429_v17 = vpop.trf.xlu0  ;;  %8401 = vxpose.xlu1.b32.cont [2/8] (short) (narrow) %v20303_v25, 8 }
 0x59c   : > { %20302 = vst [vmem:[#allocation180_spill] sm:$0xff] %v17429_v17  ;;  %8433 = vxpose.xlu0.b32.cont [2/8] (short) (narrow) %v20304_v15, 8 }
 0x59e   : > { %v17463_v21 = vpop.trf.xlu1 }
 0x59f   : > { %20305 = vst [vmem:[#allocation181_spill] sm:$0xff] %v17463_v21  ;;  %v17465_v54 = vpop.trf.xlu0  ;;  %8402 = vxpose.xlu1.b32.cont [3/8] (short) (narrow) %v4448_v4, 8 }
 0x5a0   : > { %20306 = vst [vmem:[#allocation182_spill] sm:$0xff] %v17465_v54  ;;  %8434 = vxpose.xlu0.b32.cont [3/8] (short) (narrow) %v4449_v33, 8 }
 0x5a2   : > { %v17469_v28 = vpop.trf.xlu1 }
 0x5a3   : > { %20307 = vst [vmem:[#allocation183_spill] sm:$0xff] %v17469_v28  ;;  %v17471_v15 = vpop.trf.xlu0  ;;  %v4864_v48 = vcombine.low %v17357_v20, %v17469_v28 }
 0x5a4   : > { %20308 = vst [vmem:[#allocation184_spill] sm:$0xff] %v17471_v15  ;;  %v4880_v53 = vcombine.low %v17359_v62, %v17471_v15 }
 0x5a5   : > { %v17478_v25 = vrot.slane %v4864_v48, %v14966_v38 }
 0x5a6   : > { %v17481_v31 = vrot.slane %v4880_v53, %v14966_v38  ;;  %v17483_v63 = vpop.trf.xlu1 }
 0x5a7   : > { %20309 = vst [vmem:[#allocation185_spill] sm:$0xff] %v17483_v63  ;;  %v17485_v32 = vpop.trf.xlu0 }
 0x5a8   : > { %20310 = vst [vmem:[#allocation186_spill] sm:$0xff] %v17485_v32  ;;  %v4929_v51 = vcombine.high %v17478_v25, %v17481_v31 }
 0x5aa   : > { %v17489_v4 = vpop.trf.xlu1 }
 0x5ab   : > { %20311 = vst [vmem:[#allocation187_spill] sm:$0xff] %v17489_v4  ;;  %v17491_v33 = vpop.trf.xlu0 }
 0x5ac   : > { %20312 = vst [vmem:[#allocation188_spill] sm:$0xff] %v17491_v33 }
 0x5ae   : > { %v17493_v26 = vpop.trf.xlu1 }
 0x5af   : > { %20313 = vst [vmem:[#allocation189_spill] sm:$0xff] %v17493_v26  ;;  %v17495_v9 = vpop.trf.xlu0 }
 0x5b0   : > { %20314 = vst [vmem:[#allocation190_spill] sm:$0xff] %v17495_v9 }
 0x5b2   : > { %v17497_v48 = vpop.trf.xlu1 }
 0x5b3   : > { %20315 = vst [vmem:[#allocation191_spill] sm:$0xff] %v17497_v48  ;;  %v17499_v29 = vpop.trf.xlu0 }
 0x5b4   : > { %20316 = vst [vmem:[#allocation192_spill] sm:$0xff] %v17499_v29 }
 0x5b6   : > { %v17501_v53 = vpop.trf.xlu1 }
 0x5b7   : > { %20317 = vst [vmem:[#allocation193_spill] sm:$0xff] %v17501_v53  ;;  %v17503_v13 = vpop.trf.xlu0 }
 0x5b8   : > { %20318 = vst [vmem:[#allocation194_spill] sm:$0xff] %v17503_v13 }
 0x5ba   : > { %v17505_v10 = vpop.trf.xlu1 }
 0x5bb   : > { %20319 = vst [vmem:[#allocation195_spill] sm:$0xff] %v17505_v10  ;;  %v17507_v61 = vpop.trf.xlu0 }
 0x5bc   : > { %20320 = vst [vmem:[#allocation196_spill] sm:$0xff] %v17507_v61 }
 0x5be   : > { %v17509_v43 = vpop.trf.xlu1 }
 0x5bf   : > { %20321 = vst [vmem:[#allocation197_spill] sm:$0xff] %v17509_v43  ;;  %v17511_v59 = vpop.trf.xlu0 }
 0x5c0   : > { %20322 = vst [vmem:[#allocation198_spill] sm:$0xff] %v17511_v59 }
 0x5c2   : > { %v17513_v54 = vpop.trf.xlu1 }
 0x5c3   : > { %20323 = vst [vmem:[#allocation199_spill] sm:$0xff] %v17513_v54  ;;  %v17515_v21 = vpop.trf.xlu0  ;;  %v4896_v9 = vcombine.low %v17497_v48, %v17513_v54 }
 0x5c4   : > { %20324 = vst [vmem:[#allocation200_spill] sm:$0xff] %v17515_v21  ;;  %v4912_v26 = vcombine.low %v17499_v29, %v17515_v21 }
 0x5c5   : > { %v17522_v40 = vrot.slane %v4896_v9, %v14966_v38  ;;  %v17541_v9 = vrot.slane %v4929_v51, %v14973_v23 }
 0x5c6   : > { %v17525_v36 = vrot.slane %v4912_v26, %v14966_v38  ;;  %v17527_v16 = vpop.trf.xlu1 }
 0x5c7   : > { %20325 = vst [vmem:[#allocation201_spill] sm:$0xff] %v17527_v16  ;;  %v17529_v43 = vpop.trf.xlu0 }
 0x5c8   : > { %20326 = vst [vmem:[#allocation202_spill] sm:$0xff] %v17529_v43  ;;  %v4961_v59 = vcombine.high %v17522_v40, %v17525_v36 }
 0x5ca   : > { %v17533_v24 = vpop.trf.xlu1  ;;  %v17538_v5 = vrot.slane %v4961_v59, %v14973_v23 }
 0x5cb   : > { %20327 = vst [vmem:[#allocation203_spill] sm:$0xff] %v17533_v24  ;;  %v17535_v11 = vpop.trf.xlu0 }
 0x5cc   : > { %20328 = vst [vmem:[#allocation204_spill] sm:$0xff] %v17535_v11 }
 0x5ce   : > { %v17543_v41 = vpop.trf.xlu1 }
 0x5cf   : > { %20329 = vst [vmem:[#allocation205_spill] sm:$0xff] %v17543_v41  ;;  %v17545_v26 = vpop.trf.xlu0 }
 0x5d0   : > { %20330 = vst [vmem:[#allocation206_spill] sm:$0xff] %v17545_v26 }
 0x5d2   : > { %v17551_v33 = vpop.trf.xlu1 }
 0x5d3   : > { %20331 = vst [vmem:[#allocation207_spill] sm:$0xff] %v17551_v33  ;;  %v17553_v44 = vpop.trf.xlu0 }
 0x5d4   : > { %20332 = vst [vmem:[#allocation208_spill] sm:$0xff] %v17553_v44 }
 0x5d6   : > { %v17555_v4 = vpop.trf.xlu1 }
 0x5d7   : > { %20333 = vst [vmem:[#allocation209_spill] sm:$0xff] %v17555_v4  ;;  %v17557_v59 = vpop.trf.xlu0 }
 0x5d8   : > { %20334 = vst [vmem:[#allocation210_spill] sm:$0xff] %v17557_v59 }
 0x5da   : > { %v17559_v51 = vpop.trf.xlu1 }
 0x5db   : > { %20335 = vst [vmem:[#allocation211_spill] sm:$0xff] %v17559_v51  ;;  %v17561_v61 = vpop.trf.xlu0 }
 0x5dc   : > { %20336 = vst [vmem:[#allocation212_spill] sm:$0xff] %v17561_v61 }
 0x5de   : > { %v17563_v41 = vpop.trf.xlu1 }
 0x5df   : > { %20337 = vst [vmem:[#allocation213_spill] sm:$0xff] %v17563_v41  ;;  %v17565_v26 = vpop.trf.xlu0 }
 0x5e0   : > { %20338 = vst [vmem:[#allocation214_spill] sm:$0xff] %v17565_v26 }
 0x5e2   : > { %v17567_v49 = vpop.trf.xlu1 }
 0x5e3   : > { %20339 = vst [vmem:[#allocation215_spill] sm:$0xff] %v17567_v49  ;;  %v17569_v11 = vpop.trf.xlu0  ;;  %v4456_v17 = vcombine.low %v17551_v33, %v17567_v49 }
 0x5e4   : > { %20340 = vst [vmem:[#allocation216_spill] sm:$0xff] %v17569_v11  ;;  %v4472_v10 = vcombine.low %v17553_v44, %v17569_v11 }
 0x5e5   : > { %v17576_v24 = vrot.slane %v4456_v17, %v14966_v38 }
 0x5e6   : > { %v17579_v51 = vrot.slane %v4472_v10, %v14966_v38  ;;  %v17581_v61 = vpop.trf.xlu1 }
 0x5e7   : > { %20341 = vst [vmem:[#allocation217_spill] sm:$0xff] %v17581_v61  ;;  %v17583_v41 = vpop.trf.xlu0 }
 0x5e8   : > { %20342 = vst [vmem:[#allocation218_spill] sm:$0xff] %v17583_v41  ;;  %v4521_v26 = vcombine.high %v17576_v24, %v17579_v51  ;;  %v4520_v14 = vcombine.low %v17576_v24, %v17579_v51 }
 0x5ea   : > { %v17587_v18 = vpop.trf.xlu1 }
 0x5eb   : > { %20343 = vst [vmem:[#allocation219_spill] sm:$0xff] %v17587_v18  ;;  %v17589_v46 = vpop.trf.xlu0 }
 0x5ec   : > { %20344 = vst [vmem:[#allocation220_spill] sm:$0xff] %v17589_v46 }
 0x5ee   : > { %v17591_v37 = vpop.trf.xlu1 }
 0x5ef   : > { %20345 = vst [vmem:[#allocation221_spill] sm:$0xff] %v17591_v37  ;;  %v17593_v22 = vpop.trf.xlu0 }
 0x5f0   : > { %20346 = vst [vmem:[#allocation222_spill] sm:$0xff] %v17593_v22 }
 0x5f2   : > { %v17595_v17 = vpop.trf.xlu1 }
 0x5f3   : > { %v17597_v3 = vpop.trf.xlu0 }
 0x5f4   : > { %20347 = vst [vmem:[#allocation223_spill] sm:$0xff] %v17597_v3 }
 0x5f6   : > { %v2913_v10 = vpop.trf.xlu1 }
 0x5f7   : > { %v2945_v55 = vpop.trf.xlu0 }
 0x5fa   : > { %v2914_v47 = vpop.trf.xlu1 }
 0x5fb   : > { %v2946_v2 = vpop.trf.xlu0 }
 0x5fe   : > { %v2915_v0 = vpop.trf.xlu1 }
 0x5ff   : > { %v2947_v32 = vpop.trf.xlu0 }
 0x602   : > { %v17599_v7 = vpop.trf.xlu1 }
 0x603   : > { %v17601_v63 = vpop.trf.xlu0  ;;  %v4488_v46 = vcombine.low %v17595_v17, %v17599_v7 }
 0x604   : > { %v4504_v22 = vcombine.low %v17597_v3, %v17601_v63 }
 0x605   : > { %v4496_v37 = vrot.slane %v4488_v46, %v14966_v38 }
 0x606   : > { %v4512_v18 = vrot.slane %v4504_v22, %v14966_v38  ;;  %v2977_v13 = vpop.trf.xlu1 }
 0x607   : > { %v3009_v43 = vpop.trf.xlu0  ;;  %v5576_v59 = vcombine.low %v2913_v10, %v2977_v13  ;;  %v5577_v41 = vcombine.high %v2913_v10, %v2977_v13 }
 0x608   : > { %v4552_v53 = vcombine.low %v4496_v37, %v4512_v18  ;;  %v4553_v16 = vcombine.high %v4496_v37, %v4512_v18  ;;  %v5592_v4 = vcombine.low %v2945_v55, %v3009_v43  ;;  %v5593_v61 = vcombine.high %v2945_v55, %v3009_v43 }
 0x609   : > { %v17613_v35 = vrot.slane %v5576_v59, %v14966_v38  ;;  %v17616_v46 = vrot.slane %v5577_v41, %v14966_v38  ;;  %v4528_v41 = vrot.slane %v4520_v14, %v14973_v23 }
 0x60a   : > { %v4560_v39 = vrot.slane %v4552_v53, %v14973_v23  ;;  %v17619_v22 = vrot.slane %v5592_v4, %v14966_v38  ;;  %v17622_v37 = vrot.slane %v5593_v61, %v14966_v38  ;;  %v2978_v13 = vpop.trf.xlu1 }
 0x60b   : > { %20348 = vst [vmem:[#allocation224_spill] sm:$0xff] %v17613_v35  ;;  %20349 = vst [vmem:[#allocation225_spill] sm:$0xff] %v17616_v46  ;;  %v3010_v18 = vpop.trf.xlu0  ;;  %v6664_v55 = vcombine.low %v2914_v47, %v2978_v13  ;;  %v6665_v43 = vcombine.high %v2914_v47, %v2978_v13  ;;  %v17645_v13 = vrot.slane %v4553_v16, %v14973_v23 }
 0x60c   : > { %20350 = vst [vmem:[#allocation226_spill] sm:$0xff] %v17619_v22  ;;  %20351 = vst [vmem:[#allocation227_spill] sm:$0xff] %v17622_v37  ;;  %v6680_v10 = vcombine.low %v2946_v2, %v3010_v18  ;;  %v6681_v24 = vcombine.high %v2946_v2, %v3010_v18  ;;  %v4585_v16 = vcombine.high %v4528_v41, %v4560_v39 }
 0x60d   : > { %v17633_v61 = vrot.slane %v6664_v55, %v14966_v38  ;;  %v17636_v51 = vrot.slane %v6665_v43, %v14966_v38  ;;  %v4584_v37 = vcombine.low %v4528_v41, %v4560_v39  ;;  %v17657_v46 = vrot.slane %v4521_v26, %v14973_v23 }
 0x60e   : > { %v17639_v2 = vrot.slane %v6680_v10, %v14966_v38  ;;  %v17642_v47 = vrot.slane %v6681_v24, %v14966_v38  ;;  %v2979_v18 = vpop.trf.xlu1  ;;  %8435 = vxpose.xlu0.b32.cont [4/8] (short) (narrow) %v4585_v16, 8  ;;  %v4960_v26 = vcombine.low %v17522_v40, %v17525_v36  ;;  %v20361_v36 = vcombine.low %v16210_v12, %v16299_v34 }
 0x60f   : > { %20352 = vst [vmem:[#allocation228_spill] sm:$0xff] %v17633_v61  ;;  %20353 = vst [vmem:[#allocation229_spill] sm:$0xff] %v17636_v51  ;;  %v3011_v59 = vpop.trf.xlu0  ;;  %v7752_v4 = vcombine.low %v2915_v0, %v2979_v18  ;;  %v7753_v53 = vcombine.high %v2915_v0, %v2979_v18  ;;  %8403 = vxpose.xlu1.b32.cont [4/8] (short) (narrow) %v4584_v37, 8  ;;  %v20363_v16 = vcombine.low %v16925_v52, %v16990_v8 }
 0x610   : > { %20354 = vst [vmem:[#allocation230_spill] sm:$0xff] %v17639_v2  ;;  %20355 = vst [vmem:[#allocation231_spill] sm:$0xff] %v17642_v47  ;;  %v7768_v55 = vcombine.low %v2947_v32, %v3011_v59  ;;  %v7769_v24 = vcombine.high %v2947_v32, %v3011_v59 }
 0x611   : > { %v17660_v14 = vrot.slane %v7752_v4, %v14966_v38  ;;  %v17667_v10 = vrot.slane %v7753_v53, %v14966_v38  ;;  %v4928_v53 = vcombine.low %v17478_v25, %v17481_v31  ;;  %v20360_v4 = vcombine.high %v16210_v12, %v16299_v34 }
 0x612   : > { %v17662_v43 = vpop.trf.xlu1  ;;  %v17676_v37 = vrot.slane %v7768_v55, %v14966_v38  ;;  %v17679_v41 = vrot.slane %v7769_v24, %v14966_v38  ;;  %v4968_v25 = vrot.slane %v4960_v26, %v14973_v23  ;;  %v20362_v24 = vcombine.high %v16925_v52, %v16990_v8 }
 0x613   : > { %20356 = vst [vmem:[#allocation232_spill] sm:$0xff] %v17660_v14  ;;  %v17664_v2 = vpop.trf.xlu0  ;;  %20357 = vst [vmem:[#allocation233_spill] sm:$0xff] %v17667_v10  ;;  %8436 = vxpose.xlu0.b32.cont [5/8] (short) (narrow) %v20360_v4, 8  ;;  %8404 = vxpose.xlu1.b32.cont [5/8] (short) (narrow) %v20361_v36, 8  ;;  %v4936_v34 = vrot.slane %v4928_v53, %v14973_v23 }
 0x614   : > { %20358 = vst [vmem:[#allocation234_spill] sm:$0xff] %v17676_v37  ;;  %20359 = vst [vmem:[#allocation235_spill] sm:$0xff] %v17679_v41 }
 0x615   : > { %v4993_v36 = vcombine.high %v4936_v34, %v4968_v25  ;;  %v4992_v59 = vcombine.low %v4936_v34, %v4968_v25 }
 0x616   : > { %v3809_v40 = vpop.trf.xlu1 }
 0x617   : > { %v3841_v18 = vpop.trf.xlu0  ;;  %8437 = vxpose.xlu0.b32.cont [6/8] (short) (narrow) %v20362_v24, 8  ;;  %8405 = vxpose.xlu1.b32.cont [6/8] (short) (narrow) %v20363_v16, 8 }
 0x61a   : > { %v3810_v12 = vpop.trf.xlu1 }
 0x61b   : > { %v3842_v4 = vpop.trf.xlu0  ;;  %8438 = vxpose.xlu0.b32.cont [7/8] (short) (narrow) %v4993_v36, 8  ;;  %8406 = vxpose.xlu1.b32.cont [7/8] (short) (narrow) %v4992_v59, 8 }
 0x61e   : > { %v3811_v55 = vpop.trf.xlu1 }
 0x61f   : > { %v3843_v31 = vpop.trf.xlu0 }
 0x622   : > { %v3872_v32 = vpop.trf.xlu1 }
 0x623   : > { %v3904_v26 = vpop.trf.xlu0  ;;  %v5001_v39 = vcombine.high %v17662_v43, %v3872_v32 }
 0x624   : > { %v5017_v24 = vcombine.high %v17664_v2, %v3904_v26 }
 0x625   : > { %v5015_v0 = vrot.slane %v5001_v39, %v14966_v38 }
 0x626   : > { %v5031_v52 = vrot.slane %v5017_v24, %v14966_v38  ;;  %v3873_v8 = vpop.trf.xlu1 }
 0x627   : > { %v3905_v16 = vpop.trf.xlu0  ;;  %v6088_v10 = vcombine.low %v3809_v40, %v3873_v8  ;;  %v6089_v25 = vcombine.high %v3809_v40, %v3873_v8 }
 0x628   : > { %v5080_v53 = vcombine.low %v5015_v0, %v5031_v52  ;;  %v5081_v41 = vcombine.high %v5015_v0, %v5031_v52  ;;  %v6104_v34 = vcombine.low %v3841_v18, %v3905_v16  ;;  %v6105_v59 = vcombine.high %v3841_v18, %v3905_v16 }
 0x629   : > { %v6096_v36 = vrot.slane %v6088_v10, %v14966_v38  ;;  %v6103_v37 = vrot.slane %v6089_v25, %v14966_v38 }
 0x62a   : > { %v6112_v14 = vrot.slane %v6104_v34, %v14966_v38  ;;  %v6119_v47 = vrot.slane %v6105_v59, %v14966_v38  ;;  %v3874_v51 = vpop.trf.xlu1 }
 0x62b   : > { %v3906_v39 = vpop.trf.xlu0  ;;  %v7176_v61 = vcombine.low %v3810_v12, %v3874_v51  ;;  %v7177_v24 = vcombine.high %v3810_v12, %v3874_v51 }
 0x62c   : > { %v7192_v22 = vcombine.low %v3842_v4, %v3906_v39  ;;  %v7193_v35 = vcombine.high %v3842_v4, %v3906_v39  ;;  %v6152_v42 = vcombine.low %v6096_v36, %v6112_v14  ;;  %v6153_v0 = vcombine.high %v6096_v36, %v6112_v14 }
 0x62d   : > { %v6168_v52 = vcombine.low %v6103_v37, %v6119_v47  ;;  %v6169_v40 = vcombine.high %v6103_v37, %v6119_v47  ;;  %v7184_v18 = vrot.slane %v7176_v61, %v14966_v38  ;;  %v7191_v10 = vrot.slane %v7177_v24, %v14966_v38 }
 0x62e   : > { %v7200_v8 = vrot.slane %v7192_v22, %v14966_v38  ;;  %v7207_v16 = vrot.slane %v7193_v35, %v14966_v38  ;;  %v3875_v25 = vpop.trf.xlu1  ;;  %v17748_v29 = vrot.slane %v6153_v0, %v14973_v23 }
 0x62f   : > { %v3907_v34 = vpop.trf.xlu0  ;;  %v8264_v12 = vcombine.low %v3811_v55, %v3875_v25  ;;  %v8265_v4 = vcombine.high %v3811_v55, %v3875_v25  ;;  %v5016_v55 = vcombine.low %v17664_v2, %v3904_v26  ;;  %v17739_v2 = vrot.slane %v5080_v53, %v14973_v23 }
 0x630   : > { %v7240_v59 = vcombine.low %v7184_v18, %v7200_v8  ;;  %v7241_v62 = vcombine.high %v7184_v18, %v7200_v8  ;;  %v7256_v15 = vcombine.low %v7191_v10, %v7207_v16  ;;  %v7257_v51 = vcombine.high %v7191_v10, %v7207_v16 }
 0x631   : > { %v8280_v39 = vcombine.low %v3843_v31, %v3907_v34  ;;  %v8281_v14 = vcombine.high %v3843_v31, %v3907_v34  ;;  %v8272_v47 = vrot.slane %v8264_v12, %v14966_v38  ;;  %v8279_v61 = vrot.slane %v8265_v4, %v14966_v38 }
 0x632   : > { %v3936_v36 = vpop.trf.xlu1  ;;  %v5000_v10 = vcombine.low %v17662_v43, %v3872_v32  ;;  %v17727_v25 = vrot.slane %v5016_v55, %v14966_v38  ;;  %v17742_v32 = vrot.slane %v5081_v41, %v14973_v23  ;;  %v17745_v55 = vrot.slane %v6152_v42, %v14973_v23 }
 0x633   : > { %v8288_v37 = vrot.slane %v8280_v39, %v14966_v38  ;;  %v8295_v22 = vrot.slane %v8281_v14, %v14966_v38  ;;  %v3968_v35 = vpop.trf.xlu0  ;;  %v17754_v53 = vrot.slane %v6169_v40, %v14973_v23  ;;  %v17768_v0 = vrot.slane %v7241_v62, %v14973_v23 }
 0x634   : > { %v17724_v16 = vrot.slane %v5000_v10, %v14966_v38  ;;  %v17774_v40 = vrot.slane %v7257_v51, %v14973_v23 }
 0x635   : > { %v8328_v24 = vcombine.low %v8272_v47, %v8288_v37  ;;  %v8329_v20 = vcombine.high %v8272_v47, %v8288_v37  ;;  %v8344_v28 = vcombine.low %v8279_v61, %v8295_v22  ;;  %v8345_v18 = vcombine.high %v8279_v61, %v8295_v22 }
 0x636   : > { %v3937_v8 = vpop.trf.xlu1  ;;  %v5064_v4 = vcombine.low %v17724_v16, %v17727_v25 }
 0x637   : > { %v3969_v31 = vpop.trf.xlu0  ;;  %v17785_v51 = vrot.slane %v8344_v28, %v14973_v23  ;;  %v17788_v58 = vrot.slane %v8345_v18, %v14973_v23 }
 0x638   : > { %v17736_v43 = vrot.slane %v5064_v4, %v14973_v23  ;;  %v17751_v4 = vrot.slane %v6168_v52, %v14973_v23  ;;  %v17771_v52 = vrot.slane %v7256_v15, %v14973_v23  ;;  %v17782_v15 = vrot.slane %v8329_v20, %v14973_v23 }
 0x63a   : > { %v3938_v34 = vpop.trf.xlu1 }
 0x63b   : > { %v3970_v12 = vpop.trf.xlu0 }
 0x63e   : > { %v17731_v39 = vpop.trf.xlu1 }
 0x63f   : > { %v17733_v14 = vpop.trf.xlu0 }
 0x642   : > { %v4000_v26 = vpop.trf.xlu1 }
 0x643   : > { %v4032_v47 = vpop.trf.xlu0  ;;  %v5032_v61 = vcombine.low %v3936_v36, %v4000_v26  ;;  %v5033_v37 = vcombine.high %v3936_v36, %v4000_v26 }
 0x644   : > { %v5048_v22 = vcombine.low %v3968_v35, %v4032_v47  ;;  %v5049_v10 = vcombine.high %v3968_v35, %v4032_v47  ;;  %v17765_v35 = vrot.slane %v7240_v59, %v14973_v23 }
 0x645   : > { %v17757_v41 = vrot.slane %v5032_v61, %v14966_v38  ;;  %v5047_v21 = vrot.slane %v5033_v37, %v14966_v38  ;;  %v17777_v61 = vrot.slane %v8328_v24, %v14973_v23 }
 0x646   : > { %v17761_v36 = vrot.slane %v5048_v22, %v14966_v38  ;;  %v5063_v42 = vrot.slane %v5049_v10, %v14966_v38  ;;  %v4001_v26 = vpop.trf.xlu1 }
 0x647   : > { %v4033_v47 = vpop.trf.xlu0  ;;  %v6120_v10 = vcombine.low %v3937_v8, %v4001_v26  ;;  %v6121_v48 = vcombine.high %v3937_v8, %v4001_v26 }
 0x648   : > { %v5096_v37 = vcombine.low %v17757_v41, %v17761_v36  ;;  %v5112_v22 = vcombine.low %v5047_v21, %v5063_v42  ;;  %v5113_v59 = vcombine.high %v5047_v21, %v5063_v42  ;;  %v6136_v62 = vcombine.low %v3969_v31, %v4033_v47 }
 0x649   : > { %v6137_v54 = vcombine.high %v3969_v31, %v4033_v47  ;;  %v6128_v27 = vrot.slane %v6120_v10, %v14966_v38  ;;  %v6135_v44 = vrot.slane %v6121_v48, %v14966_v38 }
 0x64a   : > { %v5104_v24 = vrot.slane %v5096_v37, %v14973_v23  ;;  %v6144_v21 = vrot.slane %v6136_v62, %v14966_v38  ;;  %v4002_v31 = vpop.trf.xlu1  ;;  %v17803_v3 = vrot.slane %v5113_v59, %v14973_v23 }
 0x64b   : > { %v6151_v8 = vrot.slane %v6137_v54, %v14966_v38  ;;  %v4034_v42 = vpop.trf.xlu0  ;;  %v7208_v20 = vcombine.low %v3938_v34, %v4002_v31  ;;  %v7209_v26 = vcombine.high %v3938_v34, %v4002_v31  ;;  %v17800_v54 = vrot.slane %v5112_v22, %v14973_v23 }
 0x64c   : > { %v7224_v47 = vcombine.low %v3970_v12, %v4034_v42  ;;  %v7225_v28 = vcombine.high %v3970_v12, %v4034_v42  ;;  %v6184_v11 = vcombine.low %v6128_v27, %v6144_v21  ;;  %v6185_v33 = vcombine.high %v6128_v27, %v6144_v21 }
 0x64d   : > { %v6200_v18 = vcombine.low %v6135_v44, %v6151_v8  ;;  %v6201_v49 = vcombine.high %v6135_v44, %v6151_v8  ;;  %v7216_v37 = vrot.slane %v7208_v20, %v14966_v38  ;;  %v7223_v10 = vrot.slane %v7209_v26, %v14966_v38 }
 0x64e   : > { %v7232_v48 = vrot.slane %v7224_v47, %v14966_v38  ;;  %v7239_v62 = vrot.slane %v7225_v28, %v14966_v38  ;;  %v17806_v34 = vrot.slane %v6184_v11, %v14973_v23  ;;  %v17809_v27 = vrot.slane %v6185_v33, %v14973_v23  ;;  %v4003_v44 = vpop.trf.xlu1 }
 0x64f   : > { %v4035_v42 = vpop.trf.xlu0  ;;  %v8296_v20 = vcombine.low %v17731_v39, %v4003_v44  ;;  %v8297_v22 = vcombine.high %v17731_v39, %v4003_v44  ;;  %v5129_v26 = vcombine.high %v17736_v43, %v5104_v24  ;;  %v5128_v59 = vcombine.low %v17736_v43, %v5104_v24 }
 0x650   : > { %v7272_v12 = vcombine.low %v7216_v37, %v7232_v48  ;;  %v7273_v21 = vcombine.high %v7216_v37, %v7232_v48  ;;  %v7288_v8 = vcombine.low %v7223_v10, %v7239_v62  ;;  %v7289_v31 = vcombine.high %v7223_v10, %v7239_v62 }
 0x651   : > { %v17816_v11 = vrot.slane %v6200_v18, %v14973_v23  ;;  %v17819_v33 = vrot.slane %v6201_v49, %v14973_v23  ;;  %v8304_v39 = vrot.slane %v8296_v20, %v14966_v38  ;;  %8439 = vxpose.xlu0.b32.end [8/8] (short) (narrow) %v5129_v26, 8  ;;  %8407 = vxpose.xlu1.b32.end [8/8] (short) (narrow) %v5128_v59, 8 }
 0x652   : > { %v17822_v47 = vrot.slane %v7272_v12, %v14973_v23  ;;  %v17825_v28 = vrot.slane %v7273_v21, %v14973_v23  ;;  %v17828_v37 = vrot.slane %v7288_v8, %v14973_v23  ;;  %v8312_v43 = vcombine.low %v17733_v14, %v4035_v42 }
 0x653   : > { %v17833_v24 = vrot.slane %v7289_v31, %v14973_v23  ;;  %v8311_v49 = vrot.slane %v8297_v22, %v14966_v38  ;;  %v8313_v18 = vcombine.high %v17733_v14, %v4035_v42  ;;  %v5133_v10 = vcombine.high %v17739_v2, %v17800_v54  ;;  %v20364_v22 = vld [vmem:[#allocation96_spill] sm:$0xff] }
 0x654   : > { %v8320_v48 = vrot.slane %v8312_v43, %v14966_v38  ;;  %v5132_v62 = vcombine.low %v17739_v2, %v17800_v54  ;;  %v5135_v44 = vcombine.high %v17742_v32, %v17803_v3  ;;  %v5134_v12 = vcombine.low %v17742_v32, %v17803_v3  ;;  %v20420_v54 = vld [vmem:[#allocation83_spill] sm:$0xff]  ;;  %v20444_v32 = vld [vmem:[#allocation201_spill] sm:$0xff]  ;;  %v20460_v31 = vld [vmem:[#allocation120_spill] sm:$0xff] }
 0x655   : > { %v8327_v21 = vrot.slane %v8313_v18, %v14966_v38  ;;  %v20365_v26 = vcombine.high %v15820_v6, %v20364_v22  ;;  %v20366_v59 = vcombine.low %v15820_v6, %v20364_v22  ;;  %v6218_v43 = vcombine.low %v17748_v29, %v17809_v27  ;;  %v20459_v6 = vld [vmem:[#allocation42_spill] sm:$0xff] }
 0x656   : > { %v8360_v42 = vcombine.low %v8304_v39, %v8320_v48  ;;  %v8361_v20 = vcombine.high %v8304_v39, %v8320_v48  ;;  %v6221_v14 = vcombine.high %v17751_v4, %v17816_v11  ;;  %v20372_v22 = vcombine.low %v17657_v46, %v17645_v13 }
 0x657   : > { %8496 = vxpose.xlu0.b32.start [1/8] (short) (narrow) %v20365_v26, 8  ;;  %8464 = vxpose.xlu1.b32.start [1/8] (short) (narrow) %v20366_v59, 8  ;;  %v8376_v18 = vcombine.low %v8311_v49, %v8327_v21  ;;  %v8377_v8 = vcombine.high %v8311_v49, %v8327_v21  ;;  %v20368_v59 = vcombine.low %v16587_v30, %v16649_v50  ;;  %v20400_v26 = vld [vmem:[#allocation84_spill] sm:$0xff] }
 0x658   : > { %v17866_v39 = vrot.slane %v8360_v42, %v14973_v23  ;;  %v17869_v48 = vrot.slane %v8361_v20, %v14973_v23  ;;  %v20367_v20 = vcombine.high %v16587_v30, %v16649_v50  ;;  %v20369_v50 = vcombine.high %v17253_v56, %v17313_v1 }
 0x659   : > { %v17876_v49 = vrot.slane %v8376_v18, %v14973_v23  ;;  %v17879_v21 = vrot.slane %v8377_v8, %v14973_v23  ;;  %v20371_v42 = vcombine.high %v17657_v46, %v17645_v13  ;;  %v20374_v30 = vcombine.low %v16216_v45, %v16302_v57 }
 0x65a   : > { %v20376_v46 = vcombine.low %v16931_v19, %v16993_v60 }
 0x65b   : > { %8497 = vxpose.xlu0.b32.cont [2/8] (short) (narrow) %v20367_v20, 8  ;;  %8465 = vxpose.xlu1.b32.cont [2/8] (short) (narrow) %v20368_v59, 8  ;;  %v20370_v59 = vcombine.low %v17253_v56, %v17313_v1  ;;  %v20373_v20 = vcombine.high %v16216_v45, %v16302_v57  ;;  %v5097_v56 = vcombine.high %v17757_v41, %v17761_v36  ;;  %v20380_v36 = vld [vmem:[#allocation215_spill] sm:$0xff] }
 0x65c   : > { %v5065_v1 = vcombine.high %v17724_v16, %v17727_v25  ;;  %v20377_v45 = vcombine.high %v17541_v9, %v17538_v5  ;;  %v20378_v57 = vcombine.low %v17541_v9, %v17538_v5  ;;  %v4489_v16 = vcombine.high %v17595_v17, %v17599_v7  ;;  %v20379_v25 = vld [vmem:[#allocation223_spill] sm:$0xff] }
 0x65d   : > { %v5111_v13 = vrot.slane %v5097_v56, %v14973_v23  ;;  %v4505_v41 = vcombine.high %v20379_v25, %v17601_v63  ;;  %v20384_v17 = vld [vmem:[#allocation35_spill] sm:$0xff]  ;;  %v20385_v63 = vld [vmem:[#allocation97_spill] sm:$0xff] }
 0x65f   : > { %8498 = vxpose.xlu0.b32.cont [3/8] (short) (narrow) %v20369_v50, 8  ;;  %8466 = vxpose.xlu1.b32.cont [3/8] (short) (narrow) %v20370_v59, 8  ;;  %v20382_v50 = vld [vmem:[#allocation216_spill] sm:$0xff]  ;;  %v4519_v5 = vrot.slane %v4505_v41, %v14966_v38  ;;  %v20392_v41 = vld [vmem:[#allocation199_spill] sm:$0xff] }
 0x660   : > { %v20383_v59 = vld [vmem:[#allocation208_spill] sm:$0xff] }
 0x661   : > { %v4473_v56 = vcombine.high %v20383_v59, %v20382_v50  ;;  %v20396_v59 = vld [vmem:[#allocation183_spill] sm:$0xff] }
 0x663   : > { %8499 = vxpose.xlu0.b32.cont [4/8] (short) (narrow) %v20371_v42, 8  ;;  %8467 = vxpose.xlu1.b32.cont [4/8] (short) (narrow) %v20372_v22, 8  ;;  %v20375_v42 = vcombine.high %v16931_v19, %v16993_v60  ;;  %v5079_v22 = vrot.slane %v5065_v1, %v14973_v23  ;;  %v4503_v1 = vrot.slane %v4489_v16, %v14966_v38 }
 0x664   : > { %v4487_v7 = vrot.slane %v4473_v56, %v14966_v38  ;;  %v20397_v56 = vld [vmem:[#allocation167_spill] sm:$0xff] }
 0x665   : > { %v5131_v19 = vcombine.high %v5079_v22, %v5111_v13  ;;  %v5130_v60 = vcombine.low %v5079_v22, %v5111_v13  ;;  %v4568_v13 = vcombine.low %v4503_v1, %v4519_v5 }
 0x667   : > { %8500 = vxpose.xlu0.b32.cont [5/8] (short) (narrow) %v20373_v20, 8  ;;  %8468 = vxpose.xlu1.b32.cont [5/8] (short) (narrow) %v20374_v30, 8  ;;  %v20381_v20 = vld [vmem:[#allocation207_spill] sm:$0xff]  ;;  %v4576_v50 = vrot.slane %v4568_v13, %v14973_v23 }
 0x668   : > { %v4457_v30 = vcombine.high %v20381_v20, %v20380_v36  ;;  %v20394_v36 = vld [vmem:[#allocation200_spill] sm:$0xff] }
 0x669   : > { %v20395_v20 = vld [vmem:[#allocation192_spill] sm:$0xff] }
 0x66a   : > { %v4471_v9 = vrot.slane %v4457_v30, %v14966_v38  ;;  %v4913_v30 = vcombine.high %v20395_v20, %v20394_v36 }
 0x66b   : > { %8501 = vxpose.xlu0.b32.cont [6/8] (short) (narrow) %v20375_v42, 8  ;;  %8469 = vxpose.xlu1.b32.cont [6/8] (short) (narrow) %v20376_v46, 8  ;;  %v20386_v42 = vcombine.high %v20384_v17, %v20385_v63  ;;  %v20387_v46 = vcombine.low %v20384_v17, %v20385_v63  ;;  %v4865_v17 = vcombine.high %v20397_v56, %v20396_v59  ;;  %v20398_v63 = vld [vmem:[#allocation184_spill] sm:$0xff]  ;;  %v20404_v56 = vld [vmem:[#allocation39_spill] sm:$0xff] }
 0x66c   : > { %v4536_v22 = vcombine.low %v4471_v9, %v4487_v7  ;;  %v4927_v13 = vrot.slane %v4913_v30, %v14966_v38  ;;  %v20408_v30 = vld [vmem:[#allocation76_spill] sm:$0xff] }
 0x66d   : > { %v4879_v36 = vrot.slane %v4865_v17, %v14966_v38 }
 0x66f   : > { %8502 = vxpose.xlu0.b32.cont [7/8] (short) (narrow) %v20377_v45, 8  ;;  %8470 = vxpose.xlu1.b32.cont [7/8] (short) (narrow) %v20378_v57, 8  ;;  %v20388_v45 = vld [vmem:[#allocation70_spill] sm:$0xff] }
 0x670   : > { %v20389_v57 = vld [vmem:[#allocation54_spill] sm:$0xff] }
 0x671   : > { %v20390_v25 = vcombine.high %v20388_v45, %v20389_v57  ;;  %v20391_v16 = vcombine.low %v20388_v45, %v20389_v57  ;;  %v4544_v57 = vrot.slane %v4536_v22, %v14973_v23 }
 0x673   : > { %8503 = vxpose.xlu0.b32.end [8/8] (short) (narrow) %v5131_v19, 8  ;;  %8471 = vxpose.xlu1.b32.end [8/8] (short) (narrow) %v5130_v60, 8  ;;  %v20393_v19 = vld [vmem:[#allocation191_spill] sm:$0xff] }
 0x674   : > { %v4897_v60 = vcombine.high %v20393_v19, %v20392_v41  ;;  %v4589_v41 = vcombine.high %v4544_v57, %v4576_v50  ;;  %v4588_v19 = vcombine.low %v4544_v57, %v4576_v50  ;;  %v20409_v50 = vld [vmem:[#allocation59_spill] sm:$0xff]  ;;  %v20412_v57 = vld [vmem:[#allocation37_spill] sm:$0xff] }
 0x675   : > { %v20411_v17 = vcombine.low %v20408_v30, %v20409_v50 }
 0x677   : > { %8560 = vxpose.xlu0.b32.start [1/8] (short) (narrow) %v20386_v42, 8  ;;  %8528 = vxpose.xlu1.b32.start [1/8] (short) (narrow) %v20387_v46, 8  ;;  %v20399_v42 = vld [vmem:[#allocation168_spill] sm:$0xff] }
 0x678   : > { %v4881_v46 = vcombine.high %v20399_v42, %v20398_v63  ;;  %v20405_v63 = vld [vmem:[#allocation118_spill] sm:$0xff]  ;;  %v20410_v42 = vcombine.high %v20408_v30, %v20409_v50 }
 0x679   : > { %v20407_v22 = vcombine.low %v20404_v56, %v20405_v63 }
 0x67a   : > { %v4895_v20 = vrot.slane %v4881_v46, %v14966_v38 }
 0x67b   : > { %8561 = vxpose.xlu0.b32.cont [2/8] (short) (narrow) %v20390_v25, 8  ;;  %8529 = vxpose.xlu1.b32.cont [2/8] (short) (narrow) %v20391_v16, 8  ;;  %v20401_v25 = vld [vmem:[#allocation161_spill] sm:$0xff]  ;;  %v4911_v16 = vrot.slane %v4897_v60, %v14966_v38 }
 0x67c   : > { %v20402_v8 = vcombine.high %v20400_v26, %v20401_v25  ;;  %v20403_v45 = vcombine.low %v20400_v26, %v20401_v25  ;;  %v20406_v26 = vcombine.high %v20404_v56, %v20405_v63  ;;  %v4537_v56 = vcombine.high %v4471_v9, %v4487_v7  ;;  %v20416_v63 = vld [vmem:[#allocation68_spill] sm:$0xff] }
 0x67d   : > { %v4976_v59 = vcombine.low %v4911_v16, %v4927_v13  ;;  %v4977_v7 = vcombine.high %v4911_v16, %v4927_v13  ;;  %v4945_v50 = vcombine.high %v4879_v36, %v4895_v20 }
 0x67f   : > { %8562 = vxpose.xlu0.b32.cont [3/8] (short) (narrow) %v20402_v8, 8  ;;  %8530 = vxpose.xlu1.b32.cont [3/8] (short) (narrow) %v20403_v45, 8  ;;  %v4944_v8 = vcombine.low %v4879_v36, %v4895_v20  ;;  %v4984_v60 = vrot.slane %v4976_v59, %v14973_v23  ;;  %v4959_v16 = vrot.slane %v4945_v50, %v14973_v23  ;;  %v20432_v20 = vld [vmem:[#allocation217_spill] sm:$0xff]  ;;  %v20446_v50 = vld [vmem:[#allocation202_spill] sm:$0xff] }
 0x681   : > { %v4952_v46 = vrot.slane %v4944_v8, %v14973_v23  ;;  %v4569_v8 = vcombine.high %v4503_v1, %v4519_v5  ;;  %v4551_v1 = vrot.slane %v4537_v56, %v14973_v23 }
 0x683   : > { %8563 = vxpose.xlu0.b32.cont [4/8] (short) (narrow) %v4589_v41, 8  ;;  %8531 = vxpose.xlu1.b32.cont [4/8] (short) (narrow) %v4588_v19, 8  ;;  %v4997_v25 = vcombine.high %v4952_v46, %v4984_v60  ;;  %v4996_v45 = vcombine.low %v4952_v46, %v4984_v60  ;;  %v20413_v41 = vld [vmem:[#allocation98_spill] sm:$0xff]  ;;  %v4583_v2 = vrot.slane %v4569_v8, %v14973_v23  ;;  %v20433_v8 = vld [vmem:[#allocation209_spill] sm:$0xff] }
 0x684   : > { %v20414_v19 = vcombine.high %v20412_v57, %v20413_v41  ;;  %v20415_v59 = vcombine.low %v20412_v57, %v20413_v41  ;;  %v20428_v57 = vld [vmem:[#allocation78_spill] sm:$0xff]  ;;  %v5544_v56 = vcombine.low %v20433_v8, %v20432_v20 }
 0x685   : > { %v4591_v5 = vcombine.high %v4551_v1, %v4583_v2  ;;  %v4590_v9 = vcombine.low %v4551_v1, %v4583_v2  ;;  %v20429_v41 = vld [vmem:[#allocation62_spill] sm:$0xff] }
 0x687   : > { %8564 = vxpose.xlu0.b32.cont [5/8] (short) (narrow) %v20406_v26, 8  ;;  %8532 = vxpose.xlu1.b32.cont [5/8] (short) (narrow) %v20407_v22, 8  ;;  %v20417_v26 = vld [vmem:[#allocation132_spill] sm:$0xff] }
 0x688   : > { %v20418_v22 = vcombine.high %v20416_v63, %v20417_v26 }
 0x68b   : > { %8565 = vxpose.xlu0.b32.cont [6/8] (short) (narrow) %v20410_v42, 8  ;;  %8533 = vxpose.xlu1.b32.cont [6/8] (short) (narrow) %v20411_v17, 8  ;;  %v20424_v42 = vld [vmem:[#allocation40_spill] sm:$0xff]  ;;  %v20425_v17 = vld [vmem:[#allocation119_spill] sm:$0xff] }
 0x68c   : > { %v20426_v46 = vcombine.high %v20424_v42, %v20425_v17 }
 0x68f   : > { %8566 = vxpose.xlu0.b32.cont [7/8] (short) (narrow) %v4997_v25, 8  ;;  %8534 = vxpose.xlu1.b32.cont [7/8] (short) (narrow) %v4996_v45, 8  ;;  %v20427_v25 = vcombine.low %v20424_v42, %v20425_v17  ;;  %v4991_v45 = vrot.slane %v4977_v7, %v14973_v23  ;;  %v20447_v42 = vld [vmem:[#allocation194_spill] sm:$0xff] }
 0x690   : > { %v6000_v17 = vcombine.low %v20447_v42, %v20446_v50 }
 0x691   : > { %v4999_v13 = vcombine.high %v4959_v16, %v4991_v45  ;;  %v4998_v36 = vcombine.low %v4959_v16, %v4991_v45  ;;  %v20453_v16 = vld [vmem:[#allocation186_spill] sm:$0xff] }
 0x693   : > { %8567 = vxpose.xlu0.b32.end [8/8] (short) (narrow) %v5133_v10, 8  ;;  %8535 = vxpose.xlu1.b32.end [8/8] (short) (narrow) %v5132_v62, 8  ;;  %v20419_v10 = vcombine.low %v20416_v63, %v20417_v26  ;;  %v20421_v62 = vld [vmem:[#allocation162_spill] sm:$0xff] }
 0x694   : > { %v20422_v60 = vcombine.high %v20420_v54, %v20421_v62  ;;  %v20423_v30 = vcombine.low %v20420_v54, %v20421_v62  ;;  %v20434_v63 = vld [vmem:[#allocation218_spill] sm:$0xff]  ;;  %v20437_v62 = vld [vmem:[#allocation99_spill] sm:$0xff] }
 0x695   : > { %v20435_v26 = vld [vmem:[#allocation210_spill] sm:$0xff] }
 0x696   : > { %v20436_v54 = vld [vmem:[#allocation34_spill] sm:$0xff] }
 0x697   : > { %8624 = vxpose.xlu0.b32.start [1/8] (short) (narrow) %v20414_v19, 8  ;;  %8592 = vxpose.xlu1.b32.start [1/8] (short) (narrow) %v20415_v59, 8  ;;  %v20430_v19 = vcombine.high %v20428_v57, %v20429_v41  ;;  %v20431_v59 = vcombine.low %v20428_v57, %v20429_v41  ;;  %v20451_v41 = vld [vmem:[#allocation185_spill] sm:$0xff] }
 0x69b   : > { %8625 = vxpose.xlu0.b32.cont [2/8] (short) (narrow) %v20418_v22, 8  ;;  %8593 = vxpose.xlu1.b32.cont [2/8] (short) (narrow) %v20419_v10, 8  ;;  %v5560_v22 = vcombine.low %v20435_v26, %v20434_v63  ;;  %v5552_v10 = vrot.slane %v5544_v56, %v14966_v38  ;;  %v20455_v56 = vld [vmem:[#allocation86_spill] sm:$0xff] }
 0x69d   : > { %v5568_v2 = vrot.slane %v5560_v22, %v14966_v38  ;;  %v20456_v22 = vld [vmem:[#allocation163_spill] sm:$0xff] }
 0x69f   : > { %8626 = vxpose.xlu0.b32.cont [3/8] (short) (narrow) %v20422_v60, 8  ;;  %8594 = vxpose.xlu1.b32.cont [3/8] (short) (narrow) %v20423_v30, 8  ;;  %v20438_v60 = vcombine.high %v20436_v54, %v20437_v62  ;;  %v20439_v30 = vcombine.low %v20436_v54, %v20437_v62  ;;  %v5608_v1 = vcombine.low %v5552_v10, %v5568_v2 }
 0x6a0   : > { %v20457_v54 = vcombine.high %v20455_v56, %v20456_v22  ;;  %v20458_v62 = vcombine.low %v20455_v56, %v20456_v22  ;;  %v20461_v56 = vcombine.high %v20459_v6, %v20460_v31 }
 0x6a3   : > { %8627 = vxpose.xlu0.b32.cont [4/8] (short) (narrow) %v4591_v5, 8  ;;  %8595 = vxpose.xlu1.b32.cont [4/8] (short) (narrow) %v4590_v9, 8  ;;  %v20440_v5 = vld [vmem:[#allocation72_spill] sm:$0xff]  ;;  %v20441_v9 = vld [vmem:[#allocation133_spill] sm:$0xff] }
 0x6a4   : > { %v20443_v3 = vcombine.low %v20440_v5, %v20441_v9 }
 0x6a7   : > { %8628 = vxpose.xlu0.b32.cont [5/8] (short) (narrow) %v20426_v46, 8  ;;  %8596 = vxpose.xlu1.b32.cont [5/8] (short) (narrow) %v20427_v25, 8  ;;  %v20448_v46 = vld [vmem:[#allocation224_spill] sm:$0xff]  ;;  %v20449_v25 = vld [vmem:[#allocation226_spill] sm:$0xff] }
 0x6a8   : > { %v20450_v45 = vcombine.low %v20448_v46, %v20449_v25 }
 0x6aa   : > { %v5648_v57 = vrot.slane %v20450_v45, %v14973_v23 }
 0x6ab   : > { %8629 = vxpose.xlu0.b32.cont [6/8] (short) (narrow) %v20430_v19, 8  ;;  %8597 = vxpose.xlu1.b32.cont [6/8] (short) (narrow) %v20431_v59, 8  ;;  %v20452_v19 = vld [vmem:[#allocation169_spill] sm:$0xff] }
 0x6ac   : > { %v5952_v59 = vcombine.low %v20452_v19, %v20451_v41 }
 0x6af   : > { %8630 = vxpose.xlu0.b32.cont [7/8] (short) (narrow) %v4999_v13, 8  ;;  %8598 = vxpose.xlu1.b32.cont [7/8] (short) (narrow) %v4998_v36, 8  ;;  %v20454_v13 = vld [vmem:[#allocation170_spill] sm:$0xff] }
 0x6b0   : > { %v5968_v36 = vcombine.low %v20454_v13, %v20453_v16 }
 0x6b2   : > { %v5976_v45 = vrot.slane %v5968_v36, %v14966_v38 }
 0x6b3   : > { %8631 = vxpose.xlu0.b32.end [8/8] (short) (narrow) %v5135_v44, 8  ;;  %8599 = vxpose.xlu1.b32.end [8/8] (short) (narrow) %v5134_v12, 8  ;;  %v20442_v44 = vcombine.high %v20440_v5, %v20441_v9  ;;  %v20445_v12 = vld [vmem:[#allocation193_spill] sm:$0xff]  ;;  %v6008_v5 = vrot.slane %v6000_v17, %v14966_v38  ;;  %v20463_v17 = vld [vmem:[#allocation75_spill] sm:$0xff] }
 0x6b4   : > { %v5984_v7 = vcombine.low %v20445_v12, %v20444_v32 }
 0x6b7   : > { %8688 = vxpose.xlu0.b32.start [1/8] (short) (narrow) %v20438_v60, 8  ;;  %8656 = vxpose.xlu1.b32.start [1/8] (short) (narrow) %v20439_v30, 8  ;;  %v5616_v60 = vrot.slane %v5608_v1, %v14973_v23  ;;  %v5992_v30 = vrot.slane %v5984_v7, %v14966_v38  ;;  %v20462_v1 = vcombine.low %v20459_v6, %v20460_v31 }
 0x6b8   : > { %v20467_v31 = vcombine.high %v17745_v55, %v17806_v34  ;;  %v20468_v6 = vcombine.low %v17745_v55, %v17806_v34  ;;  %v20477_v55 = vcombine.high %v20448_v46, %v20449_v25 }
 0x6b9   : > { %v5673_v9 = vcombine.high %v5616_v60, %v5648_v57  ;;  %v6048_v18 = vcombine.low %v5992_v30, %v6008_v5 }
 0x6ba   : > { %v5655_v34 = vrot.slane %v20477_v55, %v14973_v23 }
 0x6bb   : > { %8689 = vxpose.xlu0.b32.cont [2/8] (short) (narrow) %v20442_v44, 8  ;;  %8657 = vxpose.xlu1.b32.cont [2/8] (short) (narrow) %v20443_v3, 8  ;;  %v5672_v44 = vcombine.low %v5616_v60, %v5648_v57  ;;  %v5960_v3 = vrot.slane %v5952_v59, %v14966_v38  ;;  %v6056_v7 = vrot.slane %v6048_v18, %v14973_v23  ;;  %v20464_v57 = vld [vmem:[#allocation145_spill] sm:$0xff]  ;;  %v20469_v18 = vld [vmem:[#allocation36_spill] sm:$0xff] }
 0x6bc   : > { %v20465_v22 = vcombine.high %v20463_v17, %v20464_v57  ;;  %v20466_v59 = vcombine.low %v20463_v17, %v20464_v57 }
 0x6bf   : > { %8690 = vxpose.xlu0.b32.cont [3/8] (short) (narrow) %v20457_v54, 8  ;;  %8658 = vxpose.xlu1.b32.cont [3/8] (short) (narrow) %v20458_v62, 8  ;;  %v6016_v54 = vcombine.low %v5960_v3, %v5976_v45 }
 0x6c1   : > { %v6024_v36 = vrot.slane %v6016_v54, %v14973_v23  ;;  %v5609_v54 = vcombine.high %v5552_v10, %v5568_v2 }
 0x6c3   : > { %8691 = vxpose.xlu0.b32.cont [4/8] (short) (narrow) %v5673_v9, 8  ;;  %8659 = vxpose.xlu1.b32.cont [4/8] (short) (narrow) %v5672_v44, 8  ;;  %v6081_v62 = vcombine.high %v6024_v36, %v6056_v7  ;;  %v6080_v60 = vcombine.low %v6024_v36, %v6056_v7  ;;  %v20470_v9 = vld [vmem:[#allocation100_spill] sm:$0xff]  ;;  %v20474_v7 = vld [vmem:[#allocation134_spill] sm:$0xff]  ;;  %v5623_v2 = vrot.slane %v5609_v54, %v14973_v23 }
 0x6c4   : > { %v20471_v44 = vcombine.high %v20469_v18, %v20470_v9 }
 0x6c7   : > { %8692 = vxpose.xlu0.b32.cont [5/8] (short) (narrow) %v20461_v56, 8  ;;  %8660 = vxpose.xlu1.b32.cont [5/8] (short) (narrow) %v20462_v1, 8  ;;  %v20472_v56 = vcombine.low %v20469_v18, %v20470_v9  ;;  %v20473_v1 = vld [vmem:[#allocation69_spill] sm:$0xff] }
 0x6c8   : > { %v20475_v17 = vcombine.high %v20473_v1, %v20474_v7  ;;  %v20476_v57 = vcombine.low %v20473_v1, %v20474_v7  ;;  %v20482_v18 = vld [vmem:[#allocation41_spill] sm:$0xff]  ;;  %v20487_v1 = vld [vmem:[#allocation146_spill] sm:$0xff] }
 0x6c9   : > { %v20483_v9 = vld [vmem:[#allocation121_spill] sm:$0xff] }
 0x6ca   : > { %v20484_v46 = vcombine.high %v20482_v18, %v20483_v9  ;;  %v20485_v25 = vcombine.low %v20482_v18, %v20483_v9  ;;  %v5969_v18 = vcombine.high %v20454_v13, %v20453_v16  ;;  %v20502_v9 = vld [vmem:[#allocation85_spill] sm:$0xff] }
 0x6cb   : > { %8693 = vxpose.xlu0.b32.cont [6/8] (short) (narrow) %v20465_v22, 8  ;;  %8661 = vxpose.xlu1.b32.cont [6/8] (short) (narrow) %v20466_v59, 8  ;;  %v20478_v22 = vld [vmem:[#allocation61_spill] sm:$0xff]  ;;  %v20479_v59 = vld [vmem:[#allocation164_spill] sm:$0xff] }
 0x6cc   : > { %v20480_v36 = vcombine.high %v20478_v22, %v20479_v59  ;;  %v20481_v10 = vcombine.low %v20478_v22, %v20479_v59  ;;  %v20491_v22 = vld [vmem:[#allocation38_spill] sm:$0xff]  ;;  %v20492_v59 = vld [vmem:[#allocation101_spill] sm:$0xff] }
 0x6cf   : > { %8694 = vxpose.xlu0.b32.cont [7/8] (short) (narrow) %v6081_v62, 8  ;;  %8662 = vxpose.xlu1.b32.cont [7/8] (short) (narrow) %v6080_v60, 8  ;;  %v5675_v62 = vcombine.high %v5623_v2, %v5655_v34  ;;  %v5674_v60 = vcombine.low %v5623_v2, %v5655_v34  ;;  %v20499_v2 = vld [vmem:[#allocation225_spill] sm:$0xff] }
 0x6d3   : > { %8695 = vxpose.xlu0.b32.end [8/8] (short) (narrow) %v20467_v31, 8  ;;  %8663 = vxpose.xlu1.b32.end [8/8] (short) (narrow) %v20468_v6, 8  ;;  %v6049_v31 = vcombine.high %v5992_v30, %v6008_v5  ;;  %v6017_v6 = vcombine.high %v5960_v3, %v5976_v45  ;;  %v5545_v45 = vcombine.high %v20433_v8, %v20432_v20 }
 0x6d4   : > { %v20494_v20 = vcombine.low %v20491_v22, %v20492_v59 }
 0x6d5   : > { %v6031_v30 = vrot.slane %v6017_v6, %v14973_v23  ;;  %v5559_v55 = vrot.slane %v5545_v45, %v14966_v38  ;;  %v5953_v6 = vcombine.high %v20452_v19, %v20451_v41  ;;  %v5983_v19 = vrot.slane %v5969_v18, %v14966_v38  ;;  %v20511_v45 = vld [vmem:[#allocation147_spill] sm:$0xff] }
 0x6d7   : > { %8752 = vxpose.xlu0.b32.start [1/8] (short) (narrow) %v20471_v44, 8  ;;  %8720 = vxpose.xlu1.b32.start [1/8] (short) (narrow) %v20472_v56, 8  ;;  %v6063_v44 = vrot.slane %v6049_v31, %v14973_v23  ;;  %v20486_v56 = vld [vmem:[#allocation80_spill] sm:$0xff]  ;;  %v5967_v41 = vrot.slane %v5953_v6, %v14966_v38  ;;  %v20525_v6 = vld [vmem:[#allocation166_spill] sm:$0xff] }
 0x6d8   : > { %v20488_v7 = vcombine.high %v20486_v56, %v20487_v1  ;;  %v20489_v54 = vcombine.low %v20486_v56, %v20487_v1  ;;  %v20506_v1 = vld [vmem:[#allocation43_spill] sm:$0xff] }
 0x6d9   : > { %v6083_v5 = vcombine.high %v6031_v30, %v6063_v44  ;;  %v6082_v3 = vcombine.low %v6031_v30, %v6063_v44  ;;  %v6032_v13 = vcombine.low %v5967_v41, %v5983_v19 }
 0x6db   : > { %8753 = vxpose.xlu0.b32.cont [2/8] (short) (narrow) %v20475_v17, 8  ;;  %8721 = vxpose.xlu1.b32.cont [2/8] (short) (narrow) %v20476_v57, 8  ;;  %v5561_v17 = vcombine.high %v20435_v26, %v20434_v63  ;;  %v20490_v57 = vcombine.high %v17748_v29, %v17809_v27  ;;  %v20495_v63 = vld [vmem:[#allocation46_spill] sm:$0xff]  ;;  %v20496_v26 = vld [vmem:[#allocation135_spill] sm:$0xff]  ;;  %v5985_v27 = vcombine.high %v20445_v12, %v20444_v32 }
 0x6dc   : > { %v20498_v29 = vcombine.low %v20495_v63, %v20496_v26 }
 0x6dd   : > { %v5575_v34 = vrot.slane %v5561_v17, %v14966_v38 }
 0x6df   : > { %8754 = vxpose.xlu0.b32.cont [3/8] (short) (narrow) %v20480_v36, 8  ;;  %8722 = vxpose.xlu1.b32.cont [3/8] (short) (narrow) %v20481_v10, 8  ;;  %v20493_v36 = vcombine.high %v20491_v22, %v20492_v59  ;;  %v5624_v8 = vcombine.low %v5559_v55, %v5575_v34  ;;  %v20497_v10 = vcombine.high %v20495_v63, %v20496_v26  ;;  %v20516_v63 = vld [vmem:[#allocation102_spill] sm:$0xff] }
 0x6e0   : > { %v6040_v22 = vrot.slane %v6032_v13, %v14973_v23  ;;  %v20533_v13 = vld [vmem:[#allocation148_spill] sm:$0xff] }
 0x6e1   : > { %v5632_v12 = vrot.slane %v5624_v8, %v14973_v23  ;;  %v20515_v8 = vld [vmem:[#allocation87_spill] sm:$0xff] }
 0x6e2   : > { %v20517_v26 = vcombine.high %v20515_v8, %v20516_v63 }
 0x6e3   : > { %8755 = vxpose.xlu0.b32.cont [4/8] (short) (narrow) %v5675_v62, 8  ;;  %8723 = vxpose.xlu1.b32.cont [4/8] (short) (narrow) %v5674_v60, 8  ;;  %v20500_v62 = vld [vmem:[#allocation227_spill] sm:$0xff] }
 0x6e4   : > { %v20501_v60 = vcombine.low %v20499_v2, %v20500_v62 }
 0x6e6   : > { %v5664_v31 = vrot.slane %v20501_v60, %v14973_v23 }
 0x6e7   : > { %8756 = vxpose.xlu0.b32.cont [5/8] (short) (narrow) %v20484_v46, 8  ;;  %8724 = vxpose.xlu1.b32.cont [5/8] (short) (narrow) %v20485_v25, 8  ;;  %v20503_v46 = vld [vmem:[#allocation165_spill] sm:$0xff] }
 0x6e8   : > { %v20504_v25 = vcombine.high %v20502_v9, %v20503_v46  ;;  %v20505_v32 = vcombine.low %v20502_v9, %v20503_v46  ;;  %v5677_v44 = vcombine.high %v5632_v12, %v5664_v31  ;;  %v5676_v56 = vcombine.low %v5632_v12, %v5664_v31  ;;  %v20524_v31 = vld [vmem:[#allocation64_spill] sm:$0xff] }
 0x6e9   : > { %v20526_v18 = vcombine.high %v20524_v31, %v20525_v6  ;;  %v20528_v12 = vld [vmem:[#allocation44_spill] sm:$0xff] }
 0x6eb   : > { %8757 = vxpose.xlu0.b32.cont [6/8] (short) (narrow) %v20488_v7, 8  ;;  %8725 = vxpose.xlu1.b32.cont [6/8] (short) (narrow) %v20489_v54, 8  ;;  %v20507_v7 = vld [vmem:[#allocation122_spill] sm:$0xff] }
 0x6ec   : > { %v20508_v54 = vcombine.high %v20506_v1, %v20507_v7  ;;  %v20509_v30 = vcombine.low %v20506_v1, %v20507_v7 }
 0x6ef   : > { %8758 = vxpose.xlu0.b32.cont [7/8] (short) (narrow) %v6083_v5, 8  ;;  %8726 = vxpose.xlu1.b32.cont [7/8] (short) (narrow) %v6082_v3, 8  ;;  %v20510_v3 = vld [vmem:[#allocation77_spill] sm:$0xff] }
 0x6f0   : > { %v20512_v17 = vcombine.high %v20510_v3, %v20511_v45 }
 0x6f3   : > { %8759 = vxpose.xlu0.b32.end [8/8] (short) (narrow) %v20490_v57, 8  ;;  %8727 = vxpose.xlu1.b32.end [8/8] (short) (narrow) %v6218_v43, 8  ;;  %v6001_v43 = vcombine.high %v20447_v42, %v20446_v50  ;;  %v5999_v50 = vrot.slane %v5985_v27, %v14966_v38  ;;  %v20513_v57 = vcombine.low %v20510_v3, %v20511_v45  ;;  %v20519_v27 = vld [vmem:[#allocation71_spill] sm:$0xff]  ;;  %v20539_v3 = vld [vmem:[#allocation212_spill] sm:$0xff] }
 0x6f5   : > { %v6015_v42 = vrot.slane %v6001_v43, %v14966_v38  ;;  %v20520_v43 = vld [vmem:[#allocation136_spill] sm:$0xff] }
 0x6f6   : > { %v20521_v60 = vcombine.high %v20519_v27, %v20520_v43 }
 0x6f7   : > { %8816 = vxpose.xlu0.b32.start [1/8] (short) (narrow) %v20493_v36, 8  ;;  %8784 = vxpose.xlu1.b32.start [1/8] (short) (narrow) %v20494_v20, 8  ;;  %v6064_v16 = vcombine.low %v5999_v50, %v6015_v42  ;;  %v20514_v20 = vcombine.low %v17751_v4, %v17816_v11  ;;  %v20523_v4 = vcombine.high %v20499_v2, %v20500_v62 }
 0x6f9   : > { %v6072_v5 = vrot.slane %v6064_v16, %v14973_v23  ;;  %v5671_v11 = vrot.slane %v20523_v4, %v14973_v23  ;;  %v20532_v16 = vld [vmem:[#allocation53_spill] sm:$0xff]  ;;  %v20553_v4 = vld [vmem:[#allocation196_spill] sm:$0xff] }
 0x6fa   : > { %v20534_v1 = vcombine.high %v20532_v16, %v20533_v13  ;;  %v20535_v7 = vcombine.low %v20532_v16, %v20533_v13 }
 0x6fb   : > { %8817 = vxpose.xlu0.b32.cont [2/8] (short) (narrow) %v20497_v10, 8  ;;  %8785 = vxpose.xlu1.b32.cont [2/8] (short) (narrow) %v20498_v29, 8  ;;  %v6085_v59 = vcombine.high %v6040_v22, %v6072_v5  ;;  %v6084_v36 = vcombine.low %v6040_v22, %v6072_v5  ;;  %v20518_v10 = vcombine.low %v20515_v8, %v20516_v63  ;;  %v20538_v5 = vld [vmem:[#allocation220_spill] sm:$0xff] }
 0x6fc   : > { %v5625_v29 = vcombine.high %v5559_v55, %v5575_v34  ;;  %v20527_v55 = vcombine.low %v20524_v31, %v20525_v6  ;;  %v6648_v45 = vcombine.low %v20539_v3, %v20538_v5  ;;  %v20554_v31 = vld [vmem:[#allocation228_spill] sm:$0xff]  ;;  %v20555_v6 = vld [vmem:[#allocation230_spill] sm:$0xff] }
 0x6fe   : > { %v5639_v34 = vrot.slane %v5625_v29, %v14973_v23  ;;  %v20547_v29 = vld [vmem:[#allocation141_spill] sm:$0xff] }
 0x6ff   : > { %8818 = vxpose.xlu0.b32.cont [3/8] (short) (narrow) %v20504_v25, 8  ;;  %8786 = vxpose.xlu1.b32.cont [3/8] (short) (narrow) %v20505_v32, 8  ;;  %v6065_v25 = vcombine.high %v5999_v50, %v6015_v42  ;;  %v6033_v32 = vcombine.high %v5967_v41, %v5983_v19  ;;  %v20536_v19 = vld [vmem:[#allocation219_spill] sm:$0xff] }
 0x700   : > { %v5679_v9 = vcombine.high %v5639_v34, %v5671_v11  ;;  %v5678_v46 = vcombine.low %v5639_v34, %v5671_v11  ;;  %v20557_v34 = vld [vmem:[#allocation187_spill] sm:$0xff] }
 0x701   : > { %v6047_v50 = vrot.slane %v6033_v32, %v14973_v23  ;;  %v20560_v32 = vld [vmem:[#allocation180_spill] sm:$0xff] }
 0x703   : > { %8819 = vxpose.xlu0.b32.cont [4/8] (short) (narrow) %v5677_v44, 8  ;;  %8787 = vxpose.xlu1.b32.cont [4/8] (short) (narrow) %v5676_v56, 8  ;;  %v20529_v44 = vld [vmem:[#allocation123_spill] sm:$0xff]  ;;  %v6079_v56 = vrot.slane %v6065_v25, %v14973_v23  ;;  %v20559_v25 = vld [vmem:[#allocation188_spill] sm:$0xff] }
 0x704   : > { %v20530_v2 = vcombine.high %v20528_v12, %v20529_v44  ;;  %v20531_v62 = vcombine.low %v20528_v12, %v20529_v44  ;;  %v7056_v12 = vcombine.low %v20560_v32, %v20559_v25  ;;  %v20561_v44 = vld [vmem:[#allocation63_spill] sm:$0xff] }
 0x705   : > { %v6087_v42 = vcombine.high %v6047_v50, %v6079_v56  ;;  %v6086_v41 = vcombine.low %v6047_v50, %v6079_v56 }
 0x707   : > { %8820 = vxpose.xlu0.b32.cont [5/8] (short) (narrow) %v20508_v54, 8  ;;  %8788 = vxpose.xlu1.b32.cont [5/8] (short) (narrow) %v20509_v30, 8  ;;  %v20537_v54 = vld [vmem:[#allocation211_spill] sm:$0xff] }
 0x708   : > { %v6632_v30 = vcombine.low %v20537_v54, %v20536_v19 }
 0x70a   : > { %v6640_v22 = vrot.slane %v6632_v30, %v14966_v38 }
 0x70b   : > { %8821 = vxpose.xlu0.b32.cont [6/8] (short) (narrow) %v20512_v17, 8  ;;  %8789 = vxpose.xlu1.b32.cont [6/8] (short) (narrow) %v20513_v57, 8  ;;  %v20540_v17 = vcombine.high %v17754_v53, %v17819_v33  ;;  %v20541_v57 = vcombine.low %v17754_v53, %v17819_v33  ;;  %v20550_v33 = vld [vmem:[#allocation203_spill] sm:$0xff] }
 0x70f   : > { %8822 = vxpose.xlu0.b32.cont [7/8] (short) (narrow) %v6085_v59, 8  ;;  %8790 = vxpose.xlu1.b32.cont [7/8] (short) (narrow) %v6084_v36, 8  ;;  %v6656_v59 = vrot.slane %v6648_v45, %v14966_v38  ;;  %v20542_v36 = vld [vmem:[#allocation88_spill] sm:$0xff] }
 0x713   : > { %8823 = vxpose.xlu0.b32.end [8/8] (short) (narrow) %v6221_v14, 8  ;;  %8791 = vxpose.xlu1.b32.end [8/8] (short) (narrow) %v20514_v20, 8  ;;  %v20522_v14 = vcombine.low %v20519_v27, %v20520_v43  ;;  %v20543_v20 = vld [vmem:[#allocation107_spill] sm:$0xff] }
 0x714   : > { %v20544_v8 = vcombine.high %v20542_v36, %v20543_v20  ;;  %v20545_v63 = vcombine.low %v20542_v36, %v20543_v20  ;;  %v20551_v43 = vld [vmem:[#allocation195_spill] sm:$0xff] }
 0x717   : > { %8880 = vxpose.xlu0.b32.start [1/8] (short) (narrow) %v20517_v26, 8  ;;  %8848 = vxpose.xlu1.b32.start [1/8] (short) (narrow) %v20518_v10, 8  ;;  %v6696_v26 = vcombine.low %v6640_v22, %v6656_v59  ;;  %v20546_v10 = vld [vmem:[#allocation47_spill] sm:$0xff] }
 0x718   : > { %v20548_v27 = vcombine.high %v20546_v10, %v20547_v29  ;;  %v20549_v53 = vcombine.low %v20546_v10, %v20547_v29 }
 0x719   : > { %v6704_v16 = vrot.slane %v6696_v26, %v14973_v23  ;;  %v20570_v26 = vld [vmem:[#allocation153_spill] sm:$0xff] }
 0x71b   : > { %8881 = vxpose.xlu0.b32.cont [2/8] (short) (narrow) %v20521_v60, 8  ;;  %8849 = vxpose.xlu1.b32.cont [2/8] (short) (narrow) %v20522_v14, 8  ;;  %v7072_v60 = vcombine.low %v20551_v43, %v20550_v33  ;;  %v20552_v14 = vld [vmem:[#allocation204_spill] sm:$0xff] }
 0x71c   : > { %v7088_v11 = vcombine.low %v20553_v4, %v20552_v14 }
 0x71d   : > { %v7080_v13 = vrot.slane %v7072_v60, %v14966_v38 }
 0x71f   : > { %8882 = vxpose.xlu0.b32.cont [3/8] (short) (narrow) %v20526_v18, 8  ;;  %8850 = vxpose.xlu1.b32.cont [3/8] (short) (narrow) %v20527_v55, 8  ;;  %v20556_v18 = vcombine.low %v20554_v31, %v20555_v6 }
 0x721   : > { %v6736_v55 = vrot.slane %v20556_v18, %v14973_v23  ;;  %v20574_v18 = vcombine.low %v17765_v35, %v17822_v47 }
 0x723   : > { %8883 = vxpose.xlu0.b32.cont [4/8] (short) (narrow) %v5679_v9, 8  ;;  %8851 = vxpose.xlu1.b32.cont [4/8] (short) (narrow) %v5678_v46, 8  ;;  %v20558_v9 = vld [vmem:[#allocation179_spill] sm:$0xff]  ;;  %v6760_v50 = vcombine.low %v6704_v16, %v6736_v55 }
 0x724   : > { %v7040_v46 = vcombine.low %v20558_v9, %v20557_v34 }
 0x727   : > { %8884 = vxpose.xlu0.b32.cont [5/8] (short) (narrow) %v20530_v2, 8  ;;  %8852 = vxpose.xlu1.b32.cont [5/8] (short) (narrow) %v20531_v62, 8  ;;  %v20562_v2 = vld [vmem:[#allocation171_spill] sm:$0xff] }
 0x728   : > { %v20563_v62 = vcombine.high %v20561_v44, %v20562_v2  ;;  %v20564_v56 = vcombine.low %v20561_v44, %v20562_v2  ;;  %v6697_v2 = vcombine.high %v6640_v22, %v6656_v59 }
 0x72a   : > { %v6711_v59 = vrot.slane %v6697_v2, %v14973_v23 }
 0x72b   : > { %8885 = vxpose.xlu0.b32.cont [6/8] (short) (narrow) %v20534_v1, 8  ;;  %8853 = vxpose.xlu1.b32.cont [6/8] (short) (narrow) %v20535_v7, 8  ;;  %v7096_v1 = vrot.slane %v7088_v11, %v14966_v38  ;;  %v6761_v7 = vcombine.high %v6704_v16, %v6736_v55  ;;  %v20573_v11 = vcombine.high %v17765_v35, %v17822_v47  ;;  %v20575_v55 = vld [vmem:[#allocation89_spill] sm:$0xff] }
 0x72c   : > { %v20583_v35 = vcombine.high %v20554_v31, %v20555_v6 }
 0x72d   : > { %v7136_v30 = vcombine.low %v7080_v13, %v7096_v1 }
 0x72e   : > { %v6743_v47 = vrot.slane %v20583_v35, %v14973_v23 }
 0x72f   : > { %8886 = vxpose.xlu0.b32.cont [7/8] (short) (narrow) %v6087_v42, 8  ;;  %8854 = vxpose.xlu1.b32.cont [7/8] (short) (narrow) %v6086_v41, 8  ;;  %v7048_v42 = vrot.slane %v7040_v46, %v14966_v38  ;;  %v7064_v41 = vrot.slane %v7056_v12, %v14966_v38  ;;  %v20576_v46 = vld [vmem:[#allocation108_spill] sm:$0xff] }
 0x730   : > { %v20577_v12 = vcombine.high %v20575_v55, %v20576_v46  ;;  %v20578_v44 = vcombine.low %v20575_v55, %v20576_v46 }
 0x731   : > { %v7104_v45 = vcombine.low %v7048_v42, %v7064_v41 }
 0x733   : > { %8887 = vxpose.xlu0.b32.end [8/8] (short) (narrow) %v20540_v17, 8  ;;  %8855 = vxpose.xlu1.b32.end [8/8] (short) (narrow) %v20541_v57, 8  ;;  %v20565_v17 = vld [vmem:[#allocation45_spill] sm:$0xff]  ;;  %v20566_v57 = vld [vmem:[#allocation128_spill] sm:$0xff] }
 0x734   : > { %v20567_v36 = vcombine.high %v20565_v17, %v20566_v57  ;;  %v20568_v20 = vcombine.low %v20565_v17, %v20566_v57  ;;  %v6763_v17 = vcombine.high %v6711_v59, %v6743_v47  ;;  %v6762_v57 = vcombine.low %v6711_v59, %v6743_v47 }
 0x737   : > { %8944 = vxpose.xlu0.b32.start [1/8] (short) (narrow) %v20544_v8, 8  ;;  %8912 = vxpose.xlu1.b32.start [1/8] (short) (narrow) %v20545_v63, 8  ;;  %v7144_v8 = vrot.slane %v7136_v30, %v14973_v23  ;;  %v20569_v63 = vld [vmem:[#allocation79_spill] sm:$0xff]  ;;  %v20585_v30 = vld [vmem:[#allocation172_spill] sm:$0xff] }
 0x738   : > { %v20571_v10 = vcombine.high %v20569_v63, %v20570_v26  ;;  %v20572_v29 = vcombine.low %v20569_v63, %v20570_v26  ;;  %v20589_v63 = vld [vmem:[#allocation129_spill] sm:$0xff] }
 0x73b   : > { %8945 = vxpose.xlu0.b32.cont [2/8] (short) (narrow) %v20548_v27, 8  ;;  %8913 = vxpose.xlu1.b32.cont [2/8] (short) (narrow) %v20549_v53, 8  ;;  %v7112_v27 = vrot.slane %v7104_v45, %v14973_v23 }
 0x73d   : > { %v7169_v53 = vcombine.high %v7112_v27, %v7144_v8  ;;  %v7168_v60 = vcombine.low %v7112_v27, %v7144_v8  ;;  %v20588_v8 = vld [vmem:[#allocation111_spill] sm:$0xff] }
 0x73e   : > { %v20590_v31 = vcombine.high %v20588_v8, %v20589_v63  ;;  %v20591_v6 = vcombine.low %v20588_v8, %v20589_v63 }
 0x73f   : > { %8946 = vxpose.xlu0.b32.cont [3/8] (short) (narrow) %v20563_v62, 8  ;;  %8914 = vxpose.xlu1.b32.cont [3/8] (short) (narrow) %v20564_v56, 8  ;;  %v20579_v62 = vld [vmem:[#allocation48_spill] sm:$0xff]  ;;  %v20580_v56 = vld [vmem:[#allocation142_spill] sm:$0xff] }
 0x740   : > { %v20581_v16 = vcombine.high %v20579_v62, %v20580_v56 }
 0x743   : > { %8947 = vxpose.xlu0.b32.cont [4/8] (short) (narrow) %v6761_v7, 8  ;;  %8915 = vxpose.xlu1.b32.cont [4/8] (short) (narrow) %v6760_v50, 8  ;;  %v20582_v7 = vcombine.low %v20579_v62, %v20580_v56  ;;  %v20584_v50 = vld [vmem:[#allocation66_spill] sm:$0xff]  ;;  %v7089_v56 = vcombine.high %v20553_v4, %v20552_v14 }
 0x744   : > { %v20586_v45 = vcombine.high %v20584_v50, %v20585_v30  ;;  %v20587_v22 = vcombine.low %v20584_v50, %v20585_v30  ;;  %v7041_v50 = vcombine.high %v20558_v9, %v20557_v34  ;;  %v7057_v30 = vcombine.high %v20560_v32, %v20559_v25 }
 0x745   : > { %v7103_v4 = vrot.slane %v7089_v56, %v14966_v38 }
 0x746   : > { %v7055_v34 = vrot.slane %v7041_v50, %v14966_v38  ;;  %v7071_v9 = vrot.slane %v7057_v30, %v14966_v38  ;;  %v20637_v50 = vld [vmem:[#allocation131_spill] sm:$0xff] }
 0x747   : > { %8948 = vxpose.xlu0.b32.cont [5/8] (short) (narrow) %v20567_v36, 8  ;;  %8916 = vxpose.xlu1.b32.cont [5/8] (short) (narrow) %v20568_v20, 8  ;;  %v7137_v36 = vcombine.high %v7080_v13, %v7096_v1  ;;  %v7105_v20 = vcombine.high %v7048_v42, %v7064_v41  ;;  %v6633_v41 = vcombine.high %v20537_v54, %v20536_v19 }
 0x748   : > { %v7120_v32 = vcombine.low %v7055_v34, %v7071_v9 }
 0x749   : > { %v7151_v26 = vrot.slane %v7137_v36, %v14973_v23  ;;  %v7119_v13 = vrot.slane %v7105_v20, %v14973_v23  ;;  %v6647_v55 = vrot.slane %v6633_v41, %v14966_v38  ;;  %v20613_v36 = vld [vmem:[#allocation112_spill] sm:$0xff]  ;;  %v20614_v20 = vld [vmem:[#allocation130_spill] sm:$0xff]  ;;  %v20623_v41 = vld [vmem:[#allocation91_spill] sm:$0xff] }
 0x74a   : > { %v20615_v8 = vcombine.high %v20613_v36, %v20614_v20  ;;  %v20616_v63 = vcombine.low %v20613_v36, %v20614_v20  ;;  %v20648_v36 = vcombine.high %v17774_v40, %v17833_v24  ;;  %v20649_v20 = vcombine.low %v17774_v40, %v17833_v24  ;;  %v20658_v24 = vld [vmem:[#allocation205_spill] sm:$0xff] }
 0x74b   : > { %8949 = vxpose.xlu0.b32.cont [6/8] (short) (narrow) %v20571_v10, 8  ;;  %8917 = vxpose.xlu1.b32.cont [6/8] (short) (narrow) %v20572_v29, 8  ;;  %v20592_v10 = vld [vmem:[#allocation56_spill] sm:$0xff]  ;;  %v20593_v29 = vld [vmem:[#allocation154_spill] sm:$0xff]  ;;  %v7171_v1 = vcombine.high %v7119_v13, %v7151_v26  ;;  %v7170_v42 = vcombine.low %v7119_v13, %v7151_v26  ;;  %v20618_v26 = vld [vmem:[#allocation155_spill] sm:$0xff] }
 0x74c   : > { %v20594_v27 = vcombine.high %v20592_v10, %v20593_v29 }
 0x74f   : > { %8950 = vxpose.xlu0.b32.cont [7/8] (short) (narrow) %v7169_v53, 8  ;;  %8918 = vxpose.xlu1.b32.cont [7/8] (short) (narrow) %v7168_v60, 8  ;;  %v20595_v53 = vcombine.low %v20592_v10, %v20593_v29  ;;  %v6649_v60 = vcombine.high %v20539_v3, %v20538_v5  ;;  %v20602_v5 = vld [vmem:[#allocation49_spill] sm:$0xff]  ;;  %v20603_v3 = vld [vmem:[#allocation143_spill] sm:$0xff] }
 0x750   : > { %v20604_v62 = vcombine.high %v20602_v5, %v20603_v3 }
 0x751   : > { %v6663_v46 = vrot.slane %v6649_v60, %v14966_v38  ;;  %v20624_v60 = vld [vmem:[#allocation110_spill] sm:$0xff] }
 0x753   : > { %8951 = vxpose.xlu0.b32.end [8/8] (short) (narrow) %v20573_v11, 8  ;;  %8919 = vxpose.xlu1.b32.end [8/8] (short) (narrow) %v20574_v18, 8  ;;  %v20596_v11 = vcombine.high %v17768_v0, %v17825_v28  ;;  %v20597_v18 = vcombine.low %v17768_v0, %v17825_v28  ;;  %v6712_v54 = vcombine.low %v6647_v55, %v6663_v46 }
 0x754   : > { %v20605_v0 = vcombine.low %v20602_v5, %v20603_v3  ;;  %v7073_v28 = vcombine.high %v20551_v43, %v20550_v33  ;;  %v20632_v5 = vld [vmem:[#allocation158_spill] sm:$0xff] }
 0x755   : > { %v6720_v43 = vrot.slane %v6712_v54, %v14973_v23  ;;  %v20633_v3 = vld [vmem:[#allocation174_spill] sm:$0xff] }
 0x756   : > { %v7087_v14 = vrot.slane %v7073_v28, %v14966_v38 }
 0x757   : > { %9008 = vxpose.xlu0.b32.start [1/8] (short) (narrow) %v20577_v12, 8  ;;  %8976 = vxpose.xlu1.b32.start [1/8] (short) (narrow) %v20578_v44, 8  ;;  %v20598_v12 = vld [vmem:[#allocation90_spill] sm:$0xff]  ;;  %v20599_v44 = vld [vmem:[#allocation109_spill] sm:$0xff] }
 0x758   : > { %v20600_v2 = vcombine.high %v20598_v12, %v20599_v44  ;;  %v20601_v19 = vcombine.low %v20598_v12, %v20599_v44  ;;  %v7152_v25 = vcombine.low %v7087_v14, %v7103_v4  ;;  %v6713_v12 = vcombine.high %v6647_v55, %v6663_v46  ;;  %v20627_v44 = vld [vmem:[#allocation74_spill] sm:$0xff] }
 0x759   : > { %v20635_v55 = vcombine.low %v20632_v5, %v20633_v3  ;;  %v7153_v56 = vcombine.high %v7087_v14, %v7103_v4 }
 0x75a   : > { %v6727_v46 = vrot.slane %v6713_v12, %v14973_v23  ;;  %v20663_v12 = vld [vmem:[#allocation234_spill] sm:$0xff] }
 0x75b   : > { %9009 = vxpose.xlu0.b32.cont [2/8] (short) (narrow) %v20581_v16, 8  ;;  %8977 = vxpose.xlu1.b32.cont [2/8] (short) (narrow) %v20582_v7, 8  ;;  %v20606_v16 = vld [vmem:[#allocation229_spill] sm:$0xff]  ;;  %v20607_v7 = vld [vmem:[#allocation231_spill] sm:$0xff]  ;;  %v7167_v30 = vrot.slane %v7153_v56, %v14973_v23 }
 0x75c   : > { %v20608_v35 = vcombine.low %v20606_v16, %v20607_v7 }
 0x75e   : > { %v6752_v47 = vrot.slane %v20608_v35, %v14973_v23  ;;  %v7121_v35 = vcombine.high %v7055_v34, %v7071_v9  ;;  %v20646_v9 = vld [vmem:[#allocation222_spill] sm:$0xff] }
 0x75f   : > { %9010 = vxpose.xlu0.b32.cont [3/8] (short) (narrow) %v20586_v45, 8  ;;  %8978 = vxpose.xlu1.b32.cont [3/8] (short) (narrow) %v20587_v22, 8  ;;  %v20609_v45 = vld [vmem:[#allocation157_spill] sm:$0xff] }
 0x760   : > { %v20610_v22 = vld [vmem:[#allocation173_spill] sm:$0xff] }
 0x761   : > { %v20611_v59 = vcombine.high %v20609_v45, %v20610_v22  ;;  %v20612_v33 = vcombine.low %v20609_v45, %v20610_v22  ;;  %v20640_v45 = vld [vmem:[#allocation58_spill] sm:$0xff]  ;;  %v20641_v22 = vld [vmem:[#allocation156_spill] sm:$0xff] }
 0x763   : > { %9011 = vxpose.xlu0.b32.cont [4/8] (short) (narrow) %v6763_v17, 8  ;;  %8979 = vxpose.xlu1.b32.cont [4/8] (short) (narrow) %v6762_v57, 8  ;;  %v6765_v17 = vcombine.high %v6720_v43, %v6752_v47  ;;  %v6764_v57 = vcombine.low %v6720_v43, %v6752_v47  ;;  %v20636_v47 = vld [vmem:[#allocation113_spill] sm:$0xff]  ;;  %v7135_v43 = vrot.slane %v7121_v35, %v14973_v23 }
 0x765   : > { %v7175_v14 = vcombine.high %v7135_v43, %v7167_v30  ;;  %v7174_v4 = vcombine.low %v7135_v43, %v7167_v30 }
 0x767   : > { %9012 = vxpose.xlu0.b32.cont [5/8] (short) (narrow) %v20590_v31, 8  ;;  %8980 = vxpose.xlu1.b32.cont [5/8] (short) (narrow) %v20591_v6, 8  ;;  %v7160_v31 = vrot.slane %v7152_v25, %v14973_v23  ;;  %v20617_v6 = vld [vmem:[#allocation55_spill] sm:$0xff]  ;;  %v20647_v25 = vld [vmem:[#allocation214_spill] sm:$0xff] }
 0x768   : > { %v20619_v10 = vcombine.high %v20617_v6, %v20618_v26  ;;  %v20620_v29 = vcombine.low %v20617_v6, %v20618_v26  ;;  %v20651_v6 = vld [vmem:[#allocation103_spill] sm:$0xff] }
 0x76b   : > { %9013 = vxpose.xlu0.b32.cont [6/8] (short) (narrow) %v20594_v27, 8  ;;  %8981 = vxpose.xlu1.b32.cont [6/8] (short) (narrow) %v20595_v53, 8  ;;  %v7128_v27 = vrot.slane %v7120_v32, %v14973_v23  ;;  %v7736_v32 = vcombine.low %v20647_v25, %v20646_v9 }
 0x76d   : > { %v7173_v53 = vcombine.high %v7128_v27, %v7160_v31  ;;  %v7172_v13 = vcombine.low %v7128_v27, %v7160_v31  ;;  %v20650_v31 = vld [vmem:[#allocation92_spill] sm:$0xff]  ;;  %v20654_v27 = vld [vmem:[#allocation73_spill] sm:$0xff] }
 0x76e   : > { %v20652_v26 = vcombine.high %v20650_v31, %v20651_v6 }
 0x76f   : > { %9014 = vxpose.xlu0.b32.cont [7/8] (short) (narrow) %v7171_v1, 8  ;;  %8982 = vxpose.xlu1.b32.cont [7/8] (short) (narrow) %v7170_v42, 8  ;;  %v20621_v1 = vcombine.high %v17771_v52, %v17828_v37  ;;  %v20622_v42 = vcombine.low %v17771_v52, %v17828_v37  ;;  %v20631_v52 = vcombine.high %v20606_v16, %v20607_v7 }
 0x770   : > { %v20638_v16 = vcombine.high %v20636_v47, %v20637_v50  ;;  %v20639_v7 = vcombine.low %v20636_v47, %v20637_v50 }
 0x771   : > { %v6759_v37 = vrot.slane %v20631_v52, %v14973_v23 }
 0x773   : > { %9015 = vxpose.xlu0.b32.end [8/8] (short) (narrow) %v20596_v11, 8  ;;  %8983 = vxpose.xlu1.b32.end [8/8] (short) (narrow) %v20597_v18, 8  ;;  %v20625_v11 = vcombine.high %v20623_v41, %v20624_v60  ;;  %v20626_v18 = vcombine.low %v20623_v41, %v20624_v60  ;;  %v6766_v28 = vcombine.low %v6727_v46, %v6759_v37  ;;  %v20660_v41 = vld [vmem:[#allocation206_spill] sm:$0xff] }
 0x774   : > { %v20661_v60 = vld [vmem:[#allocation198_spill] sm:$0xff] }
 0x777   : > { %9072 = vxpose.xlu0.b32.start [1/8] (short) (narrow) %v20600_v2, 8  ;;  %9040 = vxpose.xlu1.b32.start [1/8] (short) (narrow) %v20601_v19, 8  ;;  %v20628_v2 = vld [vmem:[#allocation144_spill] sm:$0xff] }
 0x778   : > { %v20629_v19 = vcombine.high %v20627_v44, %v20628_v2  ;;  %v20630_v54 = vcombine.low %v20627_v44, %v20628_v2 }
 0x77b   : > { %9073 = vxpose.xlu0.b32.cont [2/8] (short) (narrow) %v20604_v62, 8  ;;  %9041 = vxpose.xlu1.b32.cont [2/8] (short) (narrow) %v20605_v0, 8  ;;  %v20634_v62 = vcombine.high %v20632_v5, %v20633_v3  ;;  %v6767_v0 = vcombine.high %v6727_v46, %v6759_v37  ;;  %v20667_v37 = vld [vmem:[#allocation190_spill] sm:$0xff] }
 0x77c   : > { %v20668_v5 = vld [vmem:[#allocation182_spill] sm:$0xff] }
 0x77d   : > { %v8144_v3 = vcombine.low %v20668_v5, %v20667_v37 }
 0x77f   : > { %9074 = vxpose.xlu0.b32.cont [3/8] (short) (narrow) %v20611_v59, 8  ;;  %9042 = vxpose.xlu1.b32.cont [3/8] (short) (narrow) %v20612_v33, 8  ;;  %v20642_v59 = vcombine.high %v20640_v45, %v20641_v22  ;;  %v20643_v33 = vcombine.low %v20640_v45, %v20641_v22  ;;  %v20673_v22 = vld [vmem:[#allocation114_spill] sm:$0xff] }
 0x783   : > { %9075 = vxpose.xlu0.b32.cont [4/8] (short) (narrow) %v6765_v17, 8  ;;  %9043 = vxpose.xlu1.b32.cont [4/8] (short) (narrow) %v6764_v57, 8  ;;  %v20644_v17 = vld [vmem:[#allocation221_spill] sm:$0xff] }
 0x784   : > { %v20645_v57 = vld [vmem:[#allocation213_spill] sm:$0xff] }
 0x785   : > { %v7720_v34 = vcombine.low %v20645_v57, %v20644_v17 }
 0x787   : > { %9076 = vxpose.xlu0.b32.cont [5/8] (short) (narrow) %v20615_v8, 8  ;;  %9044 = vxpose.xlu1.b32.cont [5/8] (short) (narrow) %v20616_v63, 8  ;;  %v7728_v8 = vrot.slane %v7720_v34, %v14966_v38  ;;  %v7744_v63 = vrot.slane %v7736_v32, %v14966_v38  ;;  %v20678_v34 = vld [vmem:[#allocation149_spill] sm:$0xff] }
 0x78b   : > { %9077 = vxpose.xlu0.b32.cont [6/8] (short) (narrow) %v20619_v10, 8  ;;  %9045 = vxpose.xlu1.b32.cont [6/8] (short) (narrow) %v20620_v29, 8  ;;  %v20653_v10 = vcombine.low %v20650_v31, %v20651_v6  ;;  %v7784_v29 = vcombine.low %v7728_v8, %v7744_v63 }
 0x78f   : > { %9078 = vxpose.xlu0.b32.cont [7/8] (short) (narrow) %v7173_v53, 8  ;;  %9046 = vxpose.xlu1.b32.cont [7/8] (short) (narrow) %v7172_v13, 8  ;;  %v20655_v53 = vld [vmem:[#allocation137_spill] sm:$0xff] }
 0x790   : > { %v20656_v13 = vcombine.high %v20654_v27, %v20655_v53  ;;  %v20657_v40 = vcombine.low %v20654_v27, %v20655_v53  ;;  %v20684_v27 = vld [vmem:[#allocation104_spill] sm:$0xff] }
 0x793   : > { %9079 = vxpose.xlu0.b32.end [8/8] (short) (narrow) %v20621_v1, 8  ;;  %9047 = vxpose.xlu1.b32.end [8/8] (short) (narrow) %v20622_v42, 8  ;;  %v20659_v1 = vld [vmem:[#allocation197_spill] sm:$0xff] }
 0x794   : > { %v8160_v42 = vcombine.low %v20659_v1, %v20658_v24 }
 0x796   : > { %v8168_v56 = vrot.slane %v8160_v42, %v14966_v38  ;;  %v20687_v42 = vld [vmem:[#allocation50_spill] sm:$0xff] }
 0x797   : > { %9136 = vxpose.xlu0.b32.start [1/8] (short) (narrow) %v20625_v11, 8  ;;  %9104 = vxpose.xlu1.b32.start [1/8] (short) (narrow) %v20626_v18, 8  ;;  %v8176_v11 = vcombine.low %v20661_v60, %v20660_v41  ;;  %v20662_v18 = vld [vmem:[#allocation232_spill] sm:$0xff] }
 0x798   : > { %v20664_v44 = vcombine.low %v20662_v18, %v20663_v12 }
 0x799   : > { %v8184_v35 = vrot.slane %v8176_v11, %v14966_v38  ;;  %v20688_v11 = vld [vmem:[#allocation138_spill] sm:$0xff] }
 0x79a   : > { %v7824_v2 = vrot.slane %v20664_v44, %v14973_v23  ;;  %v20689_v44 = vcombine.high %v20687_v42, %v20688_v11 }
 0x79b   : > { %9137 = vxpose.xlu0.b32.cont [2/8] (short) (narrow) %v20629_v19, 8  ;;  %9105 = vxpose.xlu1.b32.cont [2/8] (short) (narrow) %v20630_v54, 8  ;;  %v20665_v19 = vld [vmem:[#allocation189_spill] sm:$0xff]  ;;  %v8224_v30 = vcombine.low %v8168_v56, %v8184_v35 }
 0x79c   : > { %v20666_v54 = vld [vmem:[#allocation181_spill] sm:$0xff] }
 0x79d   : > { %v8128_v52 = vcombine.low %v20666_v54, %v20665_v19 }
 0x79f   : > { %9138 = vxpose.xlu0.b32.cont [3/8] (short) (narrow) %v20634_v62, 8  ;;  %9106 = vxpose.xlu1.b32.cont [3/8] (short) (narrow) %v20635_v55, 8  ;;  %v20669_v62 = vld [vmem:[#allocation65_spill] sm:$0xff]  ;;  %v20670_v55 = vld [vmem:[#allocation175_spill] sm:$0xff] }
 0x7a0   : > { %v20671_v46 = vcombine.high %v20669_v62, %v20670_v55 }
 0x7a3   : > { %9139 = vxpose.xlu0.b32.cont [4/8] (short) (narrow) %v6767_v0, 8  ;;  %9107 = vxpose.xlu1.b32.cont [4/8] (short) (narrow) %v6766_v28, 8  ;;  %v20672_v0 = vcombine.low %v20669_v62, %v20670_v55  ;;  %v7792_v28 = vrot.slane %v7784_v29, %v14973_v23  ;;  %v20683_v29 = vld [vmem:[#allocation93_spill] sm:$0xff] }
 0x7a4   : > { %v20685_v53 = vcombine.high %v20683_v29, %v20684_v27 }
 0x7a5   : > { %v7849_v47 = vcombine.high %v7792_v28, %v7824_v2  ;;  %v7848_v50 = vcombine.low %v7792_v28, %v7824_v2  ;;  %v20690_v2 = vcombine.low %v20687_v42, %v20688_v11  ;;  %v20714_v42 = vld [vmem:[#allocation233_spill] sm:$0xff]  ;;  %v20715_v11 = vld [vmem:[#allocation235_spill] sm:$0xff] }
 0x7a7   : > { %9140 = vxpose.xlu0.b32.cont [5/8] (short) (narrow) %v20638_v16, 8  ;;  %9108 = vxpose.xlu1.b32.cont [5/8] (short) (narrow) %v20639_v7, 8  ;;  %v8136_v16 = vrot.slane %v8128_v52, %v14966_v38  ;;  %v8152_v7 = vrot.slane %v8144_v3, %v14966_v38  ;;  %v20692_v52 = vld [vmem:[#allocation67_spill] sm:$0xff]  ;;  %v20693_v3 = vld [vmem:[#allocation176_spill] sm:$0xff] }
 0x7a8   : > { %v20694_v62 = vcombine.high %v20692_v52, %v20693_v3 }
 0x7a9   : > { %v8192_v45 = vcombine.low %v8136_v16, %v8152_v7  ;;  %v8193_v28 = vcombine.high %v8136_v16, %v8152_v7  ;;  %v7721_v7 = vcombine.high %v20645_v57, %v20644_v17  ;;  %v20706_v17 = vld [vmem:[#allocation94_spill] sm:$0xff]  ;;  %v20707_v57 = vld [vmem:[#allocation105_spill] sm:$0xff] }
 0x7ab   : > { %9141 = vxpose.xlu0.b32.cont [6/8] (short) (narrow) %v20642_v59, 8  ;;  %9109 = vxpose.xlu1.b32.cont [6/8] (short) (narrow) %v20643_v33, 8  ;;  %v20674_v59 = vld [vmem:[#allocation124_spill] sm:$0xff] }
 0x7ac   : > { %v20675_v33 = vcombine.high %v20673_v22, %v20674_v59  ;;  %v20676_v43 = vcombine.low %v20673_v22, %v20674_v59  ;;  %v20701_v22 = vld [vmem:[#allocation150_spill] sm:$0xff] }
 0x7af   : > { %9142 = vxpose.xlu0.b32.cont [7/8] (short) (narrow) %v7175_v14, 8  ;;  %9110 = vxpose.xlu1.b32.cont [7/8] (short) (narrow) %v7174_v4, 8  ;;  %v8232_v14 = vrot.slane %v8224_v30, %v14973_v23  ;;  %v20677_v4 = vld [vmem:[#allocation82_spill] sm:$0xff] }
 0x7b0   : > { %v20679_v32 = vcombine.high %v20677_v4, %v20678_v34 }
 0x7b3   : > { %9143 = vxpose.xlu0.b32.end [8/8] (short) (narrow) %v20648_v36, 8  ;;  %9111 = vxpose.xlu1.b32.end [8/8] (short) (narrow) %v20649_v20, 8  ;;  %v20680_v36 = vcombine.low %v20677_v4, %v20678_v34  ;;  %v8200_v20 = vrot.slane %v8192_v45, %v14973_v23  ;;  %v20700_v45 = vld [vmem:[#allocation81_spill] sm:$0xff]  ;;  %v20705_v4 = vcombine.low %v17782_v15, %v17869_v48  ;;  %v8416_v34 = vpop.trf.xlu1 }
 0x7b4   : > { %v20702_v59 = vcombine.high %v20700_v45, %v20701_v22 }
 0x7b5   : > { %v8257_v31 = vcombine.high %v8200_v20, %v8232_v14  ;;  %v8256_v6 = vcombine.low %v8200_v20, %v8232_v14  ;;  %v20704_v14 = vcombine.high %v17782_v15, %v17869_v48 }
 0x7b7   : > { %9200 = vxpose.xlu0.b32.start [1/8] (short) (narrow) %v20652_v26, 8  ;;  %9168 = vxpose.xlu1.b32.start [1/8] (short) (narrow) %v20653_v10, 8  ;;  %v20681_v26 = vcombine.high %v17777_v61, %v17866_v39  ;;  %v20682_v10 = vcombine.low %v17777_v61, %v17866_v39  ;;  %v20691_v61 = vcombine.high %v20662_v18, %v20663_v12 }
 0x7b9   : > { %v7831_v39 = vrot.slane %v20691_v61, %v14973_v23 }
 0x7bb   : > { %9201 = vxpose.xlu0.b32.cont [2/8] (short) (narrow) %v20656_v13, 8  ;;  %9169 = vxpose.xlu1.b32.cont [2/8] (short) (narrow) %v20657_v40, 8  ;;  %v20686_v13 = vcombine.low %v20683_v29, %v20684_v27  ;;  %v7785_v40 = vcombine.high %v7728_v8, %v7744_v63  ;;  %v20695_v8 = vcombine.low %v20692_v52, %v20693_v3  ;;  %v20711_v29 = vld [vmem:[#allocation139_spill] sm:$0xff] }
 0x7bd   : > { %v7799_v63 = vrot.slane %v7785_v40, %v14973_v23  ;;  %v8177_v40 = vcombine.high %v20661_v60, %v20660_v41 }
 0x7bf   : > { %9202 = vxpose.xlu0.b32.cont [3/8] (short) (narrow) %v20671_v46, 8  ;;  %9170 = vxpose.xlu1.b32.cont [3/8] (short) (narrow) %v20672_v0, 8  ;;  %v7851_v55 = vcombine.high %v7799_v63, %v7831_v39  ;;  %v7850_v46 = vcombine.low %v7799_v63, %v7831_v39  ;;  %v8225_v0 = vcombine.high %v8168_v56, %v8184_v35 }
 0x7c0   : > { %v8207_v56 = vrot.slane %v8193_v28, %v14973_v23 }
 0x7c1   : > { %v8239_v30 = vrot.slane %v8225_v0, %v14973_v23 }
 0x7c3   : > { %9203 = vxpose.xlu0.b32.cont [4/8] (short) (narrow) %v7849_v47, 8  ;;  %9171 = vxpose.xlu1.b32.cont [4/8] (short) (narrow) %v7848_v50, 8  ;;  %v20696_v47 = vld [vmem:[#allocation115_spill] sm:$0xff]  ;;  %v20697_v50 = vld [vmem:[#allocation125_spill] sm:$0xff]  ;;  %v8259_v35 = vcombine.high %v8207_v56, %v8239_v30  ;;  %v8258_v16 = vcombine.low %v8207_v56, %v8239_v30 }
 0x7c4   : > { %v20698_v18 = vcombine.high %v20696_v47, %v20697_v50  ;;  %v20699_v12 = vcombine.low %v20696_v47, %v20697_v50 }
 0x7c7   : > { %9204 = vxpose.xlu0.b32.cont [5/8] (short) (narrow) %v20675_v33, 8  ;;  %9172 = vxpose.xlu1.b32.cont [5/8] (short) (narrow) %v20676_v43, 8  ;;  %v20703_v33 = vcombine.low %v20700_v45, %v20701_v22  ;;  %v7737_v43 = vcombine.high %v20647_v25, %v20646_v9  ;;  %v20709_v9 = vcombine.low %v20706_v17, %v20707_v57  ;;  %v8480_v25 = vpop.trf.xlu1 }
 0x7c8   : > { %v9424_v15 = vcombine.low %v8416_v34, %v8480_v25 }
 0x7c9   : > { %v18587_v20 = vrot.slane %v7737_v43, %v14966_v38 }
 0x7ca   : > { %v9431_v52 = vrot.slane %v9424_v15, %v14966_v38 }
 0x7cb   : > { %9205 = vxpose.xlu0.b32.cont [6/8] (short) (narrow) %v20679_v32, 8  ;;  %9173 = vxpose.xlu1.b32.cont [6/8] (short) (narrow) %v20680_v36, 8  ;;  %v8448_v32 = vpop.trf.xlu0  ;;  %v18584_v36 = vrot.slane %v7721_v7, %v14966_v38  ;;  %v8544_v61 = vpop.trf.xlu1 }
 0x7cf   : > { %9206 = vxpose.xlu0.b32.cont [7/8] (short) (narrow) %v8257_v31, 8  ;;  %9174 = vxpose.xlu1.b32.cont [7/8] (short) (narrow) %v8256_v6, 8  ;;  %v20708_v31 = vcombine.high %v20706_v17, %v20707_v57  ;;  %v8512_v6 = vpop.trf.xlu0  ;;  %v8608_v0 = vpop.trf.xlu1 }
 0x7d0   : > { %v9432_v48 = vcombine.low %v8448_v32, %v8512_v6  ;;  %v9440_v47 = vcombine.low %v8544_v61, %v8608_v0 }
 0x7d2   : > { %v9439_v3 = vrot.slane %v9432_v48, %v14966_v38  ;;  %v9447_v30 = vrot.slane %v9440_v47, %v14966_v38 }
 0x7d3   : > { %9207 = vxpose.xlu0.b32.end [8/8] (short) (narrow) %v20681_v26, 8  ;;  %9175 = vxpose.xlu1.b32.end [8/8] (short) (narrow) %v20682_v10, 8  ;;  %v7800_v26 = vcombine.low %v18584_v36, %v18587_v20  ;;  %v20710_v10 = vld [vmem:[#allocation52_spill] sm:$0xff]  ;;  %v8576_v39 = vpop.trf.xlu0 }
 0x7d4   : > { %v20712_v27 = vcombine.high %v20710_v10, %v20711_v29  ;;  %v9457_v28 = vcombine.high %v9431_v52, %v9439_v3 }
 0x7d5   : > { %v7808_v63 = vrot.slane %v7800_v26, %v14973_v23 }
 0x7d7   : > { %9264 = vxpose.xlu0.b32.start [1/8] (short) (narrow) %v20685_v53, 8  ;;  %9232 = vxpose.xlu1.b32.start [1/8] (short) (narrow) %v20686_v13, 8  ;;  %v20713_v53 = vcombine.low %v20710_v10, %v20711_v29  ;;  %v8161_v13 = vcombine.high %v20659_v1, %v20658_v24  ;;  %v8145_v24 = vcombine.high %v20668_v5, %v20667_v37  ;;  %v20717_v1 = vld [vmem:[#allocation159_spill] sm:$0xff]  ;;  %v8640_v37 = vpop.trf.xlu0  ;;  %v20725_v10 = vld [vmem:[#allocation57_spill] sm:$0xff] }
 0x7d8   : > { %v9456_v5 = vcombine.low %v9431_v52, %v9439_v3  ;;  %v9448_v50 = vcombine.low %v8576_v39, %v8640_v37  ;;  %v20726_v29 = vld [vmem:[#allocation151_spill] sm:$0xff] }
 0x7da   : > { %v9455_v45 = vrot.slane %v9448_v50, %v14966_v38  ;;  %v9464_v56 = vrot.slane %v9456_v5, %v14973_v23  ;;  %v20729_v5 = vcombine.high %v17785_v51, %v17876_v49 }
 0x7db   : > { %9265 = vxpose.xlu0.b32.cont [2/8] (short) (narrow) %v20689_v44, 8  ;;  %9233 = vxpose.xlu1.b32.cont [2/8] (short) (narrow) %v20690_v2, 8  ;;  %v20716_v44 = vcombine.low %v20714_v42, %v20715_v11 }
 0x7dc   : > { %v9473_v7 = vcombine.high %v9447_v30, %v9455_v45 }
 0x7dd   : > { %v7840_v2 = vrot.slane %v20716_v44, %v14973_v23 }
 0x7de   : > { %v9487_v57 = vrot.slane %v9473_v7, %v14973_v23 }
 0x7df   : > { %9266 = vxpose.xlu0.b32.cont [3/8] (short) (narrow) %v20694_v62, 8  ;;  %9234 = vxpose.xlu1.b32.cont [3/8] (short) (narrow) %v20695_v8, 8  ;;  %v8129_v62 = vcombine.high %v20666_v54, %v20665_v19  ;;  %v20718_v8 = vld [vmem:[#allocation177_spill] sm:$0xff]  ;;  %v7853_v19 = vcombine.high %v7808_v63, %v7840_v2  ;;  %v7852_v54 = vcombine.low %v7808_v63, %v7840_v2 }
 0x7e0   : > { %v20719_v41 = vcombine.high %v20717_v1, %v20718_v8  ;;  %v20720_v60 = vcombine.low %v20717_v1, %v20718_v8 }
 0x7e3   : > { %9267 = vxpose.xlu0.b32.cont [4/8] (short) (narrow) %v7851_v55, 8  ;;  %9235 = vxpose.xlu1.b32.cont [4/8] (short) (narrow) %v7850_v46, 8  ;;  %v18625_v55 = vrot.slane %v8161_v13, %v14966_v38  ;;  %v18628_v46 = vrot.slane %v8177_v40, %v14966_v38 }
 0x7e5   : > { %v8240_v22 = vcombine.low %v18625_v55, %v18628_v46 }
 0x7e7   : > { %9268 = vxpose.xlu0.b32.cont [5/8] (short) (narrow) %v20698_v18, 8  ;;  %9236 = vxpose.xlu1.b32.cont [5/8] (short) (narrow) %v20699_v12, 8  ;;  %v18631_v18 = vrot.slane %v8129_v62, %v14966_v38  ;;  %v18634_v12 = vrot.slane %v8145_v24, %v14966_v38 }
 0x7e9   : > { %v8208_v43 = vcombine.low %v18631_v18, %v18634_v12 }
 0x7eb   : > { %9269 = vxpose.xlu0.b32.cont [6/8] (short) (narrow) %v20702_v59, 8  ;;  %9237 = vxpose.xlu1.b32.cont [6/8] (short) (narrow) %v20703_v33, 8  ;;  %v8672_v59 = vpop.trf.xlu1  ;;  %v8704_v33 = vpop.trf.xlu0  ;;  %v8216_v13 = vrot.slane %v8208_v43, %v14973_v23 }
 0x7ef   : > { %9270 = vxpose.xlu0.b32.cont [7/8] (short) (narrow) %v8259_v35, 8  ;;  %9238 = vxpose.xlu1.b32.cont [7/8] (short) (narrow) %v8258_v16, 8  ;;  %v9471_v35 = vrot.slane %v9457_v28, %v14973_v23  ;;  %v9472_v16 = vcombine.low %v9447_v30, %v9455_v45  ;;  %v8768_v25 = vpop.trf.xlu0  ;;  %v20730_v28 = vcombine.low %v17785_v51, %v17876_v49 }
 0x7f0   : > { %v9500_v44 = vcombine.low %v8704_v33, %v8768_v25  ;;  %v20736_v25 = vld [vmem:[#allocation140_spill] sm:$0xff] }
 0x7f1   : > { %v9480_v17 = vrot.slane %v9472_v16, %v14973_v23  ;;  %v9490_v48 = vcombine.low %v9471_v35, %v9487_v57  ;;  %v9491_v26 = vcombine.high %v9471_v35, %v9487_v57  ;;  %v20731_v35 = vld [vmem:[#allocation95_spill] sm:$0xff]  ;;  %v20732_v16 = vld [vmem:[#allocation106_spill] sm:$0xff] }
 0x7f2   : > { %v20733_v7 = vcombine.high %v20731_v35, %v20732_v16  ;;  %v20734_v51 = vcombine.low %v20731_v35, %v20732_v16 }
 0x7f3   : > { %9271 = vxpose.xlu0.b32.end [8/8] (short) (narrow) %v20704_v14, 8  ;;  %9239 = vxpose.xlu1.b32.end [8/8] (short) (narrow) %v20705_v4, 8  ;;  %v20721_v14 = vld [vmem:[#allocation116_spill] sm:$0xff]  ;;  %v20722_v4 = vld [vmem:[#allocation126_spill] sm:$0xff]  ;;  %v9488_v6 = vcombine.low %v9464_v56, %v9480_v17  ;;  %v9489_v15 = vcombine.high %v9464_v56, %v9480_v17  ;;  %v13475_v39 = vpack.c.bf16 %v9490_v48, %v9490_v48  ;;  %v8832_v1 = vpop.trf.xlu0 }
 0x7f4   : > { %v20723_v34 = vcombine.high %v20721_v14, %v20722_v4  ;;  %v20724_v32 = vcombine.low %v20721_v14, %v20722_v4  ;;  %v13479_v52 = vpack.c.bf16 %v9491_v26, %v9491_v26 }
 0x7f5   : > { %v13467_v2 = vpack.c.bf16 %v9488_v6, %v9488_v6  ;;  %v13471_v61 = vpack.c.bf16 %v9489_v15, %v9489_v15  ;;  %9769 = vst.msk [vmem:[#allocation2 + $0x20] sm:$0xf] %vm9760_vm1, %v13475_v39  ;;  %v20741_v39 = vld [vmem:[#allocation178_spill] sm:$0xff] }
 0x7f6   : > { %9773 = vst.msk [vmem:[#allocation2 + $0x30] sm:$0xf] %vm9760_vm1, %v13479_v52 }
 0x7f7   : > { %9328 = vxpose.xlu0.b32.start [1/8] (short) (narrow) %v20708_v31, 8  ;;  %9296 = vxpose.xlu1.b32.start [1/8] (short) (narrow) %v20709_v9, 8  ;;  %v8248_v31 = vrot.slane %v8240_v22, %v14973_v23  ;;  %v8736_v9 = vpop.trf.xlu1  ;;  %9761 = vst.msk [vmem:[#allocation2] sm:$0xf] %vm9760_vm1, %v13467_v2  ;;  %9765 = vst.msk [vmem:[#allocation2 + $0x10] sm:$0xf] %vm9760_vm1, %v13471_v61  ;;  %v8896_v63 = vpop.trf.xlu0 }
 0x7f8   : > { %v9492_v40 = vcombine.low %v8672_v59, %v8736_v9  ;;  %v9516_v37 = vcombine.low %v8832_v1, %v8896_v63  ;;  %v20735_v9 = vld [vmem:[#allocation51_spill] sm:$0xff]  ;;  %v20740_v61 = vld [vmem:[#allocation160_spill] sm:$0xff] }
 0x7f9   : > { %v8261_v3 = vcombine.high %v8216_v13, %v8248_v31  ;;  %v8260_v62 = vcombine.low %v8216_v13, %v8248_v31  ;;  %v7801_v31 = vcombine.high %v18584_v36, %v18587_v20  ;;  %v20737_v6 = vcombine.high %v20735_v9, %v20736_v25 }
 0x7fa   : > { %v9499_v8 = vrot.slane %v9492_v40, %v14966_v38  ;;  %v9523_v50 = vrot.slane %v9516_v37, %v14966_v38  ;;  %v20738_v15 = vcombine.low %v20735_v9, %v20736_v25  ;;  %v20739_v13 = vcombine.high %v20714_v42, %v20715_v11  ;;  %v20754_v25 = vld [vmem:[#allocation28_spill] sm:$0xff] }
 0x7fb   : > { %9329 = vxpose.xlu0.b32.cont [2/8] (short) (narrow) %v20712_v27, 8  ;;  %9297 = vxpose.xlu1.b32.cont [2/8] (short) (narrow) %v20713_v53, 8  ;;  %v20727_v27 = vcombine.high %v20725_v10, %v20726_v29  ;;  %v20728_v53 = vcombine.low %v20725_v10, %v20726_v29  ;;  %v8800_v24 = vpop.trf.xlu1  ;;  %v8960_v45 = vpop.trf.xlu0  ;;  %v20742_v52 = vcombine.high %v20740_v61, %v20741_v39 }
 0x7fc   : > { %v7847_v40 = vrot.slane %v20739_v13, %v14973_v23  ;;  %v20743_v42 = vcombine.low %v20740_v61, %v20741_v39  ;;  %v7815_v11 = vrot.slane %v7801_v31, %v14973_v23  ;;  %v20752_v31 = vcombine.high %v17788_v58, %v17879_v21 }
 0x7fd   : > { %v20753_v9 = vcombine.low %v17788_v58, %v17879_v21  ;;  %v20758_v58 = vld [vmem:[#allocation31_spill] sm:$0xff]  ;;  %v20759_v21 = vld [vmem:[#allocation33_spill] sm:$0xff] }
 0x7ff   : > { %9330 = vxpose.xlu0.b32.cont [3/8] (short) (narrow) %v20719_v41, 8  ;;  %9298 = vxpose.xlu1.b32.cont [3/8] (short) (narrow) %v20720_v60, 8  ;;  %v9507_v41 = vrot.slane %v9500_v44, %v14966_v38  ;;  %v8864_v60 = vpop.trf.xlu1  ;;  %v9024_v4 = vpop.trf.xlu0 }
 0x800   : > { %v9508_v0 = vcombine.low %v8800_v24, %v8864_v60  ;;  %v9568_v26 = vcombine.low %v8960_v45, %v9024_v4  ;;  %v20745_v45 = vld [vmem:[#allocation127_spill] sm:$0xff] }
 0x802   : > { %v9515_v47 = vrot.slane %v9508_v0, %v14966_v38  ;;  %v9575_v2 = vrot.slane %v9568_v26, %v14966_v38  ;;  %v8241_v0 = vcombine.high %v18625_v55, %v18628_v46  ;;  %v20757_v26 = vld [vmem:[#allocation29_spill] sm:$0xff] }
 0x803   : > { %9331 = vxpose.xlu0.b32.cont [4/8] (short) (narrow) %v7853_v19, 8  ;;  %9299 = vxpose.xlu1.b32.cont [4/8] (short) (narrow) %v7852_v54, 8  ;;  %v9524_v19 = vcombine.low %v9499_v8, %v9507_v41  ;;  %v9525_v54 = vcombine.high %v9499_v8, %v9507_v41  ;;  %v8928_v30 = vpop.trf.xlu1  ;;  %v9088_v20 = vpop.trf.xlu0 }
 0x804   : > { %v9540_v33 = vcombine.low %v9515_v47, %v9523_v50  ;;  %v9541_v56 = vcombine.high %v9515_v47, %v9523_v50  ;;  %v8209_v50 = vcombine.high %v18631_v18, %v18634_v12  ;;  %v8255_v46 = vrot.slane %v8241_v0, %v14973_v23  ;;  %v20749_v18 = vld [vmem:[#allocation152_spill] sm:$0xff] }
 0x805   : > { %v9532_v22 = vrot.slane %v9524_v19, %v14973_v23  ;;  %v9539_v59 = vrot.slane %v9525_v54, %v14973_v23 }
 0x806   : > { %v9548_v49 = vrot.slane %v9540_v33, %v14973_v23  ;;  %v9555_v43 = vrot.slane %v9541_v56, %v14973_v23 }
 0x807   : > { %9332 = vxpose.xlu0.b32.cont [5/8] (short) (narrow) %v20723_v34, 8  ;;  %9300 = vxpose.xlu1.b32.cont [5/8] (short) (narrow) %v20724_v32, 8  ;;  %v8992_v14 = vpop.trf.xlu1 }
 0x808   : > { %v9556_v34 = vcombine.low %v9532_v22, %v9548_v49  ;;  %v9557_v32 = vcombine.high %v9532_v22, %v9548_v49  ;;  %v9558_v17 = vcombine.low %v9539_v59, %v9555_v43  ;;  %v9559_v57 = vcombine.high %v9539_v59, %v9555_v43 }
 0x809   : > { %v9560_v48 = vcombine.low %v8928_v30, %v8992_v14  ;;  %v20744_v30 = vld [vmem:[#allocation117_spill] sm:$0xff]  ;;  %v8223_v43 = vrot.slane %v8209_v50, %v14973_v23 }
 0x80a   : > { %v13468_v10 = vpack.c.bf16 %v9556_v34, %v9556_v34  ;;  %v13472_v29 = vpack.c.bf16 %v9557_v32, %v9557_v32  ;;  %v20746_v22 = vcombine.high %v20744_v30, %v20745_v45  ;;  %v20747_v59 = vcombine.low %v20744_v30, %v20745_v45 }
 0x80b   : > { %9333 = vxpose.xlu0.b32.cont [6/8] (short) (narrow) %v20727_v27, 8  ;;  %9301 = vxpose.xlu1.b32.cont [6/8] (short) (narrow) %v20728_v53, 8  ;;  %v13476_v27 = vpack.c.bf16 %v9558_v17, %v9558_v17  ;;  %v13480_v53 = vpack.c.bf16 %v9559_v57, %v9559_v57  ;;  %v9056_v36 = vpop.trf.xlu1  ;;  %v9567_v44 = vrot.slane %v9560_v48, %v14966_v38  ;;  %v20756_v48 = vld [vmem:[#allocation30_spill] sm:$0xff] }
 0x80c   : > { %9762 = vst.msk [vmem:[#allocation2 + $0x4] sm:$0xf] %vm9760_vm1, %v13468_v10  ;;  %9766 = vst.msk [vmem:[#allocation2 + $0x14] sm:$0xf] %vm9760_vm1, %v13472_v29  ;;  %v8263_v17 = vcombine.high %v8223_v43, %v8255_v46  ;;  %v8262_v57 = vcombine.low %v8223_v43, %v8255_v46  ;;  %v18755_v10 = vpop.f32.mrf.mxu1 }
 0x80d   : > { %9770 = vst.msk [vmem:[#allocation2 + $0x24] sm:$0xf] %vm9760_vm1, %v13476_v27  ;;  %9774 = vst.msk [vmem:[#allocation2 + $0x34] sm:$0xf] %vm9760_vm1, %v13480_v53  ;;  %v9592_v8 = vcombine.low %v9567_v44, %v9575_v2  ;;  %v9593_v41 = vcombine.high %v9567_v44, %v9575_v2 }
 0x80f   : > { %9334 = vxpose.xlu0.b32.cont [7/8] (short) (narrow) %v8261_v3, 8  ;;  %9302 = vxpose.xlu1.b32.cont [7/8] (short) (narrow) %v8260_v62, 8  ;;  %v7855_v3 = vcombine.high %v7815_v11, %v7847_v40  ;;  %v7854_v62 = vcombine.low %v7815_v11, %v7847_v40  ;;  %v9600_v37 = vrot.slane %v9592_v8, %v14973_v23 }
 0x813   : > { %9335 = vxpose.xlu0.b32.end [8/8] (short) (narrow) %v20729_v5, 8  ;;  %9303 = vxpose.xlu1.b32.end [8/8] (short) (narrow) %v20730_v28, 8  ;;  %v9120_v24 = vpop.trf.xlu1  ;;  %v9152_v1 = vpop.trf.xlu0  ;;  %v9607_v5 = vrot.slane %v9593_v41, %v14973_v23 }
 0x814   : > { %v9576_v60 = vcombine.low %v9056_v36, %v9120_v24  ;;  %v9584_v63 = vcombine.low %v9088_v20, %v9152_v1 }
 0x816   : > { %v9583_v19 = vrot.slane %v9576_v60, %v14966_v38  ;;  %v9591_v54 = vrot.slane %v9584_v63, %v14966_v38 }
 0x817   : > { %9392 = vxpose.xlu0.b32.start [1/8] (short) (narrow) %v20733_v7, 8  ;;  %9360 = vxpose.xlu1.b32.start [1/8] (short) (narrow) %v20734_v51, 8  ;;  %v20748_v51 = vld [vmem:[#allocation60_spill] sm:$0xff] }
 0x818   : > { %v9608_v28 = vcombine.low %v9583_v19, %v9591_v54  ;;  %v9609_v47 = vcombine.high %v9583_v19, %v9591_v54  ;;  %v20750_v12 = vcombine.high %v20748_v51, %v20749_v18  ;;  %v20751_v49 = vcombine.low %v20748_v51, %v20749_v18 }
 0x81a   : > { %v9616_v33 = vrot.slane %v9608_v28, %v14973_v23  ;;  %v9623_v55 = vrot.slane %v9609_v47, %v14973_v23 }
 0x81b   : > { %9393 = vxpose.xlu0.b32.cont [2/8] (short) (narrow) %v20737_v6, 8  ;;  %9361 = vxpose.xlu1.b32.cont [2/8] (short) (narrow) %v20738_v15, 8  ;;  %v20755_v6 = vld [vmem:[#allocation32_spill] sm:$0xff]  ;;  %v18747_v15 = vpop.f32.mrf.mxu0 }
 0x81c   : > { %v9624_v56 = vcombine.low %v9600_v37, %v9616_v33  ;;  %v9625_v35 = vcombine.high %v9600_v37, %v9616_v33  ;;  %v9626_v16 = vcombine.low %v9607_v5, %v9623_v55  ;;  %v9627_v7 = vcombine.high %v9607_v5, %v9623_v55 }
 0x81e   : > { %v13469_v14 = vpack.c.bf16 %v9624_v56, %v9624_v56  ;;  %v13473_v4 = vpack.c.bf16 %v9625_v35, %v9625_v35  ;;  %v13477_v34 = vpack.c.bf16 %v9626_v16, %v9626_v16  ;;  %v13481_v32 = vpack.c.bf16 %v9627_v7, %v9627_v7 }
 0x81f   : > { %9394 = vxpose.xlu0.b32.cont [3/8] (short) (narrow) %v20742_v52, 8  ;;  %9362 = vxpose.xlu1.b32.cont [3/8] (short) (narrow) %v20743_v42, 8 }
 0x820   : > { %9763 = vst.msk [vmem:[#allocation2 + $0x8] sm:$0xf] %vm9760_vm1, %v13469_v14  ;;  %9767 = vst.msk [vmem:[#allocation2 + $0x18] sm:$0xf] %vm9760_vm1, %v13473_v4 }
 0x821   : > { %9771 = vst.msk [vmem:[#allocation2 + $0x28] sm:$0xf] %vm9760_vm1, %v13477_v34  ;;  %9775 = vst.msk [vmem:[#allocation2 + $0x38] sm:$0xf] %vm9760_vm1, %v13481_v32 }
 0x823   : > { %9395 = vxpose.xlu0.b32.cont [4/8] (short) (narrow) %v7855_v3, 8  ;;  %9363 = vxpose.xlu1.b32.cont [4/8] (short) (narrow) %v7854_v62, 8 }
 0x827   : > { %9396 = vxpose.xlu0.b32.cont [5/8] (short) (narrow) %v20746_v22, 8  ;;  %9364 = vxpose.xlu1.b32.cont [5/8] (short) (narrow) %v20747_v59, 8 }
 0x82b   : > { %9397 = vxpose.xlu0.b32.cont [6/8] (short) (narrow) %v20750_v12, 8  ;;  %9365 = vxpose.xlu1.b32.cont [6/8] (short) (narrow) %v20751_v49, 8 }
 0x82f   : > { %9398 = vxpose.xlu0.b32.cont [7/8] (short) (narrow) %v8263_v17, 8  ;;  %9366 = vxpose.xlu1.b32.cont [7/8] (short) (narrow) %v8262_v57, 8 }
 0x833   : > { %9399 = vxpose.xlu0.b32.end [8/8] (short) (narrow) %v20752_v31, 8  ;;  %9367 = vxpose.xlu1.b32.end [8/8] (short) (narrow) %v20753_v9, 8  ;;  %v9184_v29 = vpop.trf.xlu1  ;;  %v9216_v27 = vpop.trf.xlu0 }
 0x851   : > { %9785 = vrot.lane.b32.xlu1 %v20754_v25, %s14501_s10 }
 0x853   : > { %v9248_v53 = vpop.trf.xlu1  ;;  %v9280_v13 = vpop.trf.xlu0 }
 0x854   : > { %v9628_v40 = vcombine.low %v9184_v29, %v9248_v53  ;;  %v9636_v36 = vcombine.low %v9216_v27, %v9280_v13 }
 0x855   : > { %9789 = vrot.lane.b32.xlu1 %v20755_v6, %s14501_s10 }
 0x856   : > { %v9635_v2 = vrot.slane %v9628_v40, %v14966_v38  ;;  %v9643_v61 = vrot.slane %v9636_v36, %v14966_v38 }
 0x858   : > { %v9660_v42 = vcombine.low %v9635_v2, %v9643_v61  ;;  %v9661_v11 = vcombine.high %v9635_v2, %v9643_v61 }
 0x859   : > { %9791 = vrot.lane.b32.xlu1 %v18747_v15, %s14501_s10 }
 0x85a   : > { %v9668_v8 = vrot.slane %v9660_v42, %v14973_v23  ;;  %v9675_v41 = vrot.slane %v9661_v11, %v14973_v23 }
 0x85c   : > { %9787 = vrot.lane.b32.xlu0 %v20756_v48, %s14501_s10 }
 0x85d   : > { %9793 = vrot.lane.b32.xlu1 %v20757_v26, %s14501_s10 }
 0x860   : > { %9799 = vrot.lane.b32.xlu0 %v18755_v10, %s14501_s10 }
 0x861   : > { %9795 = vrot.lane.b32.xlu1 %v20758_v58, %s14501_s10 }
 0x864   : > { %9811 = vrot.lane.b32.xlu0 %v20756_v48, %s14502_s28 }
 0x865   : > { %9797 = vrot.lane.b32.xlu1 %v20759_v21, %s14501_s10 }
 0x868   : > { %9815 = vrot.lane.b32.xlu0 %v18747_v15, %s14502_s28 }
 0x869   : > { %9809 = vrot.lane.b32.xlu1 %v20754_v25, %s14502_s28 }
 0x86c   : > { %9819 = vrot.lane.b32.xlu0 %v20758_v58, %s14502_s28 }
 0x86d   : > { %9813 = vrot.lane.b32.xlu1 %v20755_v6, %s14502_s28 }
 0x870   : > { %9823 = vrot.lane.b32.xlu0 %v18755_v10, %s14502_s28 }
 0x871   : > { %9817 = vrot.lane.b32.xlu1 %v20757_v26, %s14502_s28 }
 0x873   : > { %v9312_v20 = vpop.trf.xlu1  ;;  %v9344_v44 = vpop.trf.xlu0 }
 0x874   : > { %9835 = vrot.lane.b32.xlu0 %v20756_v48, %s14503_s4 }
 0x875   : > { %9821 = vrot.lane.b32.xlu1 %v20759_v21, %s14502_s28 }
 0x878   : > { %9839 = vrot.lane.b32.xlu0 %v18747_v15, %s14503_s4 }
 0x879   : > { %9833 = vrot.lane.b32.xlu1 %v20754_v25, %s14503_s4 }
 0x87c   : > { %9843 = vrot.lane.b32.xlu0 %v20758_v58, %s14503_s4 }
 0x87d   : > { %9837 = vrot.lane.b32.xlu1 %v20755_v6, %s14503_s4 }
 0x880   : > { %9847 = vrot.lane.b32.xlu0 %v18755_v10, %s14503_s4 }
 0x881   : > { %9841 = vrot.lane.b32.xlu1 %v20757_v26, %s14503_s4 }
 0x885   : > { %9845 = vrot.lane.b32.xlu1 %v20759_v21, %s14503_s4 }
 0x893   : > { %v9376_v39 = vpop.trf.xlu1  ;;  %v9408_v52 = vpop.trf.xlu0 }
 0x894   : > { %v9644_v3 = vcombine.low %v9312_v20, %v9376_v39  ;;  %v9652_v62 = vcombine.low %v9344_v44, %v9408_v52 }
 0x896   : > { %v9651_v24 = vrot.slane %v9644_v3, %v14966_v38  ;;  %v9659_v1 = vrot.slane %v9652_v62, %v14966_v38 }
 0x898   : > { %v9676_v60 = vcombine.low %v9651_v24, %v9659_v1  ;;  %v9677_v63 = vcombine.high %v9651_v24, %v9659_v1 }
 0x89a   : > { %v9684_v19 = vrot.slane %v9676_v60, %v14973_v23  ;;  %v9691_v54 = vrot.slane %v9677_v63, %v14973_v23 }
 0x89c   : > { %v9692_v0 = vcombine.low %v9668_v8, %v9684_v19  ;;  %v9693_v37 = vcombine.high %v9668_v8, %v9684_v19  ;;  %v9694_v5 = vcombine.low %v9675_v41, %v9691_v54  ;;  %v9695_v28 = vcombine.high %v9675_v41, %v9691_v54 }
 0x89e   : > { %v13470_v47 = vpack.c.bf16 %v9692_v0, %v9692_v0  ;;  %v13474_v50 = vpack.c.bf16 %v9693_v37, %v9693_v37  ;;  %v13478_v30 = vpack.c.bf16 %v9694_v5, %v9694_v5  ;;  %v13482_v45 = vpack.c.bf16 %v9695_v28, %v9695_v28 }
 0x8a0   : > { %9764 = vst.msk [vmem:[#allocation2 + $0xc] sm:$0xf] %vm9760_vm1, %v13470_v47  ;;  %9768 = vst.msk [vmem:[#allocation2 + $0x1c] sm:$0xf] %vm9760_vm1, %v13474_v50 }
 0x8a1   : > { %9772 = vst.msk [vmem:[#allocation2 + $0x2c] sm:$0xf] %vm9760_vm1, %v13478_v30  ;;  %9776 = vst.msk [vmem:[#allocation2 + $0x3c] sm:$0xf] %vm9760_vm1, %v13482_v45 }
 0x8c3   : > { %v18807_v22 = vpop.permute.xlu1 %9785 }
 0x8c7   : > { %v18809_v59 = vpop.permute.xlu1 %9789 }
 0x8cb   : > { %v18811_v33 = vpop.permute.xlu1 %9791 }
 0x8ce   : > { %v9788_v55 = vpop.permute.xlu0 %9787 }
 0x8cf   : > { %v18813_v46 = vpop.permute.xlu1 %9793 }
 0x8d2   : > { %v18815_v56 = vpop.permute.xlu0 %9799 }
 0x8d3   : > { %v18817_v35 = vpop.permute.xlu1 %9795 }
 0x8d6   : > { %v9812_v16 = vpop.permute.xlu0 %9811 }
 0x8d7   : > { %v18819_v7 = vpop.permute.xlu1 %9797  ;;  %v9925_v43 = vcombine.low %v20756_v48, %v9812_v16  ;;  %v9926_v14 = vcombine.high %v20756_v48, %v9812_v16 }
 0x8d9   : > { %v9933_v48 = vrot.slane %v9925_v43, %v14966_v38  ;;  %v9940_v13 = vrot.slane %v9926_v14, %v14966_v38 }
 0x8da   : > { %v9816_v51 = vpop.permute.xlu0 %9815 }
 0x8db   : > { %v9810_v18 = vpop.permute.xlu1 %9809  ;;  %v10061_v4 = vcombine.low %v18747_v15, %v9816_v51  ;;  %v10062_v34 = vcombine.high %v18747_v15, %v9816_v51 }
 0x8dc   : > { %v9857_v17 = vcombine.low %v20754_v25, %v9810_v18  ;;  %v9858_v57 = vcombine.high %v20754_v25, %v9810_v18 }
 0x8dd   : > { %v10069_v36 = vrot.slane %v10061_v4, %v14966_v38  ;;  %v10076_v25 = vrot.slane %v10062_v34, %v14966_v38 }
 0x8de   : > { %v9820_v12 = vpop.permute.xlu0 %9819  ;;  %v18840_v2 = vrot.slane %v9857_v17, %v14966_v38 }
 0x8df   : > { %v9814_v49 = vpop.permute.xlu1 %9813  ;;  %v10197_v9 = vcombine.low %v20758_v58, %v9820_v12  ;;  %v10198_v29 = vcombine.high %v20758_v58, %v9820_v12 }
 0x8e0   : > { %v9993_v27 = vcombine.low %v20755_v6, %v9814_v49  ;;  %v9994_v53 = vcombine.high %v20755_v6, %v9814_v49  ;;  %v18843_v6 = vrot.slane %v9858_v57, %v14966_v38 }
 0x8e1   : > { %v18851_v42 = vrot.slane %v10198_v29, %v14966_v38 }
 0x8e2   : > { %v9824_v32 = vpop.permute.xlu0 %9823  ;;  %v18854_v11 = vrot.slane %v9993_v27, %v14966_v38 }
 0x8e3   : > { %v9818_v31 = vpop.permute.xlu1 %9817  ;;  %v10333_v15 = vcombine.low %v18755_v10, %v9824_v32  ;;  %v10334_v40 = vcombine.high %v18755_v10, %v9824_v32  ;;  %v18848_v10 = vrot.slane %v10197_v9, %v14966_v38 }
 0x8e4   : > { %v10129_v20 = vcombine.low %v20757_v26, %v9818_v31  ;;  %v10130_v58 = vcombine.high %v20757_v26, %v9818_v31  ;;  %v18857_v26 = vrot.slane %v9994_v53, %v14966_v38 }
 0x8e5   : > { %v18860_v3 = vrot.slane %v10333_v15, %v14966_v38  ;;  %v18863_v62 = vrot.slane %v10334_v40, %v14966_v38 }
 0x8e6   : > { %v9836_v44 = vpop.permute.xlu0 %9835  ;;  %v18868_v8 = vrot.slane %v10129_v20, %v14966_v38  ;;  %v18871_v41 = vrot.slane %v10130_v58, %v14966_v38 }
 0x8e7   : > { %v9941_v61 = vcombine.low %v9788_v55, %v9836_v44  ;;  %v9942_v39 = vcombine.high %v9788_v55, %v9836_v44  ;;  %v18845_v52 = vpop.permute.xlu1 %9821 }
 0x8e8   : > { %v10265_v60 = vcombine.low %v20759_v21, %v18845_v52  ;;  %v10266_v63 = vcombine.high %v20759_v21, %v18845_v52 }
 0x8e9   : > { %v9949_v24 = vrot.slane %v9941_v61, %v14966_v38  ;;  %v9956_v1 = vrot.slane %v9942_v39, %v14966_v38 }
 0x8ea   : > { %v9840_v19 = vpop.permute.xlu0 %9839 }
 0x8eb   : > { %v9957_v54 = vcombine.low %v9933_v48, %v9949_v24  ;;  %v9958_v0 = vcombine.high %v9933_v48, %v9949_v24  ;;  %v9973_v37 = vcombine.low %v9940_v13, %v9956_v1  ;;  %v9974_v5 = vcombine.high %v9940_v13, %v9956_v1  ;;  %v9834_v28 = vpop.permute.xlu1 %9833 }
 0x8ec   : > { %v10077_v47 = vcombine.low %v18811_v33, %v9840_v19  ;;  %v10078_v50 = vcombine.high %v18811_v33, %v9840_v19  ;;  %v9873_v30 = vcombine.low %v18807_v22, %v9834_v28  ;;  %v9874_v45 = vcombine.high %v18807_v22, %v9834_v28 }
 0x8ed   : > { %v9965_v55 = vrot.slane %v9957_v54, %v14973_v23  ;;  %v9972_v16 = vrot.slane %v9958_v0, %v14973_v23  ;;  %v9981_v51 = vrot.slane %v9973_v37, %v14973_v23  ;;  %v9988_v18 = vrot.slane %v9974_v5, %v14973_v23 }
 0x8ee   : > { %v10085_v12 = vrot.slane %v10077_v47, %v14966_v38  ;;  %v10092_v49 = vrot.slane %v10078_v50, %v14966_v38  ;;  %v18888_v43 = vrot.slane %v9873_v30, %v14966_v38  ;;  %v18891_v33 = vrot.slane %v9874_v45, %v14966_v38 }
 0x8ef   : > { %v10469_v14 = vcombine.low %v9965_v55, %v9972_v16  ;;  %v13340_v22 = vcombine.high %v9965_v55, %v9972_v16  ;;  %v10485_v4 = vcombine.low %v9981_v51, %v9988_v18  ;;  %v13341_v34 = vcombine.high %v9981_v51, %v9988_v18 }
 0x8f0   : > { %v10093_v32 = vcombine.low %v10069_v36, %v10085_v12  ;;  %v10094_v17 = vcombine.high %v10069_v36, %v10085_v12  ;;  %v10109_v57 = vcombine.low %v10076_v25, %v10092_v49  ;;  %v10110_v31 = vcombine.high %v10076_v25, %v10092_v49 }
 0x8f1   : > { %v10476_v9 = vrot.slane %v10469_v14, %v14966_v38  ;;  %v10484_v29 = vrot.slane %v13340_v22, %v14966_v38  ;;  %v10492_v27 = vrot.slane %v10485_v4, %v14966_v38  ;;  %v10500_v53 = vrot.slane %v13341_v34, %v14966_v38 }
 0x8f2   : > { %v10101_v48 = vrot.slane %v10093_v32, %v14973_v23  ;;  %v10108_v13 = vrot.slane %v10094_v17, %v14973_v23  ;;  %v10117_v15 = vrot.slane %v10109_v57, %v14973_v23  ;;  %v10124_v40 = vrot.slane %v10110_v31, %v14973_v23 }
 0x8f3   : > { %v10501_v20 = vcombine.low %v10476_v9, %v10484_v29  ;;  %v10502_v36 = vcombine.high %v10476_v9, %v10484_v29  ;;  %v10517_v58 = vcombine.low %v10492_v27, %v10500_v53  ;;  %v10518_v25 = vcombine.high %v10492_v27, %v10500_v53 }
 0x8f4   : > { %v10605_v44 = vcombine.low %v10101_v48, %v10108_v13  ;;  %v13344_v61 = vcombine.high %v10101_v48, %v10108_v13  ;;  %v10621_v39 = vcombine.low %v10117_v15, %v10124_v40  ;;  %v13345_v24 = vcombine.high %v10117_v15, %v10124_v40 }
 0x8f5   : > { %v10509_v1 = vrot.slane %v10501_v20, %v14973_v23  ;;  %v10516_v19 = vrot.slane %v10502_v36, %v14973_v23  ;;  %v10525_v54 = vrot.slane %v10517_v58, %v14973_v23  ;;  %v10532_v0 = vrot.slane %v10518_v25, %v14973_v23  ;;  %v9844_v25 = vpop.permute.xlu0 %9843 }
 0x8f6   : > { %v10612_v37 = vrot.slane %v10605_v44, %v14966_v38  ;;  %v10620_v5 = vrot.slane %v13344_v61, %v14966_v38  ;;  %v10628_v28 = vrot.slane %v10621_v39, %v14966_v38  ;;  %v10636_v47 = vrot.slane %v13345_v24, %v14966_v38 }
 0x8f7   : > { %v10533_v50 = vcombine.low %v10509_v1, %v10525_v54  ;;  %v10534_v30 = vcombine.high %v10509_v1, %v10525_v54  ;;  %v10535_v45 = vcombine.low %v10516_v19, %v10532_v0  ;;  %v10536_v55 = vcombine.high %v10516_v19, %v10532_v0 }
 0x8f8   : > { %v10637_v16 = vcombine.low %v10612_v37, %v10620_v5  ;;  %v10638_v51 = vcombine.high %v10612_v37, %v10620_v5  ;;  %v10653_v18 = vcombine.low %v10628_v28, %v10636_v47  ;;  %v10654_v12 = vcombine.high %v10628_v28, %v10636_v47 }
 0x8f9   : > { %v13484_v49 = vpack.c.bf16 %v10533_v50, %v10533_v50  ;;  %v13492_v14 = vpack.c.bf16 %v10534_v30, %v10534_v30  ;;  %v13500_v22 = vpack.c.bf16 %v10535_v45, %v10535_v45  ;;  %v13508_v4 = vpack.c.bf16 %v10536_v55, %v10536_v55 }
 0x8fa   : > { %v10645_v34 = vrot.slane %v10637_v16, %v14973_v23  ;;  %v10652_v32 = vrot.slane %v10638_v51, %v14973_v23  ;;  %v10661_v17 = vrot.slane %v10653_v18, %v14973_v23  ;;  %v10668_v57 = vrot.slane %v10654_v12, %v14973_v23 }
 0x8fb   : > { %11074 = vst.msk [vmem:[#allocation3 + $0x4] sm:$0xf] %vm1482_vm0, %v13484_v49  ;;  %11082 = vst.msk [vmem:[#allocation3 + $0x24] sm:$0xf] %vm1482_vm0, %v13492_v14  ;;  %v9889_v31 = vcombine.low %v18840_v2, %v18888_v43  ;;  %v9890_v9 = vcombine.high %v18840_v2, %v18888_v43  ;;  %v9905_v29 = vcombine.low %v18843_v6, %v18891_v33  ;;  %v9838_v2 = vpop.permute.xlu1 %9837 }
 0x8fc   : > { %11090 = vst.msk [vmem:[#allocation3 + $0x44] sm:$0xf] %vm1482_vm0, %v13500_v22  ;;  %11098 = vst.msk [vmem:[#allocation3 + $0x64] sm:$0xf] %vm1482_vm0, %v13508_v4  ;;  %v9906_v27 = vcombine.high %v18843_v6, %v18891_v33  ;;  %v10669_v53 = vcombine.low %v10645_v34, %v10661_v17  ;;  %v10670_v48 = vcombine.high %v10645_v34, %v10661_v17 }
 0x8fd   : > { %v10671_v13 = vcombine.low %v10652_v32, %v10668_v57  ;;  %v10672_v15 = vcombine.high %v10652_v32, %v10668_v57  ;;  %v9897_v40 = vrot.slane %v9889_v31, %v14973_v23  ;;  %v9904_v20 = vrot.slane %v9890_v9, %v14973_v23 }
 0x8fe   : > { %v9913_v36 = vrot.slane %v9905_v29, %v14973_v23  ;;  %v9920_v58 = vrot.slane %v9906_v27, %v14973_v23  ;;  %v13486_v43 = vpack.c.bf16 %v10669_v53, %v10669_v53  ;;  %v13494_v44 = vpack.c.bf16 %v10670_v48, %v10670_v48 }
 0x8ff   : > { %v13502_v61 = vpack.c.bf16 %v10671_v13, %v10671_v13  ;;  %v13510_v39 = vpack.c.bf16 %v10672_v15, %v10672_v15  ;;  %v10401_v24 = vcombine.low %v9897_v40, %v9904_v20  ;;  %v13338_v6 = vcombine.high %v9897_v40, %v9904_v20 }
 0x900   : > { %v10417_v33 = vcombine.low %v9913_v36, %v9920_v58  ;;  %v13339_v1 = vcombine.high %v9913_v36, %v9920_v58  ;;  %11076 = vst.msk [vmem:[#allocation3 + $0xc] sm:$0xf] %vm1482_vm0, %v13486_v43  ;;  %11084 = vst.msk [vmem:[#allocation3 + $0x2c] sm:$0xf] %vm1482_vm0, %v13494_v44  ;;  %v10213_v19 = vcombine.low %v18817_v35, %v9844_v25 }
 0x901   : > { %11092 = vst.msk [vmem:[#allocation3 + $0x4c] sm:$0xf] %vm1482_vm0, %v13502_v61  ;;  %11100 = vst.msk [vmem:[#allocation3 + $0x6c] sm:$0xf] %vm1482_vm0, %v13510_v39  ;;  %v10214_v54 = vcombine.high %v18817_v35, %v9844_v25  ;;  %v10009_v0 = vcombine.low %v18809_v59, %v9838_v2  ;;  %v10010_v37 = vcombine.high %v18809_v59, %v9838_v2 }
 0x902   : > { %v10408_v5 = vrot.slane %v10401_v24, %v14966_v38  ;;  %v10416_v28 = vrot.slane %v13338_v6, %v14966_v38  ;;  %v10424_v47 = vrot.slane %v10417_v33, %v14966_v38  ;;  %v10432_v50 = vrot.slane %v13339_v1, %v14966_v38 }
 0x903   : > { %v10221_v30 = vrot.slane %v10213_v19, %v14966_v38  ;;  %v10228_v45 = vrot.slane %v10214_v54, %v14966_v38  ;;  %v10017_v55 = vrot.slane %v10009_v0, %v14966_v38  ;;  %v10024_v35 = vrot.slane %v10010_v37, %v14966_v38 }
 0x904   : > { %v10433_v16 = vcombine.low %v10408_v5, %v10416_v28  ;;  %v10434_v51 = vcombine.high %v10408_v5, %v10416_v28  ;;  %v10449_v18 = vcombine.low %v10424_v47, %v10432_v50  ;;  %v10450_v59 = vcombine.high %v10424_v47, %v10432_v50 }
 0x905   : > { %v10229_v12 = vcombine.low %v18848_v10, %v10221_v30  ;;  %v10230_v49 = vcombine.high %v18848_v10, %v10221_v30  ;;  %v10245_v14 = vcombine.low %v18851_v42, %v10228_v45  ;;  %v10246_v22 = vcombine.high %v18851_v42, %v10228_v45 }
 0x906   : > { %v10441_v4 = vrot.slane %v10433_v16, %v14973_v23  ;;  %v10448_v34 = vrot.slane %v10434_v51, %v14973_v23  ;;  %v10457_v32 = vrot.slane %v10449_v18, %v14973_v23  ;;  %v10464_v17 = vrot.slane %v10450_v59, %v14973_v23 }
 0x907   : > { %v10237_v57 = vrot.slane %v10229_v12, %v14973_v23  ;;  %v10244_v31 = vrot.slane %v10230_v49, %v14973_v23  ;;  %v10253_v9 = vrot.slane %v10245_v14, %v14973_v23  ;;  %v10260_v10 = vrot.slane %v10246_v22, %v14973_v23 }
 0x908   : > { %v10465_v29 = vcombine.low %v10441_v4, %v10457_v32  ;;  %v10466_v27 = vcombine.high %v10441_v4, %v10457_v32  ;;  %v10467_v53 = vcombine.low %v10448_v34, %v10464_v17  ;;  %v10468_v42 = vcombine.high %v10448_v34, %v10464_v17  ;;  %v9848_v34 = vpop.permute.xlu0 %9847  ;;  %v9842_v32 = vpop.permute.xlu1 %9841 }
 0x909   : > { %v10741_v48 = vcombine.low %v10237_v57, %v10244_v31  ;;  %v13348_v13 = vcombine.high %v10237_v57, %v10244_v31  ;;  %v10757_v15 = vcombine.low %v10253_v9, %v10260_v10  ;;  %v13349_v40 = vcombine.high %v10253_v9, %v10260_v10 }
 0x90a   : > { %v13483_v20 = vpack.c.bf16 %v10465_v29, %v10465_v29  ;;  %v13491_v36 = vpack.c.bf16 %v10466_v27, %v10466_v27  ;;  %v13499_v58 = vpack.c.bf16 %v10467_v53, %v10467_v53  ;;  %v13507_v25 = vpack.c.bf16 %v10468_v42, %v10468_v42 }
 0x90b   : > { %v10748_v2 = vrot.slane %v10741_v48, %v14966_v38  ;;  %v10756_v43 = vrot.slane %v13348_v13, %v14966_v38  ;;  %v10764_v44 = vrot.slane %v10757_v15, %v14966_v38  ;;  %v10772_v61 = vrot.slane %v13349_v40, %v14966_v38 }
 0x90c   : > { %11073 = vst.msk [vmem:[#allocation3] sm:$0xf] %vm1482_vm0, %v13483_v20  ;;  %11081 = vst.msk [vmem:[#allocation3 + $0x20] sm:$0xf] %vm1482_vm0, %v13491_v36  ;;  %v10025_v39 = vcombine.low %v18854_v11, %v10017_v55  ;;  %v10026_v24 = vcombine.high %v18854_v11, %v10017_v55  ;;  %v10041_v6 = vcombine.low %v18857_v26, %v10024_v35 }
 0x90d   : > { %11089 = vst.msk [vmem:[#allocation3 + $0x40] sm:$0xf] %vm1482_vm0, %v13499_v58  ;;  %11097 = vst.msk [vmem:[#allocation3 + $0x60] sm:$0xf] %vm1482_vm0, %v13507_v25  ;;  %v10042_v33 = vcombine.high %v18857_v26, %v10024_v35  ;;  %v10773_v1 = vcombine.low %v10748_v2, %v10756_v43  ;;  %v10774_v19 = vcombine.high %v10748_v2, %v10756_v43 }
 0x90e   : > { %v10789_v54 = vcombine.low %v10764_v44, %v10772_v61  ;;  %v10790_v0 = vcombine.high %v10764_v44, %v10772_v61  ;;  %v10033_v37 = vrot.slane %v10025_v39, %v14973_v23  ;;  %v10040_v5 = vrot.slane %v10026_v24, %v14973_v23 }
 0x90f   : > { %v10049_v28 = vrot.slane %v10041_v6, %v14973_v23  ;;  %v10056_v47 = vrot.slane %v10042_v33, %v14973_v23  ;;  %v10781_v50 = vrot.slane %v10773_v1, %v14973_v23  ;;  %v10788_v11 = vrot.slane %v10774_v19, %v14973_v23 }
 0x910   : > { %v10797_v30 = vrot.slane %v10789_v54, %v14973_v23  ;;  %v10804_v26 = vrot.slane %v10790_v0, %v14973_v23  ;;  %v10537_v45 = vcombine.low %v10033_v37, %v10040_v5  ;;  %v13342_v55 = vcombine.high %v10033_v37, %v10040_v5 }
 0x911   : > { %v10553_v35 = vcombine.low %v10049_v28, %v10056_v47  ;;  %v13343_v16 = vcombine.high %v10049_v28, %v10056_v47  ;;  %v10349_v42 = vcombine.low %v18815_v56, %v9848_v34  ;;  %v10350_v48 = vcombine.high %v18815_v56, %v9848_v34 }
 0x912   : > { %v10805_v51 = vcombine.low %v10781_v50, %v10797_v30  ;;  %v10806_v18 = vcombine.high %v10781_v50, %v10797_v30  ;;  %v10807_v59 = vcombine.low %v10788_v11, %v10804_v26  ;;  %v10808_v12 = vcombine.high %v10788_v11, %v10804_v26 }
 0x913   : > { %v10544_v49 = vrot.slane %v10537_v45, %v14966_v38  ;;  %v10552_v14 = vrot.slane %v13342_v55, %v14966_v38  ;;  %v10560_v22 = vrot.slane %v10553_v35, %v14966_v38  ;;  %v10568_v4 = vrot.slane %v13343_v16, %v14966_v38 }
 0x914   : > { %v13488_v17 = vpack.c.bf16 %v10805_v51, %v10805_v51  ;;  %v13496_v57 = vpack.c.bf16 %v10806_v18, %v10806_v18  ;;  %v13504_v31 = vpack.c.bf16 %v10807_v59, %v10807_v59  ;;  %v13512_v9 = vpack.c.bf16 %v10808_v12, %v10808_v12 }
 0x915   : > { %v10569_v10 = vcombine.low %v10544_v49, %v10552_v14  ;;  %v10570_v29 = vcombine.high %v10544_v49, %v10552_v14  ;;  %v10585_v27 = vcombine.low %v10560_v22, %v10568_v4  ;;  %v10586_v53 = vcombine.high %v10560_v22, %v10568_v4 }
 0x916   : > { %11078 = vst.msk [vmem:[#allocation3 + $0x14] sm:$0xf] %vm1482_vm0, %v13488_v17  ;;  %11086 = vst.msk [vmem:[#allocation3 + $0x34] sm:$0xf] %vm1482_vm0, %v13496_v57  ;;  %v10145_v13 = vcombine.low %v18813_v46, %v9842_v32  ;;  %v10146_v15 = vcombine.high %v18813_v46, %v9842_v32  ;;  %v10357_v25 = vrot.slane %v10349_v42, %v14966_v38 }
 0x917   : > { %11094 = vst.msk [vmem:[#allocation3 + $0x54] sm:$0xf] %vm1482_vm0, %v13504_v31  ;;  %11102 = vst.msk [vmem:[#allocation3 + $0x74] sm:$0xf] %vm1482_vm0, %v13512_v9  ;;  %v10577_v40 = vrot.slane %v10569_v10, %v14973_v23  ;;  %v10584_v20 = vrot.slane %v10570_v29, %v14973_v23  ;;  %v10593_v36 = vrot.slane %v10585_v27, %v14973_v23 }
 0x918   : > { %v10600_v58 = vrot.slane %v10586_v53, %v14973_v23  ;;  %v10364_v2 = vrot.slane %v10350_v48, %v14966_v38  ;;  %v10153_v43 = vrot.slane %v10145_v13, %v14966_v38  ;;  %v10160_v56 = vrot.slane %v10146_v15, %v14966_v38 }
 0x919   : > { %v10601_v44 = vcombine.low %v10577_v40, %v10593_v36  ;;  %v10602_v61 = vcombine.high %v10577_v40, %v10593_v36  ;;  %v10365_v24 = vcombine.low %v18860_v3, %v10357_v25  ;;  %v10366_v6 = vcombine.high %v18860_v3, %v10357_v25 }
 0x91a   : > { %v10603_v39 = vcombine.low %v10584_v20, %v10600_v58  ;;  %v10604_v46 = vcombine.high %v10584_v20, %v10600_v58  ;;  %v10381_v33 = vcombine.low %v18863_v62, %v10364_v2  ;;  %v10382_v1 = vcombine.high %v18863_v62, %v10364_v2 }
 0x91b   : > { %v13485_v19 = vpack.c.bf16 %v10601_v44, %v10601_v44  ;;  %v13493_v54 = vpack.c.bf16 %v10602_v61, %v10602_v61  ;;  %v10373_v5 = vrot.slane %v10365_v24, %v14973_v23  ;;  %v10380_v28 = vrot.slane %v10366_v6, %v14973_v23 }
 0x91c   : > { %v13501_v0 = vpack.c.bf16 %v10603_v39, %v10603_v39  ;;  %v13509_v37 = vpack.c.bf16 %v10604_v46, %v10604_v46  ;;  %v10389_v47 = vrot.slane %v10381_v33, %v14973_v23  ;;  %v10396_v50 = vrot.slane %v10382_v1, %v14973_v23  ;;  %v9846_v46 = vpop.permute.xlu1 %9845 }
 0x91d   : > { %11075 = vst.msk [vmem:[#allocation3 + $0x8] sm:$0xf] %vm1482_vm0, %v13485_v19  ;;  %11083 = vst.msk [vmem:[#allocation3 + $0x28] sm:$0xf] %vm1482_vm0, %v13493_v54  ;;  %v10161_v3 = vcombine.low %v18868_v8, %v10153_v43  ;;  %v10162_v62 = vcombine.high %v18868_v8, %v10153_v43  ;;  %v10177_v11 = vcombine.low %v18871_v41, %v10160_v56 }
 0x91e   : > { %11091 = vst.msk [vmem:[#allocation3 + $0x48] sm:$0xf] %vm1482_vm0, %v13501_v0  ;;  %11099 = vst.msk [vmem:[#allocation3 + $0x68] sm:$0xf] %vm1482_vm0, %v13509_v37  ;;  %v10178_v30 = vcombine.high %v18871_v41, %v10160_v56  ;;  %v10877_v26 = vcombine.low %v10373_v5, %v10380_v28  ;;  %v13352_v45 = vcombine.high %v10373_v5, %v10380_v28 }
 0x91f   : > { %v10893_v55 = vcombine.low %v10389_v47, %v10396_v50  ;;  %v13353_v35 = vcombine.high %v10389_v47, %v10396_v50  ;;  %v10169_v16 = vrot.slane %v10161_v3, %v14973_v23  ;;  %v10176_v51 = vrot.slane %v10162_v62, %v14973_v23 }
 0x920   : > { %v10185_v18 = vrot.slane %v10177_v11, %v14973_v23  ;;  %v10192_v59 = vrot.slane %v10178_v30, %v14973_v23  ;;  %v10884_v12 = vrot.slane %v10877_v26, %v14966_v38  ;;  %v10892_v8 = vrot.slane %v13352_v45, %v14966_v38 }
 0x921   : > { %v10900_v49 = vrot.slane %v10893_v55, %v14966_v38  ;;  %v10908_v41 = vrot.slane %v13353_v35, %v14966_v38  ;;  %v10673_v14 = vcombine.low %v10169_v16, %v10176_v51  ;;  %v13346_v22 = vcombine.high %v10169_v16, %v10176_v51 }
 0x922   : > { %v10689_v4 = vcombine.low %v10185_v18, %v10192_v59  ;;  %v13347_v34 = vcombine.high %v10185_v18, %v10192_v59  ;;  %v10909_v32 = vcombine.low %v10884_v12, %v10892_v8  ;;  %v10910_v17 = vcombine.high %v10884_v12, %v10892_v8 }
 0x923   : > { %v10925_v57 = vcombine.low %v10900_v49, %v10908_v41  ;;  %v10926_v31 = vcombine.high %v10900_v49, %v10908_v41  ;;  %v10680_v9 = vrot.slane %v10673_v14, %v14966_v38  ;;  %v10688_v10 = vrot.slane %v13346_v22, %v14966_v38 }
 0x924   : > { %v10696_v29 = vrot.slane %v10689_v4, %v14966_v38  ;;  %v10704_v27 = vrot.slane %v13347_v34, %v14966_v38  ;;  %v10917_v53 = vrot.slane %v10909_v32, %v14973_v23  ;;  %v10924_v42 = vrot.slane %v10910_v17, %v14973_v23 }
 0x925   : > { %v10933_v48 = vrot.slane %v10925_v57, %v14973_v23  ;;  %v10940_v13 = vrot.slane %v10926_v31, %v14973_v23  ;;  %v10705_v15 = vcombine.low %v10680_v9, %v10688_v10  ;;  %v10706_v40 = vcombine.high %v10680_v9, %v10688_v10 }
 0x926   : > { %v10721_v20 = vcombine.low %v10696_v29, %v10704_v27  ;;  %v10722_v36 = vcombine.high %v10696_v29, %v10704_v27  ;;  %v10281_v5 = vcombine.low %v18819_v7, %v9846_v46  ;;  %v10282_v28 = vcombine.high %v18819_v7, %v9846_v46 }
 0x927   : > { %v10941_v58 = vcombine.low %v10917_v53, %v10933_v48  ;;  %v10942_v25 = vcombine.high %v10917_v53, %v10933_v48  ;;  %v10943_v2 = vcombine.low %v10924_v42, %v10940_v13  ;;  %v10944_v43 = vcombine.high %v10924_v42, %v10940_v13 }
 0x928   : > { %v10713_v56 = vrot.slane %v10705_v15, %v14973_v23  ;;  %v10720_v44 = vrot.slane %v10706_v40, %v14973_v23  ;;  %v10729_v61 = vrot.slane %v10721_v20, %v14973_v23  ;;  %v10736_v39 = vrot.slane %v10722_v36, %v14973_v23 }
 0x929   : > { %v13490_v24 = vpack.c.bf16 %v10941_v58, %v10941_v58  ;;  %v13498_v6 = vpack.c.bf16 %v10942_v25, %v10942_v25  ;;  %v13506_v33 = vpack.c.bf16 %v10943_v2, %v10943_v2  ;;  %v13514_v1 = vpack.c.bf16 %v10944_v43, %v10944_v43 }
 0x92a   : > { %v10737_v19 = vcombine.low %v10713_v56, %v10729_v61  ;;  %v10738_v54 = vcombine.high %v10713_v56, %v10729_v61  ;;  %v10739_v0 = vcombine.low %v10720_v44, %v10736_v39  ;;  %v10740_v37 = vcombine.high %v10720_v44, %v10736_v39 }
 0x92b   : > { %11080 = vst.msk [vmem:[#allocation3 + $0x1c] sm:$0xf] %vm1482_vm0, %v13490_v24  ;;  %11088 = vst.msk [vmem:[#allocation3 + $0x3c] sm:$0xf] %vm1482_vm0, %v13498_v6  ;;  %v10273_v11 = vrot.slane %v10265_v60, %v14966_v38  ;;  %v10280_v30 = vrot.slane %v10266_v63, %v14966_v38  ;;  %v10289_v26 = vrot.slane %v10281_v5, %v14966_v38 }
 0x92c   : > { %11096 = vst.msk [vmem:[#allocation3 + $0x5c] sm:$0xf] %vm1482_vm0, %v13506_v33  ;;  %11104 = vst.msk [vmem:[#allocation3 + $0x7c] sm:$0xf] %vm1482_vm0, %v13514_v1  ;;  %v13487_v47 = vpack.c.bf16 %v10737_v19, %v10737_v19  ;;  %v13495_v50 = vpack.c.bf16 %v10738_v54, %v10738_v54  ;;  %v13503_v3 = vpack.c.bf16 %v10739_v0, %v10739_v0 }
 0x92d   : > { %v13511_v62 = vpack.c.bf16 %v10740_v37, %v10740_v37  ;;  %v10296_v45 = vrot.slane %v10282_v28, %v14966_v38  ;;  %v10297_v7 = vcombine.low %v10273_v11, %v10289_v26  ;;  %v10298_v55 = vcombine.high %v10273_v11, %v10289_v26 }
 0x92e   : > { %11077 = vst.msk [vmem:[#allocation3 + $0x10] sm:$0xf] %vm1482_vm0, %v13487_v47  ;;  %11085 = vst.msk [vmem:[#allocation3 + $0x30] sm:$0xf] %vm1482_vm0, %v13495_v50 }
 0x92f   : > { %11093 = vst.msk [vmem:[#allocation3 + $0x50] sm:$0xf] %vm1482_vm0, %v13503_v3  ;;  %11101 = vst.msk [vmem:[#allocation3 + $0x70] sm:$0xf] %vm1482_vm0, %v13511_v62  ;;  %v10313_v60 = vcombine.low %v10280_v30, %v10296_v45  ;;  %v10314_v35 = vcombine.high %v10280_v30, %v10296_v45  ;;  %v10305_v16 = vrot.slane %v10297_v7, %v14973_v23 }
 0x930   : > { %v10312_v21 = vrot.slane %v10298_v55, %v14973_v23 }
 0x931   : > { %v10321_v52 = vrot.slane %v10313_v60, %v14973_v23  ;;  %v10328_v63 = vrot.slane %v10314_v35, %v14973_v23 }
 0x932   : > { %v10809_v51 = vcombine.low %v10305_v16, %v10312_v21  ;;  %v13350_v18 = vcombine.high %v10305_v16, %v10312_v21 }
 0x933   : > { %v10825_v59 = vcombine.low %v10321_v52, %v10328_v63  ;;  %v13351_v12 = vcombine.high %v10321_v52, %v10328_v63 }
 0x934   : > { %v10816_v8 = vrot.slane %v10809_v51, %v14966_v38  ;;  %v10824_v49 = vrot.slane %v13350_v18, %v14966_v38 }
 0x935   : > { %v10832_v41 = vrot.slane %v10825_v59, %v14966_v38  ;;  %v10840_v14 = vrot.slane %v13351_v12, %v14966_v38 }
 0x936   : > { %v10841_v22 = vcombine.low %v10816_v8, %v10824_v49  ;;  %v10842_v4 = vcombine.high %v10816_v8, %v10824_v49 }
 0x937   : > { %v10857_v34 = vcombine.low %v10832_v41, %v10840_v14  ;;  %v10858_v32 = vcombine.high %v10832_v41, %v10840_v14 }
 0x938   : > { %v10849_v17 = vrot.slane %v10841_v22, %v14973_v23  ;;  %v10856_v57 = vrot.slane %v10842_v4, %v14973_v23 }
 0x939   : > { %v10865_v31 = vrot.slane %v10857_v34, %v14973_v23  ;;  %v10872_v9 = vrot.slane %v10858_v32, %v14973_v23 }
 0x93b   : > { %v10873_v10 = vcombine.low %v10849_v17, %v10865_v31  ;;  %v10874_v29 = vcombine.high %v10849_v17, %v10865_v31  ;;  %v10875_v27 = vcombine.low %v10856_v57, %v10872_v9  ;;  %v10876_v53 = vcombine.high %v10856_v57, %v10872_v9 }
 0x93d   : > { %v13489_v42 = vpack.c.bf16 %v10873_v10, %v10873_v10  ;;  %v13497_v48 = vpack.c.bf16 %v10874_v29, %v10874_v29  ;;  %v13505_v13 = vpack.c.bf16 %v10875_v27, %v10875_v27  ;;  %v13513_v38 = vpack.c.bf16 %v10876_v53, %v10876_v53 }
 0x93f   : > { %11079 = vst.msk [vmem:[#allocation3 + $0x18] sm:$0xf] %vm1482_vm0, %v13489_v42  ;;  %11087 = vst.msk [vmem:[#allocation3 + $0x38] sm:$0xf] %vm1482_vm0, %v13497_v48 }
 0x940   : > { %11095 = vst.msk [vmem:[#allocation3 + $0x58] sm:$0xf] %vm1482_vm0, %v13505_v13  ;;  %11103 = vst.msk [vmem:[#allocation3 + $0x78] sm:$0xf] %vm1482_vm0, %v13513_v38 }
 0x941 PF: > { %v11105_v23 = vld [vmem:[%s14790_s11] sm:$0xff]  ;;  %v11107_v15 = vld [vmem:[%s14790_s11 + $0x10] sm:$0xff]  ;;  %v11106_v40 = vld [vmem:[%s14790_s11 + $0x8] sm:$0xff]  ;;  %s20760_s21 = sld [smem:[#allocation239_spill]]  ;;  %s14508_s9 = smov 96   ;;  %vm11891_vm2 = vcmask 261120  }
 0x942   : > { %11111 = vadd.xlane.f32.xlu0 %v11105_v23  ;;  %11115 = vadd.xlane.f32.xlu1 %v11107_v15  ;;  %v11108_v20 = vld [vmem:[%s14790_s11 + $0x18] sm:$0xff]  ;;  %v14076_v37 = vld [vmem:[#allocation9 + $0x30] sm:$0xff]   ;;  %v14077_v5 = vld [vmem:[#allocation9 + $0x28] sm:$0xff]   ;;  %s20761_s8 = sld [smem:[#allocation240_spill]]  ;;  %s14509_s19 = smov 64   ;;  %vm12280_vm3 = vcmask 523264  }
 0x943   : > { %v14075_v0 = vld [vmem:[#allocation9 + $0x38] sm:$0xff]   ;;  %v14078_v28 = vld [vmem:[#allocation9 + $0x20] sm:$0xff]   ;;  %v14080_v50 = vld [vmem:[#allocation9 + $0x10] sm:$0xff]   ;;  %s14510_s27 = smov 32   ;;  %s20762_s12 = sld [smem:[#allocation20_spill]] }
 0x944   : > { %13600 = vmatprep.subr.bf16.mxu0 %v14075_v0  ;;  %v14079_v47 = vld [vmem:[#allocation9 + $0x18] sm:$0xff]   ;;  %v14081_v3 = vld [vmem:[#allocation9 + $0x8] sm:$0xff]   ;;  %v14082_v62 = vld [vmem:[#allocation9] sm:$0xff]   ;;  %s20763_s2 = sld [smem:[#allocation21_spill]]  ;;  %s13141_s10 = sshll.u32 %s14810_s26, 4  ;;  %s19459_s10 = int_to_ptr.vmem [resolvable:$true] %s13141_s10 }
 0x945   : > { %13601 = vmatpush3.bf16.msra.mxu0 %v14075_v0 }
 0x946   : > { %11113 = vadd.xlane.f32.xlu0 %v11106_v40  ;;  %11117 = vadd.xlane.f32.xlu1 %v11108_v20 }
 0x947   : > { %13602 = vmatprep.subr.bf16.mxu0 %v14076_v37  ;;  %v13386_v59 = vld [vmem:[%s20760_s21] ss:$0 sm:$0xff]  ;;  %s20765_s21 = sld [smem:[#allocation244_spill]] }
 0x948   : > { %v13387_v14 = vld [vmem:[%s20761_s8] ss:$0 sm:$0xff]  ;;  %s13126_s8 = scalar_lea.sflag [#allocation6], %s14786_s3 }
 0x949   : > { %13603 = vmatpush3.bf16.msra.mxu0 %v14076_v37  ;;  %s13461_s29 = sshll.u32 %s20762_s12, 2 }
 0x94a   : > { %13604 = vmatprep.subr.bf16.mxu0 %v14077_v5  ;;  %s13462_s20 = sshll.u32 %s20763_s2, 3 }
 0x94b   : > { %s13138_s30 = sadd.s32 %s13462_s20, %s13461_s29 }
 0x94c   : > { %s13463_s4 = sshll.u32 %s13138_s30, 7 }
 0x94d   : > { %13605 = vmatpush3.bf16.msra.mxu0 %v14077_v5  ;;  %s20766_s6 = smov %s20765_s21  ;;  %s19466_s13 = scalar_lea.hbm %s20765_s21, %s13463_s4 }
 0x94e   : > { %13606 = vmatprep.subr.bf16.mxu0 %v14078_v28 }
 0x951   : > { %13607 = vmatpush3.bf16.msra.mxu0 %v14078_v28 }
 0x952   : > { %13608 = vmatprep.subr.bf16.mxu0 %v14079_v47 }
 0x955   : > { %13609 = vmatpush3.bf16.msra.mxu0 %v14079_v47 }
 0x956   : > { %13610 = vmatprep.subr.bf16.mxu0 %v14080_v50 }
 0x959   : > { %13611 = vmatpush3.bf16.msra.mxu0 %v14080_v50 }
 0x95a   : > { %13612 = vmatprep.subr.bf16.mxu0 %v14081_v3 }
 0x95d   : > { %13613 = vmatpush3.bf16.msra.mxu0 %v14081_v3 }
 0x95e   : > { %13614 = vmatprep.subr.bf16.mxu0 %v14082_v62 }
 0x961   : > { %13615 = vmatpush3.bf16.msra.mxu0 %v14082_v62 }
 0x9cb   : > { %v11112_v36 = vpop.xlane.xlu0 %11111  ;;  %v11116_v58 = vpop.xlane.xlu1 %11115 }
 0x9cc   : > { %v11120_v25 = vmul.f32 0.0078125, %v11112_v36  ;;  %v11122_v2 = vmul.f32 0.0078125, %v11116_v58  ;;  %v11336_v36 = vlaneseq }
 0x9ce   : > { %v11124_v43 = vsub.f32 %v11105_v23, %v11120_v25  ;;  %v19073_v56 = vsub.f32 %v11107_v15, %v11122_v2  ;;  %v14512_v2 = vmov 1934713408  }
 0x9cf   : > { %v11114_v44 = vpop.xlane.xlu0 %11113  ;;  %v11118_v61 = vpop.xlane.xlu1 %11117 }
 0x9d0   : > { %v11121_v39 = vmul.f32 0.0078125, %v11114_v44  ;;  %v11128_v46 = vmul.f32 %v11124_v43, %v11124_v43  ;;  %v11123_v24 = vmul.f32 0.0078125, %v11118_v61  ;;  %v11130_v1 = vmul.f32 %v19073_v56, %v19073_v56 }
 0x9d1   : > { %v11337_v44 = vshrl.u32 %v11336_v36, 7 }
 0x9d2   : > { %v11125_v6 = vsub.f32 %v11106_v40, %v11121_v39  ;;  %11132 = vadd.xlane.f32.xlu0 %v11128_v46  ;;  %v11127_v33 = vsub.f32 %v11108_v20, %v11123_v24  ;;  %v14511_v40 = vmov 1983009808  }
 0x9d3   : > { %v11334_v20 = vunpack.c.l.s4 %v14511_v40 }
 0x9d4   : > { %v11129_v19 = vmul.f32 %v11125_v6, %v11125_v6  ;;  %v11131_v54 = vmul.f32 %v11127_v33, %v11127_v33 }
 0x9d6   : > { %11136 = vadd.xlane.f32.xlu0 %v11130_v1  ;;  %11134 = vadd.xlane.f32.xlu1 %v11129_v19 }
 0x9da   : > { %11138 = vadd.xlane.f32.xlu1 %v11131_v54 }
 0xa5b   : > { %v11133_v11 = vpop.xlane.xlu0 %11132 }
 0xa5c   : > { %v11140_v30 = vmul.f32 0.0078125, %v11133_v11 }
 0xa5e   : > { %v11144_v26 = vadd.f32 1e-05, %v11140_v30 }
 0xa5f   : > { %v11135_v45 = vpop.xlane.xlu1 %11134  ;;  %v11137_v7 = vpop.xlane.xlu0 %11136 }
 0xa60   : > { %14115 = vrsqrt.f32 %v11144_v26  ;;  %v11141_v55 = vmul.f32 0.0078125, %v11135_v45  ;;  %v11142_v60 = vmul.f32 0.0078125, %v11137_v7 }
 0xa62   : > { %v11145_v35 = vadd.f32 1e-05, %v11141_v55  ;;  %v11146_v16 = vadd.f32 1e-05, %v11142_v60 }
 0xa63   : > { %v11139_v21 = vpop.xlane.xlu1 %11138 }
 0xa64   : > { %14117 = vrsqrt.f32 %v11145_v35  ;;  %v11143_v52 = vmul.f32 0.0078125, %v11139_v21 }
 0xa65   : > { %14119 = vrsqrt.f32 %v11146_v16 }
 0xa66   : > { %v11147_v63 = vadd.f32 1e-05, %v11143_v52 }
 0xa68   : > { %14121 = vrsqrt.f32 %v11147_v63 }
 0xa6d   : > { %v14116_v51 = vpop.eup %14115 }
 0xa6e   : > { %v11152_v18 = vmul.f32 %v14116_v51, %v11124_v43  ;;  %v11366_v43 = vunpack.c.l.s4 %v14512_v2 }
 0xa70   : > { %v11162_v41 = vmul.f32 %v13386_v59, %v11152_v18  ;;  %v11367_v46 = vunpack.c.0.s8 %v11366_v43 }
 0xa71   : > { %v14118_v12 = vpop.eup %14117 }
 0xa72   : > { %v14120_v8 = vpop.eup %14119  ;;  %v11153_v49 = vmul.f32 %v14118_v12, %v11125_v6  ;;  %v11172_v32 = vadd.f32 %v13387_v14, %v11162_v41  ;;  %v19093_v47 = vsub.s32 %v11367_v46, %v11337_v44 }
 0xa73   : > { %v11154_v22 = vmul.f32 %v14120_v8, %v19073_v56  ;;  %v11335_v56 = vunpack.c.0.s8 %v11334_v20 }
 0xa74   : > { %v11163_v4 = vmul.f32 %v13386_v59, %v11153_v49 }
 0xa75   : > { %v14122_v34 = vpop.eup %14121  ;;  %v11164_v31 = vmul.f32 %v13386_v59, %v11154_v22  ;;  %v19091_v24 = vsub.s32 %v11335_v56, %v11337_v44 }
 0xa76   : > { %v11173_v17 = vadd.f32 %v13387_v14, %v11163_v4  ;;  %v11155_v57 = vmul.f32 %v14122_v34, %v11127_v33 }
 0xa77   : > { %v11174_v29 = vadd.f32 %v13387_v14, %v11164_v31 }
 0xa78   : > { %v11176_v9 = vpack.c.bf16 %v11173_v17, %v11172_v32  ;;  %v11165_v10 = vmul.f32 %v13386_v59, %v11155_v57 }
 0xa7a   : > { %13616 = vmatprep.mubr.bf16.mxu0 %v11176_v9  ;;  %v11175_v27 = vadd.f32 %v13387_v14, %v11165_v10 }
 0xa7c   : > { %v11177_v53 = vpack.c.bf16 %v11175_v27, %v11174_v29 }
 0xa7e   : > { %13617 = vmatmul.mubr.bf16.vlgmr.msra.gmra.mxu0 %v11177_v53 }
 0xb3e   : > { %v13618_v42 = vpop.f32.mrf.mxu0 }
 0xb3f   : > { %11299 = vrot.lane.b32.xlu0 %v13618_v42, %s14508_s9 }
 0xb40   : > { %v11276_v48 = vpop.f32.mrf.mxu0 }
 0xb41   : > { %11307 = vrot.lane.b32.xlu1 %v11276_v48, %s14509_s19 }
 0xb42   : > { %v13619_v13 = vpop.f32.mrf.mxu0 }
 0xb43   : > { %11311 = vrot.lane.b32.xlu0 %v13618_v42, %s14509_s19 }
 0xb44   : > { %v19084_v38 = vpop.f32.mrf.mxu0 }
 0xb45   : > { %11301 = vrot.lane.b32.xlu1 %v13619_v13, %s14508_s9 }
 0xb47   : > { %11295 = vrot.lane.b32.xlu0 %v11276_v48, %s14508_s9 }
 0xb49   : > { %11313 = vrot.lane.b32.xlu1 %v13619_v13, %s14509_s19 }
 0xb4b   : > { %11319 = vrot.lane.b32.xlu0 %v11276_v48, %s14510_s27 }
 0xb4d   : > { %11297 = vrot.lane.b32.xlu1 %v19084_v38, %s14508_s9  ;;  %s14357_s9 = scalar_lea.vmem %s19459_s10, 512 }
 0xb4e   : > { %p14358_p6 = scmp.ne.s32.totalorder %s19459_s10, %s14357_s9 }
 0xb4f   : > { %11323 = vrot.lane.b32.xlu0 %v13618_v42, %s14510_s27 }
 0xb50   : > { %p14359_p3 = pnand %p14358_p6, %p14711_p5 }
 0xb51   : > { %11309 = vrot.lane.b32.xlu1 %v19084_v38, %s14509_s19  ;;  %s14513_s19 = smov [#allocation13]  }
 0xb52   : > { %p14360_p13 = pneg %p14359_p3 }
 0xb55   : > { %11321 = vrot.lane.b32.xlu1 %v19084_v38, %s14510_s27 }
 0xb59   : > { %11325 = vrot.lane.b32.xlu1 %v13619_v13, %s14510_s27  ;;  %s14361_s27 = sshll.u32 %s14513_s19, 4  ;;  %s14362_s27 = int_to_ptr.vmem [resolvable:$false] %s14361_s27 }
 0xb5a   : > { %s14363_s12 = scalar_lea.vmem %s14362_s27, 1024  ;;  %p14364_p12 = scmp.lt.s32.totalorder %s19459_s10, %s14362_s27 }
 0xb5b   : > { %p14365_p7 = scmp.lt.s32.totalorder %s14363_s12, %s14357_s9 }
 0xb5d   : > { %p14366_p9 = por %p14365_p7, %p14364_p12 }
 0xb5f   : > { %p14367_p2 = pnand %p14366_p9, %p14360_p13 }
 0xbb1   : > { %v11300_v23 = vpop.permute.xlu0 %11299 }
 0xbb3   : > { %v11308_v15 = vpop.permute.xlu1 %11307 }
 0xbb4   : > { %v11331_v6 = vcombine.low %v11276_v48, %v11308_v15  ;;  %v11332_v33 = vcombine.high %v11276_v48, %v11308_v15 }
 0xbb5   : > { %v11312_v58 = vpop.permute.xlu0 %11311 }
 0xbb6   : > { %v11467_v1 = vcombine.low %v13618_v42, %v11312_v58  ;;  %v11468_v19 = vcombine.high %v13618_v42, %v11312_v58  ;;  %v11339_v3 = vrot.slane %v11331_v6, %v19091_v24  ;;  %v11346_v62 = vrot.slane %v11332_v33, %v19091_v24 }
 0xbb7   : > { %v19089_v25 = vpop.permute.xlu1 %11301 }
 0xbb8   : > { %v11475_v26 = vrot.slane %v11467_v1, %v19091_v24  ;;  %v11482_v45 = vrot.slane %v11468_v19, %v19091_v24 }
 0xbb9   : > { %v11296_v61 = vpop.permute.xlu0 %11295 }
 0xbbb   : > { %v11314_v39 = vpop.permute.xlu1 %11313 }
 0xbbc   : > { %v11535_v5 = vcombine.low %v13619_v13, %v11314_v39  ;;  %v11536_v28 = vcombine.high %v13619_v13, %v11314_v39 }
 0xbbd   : > { %v11320_v54 = vpop.permute.xlu0 %11319 }
 0xbbe   : > { %v11347_v0 = vcombine.low %v11296_v61, %v11320_v54  ;;  %v11348_v37 = vcombine.high %v11296_v61, %v11320_v54  ;;  %v19102_v21 = vrot.slane %v11535_v5, %v19091_v24  ;;  %v19105_v52 = vrot.slane %v11536_v28, %v19091_v24 }
 0xbbf   : > { %v11298_v50 = vpop.permute.xlu1 %11297 }
 0xbc0   : > { %v11355_v11 = vrot.slane %v11347_v0, %v19091_v24  ;;  %v11362_v30 = vrot.slane %v11348_v37, %v19091_v24 }
 0xbc1   : > { %v11324_v7 = vpop.permute.xlu0 %11323 }
 0xbc2   : > { %v11363_v55 = vcombine.low %v11339_v3, %v11355_v11  ;;  %v11364_v60 = vcombine.high %v11339_v3, %v11355_v11  ;;  %v11379_v35 = vcombine.low %v11346_v62, %v11362_v30  ;;  %v11380_v16 = vcombine.high %v11346_v62, %v11362_v30 }
 0xbc3   : > { %v11483_v63 = vcombine.low %v11300_v23, %v11324_v7  ;;  %v11484_v51 = vcombine.high %v11300_v23, %v11324_v7  ;;  %v11310_v18 = vpop.permute.xlu1 %11309 }
 0xbc4   : > { %v11371_v59 = vrot.slane %v11363_v55, %v19093_v47  ;;  %v11378_v12 = vrot.slane %v11364_v60, %v19093_v47  ;;  %v11387_v8 = vrot.slane %v11379_v35, %v19093_v47  ;;  %v11394_v49 = vrot.slane %v11380_v16, %v19093_v47 }
 0xbc5   : > { %v11491_v41 = vrot.slane %v11483_v63, %v19091_v24  ;;  %v11498_v14 = vrot.slane %v11484_v51, %v19091_v24  ;;  %v11399_v22 = vcombine.low %v19084_v38, %v11310_v18  ;;  %v11400_v4 = vcombine.high %v19084_v38, %v11310_v18 }
 0xbc6   : > { %v11603_v34 = vcombine.low %v11371_v59, %v11378_v12  ;;  %v13396_v32 = vcombine.high %v11371_v59, %v11378_v12  ;;  %v11619_v17 = vcombine.low %v11387_v8, %v11394_v49  ;;  %v13397_v57 = vcombine.high %v11387_v8, %v11394_v49 }
 0xbc7   : > { %v11499_v31 = vcombine.low %v11475_v26, %v11491_v41  ;;  %v11500_v9 = vcombine.high %v11475_v26, %v11491_v41  ;;  %v11515_v10 = vcombine.low %v11482_v45, %v11498_v14  ;;  %v11516_v29 = vcombine.high %v11482_v45, %v11498_v14  ;;  %v11322_v27 = vpop.permute.xlu1 %11321 }
 0xbc8   : > { %v11407_v53 = vrot.slane %v11399_v22, %v19091_v24  ;;  %v11414_v42 = vrot.slane %v11400_v4, %v19091_v24  ;;  %v11415_v48 = vcombine.low %v11298_v50, %v11322_v27  ;;  %v11416_v13 = vcombine.high %v11298_v50, %v11322_v27 }
 0xbc9   : > { %v11507_v23 = vrot.slane %v11499_v31, %v19093_v47  ;;  %v11514_v15 = vrot.slane %v11500_v9, %v19093_v47  ;;  %v11523_v38 = vrot.slane %v11515_v10, %v19093_v47  ;;  %v11530_v40 = vrot.slane %v11516_v29, %v19093_v47 }
 0xbca   : > { %v11423_v20 = vrot.slane %v11415_v48, %v19091_v24  ;;  %v11430_v36 = vrot.slane %v11416_v13, %v19091_v24  ;;  %v19124_v58 = vrot.slane %v11603_v34, %v19091_v24  ;;  %v19127_v2 = vrot.slane %v13396_v32, %v19091_v24 }
 0xbcb   : > { %v11739_v43 = vcombine.low %v11507_v23, %v11514_v15  ;;  %v13400_v56 = vcombine.high %v11507_v23, %v11514_v15  ;;  %v11755_v44 = vcombine.low %v11523_v38, %v11530_v40  ;;  %v13401_v61 = vcombine.high %v11523_v38, %v11530_v40  ;;  %v11326_v39 = vpop.permute.xlu1 %11325 }
 0xbcc   : > { %v11431_v46 = vcombine.low %v11407_v53, %v11423_v20  ;;  %v11432_v6 = vcombine.high %v11407_v53, %v11423_v20  ;;  %v11447_v33 = vcombine.low %v11414_v42, %v11430_v36  ;;  %v11448_v1 = vcombine.high %v11414_v42, %v11430_v36 }
 0xbcd   : > { %v11551_v19 = vcombine.low %v19089_v25, %v11326_v39  ;;  %v11552_v54 = vcombine.high %v19089_v25, %v11326_v39  ;;  %v19132_v0 = vrot.slane %v11619_v17, %v19091_v24  ;;  %v19135_v37 = vrot.slane %v13397_v57, %v19091_v24 }
 0xbce   : > { %v11439_v5 = vrot.slane %v11431_v46, %v19093_v47  ;;  %v11446_v28 = vrot.slane %v11432_v6, %v19093_v47  ;;  %v11455_v50 = vrot.slane %v11447_v33, %v19093_v47  ;;  %v11462_v3 = vrot.slane %v11448_v1, %v19093_v47 }
 0xbcf   : > { %v11559_v62 = vrot.slane %v11551_v19, %v19091_v24  ;;  %v11566_v11 = vrot.slane %v11552_v54, %v19091_v24  ;;  %v11635_v25 = vcombine.low %v19124_v58, %v19127_v2  ;;  %v11651_v30 = vcombine.low %v19132_v0, %v19135_v37 }
 0xbd0   : > { %v11671_v26 = vcombine.low %v11439_v5, %v11446_v28  ;;  %v13398_v45 = vcombine.high %v11439_v5, %v11446_v28  ;;  %v11687_v7 = vcombine.low %v11455_v50, %v11462_v3  ;;  %v13399_v55 = vcombine.high %v11455_v50, %v11462_v3 }
 0xbd1   : > { %v11567_v60 = vcombine.low %v19102_v21, %v11559_v62  ;;  %v11568_v35 = vcombine.high %v19102_v21, %v11559_v62  ;;  %v11583_v16 = vcombine.low %v19105_v52, %v11566_v11  ;;  %v11584_v63 = vcombine.high %v19105_v52, %v11566_v11 }
 0xbd2   : > { %v11643_v51 = vrot.slane %v11635_v25, %v19093_v47  ;;  %v11659_v18 = vrot.slane %v11651_v30, %v19093_v47  ;;  %v19154_v59 = vrot.slane %v11739_v43, %v19091_v24  ;;  %v19157_v12 = vrot.slane %v13400_v56, %v19091_v24 }
 0xbd3   : > { %v11575_v8 = vrot.slane %v11567_v60, %v19093_v47  ;;  %v11582_v49 = vrot.slane %v11568_v35, %v19093_v47  ;;  %v11591_v21 = vrot.slane %v11583_v16, %v19093_v47  ;;  %v11598_v41 = vrot.slane %v11584_v63, %v19093_v47 }
 0xbd4   : > { %v19163_v14 = vcombine.low %v11643_v51, %v11659_v18  ;;  %v19166_v52 = vrot.slane %v11755_v44, %v19091_v24  ;;  %v19169_v22 = vrot.slane %v13401_v61, %v19091_v24  ;;  %v11771_v4 = vcombine.low %v19154_v59, %v19157_v12 }
 0xbd5   : > { %v11807_v34 = vcombine.low %v11575_v8, %v11582_v49  ;;  %v13402_v32 = vcombine.high %v11575_v8, %v11582_v49  ;;  %v11823_v17 = vcombine.low %v11591_v21, %v11598_v41  ;;  %v13403_v57 = vcombine.high %v11591_v21, %v11598_v41 }
 0xbd6   : > { %v11875_v31 = vmul.f32 %v19163_v14, %v19163_v14  ;;  %v11779_v9 = vrot.slane %v11771_v4, %v19093_v47  ;;  %v11787_v10 = vcombine.low %v19166_v52, %v19169_v22  ;;  %v11678_v29 = vrot.slane %v11671_v26, %v19091_v24 }
 0xbd7   : > { %v11686_v27 = vrot.slane %v13398_v45, %v19091_v24  ;;  %v11694_v53 = vrot.slane %v11687_v7, %v19091_v24  ;;  %v11702_v42 = vrot.slane %v13399_v55, %v19091_v24  ;;  %v11814_v48 = vrot.slane %v11807_v34, %v19091_v24 }
 0xbd8   : > { %v11892_v13 = vsel %vm11891_vm2, %v11875_v31, 0.0  ;;  %v11795_v23 = vrot.slane %v11787_v10, %v19093_v47  ;;  %v11822_v15 = vrot.slane %v13402_v32, %v19091_v24  ;;  %v11830_v38 = vrot.slane %v11823_v17, %v19091_v24 }
 0xbd9   : > { %11893 = vadd.xlane.f32.xlu0 %v11892_v13  ;;  %v11703_v40 = vcombine.low %v11678_v29, %v11686_v27  ;;  %v11719_v20 = vcombine.low %v11694_v53, %v11702_v42  ;;  %v11838_v36 = vrot.slane %v13403_v57, %v19091_v24  ;;  %v11704_v44 = vcombine.high %v11678_v29, %v11686_v27 }
 0xbda   : > { %v19188_v43 = vcombine.low %v11779_v9, %v11795_v23  ;;  %v11839_v56 = vcombine.low %v11814_v48, %v11822_v15  ;;  %v11720_v6 = vcombine.high %v11694_v53, %v11702_v42  ;;  %v19201_v28 = vcombine.high %v11643_v51, %v11659_v18 }
 0xbdb   : > { %v11711_v61 = vrot.slane %v11703_v40, %v19093_v47  ;;  %v11727_v39 = vrot.slane %v11719_v20, %v19093_v47  ;;  %v11855_v46 = vcombine.low %v11830_v38, %v11838_v36  ;;  %v11718_v62 = vrot.slane %v11704_v44, %v19093_v47 }
 0xbdc   : > { %v11877_v33 = vmul.f32 %v19188_v43, %v19188_v43  ;;  %v11847_v1 = vrot.slane %v11839_v56, %v19093_v47  ;;  %v11734_v11 = vrot.slane %v11720_v6, %v19093_v47  ;;  %v11840_v30 = vcombine.high %v11814_v48, %v11822_v15  ;;  %v14084_v6 = vld [vmem:[#allocation2] sm:$0xff]  }
 0xbdd   : > { %v19195_v19 = vcombine.low %v11711_v61, %v11727_v39  ;;  %v19197_v54 = vcombine.high %v11711_v61, %v11727_v39  ;;  %v11863_v24 = vrot.slane %v11855_v46, %v19093_v47  ;;  %v11856_v55 = vcombine.high %v11830_v38, %v11838_v36  ;;  %v14083_v39 = vld [vmem:[#allocation2 + $0x8] sm:$0xff]  }
 0xbde   : > { %v11898_v5 = vsel %vm11891_vm2, %v11877_v33, 0.0  ;;  %v11879_v60 = vmul.f32 %v19201_v28, %v19201_v28  ;;  %v11636_v35 = vcombine.high %v19124_v58, %v19127_v2  ;;  %v19221_v63 = vcombine.low %v11718_v62, %v11734_v11  ;;  %13620 = vmatprep.subr.bf16.mxu1 %v14083_v39  ;;  %v14085_v33 = vld [vmem:[#allocation2 + $0x18] sm:$0xff]  }
 0xbdf   : > { %11899 = vadd.xlane.f32.xlu0 %v11898_v5  ;;  %v11876_v50 = vmul.f32 %v19195_v19, %v19195_v19  ;;  %v19205_v3 = vcombine.low %v11847_v1, %v11863_v24  ;;  %v11880_v25 = vmul.f32 %v19197_v54, %v19197_v54  ;;  %v19214_v7 = vcombine.high %v11847_v1, %v11863_v24 }
 0xbe0   : > { %v19223_v51 = vcombine.high %v11779_v9, %v11795_v23  ;;  %v11652_v18 = vcombine.high %v19132_v0, %v19135_v37  ;;  %v11854_v8 = vrot.slane %v11840_v30, %v19093_v47  ;;  %v11650_v49 = vrot.slane %v11636_v35, %v19093_v47  ;;  %13621 = vmatpush3.bf16.msra.mxu1 %v14083_v39 }
 0xbe1   : > { %v11895_v26 = vsel %vm11891_vm2, %v11876_v50, 0.0  ;;  %v11878_v45 = vmul.f32 %v19205_v3, %v19205_v3  ;;  %v11772_v21 = vcombine.high %v19154_v59, %v19157_v12  ;;  %v11788_v58 = vcombine.high %v19166_v52, %v19169_v22  ;;  %13622 = vmatprep.subr.bf16.mxu1 %v14084_v6 }
 0xbe2   : > { %11896 = vadd.xlane.f32.xlu1 %v11895_v26  ;;  %v11907_v2 = vsel %vm11891_vm2, %v11880_v25, 0.0  ;;  %v11882_v41 = vmul.f32 %v19214_v7, %v19214_v7  ;;  %v11870_v4 = vrot.slane %v11856_v55, %v19093_v47  ;;  %v11666_v0 = vrot.slane %v11652_v18, %v19093_v47 }
 0xbe3   : > { %v11901_v16 = vsel %vm11891_vm2, %v11878_v45, 0.0  ;;  %v11904_v37 = vsel %vm11891_vm2, %v11879_v60, 0.0  ;;  %v11881_v34 = vmul.f32 %v19223_v51, %v19223_v51  ;;  %v11786_v59 = vrot.slane %v11772_v21, %v19093_v47 }
 0xbe4   : > { %11902 = vadd.xlane.f32.xlu0 %v11901_v16  ;;  %v19241_v32 = vcombine.low %v11650_v49, %v11666_v0  ;;  %v11802_v12 = vrot.slane %v11788_v58, %v19093_v47  ;;  %v11913_v52 = vsel %vm11891_vm2, %v11882_v41, 0.0  ;;  %v11884_v22 = vmul.f32 %v19221_v63, %v19221_v63  ;;  %13623 = vmatpush3.bf16.msra.mxu1 %v14084_v6 }
 0xbe5   : > { %v19248_v17 = vcombine.low %v11854_v8, %v11870_v4  ;;  %v11910_v57 = vsel %vm11891_vm2, %v11881_v34, 0.0  ;;  %v19258_v29 = vcombine.high %v11718_v62, %v11734_v11  ;;  %v19263_v42 = vcombine.high %v11650_v49, %v11666_v0  ;;  %13628 = vmatprep.subr.bf16.mxu1 %v14085_v33 }
 0xbe6   : > { %11908 = vadd.xlane.f32.xlu1 %v11907_v2  ;;  %v11883_v31 = vmul.f32 %v19241_v32, %v19241_v32  ;;  %v19253_v9 = vcombine.low %v11786_v59, %v11802_v12  ;;  %v11919_v10 = vsel %vm11891_vm2, %v11884_v22, 0.0  ;;  %v19268_v23 = vcombine.high %v11854_v8, %v11870_v4 }
 0xbe7   : > { %v11886_v47 = vmul.f32 %v19248_v17, %v19248_v17  ;;  %v11888_v13 = vmul.f32 %v19258_v29, %v19258_v29  ;;  %v11887_v38 = vmul.f32 %v19263_v42, %v19263_v42  ;;  %v19273_v40 = vcombine.high %v11786_v59, %v11802_v12 }
 0xbe8   : > { %11905 = vadd.xlane.f32.xlu0 %v11904_v37  ;;  %v11916_v27 = vsel %vm11891_vm2, %v11883_v31, 0.0  ;;  %v11885_v53 = vmul.f32 %v19253_v9, %v19253_v9  ;;  %v11890_v36 = vmul.f32 %v19268_v23, %v19268_v23 }
 0xbe9   : > { %v11925_v48 = vsel %vm11891_vm2, %v11886_v47, 0.0  ;;  %v11931_v20 = vsel %vm11891_vm2, %v11888_v13, 0.0  ;;  %v11928_v56 = vsel %vm11891_vm2, %v11887_v38, 0.0  ;;  %v11889_v44 = vmul.f32 %v19273_v40, %v19273_v40 }
 0xbea   : > { %11914 = vadd.xlane.f32.xlu1 %v11913_v52  ;;  %v11922_v15 = vsel %vm11891_vm2, %v11885_v53, 0.0  ;;  %v11937_v61 = vsel %vm11891_vm2, %v11890_v36, 0.0 }
 0xbeb   : > { %v11934_v46 = vsel %vm11891_vm2, %v11889_v44, 0.0 }
 0xbec   : > { %11911 = vadd.xlane.f32.xlu0 %v11910_v57 }
 0xbee   : > { %11920 = vadd.xlane.f32.xlu1 %v11919_v10 }
 0xbf0   : > { %11917 = vadd.xlane.f32.xlu0 %v11916_v27 }
 0xbf2   : > { %11926 = vadd.xlane.f32.xlu1 %v11925_v48 }
 0xbf4   : > { %11923 = vadd.xlane.f32.xlu0 %v11922_v15  ;;  %v14086_v15 = vld [vmem:[#allocation2 + $0x10] sm:$0xff]  }
 0xbf6   : > { %11932 = vadd.xlane.f32.xlu1 %v11931_v20 }
 0xbf8   : > { %11929 = vadd.xlane.f32.xlu0 %v11928_v56 }
 0xbfa   : > { %11938 = vadd.xlane.f32.xlu1 %v11937_v61  ;;  %v14087_v61 = vld [vmem:[#allocation2 + $0x28] sm:$0xff]  }
 0xbfc   : > { %11935 = vadd.xlane.f32.xlu0 %v11934_v46 }
 0xc62   : > { %v11894_v1 = vpop.xlane.xlu0 %11893 }
 0xc63   : > { %v11940_v24 = vmax.f32 %v11894_v1, 1e-24 }
 0xc65   : > { %14123 = vrsqrt.f32 %v11940_v24 }
 0xc68   : > { %v11900_v5 = vpop.xlane.xlu0 %11899 }
 0xc69   : > { %v11942_v50 = vmax.f32 %v11900_v5, 1e-24 }
 0xc6b   : > { %v11897_v62 = vpop.xlane.xlu1 %11896  ;;  %14125 = vrsqrt.f32 %v11942_v50 }
 0xc6c   : > { %v11941_v11 = vmax.f32 %v11897_v62, 1e-24 }
 0xc6d   : > { %v11903_v25 = vpop.xlane.xlu0 %11902 }
 0xc6e   : > { %14127 = vrsqrt.f32 %v11941_v11  ;;  %v11943_v30 = vmax.f32 %v11903_v25, 1e-24 }
 0xc6f   : > { %v11909_v26 = vpop.xlane.xlu1 %11908 }
 0xc70   : > { %14129 = vrsqrt.f32 %v11943_v30  ;;  %v11945_v45 = vmax.f32 %v11909_v26, 1e-24 }
 0xc71   : > { %v11906_v55 = vpop.xlane.xlu0 %11905 }
 0xc72   : > { %14131 = vrsqrt.f32 %v11945_v45  ;;  %v11944_v60 = vmax.f32 %v11906_v55, 1e-24  ;;  %v14124_v58 = vpop.eup %14123 }
 0xc73   : > { %v11915_v35 = vpop.xlane.xlu1 %11914  ;;  %v11972_v59 = vmul.f32 %v14124_v58, %v19163_v14 }
 0xc74   : > { %14133 = vrsqrt.f32 %v11944_v60  ;;  %v11947_v16 = vmax.f32 %v11915_v35, 1e-24  ;;  %v14090_v60 = vld [vmem:[#allocation2 + $0x30] sm:$0xff]  }
 0xc75   : > { %v11912_v18 = vpop.xlane.xlu0 %11911 }
 0xc76   : > { %14135 = vrsqrt.f32 %v11947_v16  ;;  %v11946_v8 = vmax.f32 %v11912_v18, 1e-24 }
 0xc77   : > { %v11921_v49 = vpop.xlane.xlu1 %11920 }
 0xc78   : > { %14137 = vrsqrt.f32 %v11946_v8  ;;  %v11949_v21 = vmax.f32 %v11921_v49, 1e-24  ;;  %v14126_v41 = vpop.eup %14125 }
 0xc79   : > { %v11918_v2 = vpop.xlane.xlu0 %11917  ;;  %v11974_v57 = vmul.f32 %v14126_v41, %v19188_v43 }
 0xc7a   : > { %14139 = vrsqrt.f32 %v11949_v21  ;;  %v11948_v4 = vmax.f32 %v11918_v2, 1e-24 }
 0xc7b   : > { %v14128_v0 = vpop.eup %14127  ;;  %v11927_v37 = vpop.xlane.xlu1 %11926 }
 0xc7c   : > { %14141 = vrsqrt.f32 %v11948_v4  ;;  %v11951_v34 = vmax.f32 %v11927_v37, 1e-24  ;;  %v11973_v12 = vmul.f32 %v14128_v0, %v19195_v19 }
 0xc7d   : > { %v14130_v52 = vpop.eup %14129  ;;  %v11924_v22 = vpop.xlane.xlu0 %11923 }
 0xc7e   : > { %14143 = vrsqrt.f32 %v11951_v34  ;;  %v11950_v31 = vmax.f32 %v11924_v22, 1e-24  ;;  %v11988_v10 = vpack.c.bf16 %v11973_v12, %v11972_v59  ;;  %v11975_v47 = vmul.f32 %v14130_v52, %v19205_v3 }
 0xc7f   : > { %v14132_v27 = vpop.eup %14131  ;;  %v11933_v53 = vpop.xlane.xlu1 %11932 }
 0xc80   : > { %14145 = vrsqrt.f32 %v11950_v31  ;;  %v11953_v48 = vmax.f32 %v11933_v53, 1e-24  ;;  %13624 = vmatprep.mubr.msk.bf16.mxu1 %vm11891_vm2, %v11988_v10  ;;  %v11989_v13 = vpack.c.bf16 %v11975_v47, %v11974_v57  ;;  %v11977_v20 = vmul.f32 %v14132_v27, %v19197_v54 }
 0xc81   : > { %v14134_v14 = vpop.eup %14133  ;;  %v11930_v38 = vpop.xlane.xlu0 %11929 }
 0xc82   : > { %14147 = vrsqrt.f32 %v11953_v48  ;;  %v11952_v19 = vmax.f32 %v11930_v38, 1e-24  ;;  %13625 = vmatmul.mubr.msk.bf16.vlgmr.msra.gmra.mxu1 %vm11891_vm2, %v11989_v13  ;;  %v11976_v43 = vmul.f32 %v14134_v14, %v19201_v28 }
 0xc83   : > { %v14136_v36 = vpop.eup %14135  ;;  %v11939_v3 = vpop.xlane.xlu1 %11938  ;;  %13629 = vmatpush3.bf16.msra.mxu1 %v14085_v33  ;;  %v14088_v33 = vld [vmem:[#allocation2 + $0x20] sm:$0xff]  }
 0xc84   : > { %14149 = vrsqrt.f32 %v11952_v19  ;;  %v11955_v56 = vmax.f32 %v11939_v3, 1e-24  ;;  %13630 = vmatprep.subr.bf16.mxu1 %v14086_v15  ;;  %v11990_v44 = vpack.c.bf16 %v11977_v20, %v11976_v43  ;;  %v11979_v28 = vmul.f32 %v14136_v36, %v19214_v7 }
 0xc85   : > { %v14138_v39 = vpop.eup %14137  ;;  %v11936_v46 = vpop.xlane.xlu0 %11935 }
 0xc86   : > { %14151 = vrsqrt.f32 %v11955_v56  ;;  %v11954_v6 = vmax.f32 %v11936_v46, 1e-24  ;;  %13632 = vmatprep.mubr.msk.bf16.mxu1 %vm11891_vm2, %v11990_v44  ;;  %v11978_v1 = vmul.f32 %v14138_v39, %v19223_v51  ;;  %v14089_v51 = vld [vmem:[#allocation2 + $0x38] sm:$0xff]  }
 0xc87   : > { %v14140_v24 = vpop.eup %14139  ;;  %13631 = vmatpush3.bf16.msra.mxu1 %v14086_v15 }
 0xc88   : > { %14153 = vrsqrt.f32 %v11954_v6  ;;  %13636 = vmatprep.subr.bf16.mxu1 %v14087_v61  ;;  %v11991_v54 = vpack.c.bf16 %v11979_v28, %v11978_v1  ;;  %v11981_v62 = vmul.f32 %v14140_v24, %v19221_v63 }
 0xc89   : > { %v14142_v5 = vpop.eup %14141 }
 0xc8a   : > { %13633 = vmatmul.mubr.msk.bf16.vlgmr.msra.gmra.mxu1 %vm11891_vm2, %v11991_v54  ;;  %v11980_v50 = vmul.f32 %v14142_v5, %v19241_v32 }
 0xc8b   : > { %v14144_v11 = vpop.eup %14143  ;;  %13637 = vmatpush3.bf16.msra.mxu1 %v14087_v61 }
 0xc8c   : > { %13638 = vmatprep.subr.bf16.mxu1 %v14088_v33  ;;  %v11992_v25 = vpack.c.bf16 %v11981_v62, %v11980_v50  ;;  %v11983_v26 = vmul.f32 %v14144_v11, %v19248_v17 }
 0xc8d   : > { %v14146_v30 = vpop.eup %14145 }
 0xc8e   : > { %13640 = vmatprep.mubr.msk.bf16.mxu1 %vm11891_vm2, %v11992_v25  ;;  %v11982_v7 = vmul.f32 %v14146_v30, %v19253_v9 }
 0xc8f   : > { %v14148_v45 = vpop.eup %14147  ;;  %13639 = vmatpush3.bf16.msra.mxu1 %v14088_v33 }
 0xc90   : > { %13644 = vmatprep.subr.bf16.mxu1 %v14089_v51  ;;  %v11993_v55 = vpack.c.bf16 %v11983_v26, %v11982_v7  ;;  %v11985_v35 = vmul.f32 %v14148_v45, %v19258_v29 }
 0xc91   : > { %v14150_v32 = vpop.eup %14149 }
 0xc92   : > { %13641 = vmatmul.mubr.msk.bf16.vlgmr.msra.gmra.mxu1 %vm11891_vm2, %v11993_v55  ;;  %v11984_v63 = vmul.f32 %v14150_v32, %v19263_v42 }
 0xc93   : > { %v14152_v16 = vpop.eup %14151  ;;  %13645 = vmatpush3.bf16.msra.mxu1 %v14089_v51 }
 0xc94   : > { %13646 = vmatprep.subr.bf16.mxu1 %v14090_v60  ;;  %v11994_v18 = vpack.c.bf16 %v11985_v35, %v11984_v63  ;;  %v11987_v9 = vmul.f32 %v14152_v16, %v19268_v23 }
 0xc95   : > { %v14154_v8 = vpop.eup %14153 }
 0xc96   : > { %13648 = vmatprep.mubr.msk.bf16.mxu1 %vm11891_vm2, %v11994_v18  ;;  %v11986_v17 = vmul.f32 %v14154_v8, %v19273_v40 }
 0xc97   : > { %13647 = vmatpush3.bf16.msra.mxu1 %v14090_v60 }
 0xc98   : > { %v11995_v49 = vpack.c.bf16 %v11987_v9, %v11986_v17 }
 0xc9a   : > { %13649 = vmatmul.mubr.msk.bf16.vlgmr.msra.gmra.mxu1 %vm11891_vm2, %v11995_v49 }
 0xd42   : > { %v13626_v21 = vpop.f32.mrf.mxu1 }
 0xd43   : > { %v12287_v42 = vsel %vm12280_vm3, %v13626_v21, -inf }
 0xd44   : > { %12288 = vmax.xlane.f32.xlu0 %v12287_v42  ;;  %v12064_v29 = vpop.f32.mrf.mxu1 }
 0xd45   : > { %v12281_v2 = vsel %vm12280_vm3, %v12064_v29, -inf }
 0xd46   : > { %v13627_v58 = vpop.f32.mrf.mxu1 }
 0xd47   : > { %v12290_v41 = vsel %vm12280_vm3, %v13627_v58, -inf }
 0xd48   : > { %12282 = vmax.xlane.f32.xlu0 %v12281_v2  ;;  %12291 = vmax.xlane.f32.xlu1 %v12290_v41  ;;  %v12067_v40 = vpop.f32.mrf.mxu1 }
 0xd49   : > { %v12284_v23 = vsel %vm12280_vm3, %v12067_v40, -inf }
 0xd4a   : > { %v13634_v4 = vpop.f32.mrf.mxu1 }
 0xd4b   : > { %v12299_v0 = vsel %vm12280_vm3, %v13634_v4, -inf }
 0xd4c   : > { %12285 = vmax.xlane.f32.xlu1 %v12284_v23  ;;  %12300 = vmax.xlane.f32.xlu0 %v12299_v0  ;;  %v12131_v37 = vpop.f32.mrf.mxu1 }
 0xd4d   : > { %v12293_v59 = vsel %vm12280_vm3, %v12131_v37, -inf }
 0xd4e   : > { %v13635_v34 = vpop.f32.mrf.mxu1 }
 0xd4f   : > { %v12302_v12 = vsel %vm12280_vm3, %v13635_v34, -inf }
 0xd50   : > { %12294 = vmax.xlane.f32.xlu0 %v12293_v59  ;;  %12303 = vmax.xlane.f32.xlu1 %v12302_v12  ;;  %v12134_v52 = vpop.f32.mrf.mxu1 }
 0xd51   : > { %v12296_v57 = vsel %vm12280_vm3, %v12134_v52, -inf }
 0xd52   : > { %v13642_v22 = vpop.f32.mrf.mxu1 }
 0xd53   : > { %v12311_v31 = vsel %vm12280_vm3, %v13642_v22, -inf }
 0xd54   : > { %12297 = vmax.xlane.f32.xlu1 %v12296_v57  ;;  %12312 = vmax.xlane.f32.xlu0 %v12311_v31  ;;  %v19316_v10 = vpop.f32.mrf.mxu1 }
 0xd55   : > { %v12305_v27 = vsel %vm12280_vm3, %v19316_v10, -inf }
 0xd56   : > { %v19318_v47 = vpop.f32.mrf.mxu1 }
 0xd57   : > { %v12314_v53 = vsel %vm12280_vm3, %v19318_v47, -inf }
 0xd58   : > { %12306 = vmax.xlane.f32.xlu0 %v12305_v27  ;;  %12315 = vmax.xlane.f32.xlu1 %v12314_v53  ;;  %v19324_v48 = vpop.f32.mrf.mxu1 }
 0xd59   : > { %v12308_v15 = vsel %vm12280_vm3, %v19324_v48, -inf }
 0xd5a   : > { %v19326_v13 = vpop.f32.mrf.mxu1 }
 0xd5b   : > { %v12323_v20 = vsel %vm12280_vm3, %v19326_v13, -inf }
 0xd5c   : > { %12309 = vmax.xlane.f32.xlu1 %v12308_v15  ;;  %v19330_v14 = vpop.f32.mrf.mxu1 }
 0xd5d   : > { %v12317_v38 = vsel %vm12280_vm3, %v19330_v14, -inf }
 0xd5e   : > { %12318 = vmax.xlane.f32.xlu0 %v12317_v38  ;;  %v19334_v19 = vpop.f32.mrf.mxu1 }
 0xd5f   : > { %v12326_v3 = vsel %vm12280_vm3, %v19334_v19, -inf }
 0xd60   : > { %v19336_v43 = vpop.f32.mrf.mxu1 }
 0xd61   : > { %v12320_v36 = vsel %vm12280_vm3, %v19336_v43, -inf }
 0xd62   : > { %12324 = vmax.xlane.f32.xlu0 %v12323_v20  ;;  %12321 = vmax.xlane.f32.xlu1 %v12320_v36 }
 0xd66   : > { %12327 = vmax.xlane.f32.xlu1 %v12326_v3 }
 0xdcd   : > { %v12289_v56 = vpop.xlane.xlu0 %12288 }
 0xdce   : > { %v12331_v44 = vsub.f32 %v13626_v21, %v12289_v56 }
 0xdd0   : > { %v12349_v61 = vmul.f32 1.442695, %v12331_v44 }
 0xdd1   : > { %v12283_v39 = vpop.xlane.xlu0 %12282  ;;  %v12292_v46 = vpop.xlane.xlu1 %12291 }
 0xdd2   : > { %14155 = vpow2.f32 %v12349_v61  ;;  %v12329_v6 = vsub.f32 %v12064_v29, %v12283_v39  ;;  %v12332_v1 = vsub.f32 %v13627_v58, %v12292_v46 }
 0xdd4   : > { %v12345_v28 = vmul.f32 1.442695, %v12329_v6  ;;  %v12351_v24 = vmul.f32 1.442695, %v12332_v1  ;;  %v14091_v1 = vld [vmem:[#allocation3 + $0x18] sm:$0xff]  }
 0xdd5   : > { %v12301_v54 = vpop.xlane.xlu0 %12300  ;;  %v12286_v33 = vpop.xlane.xlu1 %12285  ;;  %13652 = vmatprep.subr.bf16.mxu0 %v14091_v1 }
 0xdd6   : > { %14157 = vpow2.f32 %v12345_v28  ;;  %v12335_v5 = vsub.f32 %v13634_v4, %v12301_v54  ;;  %v12330_v50 = vsub.f32 %v12067_v40, %v12286_v33  ;;  %13653 = vmatpush3.bf16.msra.mxu0 %v14091_v1  ;;  %v14092_v54 = vld [vmem:[#allocation3 + $0x10] sm:$0xff]  }
 0xdd7   : > { %14159 = vpow2.f32 %v12351_v24  ;;  %13654 = vmatprep.subr.bf16.mxu0 %v14092_v54 }
 0xdd8   : > { %v12357_v62 = vmul.f32 1.442695, %v12335_v5  ;;  %v12347_v11 = vmul.f32 1.442695, %v12330_v50  ;;  %v14093_v50 = vld [vmem:[#allocation3 + $0x8] sm:$0xff]  }
 0xdd9   : > { %v12295_v25 = vpop.xlane.xlu0 %12294  ;;  %v12304_v51 = vpop.xlane.xlu1 %12303 }
 0xdda   : > { %14161 = vpow2.f32 %v12357_v62  ;;  %v12333_v30 = vsub.f32 %v12131_v37, %v12295_v25  ;;  %v12336_v7 = vsub.f32 %v13635_v34, %v12304_v51  ;;  %13655 = vmatpush3.bf16.msra.mxu0 %v14092_v54  ;;  %v14094_v62 = vld [vmem:[#allocation3 + $0x38] sm:$0xff]   ;;  %v14104_v54 = vld [vmem:[#allocation3 + $0x70] sm:$0xff]  }
 0xddb   : > { %14163 = vpow2.f32 %v12347_v11  ;;  %13656 = vmatprep.subr.bf16.mxu0 %v14093_v50  ;;  %13664 = vmatprep.subr.bf16.mxu1 %v14094_v62 }
 0xddc   : > { %v12353_v26 = vmul.f32 1.442695, %v12333_v30  ;;  %v12359_v45 = vmul.f32 1.442695, %v12336_v7  ;;  %13665 = vmatpush3.bf16.msra.mxu1 %v14094_v62  ;;  %v14095_v7 = vld [vmem:[#allocation3] sm:$0xff]  }
 0xddd   : > { %v12313_v55 = vpop.xlane.xlu0 %12312  ;;  %v12298_v60 = vpop.xlane.xlu1 %12297 }
 0xdde   : > { %14165 = vpow2.f32 %v12353_v26  ;;  %v12339_v32 = vsub.f32 %v13642_v22, %v12313_v55  ;;  %v12334_v63 = vsub.f32 %v12134_v52, %v12298_v60  ;;  %13657 = vmatpush3.bf16.msra.mxu0 %v14093_v50  ;;  %v14096_v26 = vld [vmem:[#allocation3 + $0x30] sm:$0xff]   ;;  %v14097_v60 = vld [vmem:[#allocation3 + $0x28] sm:$0xff]  }
 0xddf   : > { %v19344_v35 = vpop.eup %14155  ;;  %14167 = vpow2.f32 %v12359_v45  ;;  %13658 = vmatprep.subr.bf16.mxu0 %v14095_v7  ;;  %13666 = vmatprep.subr.bf16.mxu1 %v14096_v26  ;;  %v14105_v50 = vld [vmem:[#allocation3 + $0x68] sm:$0xff]  }
 0xde0   : > { %v12365_v16 = vmul.f32 1.442695, %v12339_v32  ;;  %v12355_v18 = vmul.f32 1.442695, %v12334_v63  ;;  %v12383_v8 = vsel %vm12280_vm3, %v19344_v35, 0.0  ;;  %13667 = vmatpush3.bf16.msra.mxu1 %v14096_v26  ;;  %v14098_v32 = vld [vmem:[#allocation3 + $0x58] sm:$0xff]  }
 0xde1   : > { %v12307_v17 = vpop.xlane.xlu0 %12306  ;;  %12384 = vadd.xlane.f32.xlu0 %v12383_v8  ;;  %v12316_v9 = vpop.xlane.xlu1 %12315  ;;  %13668 = vmatprep.subr.bf16.mxu1 %v14097_v60  ;;  %v14099_v63 = vld [vmem:[#allocation3 + $0x20] sm:$0xff]  }
 0xde2   : > { %14169 = vpow2.f32 %v12365_v16  ;;  %v12337_v49 = vsub.f32 %v19316_v10, %v12307_v17  ;;  %v12340_v21 = vsub.f32 %v19318_v47, %v12316_v9  ;;  %13659 = vmatpush3.bf16.msra.mxu0 %v14095_v7  ;;  %v19415_v16 = vld [vmem:[#allocation3 + $0x78] sm:$0xff]  }
 0xde3   : > { %v19350_v42 = vpop.eup %14157  ;;  %14171 = vpow2.f32 %v12355_v18  ;;  %13676 = vmatprep.subr.bf16.mxu0 %v14098_v32 }
 0xde4   : > { %v19352_v29 = vpop.eup %14159  ;;  %v12361_v58 = vmul.f32 1.442695, %v12337_v49  ;;  %v12367_v2 = vmul.f32 1.442695, %v12340_v21  ;;  %v12377_v41 = vsel %vm12280_vm3, %v19350_v42, 0.0  ;;  %13669 = vmatpush3.bf16.msra.mxu1 %v14097_v60  ;;  %v14106_v60 = vld [vmem:[#allocation3 + $0x60] sm:$0xff]  }
 0xde5   : > { %12378 = vadd.xlane.f32.xlu0 %v12377_v41  ;;  %v12386_v40 = vsel %vm12280_vm3, %v19352_v29, 0.0  ;;  %v12310_v4 = vpop.xlane.xlu1 %12309  ;;  %13670 = vmatprep.subr.bf16.mxu1 %v14099_v63 }
 0xde6   : > { %14173 = vpow2.f32 %v12361_v58  ;;  %12387 = vadd.xlane.f32.xlu1 %v12386_v40  ;;  %v12338_v23 = vsub.f32 %v19324_v48, %v12310_v4 }
 0xde7   : > { %v19359_v0 = vpop.eup %14161  ;;  %14175 = vpow2.f32 %v12367_v2  ;;  %v12319_v37 = vpop.xlane.xlu0 %12318 }
 0xde8   : > { %v19361_v34 = vpop.eup %14163  ;;  %v12363_v59 = vmul.f32 1.442695, %v12338_v23  ;;  %v12341_v12 = vsub.f32 %v19330_v14, %v12319_v37  ;;  %v12395_v52 = vsel %vm12280_vm3, %v19359_v0, 0.0  ;;  %13671 = vmatpush3.bf16.msra.mxu1 %v14099_v63 }
 0xde9   : > { %12396 = vadd.xlane.f32.xlu0 %v12395_v52  ;;  %v12380_v22 = vsel %vm12280_vm3, %v19361_v34, 0.0  ;;  %13688 = vmatprep.subr.bf16.mxu1 %v19415_v16 }
 0xdea   : > { %14177 = vpow2.f32 %v12363_v59  ;;  %v12369_v57 = vmul.f32 1.442695, %v12341_v12  ;;  %12381 = vadd.xlane.f32.xlu1 %v12380_v22 }
 0xdeb   : > { %v19368_v31 = vpop.eup %14165  ;;  %v12325_v10 = vpop.xlane.xlu0 %12324 }
 0xdec   : > { %v12322_v47 = vpop.xlane.xlu1 %12321  ;;  %v19370_v27 = vpop.eup %14167  ;;  %14179 = vpow2.f32 %v12369_v57  ;;  %v12343_v53 = vsub.f32 %v19326_v13, %v12325_v10  ;;  %v12389_v15 = vsel %vm12280_vm3, %v19368_v31, 0.0 }
 0xded   : > { %v12342_v48 = vsub.f32 %v19336_v43, %v12322_v47  ;;  %12390 = vadd.xlane.f32.xlu0 %v12389_v15  ;;  %v12398_v14 = vsel %vm12280_vm3, %v19370_v27, 0.0 }
 0xdee   : > { %v12373_v38 = vmul.f32 1.442695, %v12343_v53  ;;  %12399 = vadd.xlane.f32.xlu1 %v12398_v14  ;;  %v14100_v14 = vld [vmem:[#allocation3 + $0x50] sm:$0xff]  }
 0xdef   : > { %v12371_v20 = vmul.f32 1.442695, %v12342_v48  ;;  %v19378_v36 = vpop.eup %14169 }
 0xdf0   : > { %v12328_v3 = vpop.xlane.xlu1 %12327  ;;  %v19380_v56 = vpop.eup %14171  ;;  %14181 = vpow2.f32 %v12373_v38  ;;  %v12407_v43 = vsel %vm12280_vm3, %v19378_v36, 0.0 }
 0xdf1   : > { %v12344_v13 = vsub.f32 %v19334_v19, %v12328_v3  ;;  %14183 = vpow2.f32 %v12371_v20  ;;  %12408 = vadd.xlane.f32.xlu0 %v12407_v43  ;;  %v12392_v44 = vsel %vm12280_vm3, %v19380_v56, 0.0 }
 0xdf2   : > { %12393 = vadd.xlane.f32.xlu1 %v12392_v44 }
 0xdf3   : > { %v12375_v61 = vmul.f32 1.442695, %v12344_v13  ;;  %v19387_v39 = vpop.eup %14173  ;;  %v14101_v13 = vld [vmem:[#allocation3 + $0x48] sm:$0xff]  }
 0xdf4   : > { %v19389_v46 = vpop.eup %14175  ;;  %v12401_v6 = vsel %vm12280_vm3, %v19387_v39, 0.0 }
 0xdf5   : > { %14185 = vpow2.f32 %v12375_v61  ;;  %12402 = vadd.xlane.f32.xlu0 %v12401_v6  ;;  %v12410_v19 = vsel %vm12280_vm3, %v19389_v46, 0.0 }
 0xdf6   : > { %12411 = vadd.xlane.f32.xlu1 %v12410_v19 }
 0xdf7   : > { %v19395_v28 = vpop.eup %14177 }
 0xdf8   : > { %v12404_v24 = vsel %vm12280_vm3, %v19395_v28, 0.0 }
 0xdf9   : > { %v19399_v33 = vpop.eup %14179 }
 0xdfa   : > { %12405 = vadd.xlane.f32.xlu1 %v12404_v24  ;;  %v12413_v5 = vsel %vm12280_vm3, %v19399_v33, 0.0  ;;  %v14103_v24 = vld [vmem:[#allocation3 + $0x40] sm:$0xff]  }
 0xdfb   : > { %12414 = vadd.xlane.f32.xlu0 %v12413_v5 }
 0xdfd   : > { %v19403_v11 = vpop.eup %14181 }
 0xdfe   : > { %v19405_v25 = vpop.eup %14183  ;;  %v12419_v51 = vsel %vm12280_vm3, %v19403_v11, 0.0 }
 0xdff   : > { %12420 = vadd.xlane.f32.xlu0 %v12419_v51  ;;  %v12416_v30 = vsel %vm12280_vm3, %v19405_v25, 0.0 }
 0xe00   : > { %12417 = vadd.xlane.f32.xlu1 %v12416_v30 }
 0xe02   : > { %v19411_v45 = vpop.eup %14185 }
 0xe03   : > { %v12422_v55 = vsel %vm12280_vm3, %v19411_v45, 0.0 }
 0xe04   : > { %12423 = vadd.xlane.f32.xlu1 %v12422_v55 }
 0xe6a   : > { %v12385_v18 = vpop.xlane.xlu0 %12384 }
 0xe6e   : > { %v12379_v8 = vpop.xlane.xlu0 %12378 }
 0xe6f   : > { %v12388_v17 = vpop.xlane.xlu1 %12387 }
 0xe70   : > { %14187 = vrcp.f32 %v12388_v17  ;;  %v14107_v17 = vld [vmem:[#allocation12 + $0x8] sm:$0xff]  }
 0xe71   : > { %14189 = vrcp.f32 %v12379_v8 }
 0xe72   : > { %v12397_v9 = vpop.xlane.xlu0 %12396  ;;  %14191 = vrcp.f32 %v12385_v18 }
 0xe73   : > { %v12382_v49 = vpop.xlane.xlu1 %12381 }
 0xe74   : > { %14193 = vrcp.f32 %v12382_v49 }
 0xe76   : > { %v12391_v21 = vpop.xlane.xlu0 %12390 }
 0xe77   : > { %v12400_v58 = vpop.xlane.xlu1 %12399 }
 0xe78   : > { %14195 = vrcp.f32 %v12400_v58 }
 0xe79   : > { %14197 = vrcp.f32 %v12391_v21 }
 0xe7a   : > { %v12409_v2 = vpop.xlane.xlu0 %12408  ;;  %14199 = vrcp.f32 %v12397_v9  ;;  %v14110_v9 = vld [vmem:[#allocation12 + $0x10] sm:$0xff]  }
 0xe7b   : > { %v12394_v41 = vpop.xlane.xlu1 %12393 }
 0xe7c   : > { %14201 = vrcp.f32 %v12394_v41 }
 0xe7d   : > { %v14188_v40 = vpop.eup %14187 }
 0xe7e   : > { %v14190_v4 = vpop.eup %14189  ;;  %v12403_v23 = vpop.xlane.xlu0 %12402  ;;  %v12444_v52 = vmul.f32 %v14188_v40, %v19352_v29 }
 0xe7f   : > { %v12412_v37 = vpop.xlane.xlu1 %12411  ;;  %v14192_v59 = vpop.eup %14191  ;;  %v12441_v22 = vmul.f32 %v14190_v4, %v19350_v42 }
 0xe80   : > { %14203 = vrcp.f32 %v12412_v37  ;;  %v12443_v47 = vmul.f32 %v14192_v59, %v19344_v35 }
 0xe81   : > { %v14194_v12 = vpop.eup %14193  ;;  %14205 = vrcp.f32 %v12403_v23  ;;  %v14112_v23 = vld [vmem:[#allocation12 + $0x20] sm:$0xff]  }
 0xe82   : > { %v12442_v57 = vmul.f32 %v14194_v12, %v19361_v34  ;;  %14207 = vrcp.f32 %v12409_v2  ;;  %v12458_v15 = vpack.c.bf16 %v12444_v52, %v12443_v47 }
 0xe83   : > { %v12406_v10 = vpop.xlane.xlu1 %12405 }
 0xe84   : > { %14209 = vrcp.f32 %v12406_v10  ;;  %v12415_v53 = vpop.xlane.xlu0 %12414  ;;  %v12457_v48 = vpack.c.bf16 %v12442_v57, %v12441_v22  ;;  %v14114_v10 = vld [vmem:[#allocation12 + $0x30] sm:$0xff]  }
 0xe85   : > { %v14196_v38 = vpop.eup %14195  ;;  %14211 = vrcp.f32 %v12415_v53 }
 0xe86   : > { %13660 = vmatprep.mubr.msk.bf16.mxu0 %vm12280_vm3, %v12457_v48  ;;  %v14198_v20 = vpop.eup %14197  ;;  %v12448_v35 = vmul.f32 %v14196_v38, %v19370_v27 }
 0xe87   : > { %13661 = vmatmul.mubr.msk.bf16.vlgmr.msra.gmra.mxu0 %vm12280_vm3, %v12458_v15  ;;  %v14200_v29 = vpop.eup %14199  ;;  %v12445_v43 = vmul.f32 %v14198_v20, %v19368_v31 }
 0xe88   : > { %13677 = vmatpush3.bf16.msra.mxu0 %v14098_v32  ;;  %v12421_v34 = vpop.xlane.xlu0 %12420  ;;  %v12447_v61 = vmul.f32 %v14200_v29, %v19359_v0 }
 0xe89   : > { %v14202_v42 = vpop.eup %14201  ;;  %v12418_v3 = vpop.xlane.xlu1 %12417  ;;  %13678 = vmatprep.subr.bf16.mxu0 %v14100_v14 }
 0xe8a   : > { %14213 = vrcp.f32 %v12418_v3  ;;  %v12446_v44 = vmul.f32 %v14202_v42, %v19380_v56  ;;  %v12460_v19 = vpack.c.bf16 %v12448_v35, %v12447_v61 }
 0xe8b   : > { %14215 = vrcp.f32 %v12421_v34 }
 0xe8c   : > { %13679 = vmatpush3.bf16.msra.mxu0 %v14100_v14  ;;  %v12459_v6 = vpack.c.bf16 %v12446_v44, %v12445_v43 }
 0xe8d   : > { %v12424_v1 = vpop.xlane.xlu1 %12423  ;;  %13680 = vmatprep.subr.bf16.mxu0 %v14101_v13  ;;  %v14204_v5 = vpop.eup %14203 }
 0xe8e   : > { %14217 = vrcp.f32 %v12424_v1  ;;  %13672 = vmatprep.mubr.msk.bf16.mxu1 %vm12280_vm3, %v12459_v6  ;;  %v14206_v27 = vpop.eup %14205  ;;  %v12452_v56 = vmul.f32 %v14204_v5, %v19389_v46 }
 0xe8f   : > { %13673 = vmatmul.mubr.msk.bf16.vlgmr.msra.gmra.mxu1 %vm12280_vm3, %v12460_v19  ;;  %v14208_v31 = vpop.eup %14207  ;;  %v12449_v62 = vmul.f32 %v14206_v27, %v19387_v39 }
 0xe90   : > { %13681 = vmatpush3.bf16.msra.mxu0 %v14101_v13  ;;  %13689 = vmatpush3.bf16.msra.mxu1 %v19415_v16  ;;  %v12451_v30 = vmul.f32 %v14208_v31, %v19378_v36 }
 0xe91   : > { %v14210_v0 = vpop.eup %14209  ;;  %13682 = vmatprep.subr.bf16.mxu0 %v14103_v24  ;;  %13690 = vmatprep.subr.bf16.mxu1 %v14104_v54 }
 0xe92   : > { %v12450_v51 = vmul.f32 %v14210_v0, %v19395_v28  ;;  %v14212_v26 = vpop.eup %14211  ;;  %v12462_v55 = vpack.c.bf16 %v12452_v56, %v12451_v30 }
 0xe93   : > { %v12453_v46 = vmul.f32 %v14212_v26, %v19399_v33  ;;  %v14108_v33 = vld [vmem:[#allocation12] sm:$0xff]  }
 0xe94   : > { %13683 = vmatpush3.bf16.msra.mxu0 %v14103_v24  ;;  %13691 = vmatpush3.bf16.msra.mxu1 %v14104_v54  ;;  %v12461_v7 = vpack.c.bf16 %v12450_v51, %v12449_v62 }
 0xe95   : > { %13692 = vmatprep.subr.bf16.mxu1 %v14105_v50  ;;  %13700 = vmatprep.subr.bf16.mxu0 %v14107_v17 }
 0xe96   : > { %13684 = vmatprep.mubr.msk.bf16.mxu0 %vm12280_vm3, %v12461_v7 }
 0xe97   : > { %v14214_v32 = vpop.eup %14213  ;;  %13685 = vmatmul.mubr.msk.bf16.vlgmr.msra.gmra.mxu0 %vm12280_vm3, %v12462_v55 }
 0xe98   : > { %13693 = vmatpush3.bf16.msra.mxu1 %v14105_v50  ;;  %v12454_v39 = vmul.f32 %v14214_v32, %v19405_v25  ;;  %v14216_v28 = vpop.eup %14215  ;;  %13701 = vmatpush3.bf16.msra.mxu0 %v14107_v17  ;;  %v14109_v25 = vld [vmem:[#allocation12 + $0x18] sm:$0xff]  }
 0xe99   : > { %13694 = vmatprep.subr.bf16.mxu1 %v14106_v60  ;;  %v12455_v16 = vmul.f32 %v14216_v28, %v19403_v11  ;;  %13702 = vmatprep.subr.bf16.mxu0 %v14108_v33  ;;  %v14111_v11 = vld [vmem:[#allocation12 + $0x28] sm:$0xff]  }
 0xe9a   : > { %v12463_v36 = vpack.c.bf16 %v12454_v39, %v12453_v46 }
 0xe9b   : > { %v14218_v63 = vpop.eup %14217 }
 0xe9c   : > { %v12456_v18 = vmul.f32 %v14218_v63, %v19411_v45  ;;  %13696 = vmatprep.mubr.msk.bf16.mxu1 %vm12280_vm3, %v12463_v36  ;;  %13695 = vmatpush3.bf16.msra.mxu1 %v14106_v60  ;;  %v14113_v45 = vld [vmem:[#allocation12 + $0x38] sm:$0xff]   ;;  %v14219_v60 = vld [vmem:[%s14790_s11 + $0x10] sm:$0xff]  ;;  %v14220_v36 = vld [vmem:[%s14790_s11] sm:$0xff] }
 0xe9d   : > { %13703 = vmatpush3.bf16.msra.mxu0 %v14108_v33  ;;  %13708 = vmatprep.subr.bf16.mxu1 %v14109_v25 }
 0xe9e   : > { %v12464_v8 = vpack.c.bf16 %v12456_v18, %v12455_v16  ;;  %13716 = vmatprep.subr.bf16.mxu0 %v14111_v11 }
 0xea0   : > { %13697 = vmatmul.mubr.msk.bf16.vlgmr.msra.gmra.mxu1 %vm12280_vm3, %v12464_v8  ;;  %v14221_v8 = vld [vmem:[%s14790_s11 + $0x18] sm:$0xff] }
 0xea1   : > { %13709 = vmatpush3.bf16.msra.mxu1 %v14109_v25  ;;  %v14222_v25 = vld [vmem:[%s14790_s11 + $0x8] sm:$0xff] }
 0xea2   : > { %13710 = vmatprep.subr.bf16.mxu1 %v14110_v9 }
 0xea5   : > { %13711 = vmatpush3.bf16.msra.mxu1 %v14110_v9 }
 0xea6   : > { %13724 = vmatprep.subr.bf16.mxu1 %v14113_v45 }
 0xf47   : > { %v13662_v49 = vpop.f32.mrf.mxu0 }
 0xf49   : > { %v12561_v21 = vpop.f32.mrf.mxu0 }
 0xf4b   : > { %v13663_v58 = vpop.f32.mrf.mxu0 }
 0xf4c   : > { %v12814_v40 = vpack.c.bf16 %v13663_v58, %v13662_v49 }
 0xf4d   : > { %v12564_v2 = vpop.f32.mrf.mxu0 }
 0xf4e   : > { %v12813_v41 = vpack.c.bf16 %v12564_v2, %v12561_v21 }
 0xf4f   : > { %v13674_v4 = vpop.f32.mrf.mxu1 }
 0xf50   : > { %13704 = vmatprep.mubr.msk.bf16.mxu0 %vm11891_vm2, %v12813_v41 }
 0xf51   : > { %v12640_v37 = vpop.f32.mrf.mxu1  ;;  %13705 = vmatmul.mubr.msk.bf16.vlgmr.msra.gmra.mxu0 %vm11891_vm2, %v12814_v40 }
 0xf52   : > { %13717 = vmatpush3.bf16.msra.mxu0 %v14111_v11 }
 0xf53   : > { %v13675_v59 = vpop.f32.mrf.mxu1  ;;  %13718 = vmatprep.subr.bf16.mxu0 %v14112_v23 }
 0xf54   : > { %v12816_v22 = vpack.c.bf16 %v13675_v59, %v13674_v4 }
 0xf55   : > { %v12643_v12 = vpop.f32.mrf.mxu1 }
 0xf56   : > { %v12815_v52 = vpack.c.bf16 %v12643_v12, %v12640_v37  ;;  %13719 = vmatpush3.bf16.msra.mxu0 %v14112_v23 }
 0xf57   : > { %v13686_v57 = vpop.f32.mrf.mxu0 }
 0xf58   : > { %13712 = vmatprep.mubr.msk.bf16.mxu1 %vm11891_vm2, %v12815_v52 }
 0xf59   : > { %v12719_v47 = vpop.f32.mrf.mxu0  ;;  %13713 = vmatmul.mubr.msk.bf16.vlgmr.msra.gmra.mxu1 %vm11891_vm2, %v12816_v22 }
 0xf5a   : > { %13725 = vmatpush3.bf16.msra.mxu1 %v14113_v45 }
 0xf5b   : > { %v13687_v53 = vpop.f32.mrf.mxu0  ;;  %13726 = vmatprep.subr.bf16.mxu1 %v14114_v10 }
 0xf5c   : > { %v12818_v14 = vpack.c.bf16 %v13687_v53, %v13686_v57 }
 0xf5d   : > { %v12722_v48 = vpop.f32.mrf.mxu0 }
 0xf5e   : > { %v12817_v15 = vpack.c.bf16 %v12722_v48, %v12719_v47  ;;  %13727 = vmatpush3.bf16.msra.mxu1 %v14114_v10 }
 0xf60   : > { %v13698_v38 = vpop.f32.mrf.mxu1  ;;  %13720 = vmatprep.mubr.msk.bf16.mxu0 %vm11891_vm2, %v12817_v15 }
 0xf61   : > { %13721 = vmatmul.mubr.msk.bf16.vlgmr.msra.gmra.mxu0 %vm11891_vm2, %v12818_v14 }
 0xf62   : > { %v12798_v20 = vpop.f32.mrf.mxu1 }
 0xf64   : > { %v13699_v29 = vpop.f32.mrf.mxu1 }
 0xf65   : > { %v12820_v3 = vpack.c.bf16 %v13699_v29, %v13698_v38 }
 0xf66   : > { %v12801_v42 = vpop.f32.mrf.mxu1 }
 0xf67   : > { %v12819_v34 = vpack.c.bf16 %v12801_v42, %v12798_v20 }
 0xf69   : > { %13728 = vmatprep.mubr.msk.bf16.mxu1 %vm11891_vm2, %v12819_v34 }
 0xf6a   : > { %13729 = vmatmul.mubr.msk.bf16.vlgmr.msra.gmra.mxu1 %vm11891_vm2, %v12820_v3 }
0x1011   : > { %v13706_v35 = vpop.f32.mrf.mxu0 }
0x1013   : > { %v12889_v13 = vpop.f32.mrf.mxu0 }
0x1015   : > { %v13707_v43 = vpop.f32.mrf.mxu0 }
0x1017   : > { %v12892_v61 = vpop.f32.mrf.mxu0 }
0x1019   : > { %v13714_v44 = vpop.f32.mrf.mxu1 }
0x101a   : > { %v13111_v54 = vadd.f32 %v13714_v44, %v13706_v35 }
0x101b   : > { %v12956_v6 = vpop.f32.mrf.mxu1 }
0x101c   : > { %v13105_v31 = vadd.f32 %v12956_v6, %v12889_v13 }
0x101d   : > { %v13715_v19 = vpop.f32.mrf.mxu1 }
0x101e   : > { %v13114_v50 = vadd.f32 %v13715_v19, %v13707_v43 }
0x101f   : > { %v12959_v5 = vpop.f32.mrf.mxu1 }
0x1020   : > { %v13108_v26 = vadd.f32 %v12959_v5, %v12892_v61 }
0x1021   : > { %v13722_v1 = vpop.f32.mrf.mxu0 }
0x1022   : > { %v13112_v0 = vadd.f32 %v13722_v1, %v13111_v54 }
0x1023   : > { %v13023_v24 = vpop.f32.mrf.mxu0 }
0x1024   : > { %v13106_v62 = vadd.f32 %v13105_v31, %v13023_v24 }
0x1025   : > { %v13723_v27 = vpop.f32.mrf.mxu0 }
0x1026   : > { %v13115_v55 = vadd.f32 %v13723_v27, %v13114_v50 }
0x1027   : > { %v13026_v30 = vpop.f32.mrf.mxu0 }
0x1028   : > { %v13109_v28 = vadd.f32 %v13108_v26, %v13026_v30 }
0x102a   : > { %v13730_v56 = vpop.f32.mrf.mxu1 }
0x102b   : > { %v13113_v51 = vadd.f32 %v13730_v56, %v13112_v0 }
0x102c   : > { %v13090_v7 = vpop.f32.mrf.mxu1 }
0x102d   : > { %v13119_v32 = vadd.f32 %v14219_v60, %v13113_v51  ;;  %v13107_v46 = vadd.f32 %v13106_v62, %v13090_v7 }
0x102e   : > { %v13731_v39 = vpop.f32.mrf.mxu1 }
0x102f   : > { %13123 = vst [vmem:[%s14810_s26 + $0x10] sm:$0xff] %v13119_v32  ;;  %v13117_v63 = vadd.f32 %v14220_v36, %v13107_v46  ;;  %v13116_v16 = vadd.f32 %v13731_v39, %v13115_v55 }
0x1030   : > { %v13093_v18 = vpop.f32.mrf.mxu1 }
0x1031   : > { %13121 = vst [vmem:[%s14810_s26] sm:$0xff] %v13117_v63  ;;  %v13120_v17 = vadd.f32 %v14221_v8, %v13116_v16  ;;  %v13110_v33 = vadd.f32 %v13109_v28, %v13093_v18 }
0x1033   : > { %13124 = vst [vmem:[%s14810_s26 + $0x18] sm:$0xff] %v13120_v17  ;;  %v13118_v9 = vadd.f32 %v14222_v25, %v13110_v33 }
0x1035   : > { %13122 = vst [vmem:[%s14810_s26 + $0x8] sm:$0xff] %v13118_v9 }
0x1036   : > { %14370 = shalt.err (!%p14367_p2)
}
0x1037   : > { %s14371_s11 = scalar_lea.hbm %s19466_s13, 512  ;;  %s14375_s29 = scalar_lea.hbm %s20766_s6, 2048 }
0x1038   : > { %p14372_p1 = scmp.ne.s32.totalorder %s19466_s13, %s14371_s11  ;;  %p14376_p4 = scmp.lt.s32.totalorder %s19466_s13, %s20766_s6 }
0x1039   : > { %p14377_p11 = scmp.lt.s32.totalorder %s14375_s29, %s14371_s11 }
0x103a   : > { %p14373_p10 = pnand %p14372_p1, %p14711_p5 }
0x103b   : > { %p14378_p0 = por %p14377_p11, %p14376_p4 }
0x103c   : > { %p14374_p8 = pneg %p14373_p10 }
0x103e   : > { %p14379_p6 = pnand %p14378_p0, %p14374_p8 }
0x1040   : > { %14382 = shalt.err (!%p14379_p6)
}
0x1041   : > { %s14514_s4 = smov 128   ;;  %s14515_s24 = smov 8  }
0x1042   : > { %13764 = dma.vmem_to_hbm [thread:$0]  (%p14711_p5), %s19459_s10, 512, %s19466_s13, %s13126_s8, %s14514_s4, %s14514_s4, %s14515_s24  }
0x1043 PF: > { %s20767_s5 = sld [smem:[#allocation19_spill]]  ;;  %p13794_p3 = scmp.ge.s32.totalorder %s14489_s23, 2 }
0x1044   : > { %s20768_s21 = sld [smem:[#allocation24_spill]] }
0x1049   : > { %s13156_s9 = sand.u32 1, %s20767_s5  }
0x104a   : > { %p20769_p13 = scmp.ne.s32.totalorder %s20768_s21, 0  ;;  %s13157_s19 = scalar_lea.sflag [#allocation6], %s13156_s9 }
0x104c   : > { %p13784_p12 = pnand %p13794_p3, %p20769_p13 }
0x104e   : > { %p13785_p7 = pneg %p13784_p12 }
0x1050   : > { %14444 = dma.done.wait (%p13785_p7), %s13157_s19, 512  }
0x1051   : > { %14446 = vsyncadd (%p13785_p7), %s13157_s19, 4294966784  ;;  %s30_s23 = sadd.s32 1, %s14489_s23   ;;  %s20770_s19 = sld [smem:[#allocation22_spill]] }
0x1052   : > { %p27_p9 = scmp.ge.s32.totalorder %s30_s23, 6   ;;  %s20771_s21 = sld [smem:[#allocation25_spill]] }
0x1053   : > { %s20772_s3 = sld [smem:[#allocation27_spill]]  ;;  %s20773_s13 = smov %s14453_s14 }
0x1054   : > { %s20774_s14 = smov %s14457_s15  ;;  %s20775_s15 = smov %s14761_s16 }
0x1055   : > { %s20776_s16 = smov %s14465_s17  ;;  %s20777_s17 = smov %s14469_s18 }
0x1056   : > { %s20778_s18 = smov %s14734_s25  ;;  %s20779_s20 = smov %s14485_s22 }
0x1057   :  { %29 = sbr.rel (!%p27_p9) target bundleno = 22 (0x16), region = 134 }
0x1059   : > { %s20780_s22 = smov %s20772_s3 }
0x105c   :  { %13162 = vsyncpa [#allocation5], 1 }
0x105d   :  { %13164 = vsyncpa [#allocation5 + $0x1], 1 }
0x105e   :  { %13165 = vsyncpa [#allocation8], 1 }
0x105f   :  { %13167 = vsyncpa [#allocation8 + $0x1], 1 }
0x1060   :  { %13168 = vsyncpa [#allocation11], 1 }
0x1061   :  { %13169 = vsyncpa [#allocation6], 1 }
0x1062   :  { %13171 = vsyncpa [#allocation6 + $0x1], 1 }

</bundles_post_ra>
